<compile_context>
chip_gen: v7x
topology: tpu7x:2x2x1
jax: 0.10.0
libtpu: 0.0.40
codegen_flags: <defaults>
</compile_context>

<pallas_src>
import functools

import jax
import jax.numpy as jnp
from jax.experimental import pallas as pl
from jax.experimental.pallas import tpu as pltpu


# ------------------------------ small helpers --------------------------------

def _round_up(n, m):
    return ((n + m - 1) // m) * m


def _pick_col_tile(g, cap=1536):
    """Largest multiple of 128 <= cap that divides g (g is a multiple of 128)."""
    tn = min(g, cap)
    while g % tn != 0:
        tn -= 128
    return tn


def _pad_gate_cols(w, h, hp):
    """(..., 3h) -> (..., 3hp): each gate's h columns placed at the start of its hp block."""
    if h == hp:
        return w
    parts = []
    for g in range(3):
        blk = w[..., g * h:(g + 1) * h]
        pad = [(0, 0)] * (w.ndim - 1) + [(0, hp - h)]
        parts.append(jnp.pad(blk, pad))
    return jnp.concatenate(parts, axis=-1)


def _pad_rows(w, h, hp):
    """(h, C) -> (hp, C), zero rows appended."""
    if h == hp:
        return w
    return jnp.pad(w, ((0, hp - h), (0, 0)))


# -------------------- hoisted input-projection GEMM kernels ------------------

def _proj_bn_kernel(x_ref, scale_ref, shift_ref, w_ref, b_ref, o_ref):
    # Fused BatchNorm1d + ReLU prologue, then one (rc, F) x (F, tn) GEMM.
    x = jnp.maximum(x_ref[...] * scale_ref[...] + shift_ref[...], 0.0)
    y = jnp.dot(x.astype(jnp.bfloat16), w_ref[...],
                preferred_element_type=jnp.float32)
    o_ref[...] = (y + b_ref[...]).astype(o_ref.dtype)      # bf16 store


def _proj_pair_kernel(hf_ref, hb_ref, w_ref, b_ref, o_ref):
    # Layer-1 input projection: one K = 2*Hp matmul on [h_fwd | h_bwd].
    h = jnp.concatenate([hf_ref[...], hb_ref[...]], axis=-1)   # (rc, 2Hp) bf16
    y = jnp.dot(h, w_ref[...], preferred_element_type=jnp.float32)
    o_ref[...] = (y + b_ref[...]).astype(o_ref.dtype)      # bf16 store


_VMEM_LIMIT = 64 * 1024 * 1024


def _proj_l0(x2d, scale, shift, w, b, rc, tn):
    R, F = x2d.shape
    G = w.shape[1]
    return pl.pallas_call(
        _proj_bn_kernel,
        out_shape=jax.ShapeDtypeStruct((R, G), jnp.bfloat16),
        grid_spec=pltpu.PrefetchScalarGridSpec(
            num_scalar_prefetch=0,
            grid=(R // rc, G // tn),
            in_specs=[
                pl.BlockSpec((rc, F), lambda i, j: (i, 0)),
                pl.BlockSpec((1, F), lambda i, j: (0, 0)),
                pl.BlockSpec((1, F), lambda i, j: (0, 0)),
                pl.BlockSpec((F, tn), lambda i, j: (0, j)),
                pl.BlockSpec((1, tn), lambda i, j: (0, j)),
            ],
            out_specs=pl.BlockSpec((rc, tn), lambda i, j: (i, j)),
        ),
        compiler_params=pltpu.CompilerParams(
            dimension_semantics=("parallel", "parallel"),
            vmem_limit_bytes=_VMEM_LIMIT),
    )(x2d, scale, shift, w, b)


def _proj_l1(hf2d, hb2d, w, b, rc, tn):
    R, Hp = hf2d.shape
    G = w.shape[1]
    return pl.pallas_call(
        _proj_pair_kernel,
        out_shape=jax.ShapeDtypeStruct((R, G), jnp.bfloat16),
        grid_spec=pltpu.PrefetchScalarGridSpec(
            num_scalar_prefetch=0,
            grid=(R // rc, G // tn),
            in_specs=[
                pl.BlockSpec((rc, Hp), lambda i, j: (i, 0)),
                pl.BlockSpec((rc, Hp), lambda i, j: (i, 0)),
                pl.BlockSpec((2 * Hp, tn), lambda i, j: (0, j)),
                pl.BlockSpec((1, tn), lambda i, j: (0, j)),
            ],
            out_specs=pl.BlockSpec((rc, tn), lambda i, j: (i, j)),
        ),
        compiler_params=pltpu.CompilerParams(
            dimension_semantics=("parallel", "parallel"),
            vmem_limit_bytes=_VMEM_LIMIT),
    )(hf2d, hb2d, w, b)


# ------------------ time-chunked fused bidirectional GRU kernel --------------

def _bigru_chunk_kernel(gf_ref, gb_ref, whhf_ref, whhb_ref, bhnf_ref, bhnb_ref,
                        len_ref, of_ref, ob_ref, hf_ref, hb_ref, *, chunk, hp):
    c = pl.program_id(1)
    nc = pl.num_programs(1)

    @pl.when(c == 0)
    def _():
        hf_ref[...] = jnp.zeros_like(hf_ref)
        hb_ref[...] = jnp.zeros_like(hb_ref)

    lens = len_ref[...]                      # (Bt, 1) int32
    t0_f = c * chunk                         # first global time of the fwd chunk
    t0_b = (nc - 1 - c) * chunk              # first global time of the bwd chunk

    whh_f = whhf_ref[...]
    whh_b = whhb_ref[...]
    bhn_f = bhnf_ref[...]
    bhn_b = bhnb_ref[...]

    def cell(gx, h_prev, whh, bhn):
        # Single fused (Bt, 3Hp) recurrent matmul; bf16 operands, f32 accumulation.
        # b_hr/b_hz were folded into the hoisted projection; only b_hn stays here
        # (it must remain inside r*(W_hn h + b_hn) per PyTorch GRU semantics).
        hh = jnp.dot(h_prev.astype(jnp.bfloat16), whh,
                     preferred_element_type=jnp.float32)
        r = jax.nn.sigmoid(gx[:, :hp] + hh[:, :hp])
        z = jax.nn.sigmoid(gx[:, hp:2 * hp] + hh[:, hp:2 * hp])
        n = jnp.tanh(gx[:, 2 * hp:] + r * (hh[:, 2 * hp:] + bhn))
        return n + z * (h_prev - n)          # == (1-z)*n + z*h_prev

    hf = hf_ref[...]
    hb = hb_ref[...]
    # Fully unrolled chunk loop: the fwd and bwd cells are independent dependency
    # chains, so their MXU/VPU/EUP work interleaves within each step.
    for i in range(chunk):
        # ---- forward direction, global time t0_f + i ----
        hf_new = cell(gf_ref[i].astype(jnp.float32), hf, whh_f, bhn_f)
        vf = lens > (t0_f + i)                               # (Bt, 1) validity
        hf = jnp.where(vf, hf_new, hf)                       # hold state when padded
        of_ref[i] = jnp.where(vf, hf_new, 0.0).astype(of_ref.dtype)

        # ---- backward direction, global time t0_b + (chunk - 1 - i) ----
        j = chunk - 1 - i
        hb_new = cell(gb_ref[j].astype(jnp.float32), hb, whh_b, bhn_b)
        vb = lens > (t0_b + j)
        hb = jnp.where(vb, hb_new, hb)
        ob_ref[j] = jnp.where(vb, hb_new, 0.0).astype(ob_ref.dtype)

    hf_ref[...] = hf
    hb_ref[...] = hb


def _run_bigru(gates, lens_b1, whh_f, whh_b, bhn_f, bhn_b, *,
               hp, chunk, bt, out_dtype):
    Tp, Bp, _ = gates.shape                  # gates: (Tp, Bp, 6*hp) = [fwd 3hp | bwd 3hp]
    nc = Tp // chunk
    nb = Bp // bt
    kernel = functools.partial(_bigru_chunk_kernel, chunk=chunk, hp=hp)
    grid_spec = pltpu.PrefetchScalarGridSpec(
        num_scalar_prefetch=0,
        grid=(nb, nc),
        in_specs=[
            pl.BlockSpec((chunk, bt, 3 * hp), lambda b, c: (c, b, 0)),           # fwd gates
            pl.BlockSpec((chunk, bt, 3 * hp), lambda b, c: (nc - 1 - c, b, 1)),  # bwd gates
            pl.BlockSpec((hp, 3 * hp), lambda b, c: (0, 0)),                     # W_hh fwd
            pl.BlockSpec((hp, 3 * hp), lambda b, c: (0, 0)),                     # W_hh bwd
            pl.BlockSpec((1, hp), lambda b, c: (0, 0)),                          # b_hn fwd
            pl.BlockSpec((1, hp), lambda b, c: (0, 0)),                          # b_hn bwd
            pl.BlockSpec((bt, 1), lambda b, c: (b, 0)),                          # lengths
        ],
        out_specs=[
            pl.BlockSpec((chunk, bt, hp), lambda b, c: (c, b, 0)),               # fwd out
            pl.BlockSpec((chunk, bt, hp), lambda b, c: (nc - 1 - c, b, 0)),      # bwd out
        ],
        scratch_shapes=[pltpu.VMEM((bt, hp), jnp.float32),                       # h_fwd carry
                        pltpu.VMEM((bt, hp), jnp.float32)],                      # h_bwd carry
    )
    out_f, out_b = pl.pallas_call(
        kernel,
        out_shape=(jax.ShapeDtypeStruct((Tp, Bp, hp), out_dtype),
                   jax.ShapeDtypeStruct((Tp, Bp, hp), out_dtype)),
        grid_spec=grid_spec,
        compiler_params=pltpu.CompilerParams(
            # batch tiles are independent (parallel / megacore); time is sequential
            dimension_semantics=("parallel", "arbitrary"),
            vmem_limit_bytes=_VMEM_LIMIT),
    )(gates, gates, whh_f, whh_b, bhn_f, bhn_b, lens_b1)
    return out_f, out_b


# ------------------------------- full RNNBlock --------------------------------

def rnn_block_forward(x, lengths, params, *, hidden_size, chunk=8):
    """RNNBlock.forward: x (B, T, F), lengths (B,) -> (B, T, 2*hidden_size)."""
    B, T, F = x.shape
    H = hidden_size
    Hp = _round_up(H, 128)                  # lane-dense hidden width
    Tp = _round_up(T, chunk)
    Bp = _round_up(B, 8)                    # sublane-aligned batch

    xp = jnp.pad(x.astype(jnp.float32), ((0, Bp - B), (0, Tp - T), (0, 0)))
    lens_b1 = jnp.pad(lengths.astype(jnp.int32), (0, Bp - B)).reshape(Bp, 1)

    # Time-major flat rows for the hoisted input-projection GEMMs.
    x_tm = jnp.transpose(xp, (1, 0, 2)).reshape(Tp * Bp, F)
    rc = chunk * Bp                         # projection row tile (multiple of 8)
    bt = Bp if Bp <= 16 else 8              # recurrence batch tile
    tn = _pick_col_tile(6 * Hp)             # projection column tile (lane-dense)

    # Inference BatchNorm1d folded into per-feature scale/shift.
    scale = params["bn_gamma"] * jax.lax.rsqrt(params["bn_var"] + 1e-5)
    shift = params["bn_beta"] - params["bn_mean"] * scale
    scale = scale.reshape(1, F).astype(jnp.float32)
    shift = shift.reshape(1, F).astype(jnp.float32)

    def fold_bias(p):
        # b_ih + [b_hr, b_hz, 0]: r/z halves of b_hh fold into the hoisted
        # projection; b_hn stays inside the recurrence.
        b = p["bih"] + jnp.concatenate(
            [p["bhh"][:2 * H], jnp.zeros((H,), p["bhh"].dtype)])
        return _pad_gate_cols(b[None, :], H, Hp)              # (1, 3Hp)

    def rec_params(pf, pb):
        whh_f = _pad_rows(_pad_gate_cols(pf["whh"], H, Hp), H, Hp).astype(jnp.bfloat16)
        whh_b = _pad_rows(_pad_gate_cols(pb["whh"], H, Hp), H, Hp).astype(jnp.bfloat16)
        bhn_f = jnp.pad(pf["bhh"][2 * H:], (0, Hp - H)).reshape(1, Hp).astype(jnp.float32)
        bhn_b = jnp.pad(pb["bhh"][2 * H:], (0, Hp - H)).reshape(1, Hp).astype(jnp.float32)
        return whh_f, whh_b, bhn_f, bhn_b

    # ------------------------------- layer 0 ---------------------------------
    p0f, p0b = params["gru"][0]
    w0 = jnp.concatenate([_pad_gate_cols(p0f["wih"], H, Hp),
                          _pad_gate_cols(p0b["wih"], H, Hp)],
                         axis=1).astype(jnp.bfloat16)                     # (F, 6Hp)
    b0 = jnp.concatenate([fold_bias(p0f), fold_bias(p0b)],
                         axis=1).astype(jnp.float32)                      # (1, 6Hp)
    gates0 = _proj_l0(x_tm, scale, shift, w0, b0, rc, tn)                 # (Tp*Bp, 6Hp) bf16
    gates0 = gates0.reshape(Tp, Bp, 6 * Hp)

    whh0f, whh0b, bhn0f, bhn0b = rec_params(p0f, p0b)
    h0f, h0b = _run_bigru(gates0, lens_b1, whh0f, whh0b, bhn0f, bhn0b,
                          hp=Hp, chunk=chunk, bt=bt,
                          out_dtype=jnp.bfloat16)                         # (Tp,Bp,Hp) bf16 x2

    # (inter-layer dropout p=0.1 is identity at inference)

    # ------------------------------- layer 1 ---------------------------------
    p1f, p1b = params["gru"][1]

    def l1_w(p):
        w = _pad_gate_cols(p["wih"], H, Hp)            # (2H, 3Hp)
        return jnp.concatenate([_pad_rows(w[:H], H, Hp),    # rows applied to h_fwd
                                _pad_rows(w[H:], H, Hp)],   # rows applied to h_bwd
                               axis=0)                  # (2Hp, 3Hp)

    w1 = jnp.concatenate([l1_w(p1f), l1_w(p1b)], axis=1).astype(jnp.bfloat16)  # (2Hp, 6Hp)
    b1 = jnp.concatenate([fold_bias(p1f), fold_bias(p1b)],
                         axis=1).astype(jnp.float32)                           # (1, 6Hp)

    gates1 = _proj_l1(h0f.reshape(Tp * Bp, Hp), h0b.reshape(Tp * Bp, Hp),
                      w1, b1, rc, tn)                                     # (Tp*Bp, 6Hp) bf16
    gates1 = gates1.reshape(Tp, Bp, 6 * Hp)

    whh1f, whh1b, bhn1f, bhn1b = rec_params(p1f, p1b)
    h1f, h1b = _run_bigru(gates1, lens_b1, whh1f, whh1b, bhn1f, bhn1b,
                          hp=Hp, chunk=chunk, bt=bt,
                          out_dtype=jnp.float32)                          # (Tp,Bp,Hp) f32 x2

    out = jnp.concatenate([h1f[:T, :B, :H], h1b[:T, :B, :H]], axis=-1)    # (T, B, 2H)
    return jnp.transpose(out, (1, 0, 2))                                  # (B, T, 2H)


# ------------------------------ parameter init --------------------------------

def init_params(key, input_size, hidden_size):
    F, H = input_size, hidden_size
    ks = list(jax.random.split(key, 4 + 2 * 2 * 4))
    params = {
        "bn_gamma": jax.random.uniform(ks[0], (F,), jnp.float32, 0.5, 1.5),
        "bn_beta": jax.random.uniform(ks[1], (F,), jnp.float32, -0.5, 0.5),
        "bn_mean": jax.random.uniform(ks[2], (F,), jnp.float32, -0.1, 0.1),
        "bn_var": jax.random.uniform(ks[3], (F,), jnp.float32, 0.5, 1.5),
    }
    bound = 1.0 / float(H) ** 0.5
    gru = []
    ki = 4
    for layer in range(2):
        d_in = F if layer == 0 else 2 * H
        dirs = []
        for _ in range(2):  # forward, backward
            wih = jax.random.uniform(ks[ki + 0], (d_in, 3 * H), jnp.float32, -bound, bound)
            whh = jax.random.uniform(ks[ki + 1], (H, 3 * H), jnp.float32, -bound, bound)
            bih = jax.random.uniform(ks[ki + 2], (3 * H,), jnp.float32, -bound, bound)
            bhh = jax.random.uniform(ks[ki + 3], (3 * H,), jnp.float32, -bound, bound)
            ki += 4
            dirs.append({"wih": wih, "whh": whh, "bih": bih, "bhh": bhh})
        gru.append(dirs)
    params["gru"] = gru
    return params


# ----------------------------------- main --------------------------------------

if __name__ == "__main__":
    B, T, F, H = 2, 8, 16, 32
    key = jax.random.PRNGKey(0)
    kx, kp = jax.random.split(key)

    x = jax.random.normal(kx, (B, T, F), jnp.float32)
    lengths = jnp.array([T, T - 3], jnp.int32)      # max(lengths) == T
    params = init_params(kp, F, H)

    fwd = jax.jit(functools.partial(rnn_block_forward, hidden_size=H, chunk=8))
    out = jax.block_until_ready(fwd(x, lengths, params))

    assert out.shape == (B, T, 2 * H), out.shape
    assert bool(jnp.all(jnp.isfinite(out)))
    # pad_packed_sequence semantics: padded positions of sequence 1 must be zero.
    assert bool(jnp.all(out[1, T - 3:, :] == 0.0))
    print("KERNEL_OK")
</pallas_src>

<mosaic_0001>
module attributes {stable_mosaic.version = 11 : i64} {
  func.func @_proj_bn_kernel(%arg0: i32, %arg1: i32, %arg2: memref<64x16xf32, #tpu.memory_space<vmem>>, %arg3: memref<1x16xf32, #tpu.memory_space<vmem>>, %arg4: memref<1x16xf32, #tpu.memory_space<vmem>>, %arg5: memref<16x768xbf16, #tpu.memory_space<vmem>>, %arg6: memref<1x768xf32, #tpu.memory_space<vmem>>, %arg7: memref<64x768xbf16, #tpu.memory_space<vmem>>) attributes {dimension_semantics = [#tpu.dimension_semantics<parallel>, #tpu.dimension_semantics<parallel>], iteration_bounds = array<i64: 1, 1>, scalar_prefetch = 0 : i64, scratch_operands = 0 : i64, tpu.core_type = #tpu.core_type<tc>, window_params = [{transform_indices = @transform_0, window_bounds = array<i64: 64, 16>}, {pipeline_mode = #tpu.pipeline_mode<synchronous>, transform_indices = @transform_1, window_bounds = array<i64: 1, 16>}, {pipeline_mode = #tpu.pipeline_mode<synchronous>, transform_indices = @transform_2, window_bounds = array<i64: 1, 16>}, {transform_indices = @transform_3, window_bounds = array<i64: 16, 768>}, {transform_indices = @transform_4, window_bounds = array<i64: 1, 768>}, {transform_indices = @transform_5, window_bounds = array<i64: 64, 768>}]} {
    %c0 = arith.constant 0 : index
    %c0_0 = arith.constant 0 : index
    %0 = vector.load %arg2[%c0, %c0_0] : memref<64x16xf32, #tpu.memory_space<vmem>>, vector<64x16xf32>
    %c0_1 = arith.constant 0 : index
    %c0_2 = arith.constant 0 : index
    %1 = vector.load %arg3[%c0_1, %c0_2] : memref<1x16xf32, #tpu.memory_space<vmem>>, vector<1x16xf32>
    %2 = vector.broadcast %1 : vector<1x16xf32> to vector<64x16xf32>
    %3 = arith.mulf %0, %2 : vector<64x16xf32>
    %c0_3 = arith.constant 0 : index
    %c0_4 = arith.constant 0 : index
    %4 = vector.load %arg4[%c0_3, %c0_4] : memref<1x16xf32, #tpu.memory_space<vmem>>, vector<1x16xf32>
    %5 = vector.broadcast %4 : vector<1x16xf32> to vector<64x16xf32>
    %6 = arith.addf %3, %5 : vector<64x16xf32>
    %cst = arith.constant 0.000000e+00 : f32
    %7 = vector.broadcast %cst : f32 to vector<64x16xf32>
    %8 = arith.maximumf %6, %7 : vector<64x16xf32>
    %9 = arith.truncf %8 : vector<64x16xf32> to vector<64x16xbf16>
    %c0_5 = arith.constant 0 : index
    %c0_6 = arith.constant 0 : index
    %10 = vector.load %arg5[%c0_5, %c0_6] : memref<16x768xbf16, #tpu.memory_space<vmem>>, vector<16x768xbf16>
    %cst_7 = arith.constant dense<0.000000e+00> : vector<64x768xf32>
    %11 = tpu.matmul %9, %10, %cst_7 {dimension_numbers = #tpu.dot_dimension_numbers<[1], [0], [0], [1], [0, 0, 1, 1], [], []>} : vector<64x16xbf16>, vector<16x768xbf16>, vector<64x768xf32> -> vector<64x768xf32>
    %c0_8 = arith.constant 0 : index
    %c0_9 = arith.constant 0 : index
    %12 = vector.load %arg6[%c0_8, %c0_9] : memref<1x768xf32, #tpu.memory_space<vmem>>, vector<1x768xf32>
    %13 = vector.broadcast %12 : vector<1x768xf32> to vector<64x768xf32>
    %14 = arith.addf %11, %13 : vector<64x768xf32>
    %15 = arith.truncf %14 : vector<64x768xf32> to vector<64x768xbf16>
    %c0_10 = arith.constant 0 : index
    %c0_11 = arith.constant 0 : index
    %16 = vector.load %arg7[%c0_10, %c0_11] : memref<64x768xbf16, #tpu.memory_space<vmem>>, vector<64x768xbf16>
    tpu.vector_store %arg7[%c0_10, %c0_11], %15 {strides = array<i32>} : memref<64x768xbf16, #tpu.memory_space<vmem>>, vector<64x768xbf16>,
    return
  }
  func.func @transform_0(%arg0: i32, %arg1: i32) -> (i32, i32) {
    %c0_i32 = arith.constant 0 : i32
    %c0_i32_0 = arith.constant 0 : i32
    return %arg0, %c0_i32 : i32, i32
  }
  func.func @transform_1(%arg0: i32, %arg1: i32) -> (i32, i32) {
    %c0_i32 = arith.constant 0 : i32
    %c0_i32_0 = arith.constant 0 : i32
    %c0_i32_1 = arith.constant 0 : i32
    return %c0_i32, %c0_i32_0 : i32, i32
  }
  func.func @transform_2(%arg0: i32, %arg1: i32) -> (i32, i32) {
    %c0_i32 = arith.constant 0 : i32
    %c0_i32_0 = arith.constant 0 : i32
    %c0_i32_1 = arith.constant 0 : i32
    return %c0_i32, %c0_i32_0 : i32, i32
  }
  func.func @transform_3(%arg0: i32, %arg1: i32) -> (i32, i32) {
    %c0_i32 = arith.constant 0 : i32
    %c0_i32_0 = arith.constant 0 : i32
    return %c0_i32, %arg1 : i32, i32
  }
  func.func @transform_4(%arg0: i32, %arg1: i32) -> (i32, i32) {
    %c0_i32 = arith.constant 0 : i32
    %c0_i32_0 = arith.constant 0 : i32
    return %c0_i32, %arg1 : i32, i32
  }
  func.func @transform_5(%arg0: i32, %arg1: i32) -> (i32, i32) {
    %c0_i32 = arith.constant 0 : i32
    return %arg0, %arg1 : i32, i32
  }
}

module attributes {stable_mosaic.version = 11 : i64} {
  func.func @_bigru_chunk_kernel(%arg0: i32, %arg1: i32, %arg2: memref<8x8x384xbf16, #tpu.memory_space<vmem>>, %arg3: memref<8x8x384xbf16, #tpu.memory_space<vmem>>, %arg4: memref<128x384xbf16, #tpu.memory_space<vmem>>, %arg5: memref<128x384xbf16, #tpu.memory_space<vmem>>, %arg6: memref<1x128xf32, #tpu.memory_space<vmem>>, %arg7: memref<1x128xf32, #tpu.memory_space<vmem>>, %arg8: memref<8x1xi32, #tpu.memory_space<vmem>>, %arg9: memref<8x8x128xbf16, #tpu.memory_space<vmem>>, %arg10: memref<8x8x128xbf16, #tpu.memory_space<vmem>>, %arg11: memref<8x128xf32, #tpu.memory_space<vmem>>, %arg12: memref<8x128xf32, #tpu.memory_space<vmem>>) attributes {dimension_semantics = [#tpu.dimension_semantics<parallel>, #tpu.dimension_semantics<arbitrary>], iteration_bounds = array<i64: 1, 1>, scalar_prefetch = 0 : i64, scratch_operands = 2 : i64, tpu.core_type = #tpu.core_type<tc>, window_params = [{transform_indices = @transform_0, window_bounds = array<i64: 8, 8, 384>}, {transform_indices = @transform_1, window_bounds = array<i64: 8, 8, 384>}, {pipeline_mode = #tpu.pipeline_mode<synchronous>, transform_indices = @transform_2, window_bounds = array<i64: 128, 384>}, {pipeline_mode = #tpu.pipeline_mode<synchronous>, transform_indices = @transform_3, window_bounds = array<i64: 128, 384>}, {pipeline_mode = #tpu.pipeline_mode<synchronous>, transform_indices = @transform_4, window_bounds = array<i64: 1, 128>}, {pipeline_mode = #tpu.pipeline_mode<synchronous>, transform_indices = @transform_5, window_bounds = array<i64: 1, 128>}, {transform_indices = @transform_6, window_bounds = array<i64: 8, 1>}, {transform_indices = @transform_7, window_bounds = array<i64: 8, 8, 128>}, {transform_indices = @transform_8, window_bounds = array<i64: 8, 8, 128>}]} {
    %c0_i32 = arith.constant 0 : i32
    %0 = arith.cmpi eq, %arg1, %c0_i32 : i32
    %1 = arith.extui %0 : i1 to i32
    %c0_i32_0 = arith.constant 0 : i32
    %2 = arith.cmpi ne, %1, %c0_i32_0 : i32
    scf.if %2 {
      %cst_181 = arith.constant 0.000000e+00 : f32
      %735 = vector.broadcast %cst_181 : f32 to vector<8x128xf32>
      %c0_182 = arith.constant 0 : index
      %c0_183 = arith.constant 0 : index
      %736 = vector.load %arg11[%c0_182, %c0_183] : memref<8x128xf32, #tpu.memory_space<vmem>>, vector<8x128xf32>
      tpu.vector_store %arg11[%c0_182, %c0_183], %735 {strides = array<i32>} : memref<8x128xf32, #tpu.memory_space<vmem>>, vector<8x128xf32>,
      %cst_184 = arith.constant 0.000000e+00 : f32
      %737 = vector.broadcast %cst_184 : f32 to vector<8x128xf32>
      %c0_185 = arith.constant 0 : index
      %c0_186 = arith.constant 0 : index
      %738 = vector.load %arg12[%c0_185, %c0_186] : memref<8x128xf32, #tpu.memory_space<vmem>>, vector<8x128xf32>
      tpu.vector_store %arg12[%c0_185, %c0_186], %737 {strides = array<i32>} : memref<8x128xf32, #tpu.memory_space<vmem>>, vector<8x128xf32>,
    } else {
    }
    %c0 = arith.constant 0 : index
    %c0_1 = arith.constant 0 : index
    %3 = vector.load %arg8[%c0, %c0_1] : memref<8x1xi32, #tpu.memory_space<vmem>>, vector<8x1xi32>
    %c8_i32 = arith.constant 8 : i32
    %4 = arith.muli %arg1, %c8_i32 : i32
    %c0_i32_2 = arith.constant 0 : i32
    %5 = arith.subi %c0_i32_2, %arg1 : i32
    %c8_i32_3 = arith.constant 8 : i32
    %6 = arith.muli %5, %c8_i32_3 : i32
    %c0_4 = arith.constant 0 : index
    %c0_5 = arith.constant 0 : index
    %7 = vector.load %arg4[%c0_4, %c0_5] : memref<128x384xbf16, #tpu.memory_space<vmem>>, vector<128x384xbf16>
    %c0_6 = arith.constant 0 : index
    %c0_7 = arith.constant 0 : index
    %8 = vector.load %arg5[%c0_6, %c0_7] : memref<128x384xbf16, #tpu.memory_space<vmem>>, vector<128x384xbf16>
    %c0_8 = arith.constant 0 : index
    %c0_9 = arith.constant 0 : index
    %9 = vector.load %arg6[%c0_8, %c0_9] : memref<1x128xf32, #tpu.memory_space<vmem>>, vector<1x128xf32>
    %c0_10 = arith.constant 0 : index
    %c0_11 = arith.constant 0 : index
    %10 = vector.load %arg7[%c0_10, %c0_11] : memref<1x128xf32, #tpu.memory_space<vmem>>, vector<1x128xf32>
    %c0_12 = arith.constant 0 : index
    %c0_13 = arith.constant 0 : index
    %11 = vector.load %arg11[%c0_12, %c0_13] : memref<8x128xf32, #tpu.memory_space<vmem>>, vector<8x128xf32>
    %c0_14 = arith.constant 0 : index
    %c0_15 = arith.constant 0 : index
    %12 = vector.load %arg12[%c0_14, %c0_15] : memref<8x128xf32, #tpu.memory_space<vmem>>, vector<8x128xf32>
    %c0_16 = arith.constant 0 : index
    %c0_17 = arith.constant 0 : index
    %c0_18 = arith.constant 0 : index
    %13 = vector.load %arg2[%c0_16, %c0_17, %c0_18] : memref<8x8x384xbf16, #tpu.memory_space<vmem>>, vector<1x8x384xbf16>
    %14 = vector.shape_cast %13 : vector<1x8x384xbf16> to vector<8x384xbf16>
    %15 = arith.extf %14 : vector<8x384xbf16> to vector<8x384xf32>
    %16 = arith.truncf %11 : vector<8x128xf32> to vector<8x128xbf16>
    %cst = arith.constant dense<0.000000e+00> : vector<8x384xf32>
    %17 = tpu.matmul %16, %7, %cst {dimension_numbers = #tpu.dot_dimension_numbers<[1], [0], [0], [1], [0, 0, 1, 1], [], []>} : vector<8x128xbf16>, vector<128x384xbf16>, vector<8x384xf32> -> vector<8x384xf32>
    %18 = vector.extract_strided_slice %15 {offsets = [0, 0], sizes = [8, 128], strides = [1, 1]} : vector<8x384xf32> to vector<8x128xf32>
    %19 = vector.extract_strided_slice %17 {offsets = [0, 0], sizes = [8, 128], strides = [1, 1]} : vector<8x384xf32> to vector<8x128xf32>
    %20 = arith.addf %18, %19 : vector<8x128xf32>
    %21 = arith.negf %20 : vector<8x128xf32>
    %22 = math.exp %21 : vector<8x128xf32>
    %cst_19 = arith.constant 1.000000e+00 : f32
    %23 = vector.broadcast %cst_19 : f32 to vector<8x128xf32>
    %24 = arith.addf %23, %22 : vector<8x128xf32>
    %25 = arith.divf %23, %24 : vector<8x128xf32>
    %26 = vector.extract_strided_slice %15 {offsets = [0, 128], sizes = [8, 128], strides = [1, 1]} : vector<8x384xf32> to vector<8x128xf32>
    %27 = vector.extract_strided_slice %17 {offsets = [0, 128], sizes = [8, 128], strides = [1, 1]} : vector<8x384xf32> to vector<8x128xf32>
    %28 = arith.addf %26, %27 : vector<8x128xf32>
    %29 = arith.negf %28 : vector<8x128xf32>
    %30 = math.exp %29 : vector<8x128xf32>
    %cst_20 = arith.constant 1.000000e+00 : f32
    %31 = vector.broadcast %cst_20 : f32 to vector<8x128xf32>
    %32 = arith.addf %31, %30 : vector<8x128xf32>
    %33 = arith.divf %31, %32 : vector<8x128xf32>
    %34 = vector.extract_strided_slice %15 {offsets = [0, 256], sizes = [8, 128], strides = [1, 1]} : vector<8x384xf32> to vector<8x128xf32>
    %35 = vector.extract_strided_slice %17 {offsets = [0, 256], sizes = [8, 128], strides = [1, 1]} : vector<8x384xf32> to vector<8x128xf32>
    %36 = vector.broadcast %9 : vector<1x128xf32> to vector<8x128xf32>
    %37 = arith.addf %35, %36 : vector<8x128xf32>
    %38 = arith.mulf %25, %37 : vector<8x128xf32>
    %39 = arith.addf %34, %38 : vector<8x128xf32>
    %40 = math.tanh %39 : vector<8x128xf32>
    %41 = arith.subf %11, %40 : vector<8x128xf32>
    %42 = arith.mulf %33, %41 : vector<8x128xf32>
    %43 = arith.addf %40, %42 : vector<8x128xf32>
    %c0_i32_21 = arith.constant 0 : i32
    %44 = arith.addi %4, %c0_i32_21 : i32
    %45 = vector.broadcast %44 : i32 to vector<8x1xi32>
    %46 = arith.cmpi sgt, %3, %45 : vector<8x1xi32>
    %47 = vector.shape_cast %46 : vector<8x1xi1> to vector<8x1xi1>
    %48 = vector.broadcast %47 : vector<8x1xi1> to vector<8x128xi1>
    %49 = arith.select %48, %43, %11 : vector<8x128xi1>, vector<8x128xf32>
    %cst_22 = arith.constant 0.000000e+00 : f32
    %50 = vector.shape_cast %46 : vector<8x1xi1> to vector<8x1xi1>
    %51 = vector.broadcast %50 : vector<8x1xi1> to vector<8x128xi1>
    %52 = vector.broadcast %cst_22 : f32 to vector<8x128xf32>
    %53 = arith.select %51, %43, %52 : vector<8x128xi1>, vector<8x128xf32>
    %54 = arith.truncf %53 : vector<8x128xf32> to vector<8x128xbf16>
    %c0_23 = arith.constant 0 : index
    %c0_24 = arith.constant 0 : index
    %c0_25 = arith.constant 0 : index
    %55 = vector.load %arg9[%c0_23, %c0_24, %c0_25] : memref<8x8x128xbf16, #tpu.memory_space<vmem>>, vector<1x8x128xbf16>
    %56 = vector.shape_cast %55 : vector<1x8x128xbf16> to vector<8x128xbf16>
    %57 = vector.shape_cast %54 : vector<8x128xbf16> to vector<1x8x128xbf16>
    tpu.vector_store %arg9[%c0_23, %c0_24, %c0_25], %57 {strides = array<i32>} : memref<8x8x128xbf16, #tpu.memory_space<vmem>>, vector<1x8x128xbf16>,
    %c7 = arith.constant 7 : index
    %c0_26 = arith.constant 0 : index
    %c0_27 = arith.constant 0 : index
    %58 = vector.load %arg3[%c7, %c0_26, %c0_27] : memref<8x8x384xbf16, #tpu.memory_space<vmem>>, vector<1x8x384xbf16>
    %59 = vector.shape_cast %58 : vector<1x8x384xbf16> to vector<8x384xbf16>
    %60 = arith.extf %59 : vector<8x384xbf16> to vector<8x384xf32>
    %61 = arith.truncf %12 : vector<8x128xf32> to vector<8x128xbf16>
    %cst_28 = arith.constant dense<0.000000e+00> : vector<8x384xf32>
    %62 = tpu.matmul %61, %8, %cst_28 {dimension_numbers = #tpu.dot_dimension_numbers<[1], [0], [0], [1], [0, 0, 1, 1], [], []>} : vector<8x128xbf16>, vector<128x384xbf16>, vector<8x384xf32> -> vector<8x384xf32>
    %63 = vector.extract_strided_slice %60 {offsets = [0, 0], sizes = [8, 128], strides = [1, 1]} : vector<8x384xf32> to vector<8x128xf32>
    %64 = vector.extract_strided_slice %62 {offsets = [0, 0], sizes = [8, 128], strides = [1, 1]} : vector<8x384xf32> to vector<8x128xf32>
    %65 = arith.addf %63, %64 : vector<8x128xf32>
    %66 = arith.negf %65 : vector<8x128xf32>
    %67 = math.exp %66 : vector<8x128xf32>
    %cst_29 = arith.constant 1.000000e+00 : f32
    %68 = vector.broadcast %cst_29 : f32 to vector<8x128xf32>
    %69 = arith.addf %68, %67 : vector<8x128xf32>
    %70 = arith.divf %68, %69 : vector<8x128xf32>
    %71 = vector.extract_strided_slice %60 {offsets = [0, 128], sizes = [8, 128], strides = [1, 1]} : vector<8x384xf32> to vector<8x128xf32>
    %72 = vector.extract_strided_slice %62 {offsets = [0, 128], sizes = [8, 128], strides = [1, 1]} : vector<8x384xf32> to vector<8x128xf32>
    %73 = arith.addf %71, %72 : vector<8x128xf32>
    %74 = arith.negf %73 : vector<8x128xf32>
    %75 = math.exp %74 : vector<8x128xf32>
    %cst_30 = arith.constant 1.000000e+00 : f32
    %76 = vector.broadcast %cst_30 : f32 to vector<8x128xf32>
    %77 = arith.addf %76, %75 : vector<8x128xf32>
    %78 = arith.divf %76, %77 : vector<8x128xf32>
    %79 = vector.extract_strided_slice %60 {offsets = [0, 256], sizes = [8, 128], strides = [1, 1]} : vector<8x384xf32> to vector<8x128xf32>
    %80 = vector.extract_strided_slice %62 {offsets = [0, 256], sizes = [8, 128], strides = [1, 1]} : vector<8x384xf32> to vector<8x128xf32>
    %81 = vector.broadcast %10 : vector<1x128xf32> to vector<8x128xf32>
    %82 = arith.addf %80, %81 : vector<8x128xf32>
    %83 = arith.mulf %70, %82 : vector<8x128xf32>
    %84 = arith.addf %79, %83 : vector<8x128xf32>
    %85 = math.tanh %84 : vector<8x128xf32>
    %86 = arith.subf %12, %85 : vector<8x128xf32>
    %87 = arith.mulf %78, %86 : vector<8x128xf32>
    %88 = arith.addf %85, %87 : vector<8x128xf32>
    %c7_i32 = arith.constant 7 : i32
    %89 = arith.addi %6, %c7_i32 : i32
    %90 = vector.broadcast %89 : i32 to vector<8x1xi32>
    %91 = arith.cmpi sgt, %3, %90 : vector<8x1xi32>
    %92 = vector.shape_cast %91 : vector<8x1xi1> to vector<8x1xi1>
    %93 = vector.broadcast %92 : vector<8x1xi1> to vector<8x128xi1>
    %94 = arith.select %93, %88, %12 : vector<8x128xi1>, vector<8x128xf32>
    %cst_31 = arith.constant 0.000000e+00 : f32
    %95 = vector.shape_cast %91 : vector<8x1xi1> to vector<8x1xi1>
    %96 = vector.broadcast %95 : vector<8x1xi1> to vector<8x128xi1>
    %97 = vector.broadcast %cst_31 : f32 to vector<8x128xf32>
    %98 = arith.select %96, %88, %97 : vector<8x128xi1>, vector<8x128xf32>
    %99 = arith.truncf %98 : vector<8x128xf32> to vector<8x128xbf16>
    %c7_32 = arith.constant 7 : index
    %c0_33 = arith.constant 0 : index
    %c0_34 = arith.constant 0 : index
    %100 = vector.load %arg10[%c7_32, %c0_33, %c0_34] : memref<8x8x128xbf16, #tpu.memory_space<vmem>>, vector<1x8x128xbf16>
    %101 = vector.shape_cast %100 : vector<1x8x128xbf16> to vector<8x128xbf16>
    %102 = vector.shape_cast %99 : vector<8x128xbf16> to vector<1x8x128xbf16>
    tpu.vector_store %arg10[%c7_32, %c0_33, %c0_34], %102 {strides = array<i32>} : memref<8x8x128xbf16, #tpu.memory_space<vmem>>, vector<1x8x128xbf16>,
    %c1 = arith.constant 1 : index
    %c0_35 = arith.constant 0 : index
    %c0_36 = arith.constant 0 : index
    %103 = vector.load %arg2[%c1, %c0_35, %c0_36] : memref<8x8x384xbf16, #tpu.memory_space<vmem>>, vector<1x8x384xbf16>
    %104 = vector.shape_cast %103 : vector<1x8x384xbf16> to vector<8x384xbf16>
    %105 = arith.extf %104 : vector<8x384xbf16> to vector<8x384xf32>
    %106 = arith.truncf %49 : vector<8x128xf32> to vector<8x128xbf16>
    %cst_37 = arith.constant dense<0.000000e+00> : vector<8x384xf32>
    %107 = tpu.matmul %106, %7, %cst_37 {dimension_numbers = #tpu.dot_dimension_numbers<[1], [0], [0], [1], [0, 0, 1, 1], [], []>} : vector<8x128xbf16>, vector<128x384xbf16>, vector<8x384xf32> -> vector<8x384xf32>
    %108 = vector.extract_strided_slice %105 {offsets = [0, 0], sizes = [8, 128], strides = [1, 1]} : vector<8x384xf32> to vector<8x128xf32>
    %109 = vector.extract_strided_slice %107 {offsets = [0, 0], sizes = [8, 128], strides = [1, 1]} : vector<8x384xf32> to vector<8x128xf32>
    %110 = arith.addf %108, %109 : vector<8x128xf32>
    %111 = arith.negf %110 : vector<8x128xf32>
    %112 = math.exp %111 : vector<8x128xf32>
    %cst_38 = arith.constant 1.000000e+00 : f32
    %113 = vector.broadcast %cst_38 : f32 to vector<8x128xf32>
    %114 = arith.addf %113, %112 : vector<8x128xf32>
    %115 = arith.divf %113, %114 : vector<8x128xf32>
    %116 = vector.extract_strided_slice %105 {offsets = [0, 128], sizes = [8, 128], strides = [1, 1]} : vector<8x384xf32> to vector<8x128xf32>
    %117 = vector.extract_strided_slice %107 {offsets = [0, 128], sizes = [8, 128], strides = [1, 1]} : vector<8x384xf32> to vector<8x128xf32>
    %118 = arith.addf %116, %117 : vector<8x128xf32>
    %119 = arith.negf %118 : vector<8x128xf32>
    %120 = math.exp %119 : vector<8x128xf32>
    %cst_39 = arith.constant 1.000000e+00 : f32
    %121 = vector.broadcast %cst_39 : f32 to vector<8x128xf32>
    %122 = arith.addf %121, %120 : vector<8x128xf32>
    %123 = arith.divf %121, %122 : vector<8x128xf32>
    %124 = vector.extract_strided_slice %105 {offsets = [0, 256], sizes = [8, 128], strides = [1, 1]} : vector<8x384xf32> to vector<8x128xf32>
    %125 = vector.extract_strided_slice %107 {offsets = [0, 256], sizes = [8, 128], strides = [1, 1]} : vector<8x384xf32> to vector<8x128xf32>
    %126 = vector.broadcast %9 : vector<1x128xf32> to vector<8x128xf32>
    %127 = arith.addf %125, %126 : vector<8x128xf32>
    %128 = arith.mulf %115, %127 : vector<8x128xf32>
    %129 = arith.addf %124, %128 : vector<8x128xf32>
    %130 = math.tanh %129 : vector<8x128xf32>
    %131 = arith.subf %49, %130 : vector<8x128xf32>
    %132 = arith.mulf %123, %131 : vector<8x128xf32>
    %133 = arith.addf %130, %132 : vector<8x128xf32>
    %c1_i32 = arith.constant 1 : i32
    %134 = arith.addi %4, %c1_i32 : i32
    %135 = vector.broadcast %134 : i32 to vector<8x1xi32>
    %136 = arith.cmpi sgt, %3, %135 : vector<8x1xi32>
    %137 = vector.shape_cast %136 : vector<8x1xi1> to vector<8x1xi1>
    %138 = vector.broadcast %137 : vector<8x1xi1> to vector<8x128xi1>
    %139 = arith.select %138, %133, %49 : vector<8x128xi1>, vector<8x128xf32>
    %cst_40 = arith.constant 0.000000e+00 : f32
    %140 = vector.shape_cast %136 : vector<8x1xi1> to vector<8x1xi1>
    %141 = vector.broadcast %140 : vector<8x1xi1> to vector<8x128xi1>
    %142 = vector.broadcast %cst_40 : f32 to vector<8x128xf32>
    %143 = arith.select %141, %133, %142 : vector<8x128xi1>, vector<8x128xf32>
    %144 = arith.truncf %143 : vector<8x128xf32> to vector<8x128xbf16>
    %c1_41 = arith.constant 1 : index
    %c0_42 = arith.constant 0 : index
    %c0_43 = arith.constant 0 : index
    %145 = vector.load %arg9[%c1_41, %c0_42, %c0_43] : memref<8x8x128xbf16, #tpu.memory_space<vmem>>, vector<1x8x128xbf16>
    %146 = vector.shape_cast %145 : vector<1x8x128xbf16> to vector<8x128xbf16>
    %147 = vector.shape_cast %144 : vector<8x128xbf16> to vector<1x8x128xbf16>
    tpu.vector_store %arg9[%c1_41, %c0_42, %c0_43], %147 {strides = array<i32>} : memref<8x8x128xbf16, #tpu.memory_space<vmem>>, vector<1x8x128xbf16>,
    %c6 = arith.constant 6 : index
    %c0_44 = arith.constant 0 : index
    %c0_45 = arith.constant 0 : index
    %148 = vector.load %arg3[%c6, %c0_44, %c0_45] : memref<8x8x384xbf16, #tpu.memory_space<vmem>>, vector<1x8x384xbf16>
    %149 = vector.shape_cast %148 : vector<1x8x384xbf16> to vector<8x384xbf16>
    %150 = arith.extf %149 : vector<8x384xbf16> to vector<8x384xf32>
    %151 = arith.truncf %94 : vector<8x128xf32> to vector<8x128xbf16>
    %cst_46 = arith.constant dense<0.000000e+00> : vector<8x384xf32>
    %152 = tpu.matmul %151, %8, %cst_46 {dimension_numbers = #tpu.dot_dimension_numbers<[1], [0], [0], [1], [0, 0, 1, 1], [], []>} : vector<8x128xbf16>, vector<128x384xbf16>, vector<8x384xf32> -> vector<8x384xf32>
    %153 = vector.extract_strided_slice %150 {offsets = [0, 0], sizes = [8, 128], strides = [1, 1]} : vector<8x384xf32> to vector<8x128xf32>
    %154 = vector.extract_strided_slice %152 {offsets = [0, 0], sizes = [8, 128], strides = [1, 1]} : vector<8x384xf32> to vector<8x128xf32>
    %155 = arith.addf %153, %154 : vector<8x128xf32>
    %156 = arith.negf %155 : vector<8x128xf32>
    %157 = math.exp %156 : vector<8x128xf32>
    %cst_47 = arith.constant 1.000000e+00 : f32
    %158 = vector.broadcast %cst_47 : f32 to vector<8x128xf32>
    %159 = arith.addf %158, %157 : vector<8x128xf32>
    %160 = arith.divf %158, %159 : vector<8x128xf32>
    %161 = vector.extract_strided_slice %150 {offsets = [0, 128], sizes = [8, 128], strides = [1, 1]} : vector<8x384xf32> to vector<8x128xf32>
    %162 = vector.extract_strided_slice %152 {offsets = [0, 128], sizes = [8, 128], strides = [1, 1]} : vector<8x384xf32> to vector<8x128xf32>
    %163 = arith.addf %161, %162 : vector<8x128xf32>
    %164 = arith.negf %163 : vector<8x128xf32>
    %165 = math.exp %164 : vector<8x128xf32>
    %cst_48 = arith.constant 1.000000e+00 : f32
    %166 = vector.broadcast %cst_48 : f32 to vector<8x128xf32>
    %167 = arith.addf %166, %165 : vector<8x128xf32>
    %168 = arith.divf %166, %167 : vector<8x128xf32>
    %169 = vector.extract_strided_slice %150 {offsets = [0, 256], sizes = [8, 128], strides = [1, 1]} : vector<8x384xf32> to vector<8x128xf32>
    %170 = vector.extract_strided_slice %152 {offsets = [0, 256], sizes = [8, 128], strides = [1, 1]} : vector<8x384xf32> to vector<8x128xf32>
    %171 = vector.broadcast %10 : vector<1x128xf32> to vector<8x128xf32>
    %172 = arith.addf %170, %171 : vector<8x128xf32>
    %173 = arith.mulf %160, %172 : vector<8x128xf32>
    %174 = arith.addf %169, %173 : vector<8x128xf32>
    %175 = math.tanh %174 : vector<8x128xf32>
    %176 = arith.subf %94, %175 : vector<8x128xf32>
    %177 = arith.mulf %168, %176 : vector<8x128xf32>
    %178 = arith.addf %175, %177 : vector<8x128xf32>
    %c6_i32 = arith.constant 6 : i32
    %179 = arith.addi %6, %c6_i32 : i32
    %180 = vector.broadcast %179 : i32 to vector<8x1xi32>
    %181 = arith.cmpi sgt, %3, %180 : vector<8x1xi32>
    %182 = vector.shape_cast %181 : vector<8x1xi1> to vector<8x1xi1>
    %183 = vector.broadcast %182 : vector<8x1xi1> to vector<8x128xi1>
    %184 = arith.select %183, %178, %94 : vector<8x128xi1>, vector<8x128xf32>
    %cst_49 = arith.constant 0.000000e+00 : f32
    %185 = vector.shape_cast %181 : vector<8x1xi1> to vector<8x1xi1>
    %186 = vector.broadcast %185 : vector<8x1xi1> to vector<8x128xi1>
    %187 = vector.broadcast %cst_49 : f32 to vector<8x128xf32>
    %188 = arith.select %186, %178, %187 : vector<8x128xi1>, vector<8x128xf32>
    %189 = arith.truncf %188 : vector<8x128xf32> to vector<8x128xbf16>
    %c6_50 = arith.constant 6 : index
    %c0_51 = arith.constant 0 : index
    %c0_52 = arith.constant 0 : index
    %190 = vector.load %arg10[%c6_50, %c0_51, %c0_52] : memref<8x8x128xbf16, #tpu.memory_space<vmem>>, vector<1x8x128xbf16>
    %191 = vector.shape_cast %190 : vector<1x8x128xbf16> to vector<8x128xbf16>
    %192 = vector.shape_cast %189 : vector<8x128xbf16> to vector<1x8x128xbf16>
    tpu.vector_store %arg10[%c6_50, %c0_51, %c0_52], %192 {strides = array<i32>} : memref<8x8x128xbf16, #tpu.memory_space<vmem>>, vector<1x8x128xbf16>,
    %c2 = arith.constant 2 : index
    %c0_53 = arith.constant 0 : index
    %c0_54 = arith.constant 0 : index
    %193 = vector.load %arg2[%c2, %c0_53, %c0_54] : memref<8x8x384xbf16, #tpu.memory_space<vmem>>, vector<1x8x384xbf16>
    %194 = vector.shape_cast %193 : vector<1x8x384xbf16> to vector<8x384xbf16>
    %195 = arith.extf %194 : vector<8x384xbf16> to vector<8x384xf32>
    %196 = arith.truncf %139 : vector<8x128xf32> to vector<8x128xbf16>
    %cst_55 = arith.constant dense<0.000000e+00> : vector<8x384xf32>
    %197 = tpu.matmul %196, %7, %cst_55 {dimension_numbers = #tpu.dot_dimension_numbers<[1], [0], [0], [1], [0, 0, 1, 1], [], []>} : vector<8x128xbf16>, vector<128x384xbf16>, vector<8x384xf32> -> vector<8x384xf32>
    %198 = vector.extract_strided_slice %195 {offsets = [0, 0], sizes = [8, 128], strides = [1, 1]} : vector<8x384xf32> to vector<8x128xf32>
    %199 = vector.extract_strided_slice %197 {offsets = [0, 0], sizes = [8, 128], strides = [1, 1]} : vector<8x384xf32> to vector<8x128xf32>
    %200 = arith.addf %198, %199 : vector<8x128xf32>
    %201 = arith.negf %200 : vector<8x128xf32>
    %202 = math.exp %201 : vector<8x128xf32>
    %cst_56 = arith.constant 1.000000e+00 : f32
    %203 = vector.broadcast %cst_56 : f32 to vector<8x128xf32>
    %204 = arith.addf %203, %202 : vector<8x128xf32>
    %205 = arith.divf %203, %204 : vector<8x128xf32>
    %206 = vector.extract_strided_slice %195 {offsets = [0, 128], sizes = [8, 128], strides = [1, 1]} : vector<8x384xf32> to vector<8x128xf32>
    %207 = vector.extract_strided_slice %197 {offsets = [0, 128], sizes = [8, 128], strides = [1, 1]} : vector<8x384xf32> to vector<8x128xf32>
    %208 = arith.addf %206, %207 : vector<8x128xf32>
    %209 = arith.negf %208 : vector<8x128xf32>
    %210 = math.exp %209 : vector<8x128xf32>
    %cst_57 = arith.constant 1.000000e+00 : f32
    %211 = vector.broadcast %cst_57 : f32 to vector<8x128xf32>
    %212 = arith.addf %211, %210 : vector<8x128xf32>
    %213 = arith.divf %211, %212 : vector<8x128xf32>
    %214 = vector.extract_strided_slice %195 {offsets = [0, 256], sizes = [8, 128], strides = [1, 1]} : vector<8x384xf32> to vector<8x128xf32>
    %215 = vector.extract_strided_slice %197 {offsets = [0, 256], sizes = [8, 128], strides = [1, 1]} : vector<8x384xf32> to vector<8x128xf32>
    %216 = vector.broadcast %9 : vector<1x128xf32> to vector<8x128xf32>
    %217 = arith.addf %215, %216 : vector<8x128xf32>
    %218 = arith.mulf %205, %217 : vector<8x128xf32>
    %219 = arith.addf %214, %218 : vector<8x128xf32>
    %220 = math.tanh %219 : vector<8x128xf32>
    %221 = arith.subf %139, %220 : vector<8x128xf32>
    %222 = arith.mulf %213, %221 : vector<8x128xf32>
    %223 = arith.addf %220, %222 : vector<8x128xf32>
    %c2_i32 = arith.constant 2 : i32
    %224 = arith.addi %4, %c2_i32 : i32
    %225 = vector.broadcast %224 : i32 to vector<8x1xi32>
    %226 = arith.cmpi sgt, %3, %225 : vector<8x1xi32>
    %227 = vector.shape_cast %226 : vector<8x1xi1> to vector<8x1xi1>
    %228 = vector.broadcast %227 : vector<8x1xi1> to vector<8x128xi1>
    %229 = arith.select %228, %223, %139 : vector<8x128xi1>, vector<8x128xf32>
    %cst_58 = arith.constant 0.000000e+00 : f32
    %230 = vector.shape_cast %226 : vector<8x1xi1> to vector<8x1xi1>
    %231 = vector.broadcast %230 : vector<8x1xi1> to vector<8x128xi1>
    %232 = vector.broadcast %cst_58 : f32 to vector<8x128xf32>
    %233 = arith.select %231, %223, %232 : vector<8x128xi1>, vector<8x128xf32>
    %234 = arith.truncf %233 : vector<8x128xf32> to vector<8x128xbf16>
    %c2_59 = arith.constant 2 : index
    %c0_60 = arith.constant 0 : index
    %c0_61 = arith.constant 0 : index
    %235 = vector.load %arg9[%c2_59, %c0_60, %c0_61] : memref<8x8x128xbf16, #tpu.memory_space<vmem>>, vector<1x8x128xbf16>
    %236 = vector.shape_cast %235 : vector<1x8x128xbf16> to vector<8x128xbf16>
    %237 = vector.shape_cast %234 : vector<8x128xbf16> to vector<1x8x128xbf16>
    tpu.vector_store %arg9[%c2_59, %c0_60, %c0_61], %237 {strides = array<i32>} : memref<8x8x128xbf16, #tpu.memory_space<vmem>>, vector<1x8x128xbf16>,
    %c5 = arith.constant 5 : index
    %c0_62 = arith.constant 0 : index
    %c0_63 = arith.constant 0 : index
    %238 = vector.load %arg3[%c5, %c0_62, %c0_63] : memref<8x8x384xbf16, #tpu.memory_space<vmem>>, vector<1x8x384xbf16>
    %239 = vector.shape_cast %238 : vector<1x8x384xbf16> to vector<8x384xbf16>
    %240 = arith.extf %239 : vector<8x384xbf16> to vector<8x384xf32>
    %241 = arith.truncf %184 : vector<8x128xf32> to vector<8x128xbf16>
    %cst_64 = arith.constant dense<0.000000e+00> : vector<8x384xf32>
    %242 = tpu.matmul %241, %8, %cst_64 {dimension_numbers = #tpu.dot_dimension_numbers<[1], [0], [0], [1], [0, 0, 1, 1], [], []>} : vector<8x128xbf16>, vector<128x384xbf16>, vector<8x384xf32> -> vector<8x384xf32>
    %243 = vector.extract_strided_slice %240 {offsets = [0, 0], sizes = [8, 128], strides = [1, 1]} : vector<8x384xf32> to vector<8x128xf32>
    %244 = vector.extract_strided_slice %242 {offsets = [0, 0], sizes = [8, 128], strides = [1, 1]} : vector<8x384xf32> to vector<8x128xf32>
    %245 = arith.addf %243, %244 : vector<8x128xf32>
    %246 = arith.negf %245 : vector<8x128xf32>
    %247 = math.exp %246 : vector<8x128xf32>
    %cst_65 = arith.constant 1.000000e+00 : f32
    %248 = vector.broadcast %cst_65 : f32 to vector<8x128xf32>
    %249 = arith.addf %248, %247 : vector<8x128xf32>
    %250 = arith.divf %248, %249 : vector<8x128xf32>
    %251 = vector.extract_strided_slice %240 {offsets = [0, 128], sizes = [8, 128], strides = [1, 1]} : vector<8x384xf32> to vector<8x128xf32>
    %252 = vector.extract_strided_slice %242 {offsets = [0, 128], sizes = [8, 128], strides = [1, 1]} : vector<8x384xf32> to vector<8x128xf32>
    %253 = arith.addf %251, %252 : vector<8x128xf32>
    %254 = arith.negf %253 : vector<8x128xf32>
    %255 = math.exp %254 : vector<8x128xf32>
    %cst_66 = arith.constant 1.000000e+00 : f32
    %256 = vector.broadcast %cst_66 : f32 to vector<8x128xf32>
    %257 = arith.addf %256, %255 : vector<8x128xf32>
    %258 = arith.divf %256, %257 : vector<8x128xf32>
    %259 = vector.extract_strided_slice %240 {offsets = [0, 256], sizes = [8, 128], strides = [1, 1]} : vector<8x384xf32> to vector<8x128xf32>
    %260 = vector.extract_strided_slice %242 {offsets = [0, 256], sizes = [8, 128], strides = [1, 1]} : vector<8x384xf32> to vector<8x128xf32>
    %261 = vector.broadcast %10 : vector<1x128xf32> to vector<8x128xf32>
    %262 = arith.addf %260, %261 : vector<8x128xf32>
    %263 = arith.mulf %250, %262 : vector<8x128xf32>
    %264 = arith.addf %259, %263 : vector<8x128xf32>
    %265 = math.tanh %264 : vector<8x128xf32>
    %266 = arith.subf %184, %265 : vector<8x128xf32>
    %267 = arith.mulf %258, %266 : vector<8x128xf32>
    %268 = arith.addf %265, %267 : vector<8x128xf32>
    %c5_i32 = arith.constant 5 : i32
    %269 = arith.addi %6, %c5_i32 : i32
    %270 = vector.broadcast %269 : i32 to vector<8x1xi32>
    %271 = arith.cmpi sgt, %3, %270 : vector<8x1xi32>
    %272 = vector.shape_cast %271 : vector<8x1xi1> to vector<8x1xi1>
    %273 = vector.broadcast %272 : vector<8x1xi1> to vector<8x128xi1>
    %274 = arith.select %273, %268, %184 : vector<8x128xi1>, vector<8x128xf32>
    %cst_67 = arith.constant 0.000000e+00 : f32
    %275 = vector.shape_cast %271 : vector<8x1xi1> to vector<8x1xi1>
    %276 = vector.broadcast %275 : vector<8x1xi1> to vector<8x128xi1>
    %277 = vector.broadcast %cst_67 : f32 to vector<8x128xf32>
    %278 = arith.select %276, %268, %277 : vector<8x128xi1>, vector<8x128xf32>
    %279 = arith.truncf %278 : vector<8x128xf32> to vector<8x128xbf16>
    %c5_68 = arith.constant 5 : index
    %c0_69 = arith.constant 0 : index
    %c0_70 = arith.constant 0 : index
    %280 = vector.load %arg10[%c5_68, %c0_69, %c0_70] : memref<8x8x128xbf16, #tpu.memory_space<vmem>>, vector<1x8x128xbf16>
    %281 = vector.shape_cast %280 : vector<1x8x128xbf16> to vector<8x128xbf16>
    %282 = vector.shape_cast %279 : vector<8x128xbf16> to vector<1x8x128xbf16>
    tpu.vector_store %arg10[%c5_68, %c0_69, %c0_70], %282 {strides = array<i32>} : memref<8x8x128xbf16, #tpu.memory_space<vmem>>, vector<1x8x128xbf16>,
    %c3 = arith.constant 3 : index
    %c0_71 = arith.constant 0 : index
    %c0_72 = arith.constant 0 : index
    %283 = vector.load %arg2[%c3, %c0_71, %c0_72] : memref<8x8x384xbf16, #tpu.memory_space<vmem>>, vector<1x8x384xbf16>
    %284 = vector.shape_cast %283 : vector<1x8x384xbf16> to vector<8x384xbf16>
    %285 = arith.extf %284 : vector<8x384xbf16> to vector<8x384xf32>
    %286 = arith.truncf %229 : vector<8x128xf32> to vector<8x128xbf16>
    %cst_73 = arith.constant dense<0.000000e+00> : vector<8x384xf32>
    %287 = tpu.matmul %286, %7, %cst_73 {dimension_numbers = #tpu.dot_dimension_numbers<[1], [0], [0], [1], [0, 0, 1, 1], [], []>} : vector<8x128xbf16>, vector<128x384xbf16>, vector<8x384xf32> -> vector<8x384xf32>
    %288 = vector.extract_strided_slice %285 {offsets = [0, 0], sizes = [8, 128], strides = [1, 1]} : vector<8x384xf32> to vector<8x128xf32>
    %289 = vector.extract_strided_slice %287 {offsets = [0, 0], sizes = [8, 128], strides = [1, 1]} : vector<8x384xf32> to vector<8x128xf32>
    %290 = arith.addf %288, %289 : vector<8x128xf32>
    %291 = arith.negf %290 : vector<8x128xf32>
    %292 = math.exp %291 : vector<8x128xf32>
    %cst_74 = arith.constant 1.000000e+00 : f32
    %293 = vector.broadcast %cst_74 : f32 to vector<8x128xf32>
    %294 = arith.addf %293, %292 : vector<8x128xf32>
    %295 = arith.divf %293, %294 : vector<8x128xf32>
    %296 = vector.extract_strided_slice %285 {offsets = [0, 128], sizes = [8, 128], strides = [1, 1]} : vector<8x384xf32> to vector<8x128xf32>
    %297 = vector.extract_strided_slice %287 {offsets = [0, 128], sizes = [8, 128], strides = [1, 1]} : vector<8x384xf32> to vector<8x128xf32>
    %298 = arith.addf %296, %297 : vector<8x128xf32>
    %299 = arith.negf %298 : vector<8x128xf32>
    %300 = math.exp %299 : vector<8x128xf32>
    %cst_75 = arith.constant 1.000000e+00 : f32
    %301 = vector.broadcast %cst_75 : f32 to vector<8x128xf32>
    %302 = arith.addf %301, %300 : vector<8x128xf32>
    %303 = arith.divf %301, %302 : vector<8x128xf32>
    %304 = vector.extract_strided_slice %285 {offsets = [0, 256], sizes = [8, 128], strides = [1, 1]} : vector<8x384xf32> to vector<8x128xf32>
    %305 = vector.extract_strided_slice %287 {offsets = [0, 256], sizes = [8, 128], strides = [1, 1]} : vector<8x384xf32> to vector<8x128xf32>
    %306 = vector.broadcast %9 : vector<1x128xf32> to vector<8x128xf32>
    %307 = arith.addf %305, %306 : vector<8x128xf32>
    %308 = arith.mulf %295, %307 : vector<8x128xf32>
    %309 = arith.addf %304, %308 : vector<8x128xf32>
    %310 = math.tanh %309 : vector<8x128xf32>
    %311 = arith.subf %229, %310 : vector<8x128xf32>
    %312 = arith.mulf %303, %311 : vector<8x128xf32>
    %313 = arith.addf %310, %312 : vector<8x128xf32>
    %c3_i32 = arith.constant 3 : i32
    %314 = arith.addi %4, %c3_i32 : i32
    %315 = vector.broadcast %314 : i32 to vector<8x1xi32>
    %316 = arith.cmpi sgt, %3, %315 : vector<8x1xi32>
    %317 = vector.shape_cast %316 : vector<8x1xi1> to vector<8x1xi1>
    %318 = vector.broadcast %317 : vector<8x1xi1> to vector<8x128xi1>
    %319 = arith.select %318, %313, %229 : vector<8x128xi1>, vector<8x128xf32>
    %cst_76 = arith.constant 0.000000e+00 : f32
    %320 = vector.shape_cast %316 : vector<8x1xi1> to vector<8x1xi1>
    %321 = vector.broadcast %320 : vector<8x1xi1> to vector<8x128xi1>
    %322 = vector.broadcast %cst_76 : f32 to vector<8x128xf32>
    %323 = arith.select %321, %313, %322 : vector<8x128xi1>, vector<8x128xf32>
    %324 = arith.truncf %323 : vector<8x128xf32> to vector<8x128xbf16>
    %c3_77 = arith.constant 3 : index
    %c0_78 = arith.constant 0 : index
    %c0_79 = arith.constant 0 : index
    %325 = vector.load %arg9[%c3_77, %c0_78, %c0_79] : memref<8x8x128xbf16, #tpu.memory_space<vmem>>, vector<1x8x128xbf16>
    %326 = vector.shape_cast %325 : vector<1x8x128xbf16> to vector<8x128xbf16>
    %327 = vector.shape_cast %324 : vector<8x128xbf16> to vector<1x8x128xbf16>
    tpu.vector_store %arg9[%c3_77, %c0_78, %c0_79], %327 {strides = array<i32>} : memref<8x8x128xbf16, #tpu.memory_space<vmem>>, vector<1x8x128xbf16>,
    %c4 = arith.constant 4 : index
    %c0_80 = arith.constant 0 : index
    %c0_81 = arith.constant 0 : index
    %328 = vector.load %arg3[%c4, %c0_80, %c0_81] : memref<8x8x384xbf16, #tpu.memory_space<vmem>>, vector<1x8x384xbf16>
    %329 = vector.shape_cast %328 : vector<1x8x384xbf16> to vector<8x384xbf16>
    %330 = arith.extf %329 : vector<8x384xbf16> to vector<8x384xf32>
    %331 = arith.truncf %274 : vector<8x128xf32> to vector<8x128xbf16>
    %cst_82 = arith.constant dense<0.000000e+00> : vector<8x384xf32>
    %332 = tpu.matmul %331, %8, %cst_82 {dimension_numbers = #tpu.dot_dimension_numbers<[1], [0], [0], [1], [0, 0, 1, 1], [], []>} : vector<8x128xbf16>, vector<128x384xbf16>, vector<8x384xf32> -> vector<8x384xf32>
    %333 = vector.extract_strided_slice %330 {offsets = [0, 0], sizes = [8, 128], strides = [1, 1]} : vector<8x384xf32> to vector<8x128xf32>
    %334 = vector.extract_strided_slice %332 {offsets = [0, 0], sizes = [8, 128], strides = [1, 1]} : vector<8x384xf32> to vector<8x128xf32>
    %335 = arith.addf %333, %334 : vector<8x128xf32>
    %336 = arith.negf %335 : vector<8x128xf32>
    %337 = math.exp %336 : vector<8x128xf32>
    %cst_83 = arith.constant 1.000000e+00 : f32
    %338 = vector.broadcast %cst_83 : f32 to vector<8x128xf32>
    %339 = arith.addf %338, %337 : vector<8x128xf32>
    %340 = arith.divf %338, %339 : vector<8x128xf32>
    %341 = vector.extract_strided_slice %330 {offsets = [0, 128], sizes = [8, 128], strides = [1, 1]} : vector<8x384xf32> to vector<8x128xf32>
    %342 = vector.extract_strided_slice %332 {offsets = [0, 128], sizes = [8, 128], strides = [1, 1]} : vector<8x384xf32> to vector<8x128xf32>
    %343 = arith.addf %341, %342 : vector<8x128xf32>
    %344 = arith.negf %343 : vector<8x128xf32>
    %345 = math.exp %344 : vector<8x128xf32>
    %cst_84 = arith.constant 1.000000e+00 : f32
    %346 = vector.broadcast %cst_84 : f32 to vector<8x128xf32>
    %347 = arith.addf %346, %345 : vector<8x128xf32>
    %348 = arith.divf %346, %347 : vector<8x128xf32>
    %349 = vector.extract_strided_slice %330 {offsets = [0, 256], sizes = [8, 128], strides = [1, 1]} : vector<8x384xf32> to vector<8x128xf32>
    %350 = vector.extract_strided_slice %332 {offsets = [0, 256], sizes = [8, 128], strides = [1, 1]} : vector<8x384xf32> to vector<8x128xf32>
    %351 = vector.broadcast %10 : vector<1x128xf32> to vector<8x128xf32>
    %352 = arith.addf %350, %351 : vector<8x128xf32>
    %353 = arith.mulf %340, %352 : vector<8x128xf32>
    %354 = arith.addf %349, %353 : vector<8x128xf32>
    %355 = math.tanh %354 : vector<8x128xf32>
    %356 = arith.subf %274, %355 : vector<8x128xf32>
    %357 = arith.mulf %348, %356 : vector<8x128xf32>
    %358 = arith.addf %355, %357 : vector<8x128xf32>
    %c4_i32 = arith.constant 4 : i32
    %359 = arith.addi %6, %c4_i32 : i32
    %360 = vector.broadcast %359 : i32 to vector<8x1xi32>
    %361 = arith.cmpi sgt, %3, %360 : vector<8x1xi32>
    %362 = vector.shape_cast %361 : vector<8x1xi1> to vector<8x1xi1>
    %363 = vector.broadcast %362 : vector<8x1xi1> to vector<8x128xi1>
    %364 = arith.select %363, %358, %274 : vector<8x128xi1>, vector<8x128xf32>
    %cst_85 = arith.constant 0.000000e+00 : f32
    %365 = vector.shape_cast %361 : vector<8x1xi1> to vector<8x1xi1>
    %366 = vector.broadcast %365 : vector<8x1xi1> to vector<8x128xi1>
    %367 = vector.broadcast %cst_85 : f32 to vector<8x128xf32>
    %368 = arith.select %366, %358, %367 : vector<8x128xi1>, vector<8x128xf32>
    %369 = arith.truncf %368 : vector<8x128xf32> to vector<8x128xbf16>
    %c4_86 = arith.constant 4 : index
    %c0_87 = arith.constant 0 : index
    %c0_88 = arith.constant 0 : index
    %370 = vector.load %arg10[%c4_86, %c0_87, %c0_88] : memref<8x8x128xbf16, #tpu.memory_space<vmem>>, vector<1x8x128xbf16>
    %371 = vector.shape_cast %370 : vector<1x8x128xbf16> to vector<8x128xbf16>
    %372 = vector.shape_cast %369 : vector<8x128xbf16> to vector<1x8x128xbf16>
    tpu.vector_store %arg10[%c4_86, %c0_87, %c0_88], %372 {strides = array<i32>} : memref<8x8x128xbf16, #tpu.memory_space<vmem>>, vector<1x8x128xbf16>,
    %c4_89 = arith.constant 4 : index
    %c0_90 = arith.constant 0 : index
    %c0_91 = arith.constant 0 : index
    %373 = vector.load %arg2[%c4_89, %c0_90, %c0_91] : memref<8x8x384xbf16, #tpu.memory_space<vmem>>, vector<1x8x384xbf16>
    %374 = vector.shape_cast %373 : vector<1x8x384xbf16> to vector<8x384xbf16>
    %375 = arith.extf %374 : vector<8x384xbf16> to vector<8x384xf32>
    %376 = arith.truncf %319 : vector<8x128xf32> to vector<8x128xbf16>
    %cst_92 = arith.constant dense<0.000000e+00> : vector<8x384xf32>
    %377 = tpu.matmul %376, %7, %cst_92 {dimension_numbers = #tpu.dot_dimension_numbers<[1], [0], [0], [1], [0, 0, 1, 1], [], []>} : vector<8x128xbf16>, vector<128x384xbf16>, vector<8x384xf32> -> vector<8x384xf32>
    %378 = vector.extract_strided_slice %375 {offsets = [0, 0], sizes = [8, 128], strides = [1, 1]} : vector<8x384xf32> to vector<8x128xf32>
    %379 = vector.extract_strided_slice %377 {offsets = [0, 0], sizes = [8, 128], strides = [1, 1]} : vector<8x384xf32> to vector<8x128xf32>
    %380 = arith.addf %378, %379 : vector<8x128xf32>
    %381 = arith.negf %380 : vector<8x128xf32>
    %382 = math.exp %381 : vector<8x128xf32>
    %cst_93 = arith.constant 1.000000e+00 : f32
    %383 = vector.broadcast %cst_93 : f32 to vector<8x128xf32>
    %384 = arith.addf %383, %382 : vector<8x128xf32>
    %385 = arith.divf %383, %384 : vector<8x128xf32>
    %386 = vector.extract_strided_slice %375 {offsets = [0, 128], sizes = [8, 128], strides = [1, 1]} : vector<8x384xf32> to vector<8x128xf32>
    %387 = vector.extract_strided_slice %377 {offsets = [0, 128], sizes = [8, 128], strides = [1, 1]} : vector<8x384xf32> to vector<8x128xf32>
    %388 = arith.addf %386, %387 : vector<8x128xf32>
    %389 = arith.negf %388 : vector<8x128xf32>
    %390 = math.exp %389 : vector<8x128xf32>
    %cst_94 = arith.constant 1.000000e+00 : f32
    %391 = vector.broadcast %cst_94 : f32 to vector<8x128xf32>
    %392 = arith.addf %391, %390 : vector<8x128xf32>
    %393 = arith.divf %391, %392 : vector<8x128xf32>
    %394 = vector.extract_strided_slice %375 {offsets = [0, 256], sizes = [8, 128], strides = [1, 1]} : vector<8x384xf32> to vector<8x128xf32>
    %395 = vector.extract_strided_slice %377 {offsets = [0, 256], sizes = [8, 128], strides = [1, 1]} : vector<8x384xf32> to vector<8x128xf32>
    %396 = vector.broadcast %9 : vector<1x128xf32> to vector<8x128xf32>
    %397 = arith.addf %395, %396 : vector<8x128xf32>
    %398 = arith.mulf %385, %397 : vector<8x128xf32>
    %399 = arith.addf %394, %398 : vector<8x128xf32>
    %400 = math.tanh %399 : vector<8x128xf32>
    %401 = arith.subf %319, %400 : vector<8x128xf32>
    %402 = arith.mulf %393, %401 : vector<8x128xf32>
    %403 = arith.addf %400, %402 : vector<8x128xf32>
    %c4_i32_95 = arith.constant 4 : i32
    %404 = arith.addi %4, %c4_i32_95 : i32
    %405 = vector.broadcast %404 : i32 to vector<8x1xi32>
    %406 = arith.cmpi sgt, %3, %405 : vector<8x1xi32>
    %407 = vector.shape_cast %406 : vector<8x1xi1> to vector<8x1xi1>
    %408 = vector.broadcast %407 : vector<8x1xi1> to vector<8x128xi1>
    %409 = arith.select %408, %403, %319 : vector<8x128xi1>, vector<8x128xf32>
    %cst_96 = arith.constant 0.000000e+00 : f32
    %410 = vector.shape_cast %406 : vector<8x1xi1> to vector<8x1xi1>
    %411 = vector.broadcast %410 : vector<8x1xi1> to vector<8x128xi1>
    %412 = vector.broadcast %cst_96 : f32 to vector<8x128xf32>
    %413 = arith.select %411, %403, %412 : vector<8x128xi1>, vector<8x128xf32>
    %414 = arith.truncf %413 : vector<8x128xf32> to vector<8x128xbf16>
    %c4_97 = arith.constant 4 : index
    %c0_98 = arith.constant 0 : index
    %c0_99 = arith.constant 0 : index
    %415 = vector.load %arg9[%c4_97, %c0_98, %c0_99] : memref<8x8x128xbf16, #tpu.memory_space<vmem>>, vector<1x8x128xbf16>
    %416 = vector.shape_cast %415 : vector<1x8x128xbf16> to vector<8x128xbf16>
    %417 = vector.shape_cast %414 : vector<8x128xbf16> to vector<1x8x128xbf16>
    tpu.vector_store %arg9[%c4_97, %c0_98, %c0_99], %417 {strides = array<i32>} : memref<8x8x128xbf16, #tpu.memory_space<vmem>>, vector<1x8x128xbf16>,
    %c3_100 = arith.constant 3 : index
    %c0_101 = arith.constant 0 : index
    %c0_102 = arith.constant 0 : index
    %418 = vector.load %arg3[%c3_100, %c0_101, %c0_102] : memref<8x8x384xbf16, #tpu.memory_space<vmem>>, vector<1x8x384xbf16>
    %419 = vector.shape_cast %418 : vector<1x8x384xbf16> to vector<8x384xbf16>
    %420 = arith.extf %419 : vector<8x384xbf16> to vector<8x384xf32>
    %421 = arith.truncf %364 : vector<8x128xf32> to vector<8x128xbf16>
    %cst_103 = arith.constant dense<0.000000e+00> : vector<8x384xf32>
    %422 = tpu.matmul %421, %8, %cst_103 {dimension_numbers = #tpu.dot_dimension_numbers<[1], [0], [0], [1], [0, 0, 1, 1], [], []>} : vector<8x128xbf16>, vector<128x384xbf16>, vector<8x384xf32> -> vector<8x384xf32>
    %423 = vector.extract_strided_slice %420 {offsets = [0, 0], sizes = [8, 128], strides = [1, 1]} : vector<8x384xf32> to vector<8x128xf32>
    %424 = vector.extract_strided_slice %422 {offsets = [0, 0], sizes = [8, 128], strides = [1, 1]} : vector<8x384xf32> to vector<8x128xf32>
    %425 = arith.addf %423, %424 : vector<8x128xf32>
    %426 = arith.negf %425 : vector<8x128xf32>
    %427 = math.exp %426 : vector<8x128xf32>
    %cst_104 = arith.constant 1.000000e+00 : f32
    %428 = vector.broadcast %cst_104 : f32 to vector<8x128xf32>
    %429 = arith.addf %428, %427 : vector<8x128xf32>
    %430 = arith.divf %428, %429 : vector<8x128xf32>
    %431 = vector.extract_strided_slice %420 {offsets = [0, 128], sizes = [8, 128], strides = [1, 1]} : vector<8x384xf32> to vector<8x128xf32>
    %432 = vector.extract_strided_slice %422 {offsets = [0, 128], sizes = [8, 128], strides = [1, 1]} : vector<8x384xf32> to vector<8x128xf32>
    %433 = arith.addf %431, %432 : vector<8x128xf32>
    %434 = arith.negf %433 : vector<8x128xf32>
    %435 = math.exp %434 : vector<8x128xf32>
    %cst_105 = arith.constant 1.000000e+00 : f32
    %436 = vector.broadcast %cst_105 : f32 to vector<8x128xf32>
    %437 = arith.addf %436, %435 : vector<8x128xf32>
    %438 = arith.divf %436, %437 : vector<8x128xf32>
    %439 = vector.extract_strided_slice %420 {offsets = [0, 256], sizes = [8, 128], strides = [1, 1]} : vector<8x384xf32> to vector<8x128xf32>
    %440 = vector.extract_strided_slice %422 {offsets = [0, 256], sizes = [8, 128], strides = [1, 1]} : vector<8x384xf32> to vector<8x128xf32>
    %441 = vector.broadcast %10 : vector<1x128xf32> to vector<8x128xf32>
    %442 = arith.addf %440, %441 : vector<8x128xf32>
    %443 = arith.mulf %430, %442 : vector<8x128xf32>
    %444 = arith.addf %439, %443 : vector<8x128xf32>
    %445 = math.tanh %444 : vector<8x128xf32>
    %446 = arith.subf %364, %445 : vector<8x128xf32>
    %447 = arith.mulf %438, %446 : vector<8x128xf32>
    %448 = arith.addf %445, %447 : vector<8x128xf32>
    %c3_i32_106 = arith.constant 3 : i32
    %449 = arith.addi %6, %c3_i32_106 : i32
    %450 = vector.broadcast %449 : i32 to vector<8x1xi32>
    %451 = arith.cmpi sgt, %3, %450 : vector<8x1xi32>
    %452 = vector.shape_cast %451 : vector<8x1xi1> to vector<8x1xi1>
    %453 = vector.broadcast %452 : vector<8x1xi1> to vector<8x128xi1>
    %454 = arith.select %453, %448, %364 : vector<8x128xi1>, vector<8x128xf32>
    %cst_107 = arith.constant 0.000000e+00 : f32
    %455 = vector.shape_cast %451 : vector<8x1xi1> to vector<8x1xi1>
    %456 = vector.broadcast %455 : vector<8x1xi1> to vector<8x128xi1>
    %457 = vector.broadcast %cst_107 : f32 to vector<8x128xf32>
    %458 = arith.select %456, %448, %457 : vector<8x128xi1>, vector<8x128xf32>
    %459 = arith.truncf %458 : vector<8x128xf32> to vector<8x128xbf16>
    %c3_108 = arith.constant 3 : index
    %c0_109 = arith.constant 0 : index
    %c0_110 = arith.constant 0 : index
    %460 = vector.load %arg10[%c3_108, %c0_109, %c0_110] : memref<8x8x128xbf16, #tpu.memory_space<vmem>>, vector<1x8x128xbf16>
    %461 = vector.shape_cast %460 : vector<1x8x128xbf16> to vector<8x128xbf16>
    %462 = vector.shape_cast %459 : vector<8x128xbf16> to vector<1x8x128xbf16>
    tpu.vector_store %arg10[%c3_108, %c0_109, %c0_110], %462 {strides = array<i32>} : memref<8x8x128xbf16, #tpu.memory_space<vmem>>, vector<1x8x128xbf16>,
    %c5_111 = arith.constant 5 : index
    %c0_112 = arith.constant 0 : index
    %c0_113 = arith.constant 0 : index
    %463 = vector.load %arg2[%c5_111, %c0_112, %c0_113] : memref<8x8x384xbf16, #tpu.memory_space<vmem>>, vector<1x8x384xbf16>
    %464 = vector.shape_cast %463 : vector<1x8x384xbf16> to vector<8x384xbf16>
    %465 = arith.extf %464 : vector<8x384xbf16> to vector<8x384xf32>
    %466 = arith.truncf %409 : vector<8x128xf32> to vector<8x128xbf16>
    %cst_114 = arith.constant dense<0.000000e+00> : vector<8x384xf32>
    %467 = tpu.matmul %466, %7, %cst_114 {dimension_numbers = #tpu.dot_dimension_numbers<[1], [0], [0], [1], [0, 0, 1, 1], [], []>} : vector<8x128xbf16>, vector<128x384xbf16>, vector<8x384xf32> -> vector<8x384xf32>
    %468 = vector.extract_strided_slice %465 {offsets = [0, 0], sizes = [8, 128], strides = [1, 1]} : vector<8x384xf32> to vector<8x128xf32>
    %469 = vector.extract_strided_slice %467 {offsets = [0, 0], sizes = [8, 128], strides = [1, 1]} : vector<8x384xf32> to vector<8x128xf32>
    %470 = arith.addf %468, %469 : vector<8x128xf32>
    %471 = arith.negf %470 : vector<8x128xf32>
    %472 = math.exp %471 : vector<8x128xf32>
    %cst_115 = arith.constant 1.000000e+00 : f32
    %473 = vector.broadcast %cst_115 : f32 to vector<8x128xf32>
    %474 = arith.addf %473, %472 : vector<8x128xf32>
    %475 = arith.divf %473, %474 : vector<8x128xf32>
    %476 = vector.extract_strided_slice %465 {offsets = [0, 128], sizes = [8, 128], strides = [1, 1]} : vector<8x384xf32> to vector<8x128xf32>
    %477 = vector.extract_strided_slice %467 {offsets = [0, 128], sizes = [8, 128], strides = [1, 1]} : vector<8x384xf32> to vector<8x128xf32>
    %478 = arith.addf %476, %477 : vector<8x128xf32>
    %479 = arith.negf %478 : vector<8x128xf32>
    %480 = math.exp %479 : vector<8x128xf32>
    %cst_116 = arith.constant 1.000000e+00 : f32
    %481 = vector.broadcast %cst_116 : f32 to vector<8x128xf32>
    %482 = arith.addf %481, %480 : vector<8x128xf32>
    %483 = arith.divf %481, %482 : vector<8x128xf32>
    %484 = vector.extract_strided_slice %465 {offsets = [0, 256], sizes = [8, 128], strides = [1, 1]} : vector<8x384xf32> to vector<8x128xf32>
    %485 = vector.extract_strided_slice %467 {offsets = [0, 256], sizes = [8, 128], strides = [1, 1]} : vector<8x384xf32> to vector<8x128xf32>
    %486 = vector.broadcast %9 : vector<1x128xf32> to vector<8x128xf32>
    %487 = arith.addf %485, %486 : vector<8x128xf32>
    %488 = arith.mulf %475, %487 : vector<8x128xf32>
    %489 = arith.addf %484, %488 : vector<8x128xf32>
    %490 = math.tanh %489 : vector<8x128xf32>
    %491 = arith.subf %409, %490 : vector<8x128xf32>
    %492 = arith.mulf %483, %491 : vector<8x128xf32>
    %493 = arith.addf %490, %492 : vector<8x128xf32>
    %c5_i32_117 = arith.constant 5 : i32
    %494 = arith.addi %4, %c5_i32_117 : i32
    %495 = vector.broadcast %494 : i32 to vector<8x1xi32>
    %496 = arith.cmpi sgt, %3, %495 : vector<8x1xi32>
    %497 = vector.shape_cast %496 : vector<8x1xi1> to vector<8x1xi1>
    %498 = vector.broadcast %497 : vector<8x1xi1> to vector<8x128xi1>
    %499 = arith.select %498, %493, %409 : vector<8x128xi1>, vector<8x128xf32>
    %cst_118 = arith.constant 0.000000e+00 : f32
    %500 = vector.shape_cast %496 : vector<8x1xi1> to vector<8x1xi1>
    %501 = vector.broadcast %500 : vector<8x1xi1> to vector<8x128xi1>
    %502 = vector.broadcast %cst_118 : f32 to vector<8x128xf32>
    %503 = arith.select %501, %493, %502 : vector<8x128xi1>, vector<8x128xf32>
    %504 = arith.truncf %503 : vector<8x128xf32> to vector<8x128xbf16>
    %c5_119 = arith.constant 5 : index
    %c0_120 = arith.constant 0 : index
    %c0_121 = arith.constant 0 : index
    %505 = vector.load %arg9[%c5_119, %c0_120, %c0_121] : memref<8x8x128xbf16, #tpu.memory_space<vmem>>, vector<1x8x128xbf16>
    %506 = vector.shape_cast %505 : vector<1x8x128xbf16> to vector<8x128xbf16>
    %507 = vector.shape_cast %504 : vector<8x128xbf16> to vector<1x8x128xbf16>
    tpu.vector_store %arg9[%c5_119, %c0_120, %c0_121], %507 {strides = array<i32>} : memref<8x8x128xbf16, #tpu.memory_space<vmem>>, vector<1x8x128xbf16>,
    %c2_122 = arith.constant 2 : index
    %c0_123 = arith.constant 0 : index
    %c0_124 = arith.constant 0 : index
    %508 = vector.load %arg3[%c2_122, %c0_123, %c0_124] : memref<8x8x384xbf16, #tpu.memory_space<vmem>>, vector<1x8x384xbf16>
    %509 = vector.shape_cast %508 : vector<1x8x384xbf16> to vector<8x384xbf16>
    %510 = arith.extf %509 : vector<8x384xbf16> to vector<8x384xf32>
    %511 = arith.truncf %454 : vector<8x128xf32> to vector<8x128xbf16>
    %cst_125 = arith.constant dense<0.000000e+00> : vector<8x384xf32>
    %512 = tpu.matmul %511, %8, %cst_125 {dimension_numbers = #tpu.dot_dimension_numbers<[1], [0], [0], [1], [0, 0, 1, 1], [], []>} : vector<8x128xbf16>, vector<128x384xbf16>, vector<8x384xf32> -> vector<8x384xf32>
    %513 = vector.extract_strided_slice %510 {offsets = [0, 0], sizes = [8, 128], strides = [1, 1]} : vector<8x384xf32> to vector<8x128xf32>
    %514 = vector.extract_strided_slice %512 {offsets = [0, 0], sizes = [8, 128], strides = [1, 1]} : vector<8x384xf32> to vector<8x128xf32>
    %515 = arith.addf %513, %514 : vector<8x128xf32>
    %516 = arith.negf %515 : vector<8x128xf32>
    %517 = math.exp %516 : vector<8x128xf32>
    %cst_126 = arith.constant 1.000000e+00 : f32
    %518 = vector.broadcast %cst_126 : f32 to vector<8x128xf32>
    %519 = arith.addf %518, %517 : vector<8x128xf32>
    %520 = arith.divf %518, %519 : vector<8x128xf32>
    %521 = vector.extract_strided_slice %510 {offsets = [0, 128], sizes = [8, 128], strides = [1, 1]} : vector<8x384xf32> to vector<8x128xf32>
    %522 = vector.extract_strided_slice %512 {offsets = [0, 128], sizes = [8, 128], strides = [1, 1]} : vector<8x384xf32> to vector<8x128xf32>
    %523 = arith.addf %521, %522 : vector<8x128xf32>
    %524 = arith.negf %523 : vector<8x128xf32>
    %525 = math.exp %524 : vector<8x128xf32>
    %cst_127 = arith.constant 1.000000e+00 : f32
    %526 = vector.broadcast %cst_127 : f32 to vector<8x128xf32>
    %527 = arith.addf %526, %525 : vector<8x128xf32>
    %528 = arith.divf %526, %527 : vector<8x128xf32>
    %529 = vector.extract_strided_slice %510 {offsets = [0, 256], sizes = [8, 128], strides = [1, 1]} : vector<8x384xf32> to vector<8x128xf32>
    %530 = vector.extract_strided_slice %512 {offsets = [0, 256], sizes = [8, 128], strides = [1, 1]} : vector<8x384xf32> to vector<8x128xf32>
    %531 = vector.broadcast %10 : vector<1x128xf32> to vector<8x128xf32>
    %532 = arith.addf %530, %531 : vector<8x128xf32>
    %533 = arith.mulf %520, %532 : vector<8x128xf32>
    %534 = arith.addf %529, %533 : vector<8x128xf32>
    %535 = math.tanh %534 : vector<8x128xf32>
    %536 = arith.subf %454, %535 : vector<8x128xf32>
    %537 = arith.mulf %528, %536 : vector<8x128xf32>
    %538 = arith.addf %535, %537 : vector<8x128xf32>
    %c2_i32_128 = arith.constant 2 : i32
    %539 = arith.addi %6, %c2_i32_128 : i32
    %540 = vector.broadcast %539 : i32 to vector<8x1xi32>
    %541 = arith.cmpi sgt, %3, %540 : vector<8x1xi32>
    %542 = vector.shape_cast %541 : vector<8x1xi1> to vector<8x1xi1>
    %543 = vector.broadcast %542 : vector<8x1xi1> to vector<8x128xi1>
    %544 = arith.select %543, %538, %454 : vector<8x128xi1>, vector<8x128xf32>
    %cst_129 = arith.constant 0.000000e+00 : f32
    %545 = vector.shape_cast %541 : vector<8x1xi1> to vector<8x1xi1>
    %546 = vector.broadcast %545 : vector<8x1xi1> to vector<8x128xi1>
    %547 = vector.broadcast %cst_129 : f32 to vector<8x128xf32>
    %548 = arith.select %546, %538, %547 : vector<8x128xi1>, vector<8x128xf32>
    %549 = arith.truncf %548 : vector<8x128xf32> to vector<8x128xbf16>
    %c2_130 = arith.constant 2 : index
    %c0_131 = arith.constant 0 : index
    %c0_132 = arith.constant 0 : index
    %550 = vector.load %arg10[%c2_130, %c0_131, %c0_132] : memref<8x8x128xbf16, #tpu.memory_space<vmem>>, vector<1x8x128xbf16>
    %551 = vector.shape_cast %550 : vector<1x8x128xbf16> to vector<8x128xbf16>
    %552 = vector.shape_cast %549 : vector<8x128xbf16> to vector<1x8x128xbf16>
    tpu.vector_store %arg10[%c2_130, %c0_131, %c0_132], %552 {strides = array<i32>} : memref<8x8x128xbf16, #tpu.memory_space<vmem>>, vector<1x8x128xbf16>,
    %c6_133 = arith.constant 6 : index
    %c0_134 = arith.constant 0 : index
    %c0_135 = arith.constant 0 : index
    %553 = vector.load %arg2[%c6_133, %c0_134, %c0_135] : memref<8x8x384xbf16, #tpu.memory_space<vmem>>, vector<1x8x384xbf16>
    %554 = vector.shape_cast %553 : vector<1x8x384xbf16> to vector<8x384xbf16>
    %555 = arith.extf %554 : vector<8x384xbf16> to vector<8x384xf32>
    %556 = arith.truncf %499 : vector<8x128xf32> to vector<8x128xbf16>
    %cst_136 = arith.constant dense<0.000000e+00> : vector<8x384xf32>
    %557 = tpu.matmul %556, %7, %cst_136 {dimension_numbers = #tpu.dot_dimension_numbers<[1], [0], [0], [1], [0, 0, 1, 1], [], []>} : vector<8x128xbf16>, vector<128x384xbf16>, vector<8x384xf32> -> vector<8x384xf32>
    %558 = vector.extract_strided_slice %555 {offsets = [0, 0], sizes = [8, 128], strides = [1, 1]} : vector<8x384xf32> to vector<8x128xf32>
    %559 = vector.extract_strided_slice %557 {offsets = [0, 0], sizes = [8, 128], strides = [1, 1]} : vector<8x384xf32> to vector<8x128xf32>
    %560 = arith.addf %558, %559 : vector<8x128xf32>
    %561 = arith.negf %560 : vector<8x128xf32>
    %562 = math.exp %561 : vector<8x128xf32>
    %cst_137 = arith.constant 1.000000e+00 : f32
    %563 = vector.broadcast %cst_137 : f32 to vector<8x128xf32>
    %564 = arith.addf %563, %562 : vector<8x128xf32>
    %565 = arith.divf %563, %564 : vector<8x128xf32>
    %566 = vector.extract_strided_slice %555 {offsets = [0, 128], sizes = [8, 128], strides = [1, 1]} : vector<8x384xf32> to vector<8x128xf32>
    %567 = vector.extract_strided_slice %557 {offsets = [0, 128], sizes = [8, 128], strides = [1, 1]} : vector<8x384xf32> to vector<8x128xf32>
    %568 = arith.addf %566, %567 : vector<8x128xf32>
    %569 = arith.negf %568 : vector<8x128xf32>
    %570 = math.exp %569 : vector<8x128xf32>
    %cst_138 = arith.constant 1.000000e+00 : f32
    %571 = vector.broadcast %cst_138 : f32 to vector<8x128xf32>
    %572 = arith.addf %571, %570 : vector<8x128xf32>
    %573 = arith.divf %571, %572 : vector<8x128xf32>
    %574 = vector.extract_strided_slice %555 {offsets = [0, 256], sizes = [8, 128], strides = [1, 1]} : vector<8x384xf32> to vector<8x128xf32>
    %575 = vector.extract_strided_slice %557 {offsets = [0, 256], sizes = [8, 128], strides = [1, 1]} : vector<8x384xf32> to vector<8x128xf32>
    %576 = vector.broadcast %9 : vector<1x128xf32> to vector<8x128xf32>
    %577 = arith.addf %575, %576 : vector<8x128xf32>
    %578 = arith.mulf %565, %577 : vector<8x128xf32>
    %579 = arith.addf %574, %578 : vector<8x128xf32>
    %580 = math.tanh %579 : vector<8x128xf32>
    %581 = arith.subf %499, %580 : vector<8x128xf32>
    %582 = arith.mulf %573, %581 : vector<8x128xf32>
    %583 = arith.addf %580, %582 : vector<8x128xf32>
    %c6_i32_139 = arith.constant 6 : i32
    %584 = arith.addi %4, %c6_i32_139 : i32
    %585 = vector.broadcast %584 : i32 to vector<8x1xi32>
    %586 = arith.cmpi sgt, %3, %585 : vector<8x1xi32>
    %587 = vector.shape_cast %586 : vector<8x1xi1> to vector<8x1xi1>
    %588 = vector.broadcast %587 : vector<8x1xi1> to vector<8x128xi1>
    %589 = arith.select %588, %583, %499 : vector<8x128xi1>, vector<8x128xf32>
    %cst_140 = arith.constant 0.000000e+00 : f32
    %590 = vector.shape_cast %586 : vector<8x1xi1> to vector<8x1xi1>
    %591 = vector.broadcast %590 : vector<8x1xi1> to vector<8x128xi1>
    %592 = vector.broadcast %cst_140 : f32 to vector<8x128xf32>
    %593 = arith.select %591, %583, %592 : vector<8x128xi1>, vector<8x128xf32>
    %594 = arith.truncf %593 : vector<8x128xf32> to vector<8x128xbf16>
    %c6_141 = arith.constant 6 : index
    %c0_142 = arith.constant 0 : index
    %c0_143 = arith.constant 0 : index
    %595 = vector.load %arg9[%c6_141, %c0_142, %c0_143] : memref<8x8x128xbf16, #tpu.memory_space<vmem>>, vector<1x8x128xbf16>
    %596 = vector.shape_cast %595 : vector<1x8x128xbf16> to vector<8x128xbf16>
    %597 = vector.shape_cast %594 : vector<8x128xbf16> to vector<1x8x128xbf16>
    tpu.vector_store %arg9[%c6_141, %c0_142, %c0_143], %597 {strides = array<i32>} : memref<8x8x128xbf16, #tpu.memory_space<vmem>>, vector<1x8x128xbf16>,
    %c1_144 = arith.constant 1 : index
    %c0_145 = arith.constant 0 : index
    %c0_146 = arith.constant 0 : index
    %598 = vector.load %arg3[%c1_144, %c0_145, %c0_146] : memref<8x8x384xbf16, #tpu.memory_space<vmem>>, vector<1x8x384xbf16>
    %599 = vector.shape_cast %598 : vector<1x8x384xbf16> to vector<8x384xbf16>
    %600 = arith.extf %599 : vector<8x384xbf16> to vector<8x384xf32>
    %601 = arith.truncf %544 : vector<8x128xf32> to vector<8x128xbf16>
    %cst_147 = arith.constant dense<0.000000e+00> : vector<8x384xf32>
    %602 = tpu.matmul %601, %8, %cst_147 {dimension_numbers = #tpu.dot_dimension_numbers<[1], [0], [0], [1], [0, 0, 1, 1], [], []>} : vector<8x128xbf16>, vector<128x384xbf16>, vector<8x384xf32> -> vector<8x384xf32>
    %603 = vector.extract_strided_slice %600 {offsets = [0, 0], sizes = [8, 128], strides = [1, 1]} : vector<8x384xf32> to vector<8x128xf32>
    %604 = vector.extract_strided_slice %602 {offsets = [0, 0], sizes = [8, 128], strides = [1, 1]} : vector<8x384xf32> to vector<8x128xf32>
    %605 = arith.addf %603, %604 : vector<8x128xf32>
    %606 = arith.negf %605 : vector<8x128xf32>
    %607 = math.exp %606 : vector<8x128xf32>
    %cst_148 = arith.constant 1.000000e+00 : f32
    %608 = vector.broadcast %cst_148 : f32 to vector<8x128xf32>
    %609 = arith.addf %608, %607 : vector<8x128xf32>
    %610 = arith.divf %608, %609 : vector<8x128xf32>
    %611 = vector.extract_strided_slice %600 {offsets = [0, 128], sizes = [8, 128], strides = [1, 1]} : vector<8x384xf32> to vector<8x128xf32>
    %612 = vector.extract_strided_slice %602 {offsets = [0, 128], sizes = [8, 128], strides = [1, 1]} : vector<8x384xf32> to vector<8x128xf32>
    %613 = arith.addf %611, %612 : vector<8x128xf32>
    %614 = arith.negf %613 : vector<8x128xf32>
    %615 = math.exp %614 : vector<8x128xf32>
    %cst_149 = arith.constant 1.000000e+00 : f32
    %616 = vector.broadcast %cst_149 : f32 to vector<8x128xf32>
    %617 = arith.addf %616, %615 : vector<8x128xf32>
    %618 = arith.divf %616, %617 : vector<8x128xf32>
    %619 = vector.extract_strided_slice %600 {offsets = [0, 256], sizes = [8, 128], strides = [1, 1]} : vector<8x384xf32> to vector<8x128xf32>
    %620 = vector.extract_strided_slice %602 {offsets = [0, 256], sizes = [8, 128], strides = [1, 1]} : vector<8x384xf32> to vector<8x128xf32>
    %621 = vector.broadcast %10 : vector<1x128xf32> to vector<8x128xf32>
    %622 = arith.addf %620, %621 : vector<8x128xf32>
    %623 = arith.mulf %610, %622 : vector<8x128xf32>
    %624 = arith.addf %619, %623 : vector<8x128xf32>
    %625 = math.tanh %624 : vector<8x128xf32>
    %626 = arith.subf %544, %625 : vector<8x128xf32>
    %627 = arith.mulf %618, %626 : vector<8x128xf32>
    %628 = arith.addf %625, %627 : vector<8x128xf32>
    %c1_i32_150 = arith.constant 1 : i32
    %629 = arith.addi %6, %c1_i32_150 : i32
    %630 = vector.broadcast %629 : i32 to vector<8x1xi32>
    %631 = arith.cmpi sgt, %3, %630 : vector<8x1xi32>
    %632 = vector.shape_cast %631 : vector<8x1xi1> to vector<8x1xi1>
    %633 = vector.broadcast %632 : vector<8x1xi1> to vector<8x128xi1>
    %634 = arith.select %633, %628, %544 : vector<8x128xi1>, vector<8x128xf32>
    %cst_151 = arith.constant 0.000000e+00 : f32
    %635 = vector.shape_cast %631 : vector<8x1xi1> to vector<8x1xi1>
    %636 = vector.broadcast %635 : vector<8x1xi1> to vector<8x128xi1>
    %637 = vector.broadcast %cst_151 : f32 to vector<8x128xf32>
    %638 = arith.select %636, %628, %637 : vector<8x128xi1>, vector<8x128xf32>
    %639 = arith.truncf %638 : vector<8x128xf32> to vector<8x128xbf16>
    %c1_152 = arith.constant 1 : index
    %c0_153 = arith.constant 0 : index
    %c0_154 = arith.constant 0 : index
    %640 = vector.load %arg10[%c1_152, %c0_153, %c0_154] : memref<8x8x128xbf16, #tpu.memory_space<vmem>>, vector<1x8x128xbf16>
    %641 = vector.shape_cast %640 : vector<1x8x128xbf16> to vector<8x128xbf16>
    %642 = vector.shape_cast %639 : vector<8x128xbf16> to vector<1x8x128xbf16>
    tpu.vector_store %arg10[%c1_152, %c0_153, %c0_154], %642 {strides = array<i32>} : memref<8x8x128xbf16, #tpu.memory_space<vmem>>, vector<1x8x128xbf16>,
    %c7_155 = arith.constant 7 : index
    %c0_156 = arith.constant 0 : index
    %c0_157 = arith.constant 0 : index
    %643 = vector.load %arg2[%c7_155, %c0_156, %c0_157] : memref<8x8x384xbf16, #tpu.memory_space<vmem>>, vector<1x8x384xbf16>
    %644 = vector.shape_cast %643 : vector<1x8x384xbf16> to vector<8x384xbf16>
    %645 = arith.extf %644 : vector<8x384xbf16> to vector<8x384xf32>
    %646 = arith.truncf %589 : vector<8x128xf32> to vector<8x128xbf16>
    %cst_158 = arith.constant dense<0.000000e+00> : vector<8x384xf32>
    %647 = tpu.matmul %646, %7, %cst_158 {dimension_numbers = #tpu.dot_dimension_numbers<[1], [0], [0], [1], [0, 0, 1, 1], [], []>} : vector<8x128xbf16>, vector<128x384xbf16>, vector<8x384xf32> -> vector<8x384xf32>
    %648 = vector.extract_strided_slice %645 {offsets = [0, 0], sizes = [8, 128], strides = [1, 1]} : vector<8x384xf32> to vector<8x128xf32>
    %649 = vector.extract_strided_slice %647 {offsets = [0, 0], sizes = [8, 128], strides = [1, 1]} : vector<8x384xf32> to vector<8x128xf32>
    %650 = arith.addf %648, %649 : vector<8x128xf32>
    %651 = arith.negf %650 : vector<8x128xf32>
    %652 = math.exp %651 : vector<8x128xf32>
    %cst_159 = arith.constant 1.000000e+00 : f32
    %653 = vector.broadcast %cst_159 : f32 to vector<8x128xf32>
    %654 = arith.addf %653, %652 : vector<8x128xf32>
    %655 = arith.divf %653, %654 : vector<8x128xf32>
    %656 = vector.extract_strided_slice %645 {offsets = [0, 128], sizes = [8, 128], strides = [1, 1]} : vector<8x384xf32> to vector<8x128xf32>
    %657 = vector.extract_strided_slice %647 {offsets = [0, 128], sizes = [8, 128], strides = [1, 1]} : vector<8x384xf32> to vector<8x128xf32>
    %658 = arith.addf %656, %657 : vector<8x128xf32>
    %659 = arith.negf %658 : vector<8x128xf32>
    %660 = math.exp %659 : vector<8x128xf32>
    %cst_160 = arith.constant 1.000000e+00 : f32
    %661 = vector.broadcast %cst_160 : f32 to vector<8x128xf32>
    %662 = arith.addf %661, %660 : vector<8x128xf32>
    %663 = arith.divf %661, %662 : vector<8x128xf32>
    %664 = vector.extract_strided_slice %645 {offsets = [0, 256], sizes = [8, 128], strides = [1, 1]} : vector<8x384xf32> to vector<8x128xf32>
    %665 = vector.extract_strided_slice %647 {offsets = [0, 256], sizes = [8, 128], strides = [1, 1]} : vector<8x384xf32> to vector<8x128xf32>
    %666 = vector.broadcast %9 : vector<1x128xf32> to vector<8x128xf32>
    %667 = arith.addf %665, %666 : vector<8x128xf32>
    %668 = arith.mulf %655, %667 : vector<8x128xf32>
    %669 = arith.addf %664, %668 : vector<8x128xf32>
    %670 = math.tanh %669 : vector<8x128xf32>
    %671 = arith.subf %589, %670 : vector<8x128xf32>
    %672 = arith.mulf %663, %671 : vector<8x128xf32>
    %673 = arith.addf %670, %672 : vector<8x128xf32>
    %c7_i32_161 = arith.constant 7 : i32
    %674 = arith.addi %4, %c7_i32_161 : i32
    %675 = vector.broadcast %674 : i32 to vector<8x1xi32>
    %676 = arith.cmpi sgt, %3, %675 : vector<8x1xi32>
    %677 = vector.shape_cast %676 : vector<8x1xi1> to vector<8x1xi1>
    %678 = vector.broadcast %677 : vector<8x1xi1> to vector<8x128xi1>
    %679 = arith.select %678, %673, %589 : vector<8x128xi1>, vector<8x128xf32>
    %cst_162 = arith.constant 0.000000e+00 : f32
    %680 = vector.shape_cast %676 : vector<8x1xi1> to vector<8x1xi1>
    %681 = vector.broadcast %680 : vector<8x1xi1> to vector<8x128xi1>
    %682 = vector.broadcast %cst_162 : f32 to vector<8x128xf32>
    %683 = arith.select %681, %673, %682 : vector<8x128xi1>, vector<8x128xf32>
    %684 = arith.truncf %683 : vector<8x128xf32> to vector<8x128xbf16>
    %c7_163 = arith.constant 7 : index
    %c0_164 = arith.constant 0 : index
    %c0_165 = arith.constant 0 : index
    %685 = vector.load %arg9[%c7_163, %c0_164, %c0_165] : memref<8x8x128xbf16, #tpu.memory_space<vmem>>, vector<1x8x128xbf16>
    %686 = vector.shape_cast %685 : vector<1x8x128xbf16> to vector<8x128xbf16>
    %687 = vector.shape_cast %684 : vector<8x128xbf16> to vector<1x8x128xbf16>
    tpu.vector_store %arg9[%c7_163, %c0_164, %c0_165], %687 {strides = array<i32>} : memref<8x8x128xbf16, #tpu.memory_space<vmem>>, vector<1x8x128xbf16>,
    %c0_166 = arith.constant 0 : index
    %c0_167 = arith.constant 0 : index
    %c0_168 = arith.constant 0 : index
    %688 = vector.load %arg3[%c0_166, %c0_167, %c0_168] : memref<8x8x384xbf16, #tpu.memory_space<vmem>>, vector<1x8x384xbf16>
    %689 = vector.shape_cast %688 : vector<1x8x384xbf16> to vector<8x384xbf16>
    %690 = arith.extf %689 : vector<8x384xbf16> to vector<8x384xf32>
    %691 = arith.truncf %634 : vector<8x128xf32> to vector<8x128xbf16>
    %cst_169 = arith.constant dense<0.000000e+00> : vector<8x384xf32>
    %692 = tpu.matmul %691, %8, %cst_169 {dimension_numbers = #tpu.dot_dimension_numbers<[1], [0], [0], [1], [0, 0, 1, 1], [], []>} : vector<8x128xbf16>, vector<128x384xbf16>, vector<8x384xf32> -> vector<8x384xf32>
    %693 = vector.extract_strided_slice %690 {offsets = [0, 0], sizes = [8, 128], strides = [1, 1]} : vector<8x384xf32> to vector<8x128xf32>
    %694 = vector.extract_strided_slice %692 {offsets = [0, 0], sizes = [8, 128], strides = [1, 1]} : vector<8x384xf32> to vector<8x128xf32>
    %695 = arith.addf %693, %694 : vector<8x128xf32>
    %696 = arith.negf %695 : vector<8x128xf32>
    %697 = math.exp %696 : vector<8x128xf32>
    %cst_170 = arith.constant 1.000000e+00 : f32
    %698 = vector.broadcast %cst_170 : f32 to vector<8x128xf32>
    %699 = arith.addf %698, %697 : vector<8x128xf32>
    %700 = arith.divf %698, %699 : vector<8x128xf32>
    %701 = vector.extract_strided_slice %690 {offsets = [0, 128], sizes = [8, 128], strides = [1, 1]} : vector<8x384xf32> to vector<8x128xf32>
    %702 = vector.extract_strided_slice %692 {offsets = [0, 128], sizes = [8, 128], strides = [1, 1]} : vector<8x384xf32> to vector<8x128xf32>
    %703 = arith.addf %701, %702 : vector<8x128xf32>
    %704 = arith.negf %703 : vector<8x128xf32>
    %705 = math.exp %704 : vector<8x128xf32>
    %cst_171 = arith.constant 1.000000e+00 : f32
    %706 = vector.broadcast %cst_171 : f32 to vector<8x128xf32>
    %707 = arith.addf %706, %705 : vector<8x128xf32>
    %708 = arith.divf %706, %707 : vector<8x128xf32>
    %709 = vector.extract_strided_slice %690 {offsets = [0, 256], sizes = [8, 128], strides = [1, 1]} : vector<8x384xf32> to vector<8x128xf32>
    %710 = vector.extract_strided_slice %692 {offsets = [0, 256], sizes = [8, 128], strides = [1, 1]} : vector<8x384xf32> to vector<8x128xf32>
    %711 = vector.broadcast %10 : vector<1x128xf32> to vector<8x128xf32>
    %712 = arith.addf %710, %711 : vector<8x128xf32>
    %713 = arith.mulf %700, %712 : vector<8x128xf32>
    %714 = arith.addf %709, %713 : vector<8x128xf32>
    %715 = math.tanh %714 : vector<8x128xf32>
    %716 = arith.subf %634, %715 : vector<8x128xf32>
    %717 = arith.mulf %708, %716 : vector<8x128xf32>
    %718 = arith.addf %715, %717 : vector<8x128xf32>
    %c0_i32_172 = arith.constant 0 : i32
    %719 = arith.addi %6, %c0_i32_172 : i32
    %720 = vector.broadcast %719 : i32 to vector<8x1xi32>
    %721 = arith.cmpi sgt, %3, %720 : vector<8x1xi32>
    %722 = vector.shape_cast %721 : vector<8x1xi1> to vector<8x1xi1>
    %723 = vector.broadcast %722 : vector<8x1xi1> to vector<8x128xi1>
    %724 = arith.select %723, %718, %634 : vector<8x128xi1>, vector<8x128xf32>
    %cst_173 = arith.constant 0.000000e+00 : f32
    %725 = vector.shape_cast %721 : vector<8x1xi1> to vector<8x1xi1>
    %726 = vector.broadcast %725 : vector<8x1xi1> to vector<8x128xi1>
    %727 = vector.broadcast %cst_173 : f32 to vector<8x128xf32>
    %728 = arith.select %726, %718, %727 : vector<8x128xi1>, vector<8x128xf32>
    %729 = arith.truncf %728 : vector<8x128xf32> to vector<8x128xbf16>
    %c0_174 = arith.constant 0 : index
    %c0_175 = arith.constant 0 : index
    %c0_176 = arith.constant 0 : index
    %730 = vector.load %arg10[%c0_174, %c0_175, %c0_176] : memref<8x8x128xbf16, #tpu.memory_space<vmem>>, vector<1x8x128xbf16>
    %731 = vector.shape_cast %730 : vector<1x8x128xbf16> to vector<8x128xbf16>
    %732 = vector.shape_cast %729 : vector<8x128xbf16> to vector<1x8x128xbf16>
    tpu.vector_store %arg10[%c0_174, %c0_175, %c0_176], %732 {strides = array<i32>} : memref<8x8x128xbf16, #tpu.memory_space<vmem>>, vector<1x8x128xbf16>,
    %c0_177 = arith.constant 0 : index
    %c0_178 = arith.constant 0 : index
    %733 = vector.load %arg11[%c0_177, %c0_178] : memref<8x128xf32, #tpu.memory_space<vmem>>, vector<8x128xf32>
    tpu.vector_store %arg11[%c0_177, %c0_178], %679 {strides = array<i32>} : memref<8x128xf32, #tpu.memory_space<vmem>>, vector<8x128xf32>,
    %c0_179 = arith.constant 0 : index
    %c0_180 = arith.constant 0 : index
    %734 = vector.load %arg12[%c0_179, %c0_180] : memref<8x128xf32, #tpu.memory_space<vmem>>, vector<8x128xf32>
    tpu.vector_store %arg12[%c0_179, %c0_180], %724 {strides = array<i32>} : memref<8x128xf32, #tpu.memory_space<vmem>>, vector<8x128xf32>,
    return
  }
  func.func @transform_0(%arg0: i32, %arg1: i32) -> (i32, i32, i32) {
    %c0_i32 = arith.constant 0 : i32
    %c0_i32_0 = arith.constant 0 : i32
    return %arg1, %arg0, %c0_i32 : i32, i32, i32
  }
  func.func @transform_1(%arg0: i32, %arg1: i32) -> (i32, i32, i32) {
    %c0_i32 = arith.constant 0 : i32
    %0 = arith.subi %c0_i32, %arg1 : i32
    %c1_i32 = arith.constant 1 : i32
    %c0_i32_0 = arith.constant 0 : i32
    return %0, %arg0, %c1_i32 : i32, i32, i32
  }
  func.func @transform_2(%arg0: i32, %arg1: i32) -> (i32, i32) {
    %c0_i32 = arith.constant 0 : i32
    %c0_i32_0 = arith.constant 0 : i32
    %c0_i32_1 = arith.constant 0 : i32
    return %c0_i32, %c0_i32_0 : i32, i32
  }
  func.func @transform_3(%arg0: i32, %arg1: i32) -> (i32, i32) {
    %c0_i32 = arith.constant 0 : i32
    %c0_i32_0 = arith.constant 0 : i32
    %c0_i32_1 = arith.constant 0 : i32
    return %c0_i32, %c0_i32_0 : i32, i32
  }
  func.func @transform_4(%arg0: i32, %arg1: i32) -> (i32, i32) {
    %c0_i32 = arith.constant 0 : i32
    %c0_i32_0 = arith.constant 0 : i32
    %c0_i32_1 = arith.constant 0 : i32
    return %c0_i32, %c0_i32_0 : i32, i32
  }
  func.func @transform_5(%arg0: i32, %arg1: i32) -> (i32, i32) {
    %c0_i32 = arith.constant 0 : i32
    %c0_i32_0 = arith.constant 0 : i32
    %c0_i32_1 = arith.constant 0 : i32
    return %c0_i32, %c0_i32_0 : i32, i32
  }
  func.func @transform_6(%arg0: i32, %arg1: i32) -> (i32, i32) {
    %c0_i32 = arith.constant 0 : i32
    %c0_i32_0 = arith.constant 0 : i32
    return %arg0, %c0_i32 : i32, i32
  }
  func.func @transform_7(%arg0: i32, %arg1: i32) -> (i32, i32, i32) {
    %c0_i32 = arith.constant 0 : i32
    %c0_i32_0 = arith.constant 0 : i32
    return %arg1, %arg0, %c0_i32 : i32, i32, i32
  }
  func.func @transform_8(%arg0: i32, %arg1: i32) -> (i32, i32, i32) {
    %c0_i32 = arith.constant 0 : i32
    %0 = arith.subi %c0_i32, %arg1 : i32
    %c0_i32_0 = arith.constant 0 : i32
    %c0_i32_1 = arith.constant 0 : i32
    return %0, %arg0, %c0_i32_0 : i32, i32, i32
  }
}

module attributes {stable_mosaic.version = 11 : i64} {
  func.func @_proj_pair_kernel(%arg0: i32, %arg1: i32, %arg2: memref<64x128xbf16, #tpu.memory_space<vmem>>, %arg3: memref<64x128xbf16, #tpu.memory_space<vmem>>, %arg4: memref<256x768xbf16, #tpu.memory_space<vmem>>, %arg5: memref<1x768xf32, #tpu.memory_space<vmem>>, %arg6: memref<64x768xbf16, #tpu.memory_space<vmem>>) attributes {dimension_semantics = [#tpu.dimension_semantics<parallel>, #tpu.dimension_semantics<parallel>], iteration_bounds = array<i64: 1, 1>, scalar_prefetch = 0 : i64, scratch_operands = 0 : i64, tpu.core_type = #tpu.core_type<tc>, window_params = [{transform_indices = @transform_0, window_bounds = array<i64: 64, 128>}, {transform_indices = @transform_1, window_bounds = array<i64: 64, 128>}, {transform_indices = @transform_2, window_bounds = array<i64: 256, 768>}, {transform_indices = @transform_3, window_bounds = array<i64: 1, 768>}, {transform_indices = @transform_4, window_bounds = array<i64: 64, 768>}]} {
    %c0 = arith.constant 0 : index
    %c0_0 = arith.constant 0 : index
    %0 = vector.load %arg2[%c0, %c0_0] : memref<64x128xbf16, #tpu.memory_space<vmem>>, vector<64x128xbf16>
    %c0_1 = arith.constant 0 : index
    %c0_2 = arith.constant 0 : index
    %1 = vector.load %arg3[%c0_1, %c0_2] : memref<64x128xbf16, #tpu.memory_space<vmem>>, vector<64x128xbf16>
    %2 = tpu.concatenate %0, %1 in 1 : vector<64x128xbf16>, vector<64x128xbf16> -> vector<64x256xbf16>
    %c0_3 = arith.constant 0 : index
    %c0_4 = arith.constant 0 : index
    %3 = vector.load %arg4[%c0_3, %c0_4] : memref<256x768xbf16, #tpu.memory_space<vmem>>, vector<256x768xbf16>
    %cst = arith.constant dense<0.000000e+00> : vector<64x768xf32>
    %4 = tpu.matmul %2, %3, %cst {dimension_numbers = #tpu.dot_dimension_numbers<[1], [0], [0], [1], [0, 0, 1, 1], [], []>} : vector<64x256xbf16>, vector<256x768xbf16>, vector<64x768xf32> -> vector<64x768xf32>
    %c0_5 = arith.constant 0 : index
    %c0_6 = arith.constant 0 : index
    %5 = vector.load %arg5[%c0_5, %c0_6] : memref<1x768xf32, #tpu.memory_space<vmem>>, vector<1x768xf32>
    %6 = vector.broadcast %5 : vector<1x768xf32> to vector<64x768xf32>
    %7 = arith.addf %4, %6 : vector<64x768xf32>
    %8 = arith.truncf %7 : vector<64x768xf32> to vector<64x768xbf16>
    %c0_7 = arith.constant 0 : index
    %c0_8 = arith.constant 0 : index
    %9 = vector.load %arg6[%c0_7, %c0_8] : memref<64x768xbf16, #tpu.memory_space<vmem>>, vector<64x768xbf16>
    tpu.vector_store %arg6[%c0_7, %c0_8], %8 {strides = array<i32>} : memref<64x768xbf16, #tpu.memory_space<vmem>>, vector<64x768xbf16>,
    return
  }
  func.func @transform_0(%arg0: i32, %arg1: i32) -> (i32, i32) {
    %c0_i32 = arith.constant 0 : i32
    %c0_i32_0 = arith.constant 0 : i32
    return %arg0, %c0_i32 : i32, i32
  }
  func.func @transform_1(%arg0: i32, %arg1: i32) -> (i32, i32) {
    %c0_i32 = arith.constant 0 : i32
    %c0_i32_0 = arith.constant 0 : i32
    return %arg0, %c0_i32 : i32, i32
  }
  func.func @transform_2(%arg0: i32, %arg1: i32) -> (i32, i32) {
    %c0_i32 = arith.constant 0 : i32
    %c0_i32_0 = arith.constant 0 : i32
    return %c0_i32, %arg1 : i32, i32
  }
  func.func @transform_3(%arg0: i32, %arg1: i32) -> (i32, i32) {
    %c0_i32 = arith.constant 0 : i32
    %c0_i32_0 = arith.constant 0 : i32
    return %c0_i32, %arg1 : i32, i32
  }
  func.func @transform_4(%arg0: i32, %arg1: i32) -> (i32, i32) {
    %c0_i32 = arith.constant 0 : i32
    return %arg0, %arg1 : i32, i32
  }
}

module attributes {stable_mosaic.version = 11 : i64} {
  func.func @_bigru_chunk_kernel(%arg0: i32, %arg1: i32, %arg2: memref<8x8x384xbf16, #tpu.memory_space<vmem>>, %arg3: memref<8x8x384xbf16, #tpu.memory_space<vmem>>, %arg4: memref<128x384xbf16, #tpu.memory_space<vmem>>, %arg5: memref<128x384xbf16, #tpu.memory_space<vmem>>, %arg6: memref<1x128xf32, #tpu.memory_space<vmem>>, %arg7: memref<1x128xf32, #tpu.memory_space<vmem>>, %arg8: memref<8x1xi32, #tpu.memory_space<vmem>>, %arg9: memref<8x8x128xf32, #tpu.memory_space<vmem>>, %arg10: memref<8x8x128xf32, #tpu.memory_space<vmem>>, %arg11: memref<8x128xf32, #tpu.memory_space<vmem>>, %arg12: memref<8x128xf32, #tpu.memory_space<vmem>>) attributes {dimension_semantics = [#tpu.dimension_semantics<parallel>, #tpu.dimension_semantics<arbitrary>], iteration_bounds = array<i64: 1, 1>, scalar_prefetch = 0 : i64, scratch_operands = 2 : i64, tpu.core_type = #tpu.core_type<tc>, window_params = [{transform_indices = @transform_0, window_bounds = array<i64: 8, 8, 384>}, {transform_indices = @transform_1, window_bounds = array<i64: 8, 8, 384>}, {pipeline_mode = #tpu.pipeline_mode<synchronous>, transform_indices = @transform_2, window_bounds = array<i64: 128, 384>}, {pipeline_mode = #tpu.pipeline_mode<synchronous>, transform_indices = @transform_3, window_bounds = array<i64: 128, 384>}, {pipeline_mode = #tpu.pipeline_mode<synchronous>, transform_indices = @transform_4, window_bounds = array<i64: 1, 128>}, {pipeline_mode = #tpu.pipeline_mode<synchronous>, transform_indices = @transform_5, window_bounds = array<i64: 1, 128>}, {transform_indices = @transform_6, window_bounds = array<i64: 8, 1>}, {transform_indices = @transform_7, window_bounds = array<i64: 8, 8, 128>}, {transform_indices = @transform_8, window_bounds = array<i64: 8, 8, 128>}]} {
    %c0_i32 = arith.constant 0 : i32
    %0 = arith.cmpi eq, %arg1, %c0_i32 : i32
    %1 = arith.extui %0 : i1 to i32
    %c0_i32_0 = arith.constant 0 : i32
    %2 = arith.cmpi ne, %1, %c0_i32_0 : i32
    scf.if %2 {
      %cst_181 = arith.constant 0.000000e+00 : f32
      %719 = vector.broadcast %cst_181 : f32 to vector<8x128xf32>
      %c0_182 = arith.constant 0 : index
      %c0_183 = arith.constant 0 : index
      %720 = vector.load %arg11[%c0_182, %c0_183] : memref<8x128xf32, #tpu.memory_space<vmem>>, vector<8x128xf32>
      tpu.vector_store %arg11[%c0_182, %c0_183], %719 {strides = array<i32>} : memref<8x128xf32, #tpu.memory_space<vmem>>, vector<8x128xf32>,
      %cst_184 = arith.constant 0.000000e+00 : f32
      %721 = vector.broadcast %cst_184 : f32 to vector<8x128xf32>
      %c0_185 = arith.constant 0 : index
      %c0_186 = arith.constant 0 : index
      %722 = vector.load %arg12[%c0_185, %c0_186] : memref<8x128xf32, #tpu.memory_space<vmem>>, vector<8x128xf32>
      tpu.vector_store %arg12[%c0_185, %c0_186], %721 {strides = array<i32>} : memref<8x128xf32, #tpu.memory_space<vmem>>, vector<8x128xf32>,
    } else {
    }
    %c0 = arith.constant 0 : index
    %c0_1 = arith.constant 0 : index
    %3 = vector.load %arg8[%c0, %c0_1] : memref<8x1xi32, #tpu.memory_space<vmem>>, vector<8x1xi32>
    %c8_i32 = arith.constant 8 : i32
    %4 = arith.muli %arg1, %c8_i32 : i32
    %c0_i32_2 = arith.constant 0 : i32
    %5 = arith.subi %c0_i32_2, %arg1 : i32
    %c8_i32_3 = arith.constant 8 : i32
    %6 = arith.muli %5, %c8_i32_3 : i32
    %c0_4 = arith.constant 0 : index
    %c0_5 = arith.constant 0 : index
    %7 = vector.load %arg4[%c0_4, %c0_5] : memref<128x384xbf16, #tpu.memory_space<vmem>>, vector<128x384xbf16>
    %c0_6 = arith.constant 0 : index
    %c0_7 = arith.constant 0 : index
    %8 = vector.load %arg5[%c0_6, %c0_7] : memref<128x384xbf16, #tpu.memory_space<vmem>>, vector<128x384xbf16>
    %c0_8 = arith.constant 0 : index
    %c0_9 = arith.constant 0 : index
    %9 = vector.load %arg6[%c0_8, %c0_9] : memref<1x128xf32, #tpu.memory_space<vmem>>, vector<1x128xf32>
    %c0_10 = arith.constant 0 : index
    %c0_11 = arith.constant 0 : index
    %10 = vector.load %arg7[%c0_10, %c0_11] : memref<1x128xf32, #tpu.memory_space<vmem>>, vector<1x128xf32>
    %c0_12 = arith.constant 0 : index
    %c0_13 = arith.constant 0 : index
    %11 = vector.load %arg11[%c0_12, %c0_13] : memref<8x128xf32, #tpu.memory_space<vmem>>, vector<8x128xf32>
    %c0_14 = arith.constant 0 : index
    %c0_15 = arith.constant 0 : index
    %12 = vector.load %arg12[%c0_14, %c0_15] : memref<8x128xf32, #tpu.memory_space<vmem>>, vector<8x128xf32>
    %c0_16 = arith.constant 0 : index
    %c0_17 = arith.constant 0 : index
    %c0_18 = arith.constant 0 : index
    %13 = vector.load %arg2[%c0_16, %c0_17, %c0_18] : memref<8x8x384xbf16, #tpu.memory_space<vmem>>, vector<1x8x384xbf16>
    %14 = vector.shape_cast %13 : vector<1x8x384xbf16> to vector<8x384xbf16>
    %15 = arith.extf %14 : vector<8x384xbf16> to vector<8x384xf32>
    %16 = arith.truncf %11 : vector<8x128xf32> to vector<8x128xbf16>
    %cst = arith.constant dense<0.000000e+00> : vector<8x384xf32>
    %17 = tpu.matmul %16, %7, %cst {dimension_numbers = #tpu.dot_dimension_numbers<[1], [0], [0], [1], [0, 0, 1, 1], [], []>} : vector<8x128xbf16>, vector<128x384xbf16>, vector<8x384xf32> -> vector<8x384xf32>
    %18 = vector.extract_strided_slice %15 {offsets = [0, 0], sizes = [8, 128], strides = [1, 1]} : vector<8x384xf32> to vector<8x128xf32>
    %19 = vector.extract_strided_slice %17 {offsets = [0, 0], sizes = [8, 128], strides = [1, 1]} : vector<8x384xf32> to vector<8x128xf32>
    %20 = arith.addf %18, %19 : vector<8x128xf32>
    %21 = arith.negf %20 : vector<8x128xf32>
    %22 = math.exp %21 : vector<8x128xf32>
    %cst_19 = arith.constant 1.000000e+00 : f32
    %23 = vector.broadcast %cst_19 : f32 to vector<8x128xf32>
    %24 = arith.addf %23, %22 : vector<8x128xf32>
    %25 = arith.divf %23, %24 : vector<8x128xf32>
    %26 = vector.extract_strided_slice %15 {offsets = [0, 128], sizes = [8, 128], strides = [1, 1]} : vector<8x384xf32> to vector<8x128xf32>
    %27 = vector.extract_strided_slice %17 {offsets = [0, 128], sizes = [8, 128], strides = [1, 1]} : vector<8x384xf32> to vector<8x128xf32>
    %28 = arith.addf %26, %27 : vector<8x128xf32>
    %29 = arith.negf %28 : vector<8x128xf32>
    %30 = math.exp %29 : vector<8x128xf32>
    %cst_20 = arith.constant 1.000000e+00 : f32
    %31 = vector.broadcast %cst_20 : f32 to vector<8x128xf32>
    %32 = arith.addf %31, %30 : vector<8x128xf32>
    %33 = arith.divf %31, %32 : vector<8x128xf32>
    %34 = vector.extract_strided_slice %15 {offsets = [0, 256], sizes = [8, 128], strides = [1, 1]} : vector<8x384xf32> to vector<8x128xf32>
    %35 = vector.extract_strided_slice %17 {offsets = [0, 256], sizes = [8, 128], strides = [1, 1]} : vector<8x384xf32> to vector<8x128xf32>
    %36 = vector.broadcast %9 : vector<1x128xf32> to vector<8x128xf32>
    %37 = arith.addf %35, %36 : vector<8x128xf32>
    %38 = arith.mulf %25, %37 : vector<8x128xf32>
    %39 = arith.addf %34, %38 : vector<8x128xf32>
    %40 = math.tanh %39 : vector<8x128xf32>
    %41 = arith.subf %11, %40 : vector<8x128xf32>
    %42 = arith.mulf %33, %41 : vector<8x128xf32>
    %43 = arith.addf %40, %42 : vector<8x128xf32>
    %c0_i32_21 = arith.constant 0 : i32
    %44 = arith.addi %4, %c0_i32_21 : i32
    %45 = vector.broadcast %44 : i32 to vector<8x1xi32>
    %46 = arith.cmpi sgt, %3, %45 : vector<8x1xi32>
    %47 = vector.shape_cast %46 : vector<8x1xi1> to vector<8x1xi1>
    %48 = vector.broadcast %47 : vector<8x1xi1> to vector<8x128xi1>
    %49 = arith.select %48, %43, %11 : vector<8x128xi1>, vector<8x128xf32>
    %cst_22 = arith.constant 0.000000e+00 : f32
    %50 = vector.shape_cast %46 : vector<8x1xi1> to vector<8x1xi1>
    %51 = vector.broadcast %50 : vector<8x1xi1> to vector<8x128xi1>
    %52 = vector.broadcast %cst_22 : f32 to vector<8x128xf32>
    %53 = arith.select %51, %43, %52 : vector<8x128xi1>, vector<8x128xf32>
    %c0_23 = arith.constant 0 : index
    %c0_24 = arith.constant 0 : index
    %c0_25 = arith.constant 0 : index
    %54 = vector.load %arg9[%c0_23, %c0_24, %c0_25] : memref<8x8x128xf32, #tpu.memory_space<vmem>>, vector<1x8x128xf32>
    %55 = vector.shape_cast %54 : vector<1x8x128xf32> to vector<8x128xf32>
    %56 = vector.shape_cast %53 : vector<8x128xf32> to vector<1x8x128xf32>
    tpu.vector_store %arg9[%c0_23, %c0_24, %c0_25], %56 {strides = array<i32>} : memref<8x8x128xf32, #tpu.memory_space<vmem>>, vector<1x8x128xf32>,
    %c7 = arith.constant 7 : index
    %c0_26 = arith.constant 0 : index
    %c0_27 = arith.constant 0 : index
    %57 = vector.load %arg3[%c7, %c0_26, %c0_27] : memref<8x8x384xbf16, #tpu.memory_space<vmem>>, vector<1x8x384xbf16>
    %58 = vector.shape_cast %57 : vector<1x8x384xbf16> to vector<8x384xbf16>
    %59 = arith.extf %58 : vector<8x384xbf16> to vector<8x384xf32>
    %60 = arith.truncf %12 : vector<8x128xf32> to vector<8x128xbf16>
    %cst_28 = arith.constant dense<0.000000e+00> : vector<8x384xf32>
    %61 = tpu.matmul %60, %8, %cst_28 {dimension_numbers = #tpu.dot_dimension_numbers<[1], [0], [0], [1], [0, 0, 1, 1], [], []>} : vector<8x128xbf16>, vector<128x384xbf16>, vector<8x384xf32> -> vector<8x384xf32>
    %62 = vector.extract_strided_slice %59 {offsets = [0, 0], sizes = [8, 128], strides = [1, 1]} : vector<8x384xf32> to vector<8x128xf32>
    %63 = vector.extract_strided_slice %61 {offsets = [0, 0], sizes = [8, 128], strides = [1, 1]} : vector<8x384xf32> to vector<8x128xf32>
    %64 = arith.addf %62, %63 : vector<8x128xf32>
    %65 = arith.negf %64 : vector<8x128xf32>
    %66 = math.exp %65 : vector<8x128xf32>
    %cst_29 = arith.constant 1.000000e+00 : f32
    %67 = vector.broadcast %cst_29 : f32 to vector<8x128xf32>
    %68 = arith.addf %67, %66 : vector<8x128xf32>
    %69 = arith.divf %67, %68 : vector<8x128xf32>
    %70 = vector.extract_strided_slice %59 {offsets = [0, 128], sizes = [8, 128], strides = [1, 1]} : vector<8x384xf32> to vector<8x128xf32>
    %71 = vector.extract_strided_slice %61 {offsets = [0, 128], sizes = [8, 128], strides = [1, 1]} : vector<8x384xf32> to vector<8x128xf32>
    %72 = arith.addf %70, %71 : vector<8x128xf32>
    %73 = arith.negf %72 : vector<8x128xf32>
    %74 = math.exp %73 : vector<8x128xf32>
    %cst_30 = arith.constant 1.000000e+00 : f32
    %75 = vector.broadcast %cst_30 : f32 to vector<8x128xf32>
    %76 = arith.addf %75, %74 : vector<8x128xf32>
    %77 = arith.divf %75, %76 : vector<8x128xf32>
    %78 = vector.extract_strided_slice %59 {offsets = [0, 256], sizes = [8, 128], strides = [1, 1]} : vector<8x384xf32> to vector<8x128xf32>
    %79 = vector.extract_strided_slice %61 {offsets = [0, 256], sizes = [8, 128], strides = [1, 1]} : vector<8x384xf32> to vector<8x128xf32>
    %80 = vector.broadcast %10 : vector<1x128xf32> to vector<8x128xf32>
    %81 = arith.addf %79, %80 : vector<8x128xf32>
    %82 = arith.mulf %69, %81 : vector<8x128xf32>
    %83 = arith.addf %78, %82 : vector<8x128xf32>
    %84 = math.tanh %83 : vector<8x128xf32>
    %85 = arith.subf %12, %84 : vector<8x128xf32>
    %86 = arith.mulf %77, %85 : vector<8x128xf32>
    %87 = arith.addf %84, %86 : vector<8x128xf32>
    %c7_i32 = arith.constant 7 : i32
    %88 = arith.addi %6, %c7_i32 : i32
    %89 = vector.broadcast %88 : i32 to vector<8x1xi32>
    %90 = arith.cmpi sgt, %3, %89 : vector<8x1xi32>
    %91 = vector.shape_cast %90 : vector<8x1xi1> to vector<8x1xi1>
    %92 = vector.broadcast %91 : vector<8x1xi1> to vector<8x128xi1>
    %93 = arith.select %92, %87, %12 : vector<8x128xi1>, vector<8x128xf32>
    %cst_31 = arith.constant 0.000000e+00 : f32
    %94 = vector.shape_cast %90 : vector<8x1xi1> to vector<8x1xi1>
    %95 = vector.broadcast %94 : vector<8x1xi1> to vector<8x128xi1>
    %96 = vector.broadcast %cst_31 : f32 to vector<8x128xf32>
    %97 = arith.select %95, %87, %96 : vector<8x128xi1>, vector<8x128xf32>
    %c7_32 = arith.constant 7 : index
    %c0_33 = arith.constant 0 : index
    %c0_34 = arith.constant 0 : index
    %98 = vector.load %arg10[%c7_32, %c0_33, %c0_34] : memref<8x8x128xf32, #tpu.memory_space<vmem>>, vector<1x8x128xf32>
    %99 = vector.shape_cast %98 : vector<1x8x128xf32> to vector<8x128xf32>
    %100 = vector.shape_cast %97 : vector<8x128xf32> to vector<1x8x128xf32>
    tpu.vector_store %arg10[%c7_32, %c0_33, %c0_34], %100 {strides = array<i32>} : memref<8x8x128xf32, #tpu.memory_space<vmem>>, vector<1x8x128xf32>,
    %c1 = arith.constant 1 : index
    %c0_35 = arith.constant 0 : index
    %c0_36 = arith.constant 0 : index
    %101 = vector.load %arg2[%c1, %c0_35, %c0_36] : memref<8x8x384xbf16, #tpu.memory_space<vmem>>, vector<1x8x384xbf16>
    %102 = vector.shape_cast %101 : vector<1x8x384xbf16> to vector<8x384xbf16>
    %103 = arith.extf %102 : vector<8x384xbf16> to vector<8x384xf32>
    %104 = arith.truncf %49 : vector<8x128xf32> to vector<8x128xbf16>
    %cst_37 = arith.constant dense<0.000000e+00> : vector<8x384xf32>
    %105 = tpu.matmul %104, %7, %cst_37 {dimension_numbers = #tpu.dot_dimension_numbers<[1], [0], [0], [1], [0, 0, 1, 1], [], []>} : vector<8x128xbf16>, vector<128x384xbf16>, vector<8x384xf32> -> vector<8x384xf32>
    %106 = vector.extract_strided_slice %103 {offsets = [0, 0], sizes = [8, 128], strides = [1, 1]} : vector<8x384xf32> to vector<8x128xf32>
    %107 = vector.extract_strided_slice %105 {offsets = [0, 0], sizes = [8, 128], strides = [1, 1]} : vector<8x384xf32> to vector<8x128xf32>
    %108 = arith.addf %106, %107 : vector<8x128xf32>
    %109 = arith.negf %108 : vector<8x128xf32>
    %110 = math.exp %109 : vector<8x128xf32>
    %cst_38 = arith.constant 1.000000e+00 : f32
    %111 = vector.broadcast %cst_38 : f32 to vector<8x128xf32>
    %112 = arith.addf %111, %110 : vector<8x128xf32>
    %113 = arith.divf %111, %112 : vector<8x128xf32>
    %114 = vector.extract_strided_slice %103 {offsets = [0, 128], sizes = [8, 128], strides = [1, 1]} : vector<8x384xf32> to vector<8x128xf32>
    %115 = vector.extract_strided_slice %105 {offsets = [0, 128], sizes = [8, 128], strides = [1, 1]} : vector<8x384xf32> to vector<8x128xf32>
    %116 = arith.addf %114, %115 : vector<8x128xf32>
    %117 = arith.negf %116 : vector<8x128xf32>
    %118 = math.exp %117 : vector<8x128xf32>
    %cst_39 = arith.constant 1.000000e+00 : f32
    %119 = vector.broadcast %cst_39 : f32 to vector<8x128xf32>
    %120 = arith.addf %119, %118 : vector<8x128xf32>
    %121 = arith.divf %119, %120 : vector<8x128xf32>
    %122 = vector.extract_strided_slice %103 {offsets = [0, 256], sizes = [8, 128], strides = [1, 1]} : vector<8x384xf32> to vector<8x128xf32>
    %123 = vector.extract_strided_slice %105 {offsets = [0, 256], sizes = [8, 128], strides = [1, 1]} : vector<8x384xf32> to vector<8x128xf32>
    %124 = vector.broadcast %9 : vector<1x128xf32> to vector<8x128xf32>
    %125 = arith.addf %123, %124 : vector<8x128xf32>
    %126 = arith.mulf %113, %125 : vector<8x128xf32>
    %127 = arith.addf %122, %126 : vector<8x128xf32>
    %128 = math.tanh %127 : vector<8x128xf32>
    %129 = arith.subf %49, %128 : vector<8x128xf32>
    %130 = arith.mulf %121, %129 : vector<8x128xf32>
    %131 = arith.addf %128, %130 : vector<8x128xf32>
    %c1_i32 = arith.constant 1 : i32
    %132 = arith.addi %4, %c1_i32 : i32
    %133 = vector.broadcast %132 : i32 to vector<8x1xi32>
    %134 = arith.cmpi sgt, %3, %133 : vector<8x1xi32>
    %135 = vector.shape_cast %134 : vector<8x1xi1> to vector<8x1xi1>
    %136 = vector.broadcast %135 : vector<8x1xi1> to vector<8x128xi1>
    %137 = arith.select %136, %131, %49 : vector<8x128xi1>, vector<8x128xf32>
    %cst_40 = arith.constant 0.000000e+00 : f32
    %138 = vector.shape_cast %134 : vector<8x1xi1> to vector<8x1xi1>
    %139 = vector.broadcast %138 : vector<8x1xi1> to vector<8x128xi1>
    %140 = vector.broadcast %cst_40 : f32 to vector<8x128xf32>
    %141 = arith.select %139, %131, %140 : vector<8x128xi1>, vector<8x128xf32>
    %c1_41 = arith.constant 1 : index
    %c0_42 = arith.constant 0 : index
    %c0_43 = arith.constant 0 : index
    %142 = vector.load %arg9[%c1_41, %c0_42, %c0_43] : memref<8x8x128xf32, #tpu.memory_space<vmem>>, vector<1x8x128xf32>
    %143 = vector.shape_cast %142 : vector<1x8x128xf32> to vector<8x128xf32>
    %144 = vector.shape_cast %141 : vector<8x128xf32> to vector<1x8x128xf32>
    tpu.vector_store %arg9[%c1_41, %c0_42, %c0_43], %144 {strides = array<i32>} : memref<8x8x128xf32, #tpu.memory_space<vmem>>, vector<1x8x128xf32>,
    %c6 = arith.constant 6 : index
    %c0_44 = arith.constant 0 : index
    %c0_45 = arith.constant 0 : index
    %145 = vector.load %arg3[%c6, %c0_44, %c0_45] : memref<8x8x384xbf16, #tpu.memory_space<vmem>>, vector<1x8x384xbf16>
    %146 = vector.shape_cast %145 : vector<1x8x384xbf16> to vector<8x384xbf16>
    %147 = arith.extf %146 : vector<8x384xbf16> to vector<8x384xf32>
    %148 = arith.truncf %93 : vector<8x128xf32> to vector<8x128xbf16>
    %cst_46 = arith.constant dense<0.000000e+00> : vector<8x384xf32>
    %149 = tpu.matmul %148, %8, %cst_46 {dimension_numbers = #tpu.dot_dimension_numbers<[1], [0], [0], [1], [0, 0, 1, 1], [], []>} : vector<8x128xbf16>, vector<128x384xbf16>, vector<8x384xf32> -> vector<8x384xf32>
    %150 = vector.extract_strided_slice %147 {offsets = [0, 0], sizes = [8, 128], strides = [1, 1]} : vector<8x384xf32> to vector<8x128xf32>
    %151 = vector.extract_strided_slice %149 {offsets = [0, 0], sizes = [8, 128], strides = [1, 1]} : vector<8x384xf32> to vector<8x128xf32>
    %152 = arith.addf %150, %151 : vector<8x128xf32>
    %153 = arith.negf %152 : vector<8x128xf32>
    %154 = math.exp %153 : vector<8x128xf32>
    %cst_47 = arith.constant 1.000000e+00 : f32
    %155 = vector.broadcast %cst_47 : f32 to vector<8x128xf32>
    %156 = arith.addf %155, %154 : vector<8x128xf32>
    %157 = arith.divf %155, %156 : vector<8x128xf32>
    %158 = vector.extract_strided_slice %147 {offsets = [0, 128], sizes = [8, 128], strides = [1, 1]} : vector<8x384xf32> to vector<8x128xf32>
    %159 = vector.extract_strided_slice %149 {offsets = [0, 128], sizes = [8, 128], strides = [1, 1]} : vector<8x384xf32> to vector<8x128xf32>
    %160 = arith.addf %158, %159 : vector<8x128xf32>
    %161 = arith.negf %160 : vector<8x128xf32>
    %162 = math.exp %161 : vector<8x128xf32>
    %cst_48 = arith.constant 1.000000e+00 : f32
    %163 = vector.broadcast %cst_48 : f32 to vector<8x128xf32>
    %164 = arith.addf %163, %162 : vector<8x128xf32>
    %165 = arith.divf %163, %164 : vector<8x128xf32>
    %166 = vector.extract_strided_slice %147 {offsets = [0, 256], sizes = [8, 128], strides = [1, 1]} : vector<8x384xf32> to vector<8x128xf32>
    %167 = vector.extract_strided_slice %149 {offsets = [0, 256], sizes = [8, 128], strides = [1, 1]} : vector<8x384xf32> to vector<8x128xf32>
    %168 = vector.broadcast %10 : vector<1x128xf32> to vector<8x128xf32>
    %169 = arith.addf %167, %168 : vector<8x128xf32>
    %170 = arith.mulf %157, %169 : vector<8x128xf32>
    %171 = arith.addf %166, %170 : vector<8x128xf32>
    %172 = math.tanh %171 : vector<8x128xf32>
    %173 = arith.subf %93, %172 : vector<8x128xf32>
    %174 = arith.mulf %165, %173 : vector<8x128xf32>
    %175 = arith.addf %172, %174 : vector<8x128xf32>
    %c6_i32 = arith.constant 6 : i32
    %176 = arith.addi %6, %c6_i32 : i32
    %177 = vector.broadcast %176 : i32 to vector<8x1xi32>
    %178 = arith.cmpi sgt, %3, %177 : vector<8x1xi32>
    %179 = vector.shape_cast %178 : vector<8x1xi1> to vector<8x1xi1>
    %180 = vector.broadcast %179 : vector<8x1xi1> to vector<8x128xi1>
    %181 = arith.select %180, %175, %93 : vector<8x128xi1>, vector<8x128xf32>
    %cst_49 = arith.constant 0.000000e+00 : f32
    %182 = vector.shape_cast %178 : vector<8x1xi1> to vector<8x1xi1>
    %183 = vector.broadcast %182 : vector<8x1xi1> to vector<8x128xi1>
    %184 = vector.broadcast %cst_49 : f32 to vector<8x128xf32>
    %185 = arith.select %183, %175, %184 : vector<8x128xi1>, vector<8x128xf32>
    %c6_50 = arith.constant 6 : index
    %c0_51 = arith.constant 0 : index
    %c0_52 = arith.constant 0 : index
    %186 = vector.load %arg10[%c6_50, %c0_51, %c0_52] : memref<8x8x128xf32, #tpu.memory_space<vmem>>, vector<1x8x128xf32>
    %187 = vector.shape_cast %186 : vector<1x8x128xf32> to vector<8x128xf32>
    %188 = vector.shape_cast %185 : vector<8x128xf32> to vector<1x8x128xf32>
    tpu.vector_store %arg10[%c6_50, %c0_51, %c0_52], %188 {strides = array<i32>} : memref<8x8x128xf32, #tpu.memory_space<vmem>>, vector<1x8x128xf32>,
    %c2 = arith.constant 2 : index
    %c0_53 = arith.constant 0 : index
    %c0_54 = arith.constant 0 : index
    %189 = vector.load %arg2[%c2, %c0_53, %c0_54] : memref<8x8x384xbf16, #tpu.memory_space<vmem>>, vector<1x8x384xbf16>
    %190 = vector.shape_cast %189 : vector<1x8x384xbf16> to vector<8x384xbf16>
    %191 = arith.extf %190 : vector<8x384xbf16> to vector<8x384xf32>
    %192 = arith.truncf %137 : vector<8x128xf32> to vector<8x128xbf16>
    %cst_55 = arith.constant dense<0.000000e+00> : vector<8x384xf32>
    %193 = tpu.matmul %192, %7, %cst_55 {dimension_numbers = #tpu.dot_dimension_numbers<[1], [0], [0], [1], [0, 0, 1, 1], [], []>} : vector<8x128xbf16>, vector<128x384xbf16>, vector<8x384xf32> -> vector<8x384xf32>
    %194 = vector.extract_strided_slice %191 {offsets = [0, 0], sizes = [8, 128], strides = [1, 1]} : vector<8x384xf32> to vector<8x128xf32>
    %195 = vector.extract_strided_slice %193 {offsets = [0, 0], sizes = [8, 128], strides = [1, 1]} : vector<8x384xf32> to vector<8x128xf32>
    %196 = arith.addf %194, %195 : vector<8x128xf32>
    %197 = arith.negf %196 : vector<8x128xf32>
    %198 = math.exp %197 : vector<8x128xf32>
    %cst_56 = arith.constant 1.000000e+00 : f32
    %199 = vector.broadcast %cst_56 : f32 to vector<8x128xf32>
    %200 = arith.addf %199, %198 : vector<8x128xf32>
    %201 = arith.divf %199, %200 : vector<8x128xf32>
    %202 = vector.extract_strided_slice %191 {offsets = [0, 128], sizes = [8, 128], strides = [1, 1]} : vector<8x384xf32> to vector<8x128xf32>
    %203 = vector.extract_strided_slice %193 {offsets = [0, 128], sizes = [8, 128], strides = [1, 1]} : vector<8x384xf32> to vector<8x128xf32>
    %204 = arith.addf %202, %203 : vector<8x128xf32>
    %205 = arith.negf %204 : vector<8x128xf32>
    %206 = math.exp %205 : vector<8x128xf32>
    %cst_57 = arith.constant 1.000000e+00 : f32
    %207 = vector.broadcast %cst_57 : f32 to vector<8x128xf32>
    %208 = arith.addf %207, %206 : vector<8x128xf32>
    %209 = arith.divf %207, %208 : vector<8x128xf32>
    %210 = vector.extract_strided_slice %191 {offsets = [0, 256], sizes = [8, 128], strides = [1, 1]} : vector<8x384xf32> to vector<8x128xf32>
    %211 = vector.extract_strided_slice %193 {offsets = [0, 256], sizes = [8, 128], strides = [1, 1]} : vector<8x384xf32> to vector<8x128xf32>
    %212 = vector.broadcast %9 : vector<1x128xf32> to vector<8x128xf32>
    %213 = arith.addf %211, %212 : vector<8x128xf32>
    %214 = arith.mulf %201, %213 : vector<8x128xf32>
    %215 = arith.addf %210, %214 : vector<8x128xf32>
    %216 = math.tanh %215 : vector<8x128xf32>
    %217 = arith.subf %137, %216 : vector<8x128xf32>
    %218 = arith.mulf %209, %217 : vector<8x128xf32>
    %219 = arith.addf %216, %218 : vector<8x128xf32>
    %c2_i32 = arith.constant 2 : i32
    %220 = arith.addi %4, %c2_i32 : i32
    %221 = vector.broadcast %220 : i32 to vector<8x1xi32>
    %222 = arith.cmpi sgt, %3, %221 : vector<8x1xi32>
    %223 = vector.shape_cast %222 : vector<8x1xi1> to vector<8x1xi1>
    %224 = vector.broadcast %223 : vector<8x1xi1> to vector<8x128xi1>
    %225 = arith.select %224, %219, %137 : vector<8x128xi1>, vector<8x128xf32>
    %cst_58 = arith.constant 0.000000e+00 : f32
    %226 = vector.shape_cast %222 : vector<8x1xi1> to vector<8x1xi1>
    %227 = vector.broadcast %226 : vector<8x1xi1> to vector<8x128xi1>
    %228 = vector.broadcast %cst_58 : f32 to vector<8x128xf32>
    %229 = arith.select %227, %219, %228 : vector<8x128xi1>, vector<8x128xf32>
    %c2_59 = arith.constant 2 : index
    %c0_60 = arith.constant 0 : index
    %c0_61 = arith.constant 0 : index
    %230 = vector.load %arg9[%c2_59, %c0_60, %c0_61] : memref<8x8x128xf32, #tpu.memory_space<vmem>>, vector<1x8x128xf32>
    %231 = vector.shape_cast %230 : vector<1x8x128xf32> to vector<8x128xf32>
    %232 = vector.shape_cast %229 : vector<8x128xf32> to vector<1x8x128xf32>
    tpu.vector_store %arg9[%c2_59, %c0_60, %c0_61], %232 {strides = array<i32>} : memref<8x8x128xf32, #tpu.memory_space<vmem>>, vector<1x8x128xf32>,
    %c5 = arith.constant 5 : index
    %c0_62 = arith.constant 0 : index
    %c0_63 = arith.constant 0 : index
    %233 = vector.load %arg3[%c5, %c0_62, %c0_63] : memref<8x8x384xbf16, #tpu.memory_space<vmem>>, vector<1x8x384xbf16>
    %234 = vector.shape_cast %233 : vector<1x8x384xbf16> to vector<8x384xbf16>
    %235 = arith.extf %234 : vector<8x384xbf16> to vector<8x384xf32>
    %236 = arith.truncf %181 : vector<8x128xf32> to vector<8x128xbf16>
    %cst_64 = arith.constant dense<0.000000e+00> : vector<8x384xf32>
    %237 = tpu.matmul %236, %8, %cst_64 {dimension_numbers = #tpu.dot_dimension_numbers<[1], [0], [0], [1], [0, 0, 1, 1], [], []>} : vector<8x128xbf16>, vector<128x384xbf16>, vector<8x384xf32> -> vector<8x384xf32>
    %238 = vector.extract_strided_slice %235 {offsets = [0, 0], sizes = [8, 128], strides = [1, 1]} : vector<8x384xf32> to vector<8x128xf32>
    %239 = vector.extract_strided_slice %237 {offsets = [0, 0], sizes = [8, 128], strides = [1, 1]} : vector<8x384xf32> to vector<8x128xf32>
    %240 = arith.addf %238, %239 : vector<8x128xf32>
    %241 = arith.negf %240 : vector<8x128xf32>
    %242 = math.exp %241 : vector<8x128xf32>
    %cst_65 = arith.constant 1.000000e+00 : f32
    %243 = vector.broadcast %cst_65 : f32 to vector<8x128xf32>
    %244 = arith.addf %243, %242 : vector<8x128xf32>
    %245 = arith.divf %243, %244 : vector<8x128xf32>
    %246 = vector.extract_strided_slice %235 {offsets = [0, 128], sizes = [8, 128], strides = [1, 1]} : vector<8x384xf32> to vector<8x128xf32>
    %247 = vector.extract_strided_slice %237 {offsets = [0, 128], sizes = [8, 128], strides = [1, 1]} : vector<8x384xf32> to vector<8x128xf32>
    %248 = arith.addf %246, %247 : vector<8x128xf32>
    %249 = arith.negf %248 : vector<8x128xf32>
    %250 = math.exp %249 : vector<8x128xf32>
    %cst_66 = arith.constant 1.000000e+00 : f32
    %251 = vector.broadcast %cst_66 : f32 to vector<8x128xf32>
    %252 = arith.addf %251, %250 : vector<8x128xf32>
    %253 = arith.divf %251, %252 : vector<8x128xf32>
    %254 = vector.extract_strided_slice %235 {offsets = [0, 256], sizes = [8, 128], strides = [1, 1]} : vector<8x384xf32> to vector<8x128xf32>
    %255 = vector.extract_strided_slice %237 {offsets = [0, 256], sizes = [8, 128], strides = [1, 1]} : vector<8x384xf32> to vector<8x128xf32>
    %256 = vector.broadcast %10 : vector<1x128xf32> to vector<8x128xf32>
    %257 = arith.addf %255, %256 : vector<8x128xf32>
    %258 = arith.mulf %245, %257 : vector<8x128xf32>
    %259 = arith.addf %254, %258 : vector<8x128xf32>
    %260 = math.tanh %259 : vector<8x128xf32>
    %261 = arith.subf %181, %260 : vector<8x128xf32>
    %262 = arith.mulf %253, %261 : vector<8x128xf32>
    %263 = arith.addf %260, %262 : vector<8x128xf32>
    %c5_i32 = arith.constant 5 : i32
    %264 = arith.addi %6, %c5_i32 : i32
    %265 = vector.broadcast %264 : i32 to vector<8x1xi32>
    %266 = arith.cmpi sgt, %3, %265 : vector<8x1xi32>
    %267 = vector.shape_cast %266 : vector<8x1xi1> to vector<8x1xi1>
    %268 = vector.broadcast %267 : vector<8x1xi1> to vector<8x128xi1>
    %269 = arith.select %268, %263, %181 : vector<8x128xi1>, vector<8x128xf32>
    %cst_67 = arith.constant 0.000000e+00 : f32
    %270 = vector.shape_cast %266 : vector<8x1xi1> to vector<8x1xi1>
    %271 = vector.broadcast %270 : vector<8x1xi1> to vector<8x128xi1>
    %272 = vector.broadcast %cst_67 : f32 to vector<8x128xf32>
    %273 = arith.select %271, %263, %272 : vector<8x128xi1>, vector<8x128xf32>
    %c5_68 = arith.constant 5 : index
    %c0_69 = arith.constant 0 : index
    %c0_70 = arith.constant 0 : index
    %274 = vector.load %arg10[%c5_68, %c0_69, %c0_70] : memref<8x8x128xf32, #tpu.memory_space<vmem>>, vector<1x8x128xf32>
    %275 = vector.shape_cast %274 : vector<1x8x128xf32> to vector<8x128xf32>
    %276 = vector.shape_cast %273 : vector<8x128xf32> to vector<1x8x128xf32>
    tpu.vector_store %arg10[%c5_68, %c0_69, %c0_70], %276 {strides = array<i32>} : memref<8x8x128xf32, #tpu.memory_space<vmem>>, vector<1x8x128xf32>,
    %c3 = arith.constant 3 : index
    %c0_71 = arith.constant 0 : index
    %c0_72 = arith.constant 0 : index
    %277 = vector.load %arg2[%c3, %c0_71, %c0_72] : memref<8x8x384xbf16, #tpu.memory_space<vmem>>, vector<1x8x384xbf16>
    %278 = vector.shape_cast %277 : vector<1x8x384xbf16> to vector<8x384xbf16>
    %279 = arith.extf %278 : vector<8x384xbf16> to vector<8x384xf32>
    %280 = arith.truncf %225 : vector<8x128xf32> to vector<8x128xbf16>
    %cst_73 = arith.constant dense<0.000000e+00> : vector<8x384xf32>
    %281 = tpu.matmul %280, %7, %cst_73 {dimension_numbers = #tpu.dot_dimension_numbers<[1], [0], [0], [1], [0, 0, 1, 1], [], []>} : vector<8x128xbf16>, vector<128x384xbf16>, vector<8x384xf32> -> vector<8x384xf32>
    %282 = vector.extract_strided_slice %279 {offsets = [0, 0], sizes = [8, 128], strides = [1, 1]} : vector<8x384xf32> to vector<8x128xf32>
    %283 = vector.extract_strided_slice %281 {offsets = [0, 0], sizes = [8, 128], strides = [1, 1]} : vector<8x384xf32> to vector<8x128xf32>
    %284 = arith.addf %282, %283 : vector<8x128xf32>
    %285 = arith.negf %284 : vector<8x128xf32>
    %286 = math.exp %285 : vector<8x128xf32>
    %cst_74 = arith.constant 1.000000e+00 : f32
    %287 = vector.broadcast %cst_74 : f32 to vector<8x128xf32>
    %288 = arith.addf %287, %286 : vector<8x128xf32>
    %289 = arith.divf %287, %288 : vector<8x128xf32>
    %290 = vector.extract_strided_slice %279 {offsets = [0, 128], sizes = [8, 128], strides = [1, 1]} : vector<8x384xf32> to vector<8x128xf32>
    %291 = vector.extract_strided_slice %281 {offsets = [0, 128], sizes = [8, 128], strides = [1, 1]} : vector<8x384xf32> to vector<8x128xf32>
    %292 = arith.addf %290, %291 : vector<8x128xf32>
    %293 = arith.negf %292 : vector<8x128xf32>
    %294 = math.exp %293 : vector<8x128xf32>
    %cst_75 = arith.constant 1.000000e+00 : f32
    %295 = vector.broadcast %cst_75 : f32 to vector<8x128xf32>
    %296 = arith.addf %295, %294 : vector<8x128xf32>
    %297 = arith.divf %295, %296 : vector<8x128xf32>
    %298 = vector.extract_strided_slice %279 {offsets = [0, 256], sizes = [8, 128], strides = [1, 1]} : vector<8x384xf32> to vector<8x128xf32>
    %299 = vector.extract_strided_slice %281 {offsets = [0, 256], sizes = [8, 128], strides = [1, 1]} : vector<8x384xf32> to vector<8x128xf32>
    %300 = vector.broadcast %9 : vector<1x128xf32> to vector<8x128xf32>
    %301 = arith.addf %299, %300 : vector<8x128xf32>
    %302 = arith.mulf %289, %301 : vector<8x128xf32>
    %303 = arith.addf %298, %302 : vector<8x128xf32>
    %304 = math.tanh %303 : vector<8x128xf32>
    %305 = arith.subf %225, %304 : vector<8x128xf32>
    %306 = arith.mulf %297, %305 : vector<8x128xf32>
    %307 = arith.addf %304, %306 : vector<8x128xf32>
    %c3_i32 = arith.constant 3 : i32
    %308 = arith.addi %4, %c3_i32 : i32
    %309 = vector.broadcast %308 : i32 to vector<8x1xi32>
    %310 = arith.cmpi sgt, %3, %309 : vector<8x1xi32>
    %311 = vector.shape_cast %310 : vector<8x1xi1> to vector<8x1xi1>
    %312 = vector.broadcast %311 : vector<8x1xi1> to vector<8x128xi1>
    %313 = arith.select %312, %307, %225 : vector<8x128xi1>, vector<8x128xf32>
    %cst_76 = arith.constant 0.000000e+00 : f32
    %314 = vector.shape_cast %310 : vector<8x1xi1> to vector<8x1xi1>
    %315 = vector.broadcast %314 : vector<8x1xi1> to vector<8x128xi1>
    %316 = vector.broadcast %cst_76 : f32 to vector<8x128xf32>
    %317 = arith.select %315, %307, %316 : vector<8x128xi1>, vector<8x128xf32>
    %c3_77 = arith.constant 3 : index
    %c0_78 = arith.constant 0 : index
    %c0_79 = arith.constant 0 : index
    %318 = vector.load %arg9[%c3_77, %c0_78, %c0_79] : memref<8x8x128xf32, #tpu.memory_space<vmem>>, vector<1x8x128xf32>
    %319 = vector.shape_cast %318 : vector<1x8x128xf32> to vector<8x128xf32>
    %320 = vector.shape_cast %317 : vector<8x128xf32> to vector<1x8x128xf32>
    tpu.vector_store %arg9[%c3_77, %c0_78, %c0_79], %320 {strides = array<i32>} : memref<8x8x128xf32, #tpu.memory_space<vmem>>, vector<1x8x128xf32>,
    %c4 = arith.constant 4 : index
    %c0_80 = arith.constant 0 : index
    %c0_81 = arith.constant 0 : index
    %321 = vector.load %arg3[%c4, %c0_80, %c0_81] : memref<8x8x384xbf16, #tpu.memory_space<vmem>>, vector<1x8x384xbf16>
    %322 = vector.shape_cast %321 : vector<1x8x384xbf16> to vector<8x384xbf16>
    %323 = arith.extf %322 : vector<8x384xbf16> to vector<8x384xf32>
    %324 = arith.truncf %269 : vector<8x128xf32> to vector<8x128xbf16>
    %cst_82 = arith.constant dense<0.000000e+00> : vector<8x384xf32>
    %325 = tpu.matmul %324, %8, %cst_82 {dimension_numbers = #tpu.dot_dimension_numbers<[1], [0], [0], [1], [0, 0, 1, 1], [], []>} : vector<8x128xbf16>, vector<128x384xbf16>, vector<8x384xf32> -> vector<8x384xf32>
    %326 = vector.extract_strided_slice %323 {offsets = [0, 0], sizes = [8, 128], strides = [1, 1]} : vector<8x384xf32> to vector<8x128xf32>
    %327 = vector.extract_strided_slice %325 {offsets = [0, 0], sizes = [8, 128], strides = [1, 1]} : vector<8x384xf32> to vector<8x128xf32>
    %328 = arith.addf %326, %327 : vector<8x128xf32>
    %329 = arith.negf %328 : vector<8x128xf32>
    %330 = math.exp %329 : vector<8x128xf32>
    %cst_83 = arith.constant 1.000000e+00 : f32
    %331 = vector.broadcast %cst_83 : f32 to vector<8x128xf32>
    %332 = arith.addf %331, %330 : vector<8x128xf32>
    %333 = arith.divf %331, %332 : vector<8x128xf32>
    %334 = vector.extract_strided_slice %323 {offsets = [0, 128], sizes = [8, 128], strides = [1, 1]} : vector<8x384xf32> to vector<8x128xf32>
    %335 = vector.extract_strided_slice %325 {offsets = [0, 128], sizes = [8, 128], strides = [1, 1]} : vector<8x384xf32> to vector<8x128xf32>
    %336 = arith.addf %334, %335 : vector<8x128xf32>
    %337 = arith.negf %336 : vector<8x128xf32>
    %338 = math.exp %337 : vector<8x128xf32>
    %cst_84 = arith.constant 1.000000e+00 : f32
    %339 = vector.broadcast %cst_84 : f32 to vector<8x128xf32>
    %340 = arith.addf %339, %338 : vector<8x128xf32>
    %341 = arith.divf %339, %340 : vector<8x128xf32>
    %342 = vector.extract_strided_slice %323 {offsets = [0, 256], sizes = [8, 128], strides = [1, 1]} : vector<8x384xf32> to vector<8x128xf32>
    %343 = vector.extract_strided_slice %325 {offsets = [0, 256], sizes = [8, 128], strides = [1, 1]} : vector<8x384xf32> to vector<8x128xf32>
    %344 = vector.broadcast %10 : vector<1x128xf32> to vector<8x128xf32>
    %345 = arith.addf %343, %344 : vector<8x128xf32>
    %346 = arith.mulf %333, %345 : vector<8x128xf32>
    %347 = arith.addf %342, %346 : vector<8x128xf32>
    %348 = math.tanh %347 : vector<8x128xf32>
    %349 = arith.subf %269, %348 : vector<8x128xf32>
    %350 = arith.mulf %341, %349 : vector<8x128xf32>
    %351 = arith.addf %348, %350 : vector<8x128xf32>
    %c4_i32 = arith.constant 4 : i32
    %352 = arith.addi %6, %c4_i32 : i32
    %353 = vector.broadcast %352 : i32 to vector<8x1xi32>
    %354 = arith.cmpi sgt, %3, %353 : vector<8x1xi32>
    %355 = vector.shape_cast %354 : vector<8x1xi1> to vector<8x1xi1>
    %356 = vector.broadcast %355 : vector<8x1xi1> to vector<8x128xi1>
    %357 = arith.select %356, %351, %269 : vector<8x128xi1>, vector<8x128xf32>
    %cst_85 = arith.constant 0.000000e+00 : f32
    %358 = vector.shape_cast %354 : vector<8x1xi1> to vector<8x1xi1>
    %359 = vector.broadcast %358 : vector<8x1xi1> to vector<8x128xi1>
    %360 = vector.broadcast %cst_85 : f32 to vector<8x128xf32>
    %361 = arith.select %359, %351, %360 : vector<8x128xi1>, vector<8x128xf32>
    %c4_86 = arith.constant 4 : index
    %c0_87 = arith.constant 0 : index
    %c0_88 = arith.constant 0 : index
    %362 = vector.load %arg10[%c4_86, %c0_87, %c0_88] : memref<8x8x128xf32, #tpu.memory_space<vmem>>, vector<1x8x128xf32>
    %363 = vector.shape_cast %362 : vector<1x8x128xf32> to vector<8x128xf32>
    %364 = vector.shape_cast %361 : vector<8x128xf32> to vector<1x8x128xf32>
    tpu.vector_store %arg10[%c4_86, %c0_87, %c0_88], %364 {strides = array<i32>} : memref<8x8x128xf32, #tpu.memory_space<vmem>>, vector<1x8x128xf32>,
    %c4_89 = arith.constant 4 : index
    %c0_90 = arith.constant 0 : index
    %c0_91 = arith.constant 0 : index
    %365 = vector.load %arg2[%c4_89, %c0_90, %c0_91] : memref<8x8x384xbf16, #tpu.memory_space<vmem>>, vector<1x8x384xbf16>
    %366 = vector.shape_cast %365 : vector<1x8x384xbf16> to vector<8x384xbf16>
    %367 = arith.extf %366 : vector<8x384xbf16> to vector<8x384xf32>
    %368 = arith.truncf %313 : vector<8x128xf32> to vector<8x128xbf16>
    %cst_92 = arith.constant dense<0.000000e+00> : vector<8x384xf32>
    %369 = tpu.matmul %368, %7, %cst_92 {dimension_numbers = #tpu.dot_dimension_numbers<[1], [0], [0], [1], [0, 0, 1, 1], [], []>} : vector<8x128xbf16>, vector<128x384xbf16>, vector<8x384xf32> -> vector<8x384xf32>
    %370 = vector.extract_strided_slice %367 {offsets = [0, 0], sizes = [8, 128], strides = [1, 1]} : vector<8x384xf32> to vector<8x128xf32>
    %371 = vector.extract_strided_slice %369 {offsets = [0, 0], sizes = [8, 128], strides = [1, 1]} : vector<8x384xf32> to vector<8x128xf32>
    %372 = arith.addf %370, %371 : vector<8x128xf32>
    %373 = arith.negf %372 : vector<8x128xf32>
    %374 = math.exp %373 : vector<8x128xf32>
    %cst_93 = arith.constant 1.000000e+00 : f32
    %375 = vector.broadcast %cst_93 : f32 to vector<8x128xf32>
    %376 = arith.addf %375, %374 : vector<8x128xf32>
    %377 = arith.divf %375, %376 : vector<8x128xf32>
    %378 = vector.extract_strided_slice %367 {offsets = [0, 128], sizes = [8, 128], strides = [1, 1]} : vector<8x384xf32> to vector<8x128xf32>
    %379 = vector.extract_strided_slice %369 {offsets = [0, 128], sizes = [8, 128], strides = [1, 1]} : vector<8x384xf32> to vector<8x128xf32>
    %380 = arith.addf %378, %379 : vector<8x128xf32>
    %381 = arith.negf %380 : vector<8x128xf32>
    %382 = math.exp %381 : vector<8x128xf32>
    %cst_94 = arith.constant 1.000000e+00 : f32
    %383 = vector.broadcast %cst_94 : f32 to vector<8x128xf32>
    %384 = arith.addf %383, %382 : vector<8x128xf32>
    %385 = arith.divf %383, %384 : vector<8x128xf32>
    %386 = vector.extract_strided_slice %367 {offsets = [0, 256], sizes = [8, 128], strides = [1, 1]} : vector<8x384xf32> to vector<8x128xf32>
    %387 = vector.extract_strided_slice %369 {offsets = [0, 256], sizes = [8, 128], strides = [1, 1]} : vector<8x384xf32> to vector<8x128xf32>
    %388 = vector.broadcast %9 : vector<1x128xf32> to vector<8x128xf32>
    %389 = arith.addf %387, %388 : vector<8x128xf32>
    %390 = arith.mulf %377, %389 : vector<8x128xf32>
    %391 = arith.addf %386, %390 : vector<8x128xf32>
    %392 = math.tanh %391 : vector<8x128xf32>
    %393 = arith.subf %313, %392 : vector<8x128xf32>
    %394 = arith.mulf %385, %393 : vector<8x128xf32>
    %395 = arith.addf %392, %394 : vector<8x128xf32>
    %c4_i32_95 = arith.constant 4 : i32
    %396 = arith.addi %4, %c4_i32_95 : i32
    %397 = vector.broadcast %396 : i32 to vector<8x1xi32>
    %398 = arith.cmpi sgt, %3, %397 : vector<8x1xi32>
    %399 = vector.shape_cast %398 : vector<8x1xi1> to vector<8x1xi1>
    %400 = vector.broadcast %399 : vector<8x1xi1> to vector<8x128xi1>
    %401 = arith.select %400, %395, %313 : vector<8x128xi1>, vector<8x128xf32>
    %cst_96 = arith.constant 0.000000e+00 : f32
    %402 = vector.shape_cast %398 : vector<8x1xi1> to vector<8x1xi1>
    %403 = vector.broadcast %402 : vector<8x1xi1> to vector<8x128xi1>
    %404 = vector.broadcast %cst_96 : f32 to vector<8x128xf32>
    %405 = arith.select %403, %395, %404 : vector<8x128xi1>, vector<8x128xf32>
    %c4_97 = arith.constant 4 : index
    %c0_98 = arith.constant 0 : index
    %c0_99 = arith.constant 0 : index
    %406 = vector.load %arg9[%c4_97, %c0_98, %c0_99] : memref<8x8x128xf32, #tpu.memory_space<vmem>>, vector<1x8x128xf32>
    %407 = vector.shape_cast %406 : vector<1x8x128xf32> to vector<8x128xf32>
    %408 = vector.shape_cast %405 : vector<8x128xf32> to vector<1x8x128xf32>
    tpu.vector_store %arg9[%c4_97, %c0_98, %c0_99], %408 {strides = array<i32>} : memref<8x8x128xf32, #tpu.memory_space<vmem>>, vector<1x8x128xf32>,
    %c3_100 = arith.constant 3 : index
    %c0_101 = arith.constant 0 : index
    %c0_102 = arith.constant 0 : index
    %409 = vector.load %arg3[%c3_100, %c0_101, %c0_102] : memref<8x8x384xbf16, #tpu.memory_space<vmem>>, vector<1x8x384xbf16>
    %410 = vector.shape_cast %409 : vector<1x8x384xbf16> to vector<8x384xbf16>
    %411 = arith.extf %410 : vector<8x384xbf16> to vector<8x384xf32>
    %412 = arith.truncf %357 : vector<8x128xf32> to vector<8x128xbf16>
    %cst_103 = arith.constant dense<0.000000e+00> : vector<8x384xf32>
    %413 = tpu.matmul %412, %8, %cst_103 {dimension_numbers = #tpu.dot_dimension_numbers<[1], [0], [0], [1], [0, 0, 1, 1], [], []>} : vector<8x128xbf16>, vector<128x384xbf16>, vector<8x384xf32> -> vector<8x384xf32>
    %414 = vector.extract_strided_slice %411 {offsets = [0, 0], sizes = [8, 128], strides = [1, 1]} : vector<8x384xf32> to vector<8x128xf32>
    %415 = vector.extract_strided_slice %413 {offsets = [0, 0], sizes = [8, 128], strides = [1, 1]} : vector<8x384xf32> to vector<8x128xf32>
    %416 = arith.addf %414, %415 : vector<8x128xf32>
    %417 = arith.negf %416 : vector<8x128xf32>
    %418 = math.exp %417 : vector<8x128xf32>
    %cst_104 = arith.constant 1.000000e+00 : f32
    %419 = vector.broadcast %cst_104 : f32 to vector<8x128xf32>
    %420 = arith.addf %419, %418 : vector<8x128xf32>
    %421 = arith.divf %419, %420 : vector<8x128xf32>
    %422 = vector.extract_strided_slice %411 {offsets = [0, 128], sizes = [8, 128], strides = [1, 1]} : vector<8x384xf32> to vector<8x128xf32>
    %423 = vector.extract_strided_slice %413 {offsets = [0, 128], sizes = [8, 128], strides = [1, 1]} : vector<8x384xf32> to vector<8x128xf32>
    %424 = arith.addf %422, %423 : vector<8x128xf32>
    %425 = arith.negf %424 : vector<8x128xf32>
    %426 = math.exp %425 : vector<8x128xf32>
    %cst_105 = arith.constant 1.000000e+00 : f32
    %427 = vector.broadcast %cst_105 : f32 to vector<8x128xf32>
    %428 = arith.addf %427, %426 : vector<8x128xf32>
    %429 = arith.divf %427, %428 : vector<8x128xf32>
    %430 = vector.extract_strided_slice %411 {offsets = [0, 256], sizes = [8, 128], strides = [1, 1]} : vector<8x384xf32> to vector<8x128xf32>
    %431 = vector.extract_strided_slice %413 {offsets = [0, 256], sizes = [8, 128], strides = [1, 1]} : vector<8x384xf32> to vector<8x128xf32>
    %432 = vector.broadcast %10 : vector<1x128xf32> to vector<8x128xf32>
    %433 = arith.addf %431, %432 : vector<8x128xf32>
    %434 = arith.mulf %421, %433 : vector<8x128xf32>
    %435 = arith.addf %430, %434 : vector<8x128xf32>
    %436 = math.tanh %435 : vector<8x128xf32>
    %437 = arith.subf %357, %436 : vector<8x128xf32>
    %438 = arith.mulf %429, %437 : vector<8x128xf32>
    %439 = arith.addf %436, %438 : vector<8x128xf32>
    %c3_i32_106 = arith.constant 3 : i32
    %440 = arith.addi %6, %c3_i32_106 : i32
    %441 = vector.broadcast %440 : i32 to vector<8x1xi32>
    %442 = arith.cmpi sgt, %3, %441 : vector<8x1xi32>
    %443 = vector.shape_cast %442 : vector<8x1xi1> to vector<8x1xi1>
    %444 = vector.broadcast %443 : vector<8x1xi1> to vector<8x128xi1>
    %445 = arith.select %444, %439, %357 : vector<8x128xi1>, vector<8x128xf32>
    %cst_107 = arith.constant 0.000000e+00 : f32
    %446 = vector.shape_cast %442 : vector<8x1xi1> to vector<8x1xi1>
    %447 = vector.broadcast %446 : vector<8x1xi1> to vector<8x128xi1>
    %448 = vector.broadcast %cst_107 : f32 to vector<8x128xf32>
    %449 = arith.select %447, %439, %448 : vector<8x128xi1>, vector<8x128xf32>
    %c3_108 = arith.constant 3 : index
    %c0_109 = arith.constant 0 : index
    %c0_110 = arith.constant 0 : index
    %450 = vector.load %arg10[%c3_108, %c0_109, %c0_110] : memref<8x8x128xf32, #tpu.memory_space<vmem>>, vector<1x8x128xf32>
    %451 = vector.shape_cast %450 : vector<1x8x128xf32> to vector<8x128xf32>
    %452 = vector.shape_cast %449 : vector<8x128xf32> to vector<1x8x128xf32>
    tpu.vector_store %arg10[%c3_108, %c0_109, %c0_110], %452 {strides = array<i32>} : memref<8x8x128xf32, #tpu.memory_space<vmem>>, vector<1x8x128xf32>,
    %c5_111 = arith.constant 5 : index
    %c0_112 = arith.constant 0 : index
    %c0_113 = arith.constant 0 : index
    %453 = vector.load %arg2[%c5_111, %c0_112, %c0_113] : memref<8x8x384xbf16, #tpu.memory_space<vmem>>, vector<1x8x384xbf16>
    %454 = vector.shape_cast %453 : vector<1x8x384xbf16> to vector<8x384xbf16>
    %455 = arith.extf %454 : vector<8x384xbf16> to vector<8x384xf32>
    %456 = arith.truncf %401 : vector<8x128xf32> to vector<8x128xbf16>
    %cst_114 = arith.constant dense<0.000000e+00> : vector<8x384xf32>
    %457 = tpu.matmul %456, %7, %cst_114 {dimension_numbers = #tpu.dot_dimension_numbers<[1], [0], [0], [1], [0, 0, 1, 1], [], []>} : vector<8x128xbf16>, vector<128x384xbf16>, vector<8x384xf32> -> vector<8x384xf32>
    %458 = vector.extract_strided_slice %455 {offsets = [0, 0], sizes = [8, 128], strides = [1, 1]} : vector<8x384xf32> to vector<8x128xf32>
    %459 = vector.extract_strided_slice %457 {offsets = [0, 0], sizes = [8, 128], strides = [1, 1]} : vector<8x384xf32> to vector<8x128xf32>
    %460 = arith.addf %458, %459 : vector<8x128xf32>
    %461 = arith.negf %460 : vector<8x128xf32>
    %462 = math.exp %461 : vector<8x128xf32>
    %cst_115 = arith.constant 1.000000e+00 : f32
    %463 = vector.broadcast %cst_115 : f32 to vector<8x128xf32>
    %464 = arith.addf %463, %462 : vector<8x128xf32>
    %465 = arith.divf %463, %464 : vector<8x128xf32>
    %466 = vector.extract_strided_slice %455 {offsets = [0, 128], sizes = [8, 128], strides = [1, 1]} : vector<8x384xf32> to vector<8x128xf32>
    %467 = vector.extract_strided_slice %457 {offsets = [0, 128], sizes = [8, 128], strides = [1, 1]} : vector<8x384xf32> to vector<8x128xf32>
    %468 = arith.addf %466, %467 : vector<8x128xf32>
    %469 = arith.negf %468 : vector<8x128xf32>
    %470 = math.exp %469 : vector<8x128xf32>
    %cst_116 = arith.constant 1.000000e+00 : f32
    %471 = vector.broadcast %cst_116 : f32 to vector<8x128xf32>
    %472 = arith.addf %471, %470 : vector<8x128xf32>
    %473 = arith.divf %471, %472 : vector<8x128xf32>
    %474 = vector.extract_strided_slice %455 {offsets = [0, 256], sizes = [8, 128], strides = [1, 1]} : vector<8x384xf32> to vector<8x128xf32>
    %475 = vector.extract_strided_slice %457 {offsets = [0, 256], sizes = [8, 128], strides = [1, 1]} : vector<8x384xf32> to vector<8x128xf32>
    %476 = vector.broadcast %9 : vector<1x128xf32> to vector<8x128xf32>
    %477 = arith.addf %475, %476 : vector<8x128xf32>
    %478 = arith.mulf %465, %477 : vector<8x128xf32>
    %479 = arith.addf %474, %478 : vector<8x128xf32>
    %480 = math.tanh %479 : vector<8x128xf32>
    %481 = arith.subf %401, %480 : vector<8x128xf32>
    %482 = arith.mulf %473, %481 : vector<8x128xf32>
    %483 = arith.addf %480, %482 : vector<8x128xf32>
    %c5_i32_117 = arith.constant 5 : i32
    %484 = arith.addi %4, %c5_i32_117 : i32
    %485 = vector.broadcast %484 : i32 to vector<8x1xi32>
    %486 = arith.cmpi sgt, %3, %485 : vector<8x1xi32>
    %487 = vector.shape_cast %486 : vector<8x1xi1> to vector<8x1xi1>
    %488 = vector.broadcast %487 : vector<8x1xi1> to vector<8x128xi1>
    %489 = arith.select %488, %483, %401 : vector<8x128xi1>, vector<8x128xf32>
    %cst_118 = arith.constant 0.000000e+00 : f32
    %490 = vector.shape_cast %486 : vector<8x1xi1> to vector<8x1xi1>
    %491 = vector.broadcast %490 : vector<8x1xi1> to vector<8x128xi1>
    %492 = vector.broadcast %cst_118 : f32 to vector<8x128xf32>
    %493 = arith.select %491, %483, %492 : vector<8x128xi1>, vector<8x128xf32>
    %c5_119 = arith.constant 5 : index
    %c0_120 = arith.constant 0 : index
    %c0_121 = arith.constant 0 : index
    %494 = vector.load %arg9[%c5_119, %c0_120, %c0_121] : memref<8x8x128xf32, #tpu.memory_space<vmem>>, vector<1x8x128xf32>
    %495 = vector.shape_cast %494 : vector<1x8x128xf32> to vector<8x128xf32>
    %496 = vector.shape_cast %493 : vector<8x128xf32> to vector<1x8x128xf32>
    tpu.vector_store %arg9[%c5_119, %c0_120, %c0_121], %496 {strides = array<i32>} : memref<8x8x128xf32, #tpu.memory_space<vmem>>, vector<1x8x128xf32>,
    %c2_122 = arith.constant 2 : index
    %c0_123 = arith.constant 0 : index
    %c0_124 = arith.constant 0 : index
    %497 = vector.load %arg3[%c2_122, %c0_123, %c0_124] : memref<8x8x384xbf16, #tpu.memory_space<vmem>>, vector<1x8x384xbf16>
    %498 = vector.shape_cast %497 : vector<1x8x384xbf16> to vector<8x384xbf16>
    %499 = arith.extf %498 : vector<8x384xbf16> to vector<8x384xf32>
    %500 = arith.truncf %445 : vector<8x128xf32> to vector<8x128xbf16>
    %cst_125 = arith.constant dense<0.000000e+00> : vector<8x384xf32>
    %501 = tpu.matmul %500, %8, %cst_125 {dimension_numbers = #tpu.dot_dimension_numbers<[1], [0], [0], [1], [0, 0, 1, 1], [], []>} : vector<8x128xbf16>, vector<128x384xbf16>, vector<8x384xf32> -> vector<8x384xf32>
    %502 = vector.extract_strided_slice %499 {offsets = [0, 0], sizes = [8, 128], strides = [1, 1]} : vector<8x384xf32> to vector<8x128xf32>
    %503 = vector.extract_strided_slice %501 {offsets = [0, 0], sizes = [8, 128], strides = [1, 1]} : vector<8x384xf32> to vector<8x128xf32>
    %504 = arith.addf %502, %503 : vector<8x128xf32>
    %505 = arith.negf %504 : vector<8x128xf32>
    %506 = math.exp %505 : vector<8x128xf32>
    %cst_126 = arith.constant 1.000000e+00 : f32
    %507 = vector.broadcast %cst_126 : f32 to vector<8x128xf32>
    %508 = arith.addf %507, %506 : vector<8x128xf32>
    %509 = arith.divf %507, %508 : vector<8x128xf32>
    %510 = vector.extract_strided_slice %499 {offsets = [0, 128], sizes = [8, 128], strides = [1, 1]} : vector<8x384xf32> to vector<8x128xf32>
    %511 = vector.extract_strided_slice %501 {offsets = [0, 128], sizes = [8, 128], strides = [1, 1]} : vector<8x384xf32> to vector<8x128xf32>
    %512 = arith.addf %510, %511 : vector<8x128xf32>
    %513 = arith.negf %512 : vector<8x128xf32>
    %514 = math.exp %513 : vector<8x128xf32>
    %cst_127 = arith.constant 1.000000e+00 : f32
    %515 = vector.broadcast %cst_127 : f32 to vector<8x128xf32>
    %516 = arith.addf %515, %514 : vector<8x128xf32>
    %517 = arith.divf %515, %516 : vector<8x128xf32>
    %518 = vector.extract_strided_slice %499 {offsets = [0, 256], sizes = [8, 128], strides = [1, 1]} : vector<8x384xf32> to vector<8x128xf32>
    %519 = vector.extract_strided_slice %501 {offsets = [0, 256], sizes = [8, 128], strides = [1, 1]} : vector<8x384xf32> to vector<8x128xf32>
    %520 = vector.broadcast %10 : vector<1x128xf32> to vector<8x128xf32>
    %521 = arith.addf %519, %520 : vector<8x128xf32>
    %522 = arith.mulf %509, %521 : vector<8x128xf32>
    %523 = arith.addf %518, %522 : vector<8x128xf32>
    %524 = math.tanh %523 : vector<8x128xf32>
    %525 = arith.subf %445, %524 : vector<8x128xf32>
    %526 = arith.mulf %517, %525 : vector<8x128xf32>
    %527 = arith.addf %524, %526 : vector<8x128xf32>
    %c2_i32_128 = arith.constant 2 : i32
    %528 = arith.addi %6, %c2_i32_128 : i32
    %529 = vector.broadcast %528 : i32 to vector<8x1xi32>
    %530 = arith.cmpi sgt, %3, %529 : vector<8x1xi32>
    %531 = vector.shape_cast %530 : vector<8x1xi1> to vector<8x1xi1>
    %532 = vector.broadcast %531 : vector<8x1xi1> to vector<8x128xi1>
    %533 = arith.select %532, %527, %445 : vector<8x128xi1>, vector<8x128xf32>
    %cst_129 = arith.constant 0.000000e+00 : f32
    %534 = vector.shape_cast %530 : vector<8x1xi1> to vector<8x1xi1>
    %535 = vector.broadcast %534 : vector<8x1xi1> to vector<8x128xi1>
    %536 = vector.broadcast %cst_129 : f32 to vector<8x128xf32>
    %537 = arith.select %535, %527, %536 : vector<8x128xi1>, vector<8x128xf32>
    %c2_130 = arith.constant 2 : index
    %c0_131 = arith.constant 0 : index
    %c0_132 = arith.constant 0 : index
    %538 = vector.load %arg10[%c2_130, %c0_131, %c0_132] : memref<8x8x128xf32, #tpu.memory_space<vmem>>, vector<1x8x128xf32>
    %539 = vector.shape_cast %538 : vector<1x8x128xf32> to vector<8x128xf32>
    %540 = vector.shape_cast %537 : vector<8x128xf32> to vector<1x8x128xf32>
    tpu.vector_store %arg10[%c2_130, %c0_131, %c0_132], %540 {strides = array<i32>} : memref<8x8x128xf32, #tpu.memory_space<vmem>>, vector<1x8x128xf32>,
    %c6_133 = arith.constant 6 : index
    %c0_134 = arith.constant 0 : index
    %c0_135 = arith.constant 0 : index
    %541 = vector.load %arg2[%c6_133, %c0_134, %c0_135] : memref<8x8x384xbf16, #tpu.memory_space<vmem>>, vector<1x8x384xbf16>
    %542 = vector.shape_cast %541 : vector<1x8x384xbf16> to vector<8x384xbf16>
    %543 = arith.extf %542 : vector<8x384xbf16> to vector<8x384xf32>
    %544 = arith.truncf %489 : vector<8x128xf32> to vector<8x128xbf16>
    %cst_136 = arith.constant dense<0.000000e+00> : vector<8x384xf32>
    %545 = tpu.matmul %544, %7, %cst_136 {dimension_numbers = #tpu.dot_dimension_numbers<[1], [0], [0], [1], [0, 0, 1, 1], [], []>} : vector<8x128xbf16>, vector<128x384xbf16>, vector<8x384xf32> -> vector<8x384xf32>
    %546 = vector.extract_strided_slice %543 {offsets = [0, 0], sizes = [8, 128], strides = [1, 1]} : vector<8x384xf32> to vector<8x128xf32>
    %547 = vector.extract_strided_slice %545 {offsets = [0, 0], sizes = [8, 128], strides = [1, 1]} : vector<8x384xf32> to vector<8x128xf32>
    %548 = arith.addf %546, %547 : vector<8x128xf32>
    %549 = arith.negf %548 : vector<8x128xf32>
    %550 = math.exp %549 : vector<8x128xf32>
    %cst_137 = arith.constant 1.000000e+00 : f32
    %551 = vector.broadcast %cst_137 : f32 to vector<8x128xf32>
    %552 = arith.addf %551, %550 : vector<8x128xf32>
    %553 = arith.divf %551, %552 : vector<8x128xf32>
    %554 = vector.extract_strided_slice %543 {offsets = [0, 128], sizes = [8, 128], strides = [1, 1]} : vector<8x384xf32> to vector<8x128xf32>
    %555 = vector.extract_strided_slice %545 {offsets = [0, 128], sizes = [8, 128], strides = [1, 1]} : vector<8x384xf32> to vector<8x128xf32>
    %556 = arith.addf %554, %555 : vector<8x128xf32>
    %557 = arith.negf %556 : vector<8x128xf32>
    %558 = math.exp %557 : vector<8x128xf32>
    %cst_138 = arith.constant 1.000000e+00 : f32
    %559 = vector.broadcast %cst_138 : f32 to vector<8x128xf32>
    %560 = arith.addf %559, %558 : vector<8x128xf32>
    %561 = arith.divf %559, %560 : vector<8x128xf32>
    %562 = vector.extract_strided_slice %543 {offsets = [0, 256], sizes = [8, 128], strides = [1, 1]} : vector<8x384xf32> to vector<8x128xf32>
    %563 = vector.extract_strided_slice %545 {offsets = [0, 256], sizes = [8, 128], strides = [1, 1]} : vector<8x384xf32> to vector<8x128xf32>
    %564 = vector.broadcast %9 : vector<1x128xf32> to vector<8x128xf32>
    %565 = arith.addf %563, %564 : vector<8x128xf32>
    %566 = arith.mulf %553, %565 : vector<8x128xf32>
    %567 = arith.addf %562, %566 : vector<8x128xf32>
    %568 = math.tanh %567 : vector<8x128xf32>
    %569 = arith.subf %489, %568 : vector<8x128xf32>
    %570 = arith.mulf %561, %569 : vector<8x128xf32>
    %571 = arith.addf %568, %570 : vector<8x128xf32>
    %c6_i32_139 = arith.constant 6 : i32
    %572 = arith.addi %4, %c6_i32_139 : i32
    %573 = vector.broadcast %572 : i32 to vector<8x1xi32>
    %574 = arith.cmpi sgt, %3, %573 : vector<8x1xi32>
    %575 = vector.shape_cast %574 : vector<8x1xi1> to vector<8x1xi1>
    %576 = vector.broadcast %575 : vector<8x1xi1> to vector<8x128xi1>
    %577 = arith.select %576, %571, %489 : vector<8x128xi1>, vector<8x128xf32>
    %cst_140 = arith.constant 0.000000e+00 : f32
    %578 = vector.shape_cast %574 : vector<8x1xi1> to vector<8x1xi1>
    %579 = vector.broadcast %578 : vector<8x1xi1> to vector<8x128xi1>
    %580 = vector.broadcast %cst_140 : f32 to vector<8x128xf32>
    %581 = arith.select %579, %571, %580 : vector<8x128xi1>, vector<8x128xf32>
    %c6_141 = arith.constant 6 : index
    %c0_142 = arith.constant 0 : index
    %c0_143 = arith.constant 0 : index
    %582 = vector.load %arg9[%c6_141, %c0_142, %c0_143] : memref<8x8x128xf32, #tpu.memory_space<vmem>>, vector<1x8x128xf32>
    %583 = vector.shape_cast %582 : vector<1x8x128xf32> to vector<8x128xf32>
    %584 = vector.shape_cast %581 : vector<8x128xf32> to vector<1x8x128xf32>
    tpu.vector_store %arg9[%c6_141, %c0_142, %c0_143], %584 {strides = array<i32>} : memref<8x8x128xf32, #tpu.memory_space<vmem>>, vector<1x8x128xf32>,
    %c1_144 = arith.constant 1 : index
    %c0_145 = arith.constant 0 : index
    %c0_146 = arith.constant 0 : index
    %585 = vector.load %arg3[%c1_144, %c0_145, %c0_146] : memref<8x8x384xbf16, #tpu.memory_space<vmem>>, vector<1x8x384xbf16>
    %586 = vector.shape_cast %585 : vector<1x8x384xbf16> to vector<8x384xbf16>
    %587 = arith.extf %586 : vector<8x384xbf16> to vector<8x384xf32>
    %588 = arith.truncf %533 : vector<8x128xf32> to vector<8x128xbf16>
    %cst_147 = arith.constant dense<0.000000e+00> : vector<8x384xf32>
    %589 = tpu.matmul %588, %8, %cst_147 {dimension_numbers = #tpu.dot_dimension_numbers<[1], [0], [0], [1], [0, 0, 1, 1], [], []>} : vector<8x128xbf16>, vector<128x384xbf16>, vector<8x384xf32> -> vector<8x384xf32>
    %590 = vector.extract_strided_slice %587 {offsets = [0, 0], sizes = [8, 128], strides = [1, 1]} : vector<8x384xf32> to vector<8x128xf32>
    %591 = vector.extract_strided_slice %589 {offsets = [0, 0], sizes = [8, 128], strides = [1, 1]} : vector<8x384xf32> to vector<8x128xf32>
    %592 = arith.addf %590, %591 : vector<8x128xf32>
    %593 = arith.negf %592 : vector<8x128xf32>
    %594 = math.exp %593 : vector<8x128xf32>
    %cst_148 = arith.constant 1.000000e+00 : f32
    %595 = vector.broadcast %cst_148 : f32 to vector<8x128xf32>
    %596 = arith.addf %595, %594 : vector<8x128xf32>
    %597 = arith.divf %595, %596 : vector<8x128xf32>
    %598 = vector.extract_strided_slice %587 {offsets = [0, 128], sizes = [8, 128], strides = [1, 1]} : vector<8x384xf32> to vector<8x128xf32>
    %599 = vector.extract_strided_slice %589 {offsets = [0, 128], sizes = [8, 128], strides = [1, 1]} : vector<8x384xf32> to vector<8x128xf32>
    %600 = arith.addf %598, %599 : vector<8x128xf32>
    %601 = arith.negf %600 : vector<8x128xf32>
    %602 = math.exp %601 : vector<8x128xf32>
    %cst_149 = arith.constant 1.000000e+00 : f32
    %603 = vector.broadcast %cst_149 : f32 to vector<8x128xf32>
    %604 = arith.addf %603, %602 : vector<8x128xf32>
    %605 = arith.divf %603, %604 : vector<8x128xf32>
    %606 = vector.extract_strided_slice %587 {offsets = [0, 256], sizes = [8, 128], strides = [1, 1]} : vector<8x384xf32> to vector<8x128xf32>
    %607 = vector.extract_strided_slice %589 {offsets = [0, 256], sizes = [8, 128], strides = [1, 1]} : vector<8x384xf32> to vector<8x128xf32>
    %608 = vector.broadcast %10 : vector<1x128xf32> to vector<8x128xf32>
    %609 = arith.addf %607, %608 : vector<8x128xf32>
    %610 = arith.mulf %597, %609 : vector<8x128xf32>
    %611 = arith.addf %606, %610 : vector<8x128xf32>
    %612 = math.tanh %611 : vector<8x128xf32>
    %613 = arith.subf %533, %612 : vector<8x128xf32>
    %614 = arith.mulf %605, %613 : vector<8x128xf32>
    %615 = arith.addf %612, %614 : vector<8x128xf32>
    %c1_i32_150 = arith.constant 1 : i32
    %616 = arith.addi %6, %c1_i32_150 : i32
    %617 = vector.broadcast %616 : i32 to vector<8x1xi32>
    %618 = arith.cmpi sgt, %3, %617 : vector<8x1xi32>
    %619 = vector.shape_cast %618 : vector<8x1xi1> to vector<8x1xi1>
    %620 = vector.broadcast %619 : vector<8x1xi1> to vector<8x128xi1>
    %621 = arith.select %620, %615, %533 : vector<8x128xi1>, vector<8x128xf32>
    %cst_151 = arith.constant 0.000000e+00 : f32
    %622 = vector.shape_cast %618 : vector<8x1xi1> to vector<8x1xi1>
    %623 = vector.broadcast %622 : vector<8x1xi1> to vector<8x128xi1>
    %624 = vector.broadcast %cst_151 : f32 to vector<8x128xf32>
    %625 = arith.select %623, %615, %624 : vector<8x128xi1>, vector<8x128xf32>
    %c1_152 = arith.constant 1 : index
    %c0_153 = arith.constant 0 : index
    %c0_154 = arith.constant 0 : index
    %626 = vector.load %arg10[%c1_152, %c0_153, %c0_154] : memref<8x8x128xf32, #tpu.memory_space<vmem>>, vector<1x8x128xf32>
    %627 = vector.shape_cast %626 : vector<1x8x128xf32> to vector<8x128xf32>
    %628 = vector.shape_cast %625 : vector<8x128xf32> to vector<1x8x128xf32>
    tpu.vector_store %arg10[%c1_152, %c0_153, %c0_154], %628 {strides = array<i32>} : memref<8x8x128xf32, #tpu.memory_space<vmem>>, vector<1x8x128xf32>,
    %c7_155 = arith.constant 7 : index
    %c0_156 = arith.constant 0 : index
    %c0_157 = arith.constant 0 : index
    %629 = vector.load %arg2[%c7_155, %c0_156, %c0_157] : memref<8x8x384xbf16, #tpu.memory_space<vmem>>, vector<1x8x384xbf16>
    %630 = vector.shape_cast %629 : vector<1x8x384xbf16> to vector<8x384xbf16>
    %631 = arith.extf %630 : vector<8x384xbf16> to vector<8x384xf32>
    %632 = arith.truncf %577 : vector<8x128xf32> to vector<8x128xbf16>
    %cst_158 = arith.constant dense<0.000000e+00> : vector<8x384xf32>
    %633 = tpu.matmul %632, %7, %cst_158 {dimension_numbers = #tpu.dot_dimension_numbers<[1], [0], [0], [1], [0, 0, 1, 1], [], []>} : vector<8x128xbf16>, vector<128x384xbf16>, vector<8x384xf32> -> vector<8x384xf32>
    %634 = vector.extract_strided_slice %631 {offsets = [0, 0], sizes = [8, 128], strides = [1, 1]} : vector<8x384xf32> to vector<8x128xf32>
    %635 = vector.extract_strided_slice %633 {offsets = [0, 0], sizes = [8, 128], strides = [1, 1]} : vector<8x384xf32> to vector<8x128xf32>
    %636 = arith.addf %634, %635 : vector<8x128xf32>
    %637 = arith.negf %636 : vector<8x128xf32>
    %638 = math.exp %637 : vector<8x128xf32>
    %cst_159 = arith.constant 1.000000e+00 : f32
    %639 = vector.broadcast %cst_159 : f32 to vector<8x128xf32>
    %640 = arith.addf %639, %638 : vector<8x128xf32>
    %641 = arith.divf %639, %640 : vector<8x128xf32>
    %642 = vector.extract_strided_slice %631 {offsets = [0, 128], sizes = [8, 128], strides = [1, 1]} : vector<8x384xf32> to vector<8x128xf32>
    %643 = vector.extract_strided_slice %633 {offsets = [0, 128], sizes = [8, 128], strides = [1, 1]} : vector<8x384xf32> to vector<8x128xf32>
    %644 = arith.addf %642, %643 : vector<8x128xf32>
    %645 = arith.negf %644 : vector<8x128xf32>
    %646 = math.exp %645 : vector<8x128xf32>
    %cst_160 = arith.constant 1.000000e+00 : f32
    %647 = vector.broadcast %cst_160 : f32 to vector<8x128xf32>
    %648 = arith.addf %647, %646 : vector<8x128xf32>
    %649 = arith.divf %647, %648 : vector<8x128xf32>
    %650 = vector.extract_strided_slice %631 {offsets = [0, 256], sizes = [8, 128], strides = [1, 1]} : vector<8x384xf32> to vector<8x128xf32>
    %651 = vector.extract_strided_slice %633 {offsets = [0, 256], sizes = [8, 128], strides = [1, 1]} : vector<8x384xf32> to vector<8x128xf32>
    %652 = vector.broadcast %9 : vector<1x128xf32> to vector<8x128xf32>
    %653 = arith.addf %651, %652 : vector<8x128xf32>
    %654 = arith.mulf %641, %653 : vector<8x128xf32>
    %655 = arith.addf %650, %654 : vector<8x128xf32>
    %656 = math.tanh %655 : vector<8x128xf32>
    %657 = arith.subf %577, %656 : vector<8x128xf32>
    %658 = arith.mulf %649, %657 : vector<8x128xf32>
    %659 = arith.addf %656, %658 : vector<8x128xf32>
    %c7_i32_161 = arith.constant 7 : i32
    %660 = arith.addi %4, %c7_i32_161 : i32
    %661 = vector.broadcast %660 : i32 to vector<8x1xi32>
    %662 = arith.cmpi sgt, %3, %661 : vector<8x1xi32>
    %663 = vector.shape_cast %662 : vector<8x1xi1> to vector<8x1xi1>
    %664 = vector.broadcast %663 : vector<8x1xi1> to vector<8x128xi1>
    %665 = arith.select %664, %659, %577 : vector<8x128xi1>, vector<8x128xf32>
    %cst_162 = arith.constant 0.000000e+00 : f32
    %666 = vector.shape_cast %662 : vector<8x1xi1> to vector<8x1xi1>
    %667 = vector.broadcast %666 : vector<8x1xi1> to vector<8x128xi1>
    %668 = vector.broadcast %cst_162 : f32 to vector<8x128xf32>
    %669 = arith.select %667, %659, %668 : vector<8x128xi1>, vector<8x128xf32>
    %c7_163 = arith.constant 7 : index
    %c0_164 = arith.constant 0 : index
    %c0_165 = arith.constant 0 : index
    %670 = vector.load %arg9[%c7_163, %c0_164, %c0_165] : memref<8x8x128xf32, #tpu.memory_space<vmem>>, vector<1x8x128xf32>
    %671 = vector.shape_cast %670 : vector<1x8x128xf32> to vector<8x128xf32>
    %672 = vector.shape_cast %669 : vector<8x128xf32> to vector<1x8x128xf32>
    tpu.vector_store %arg9[%c7_163, %c0_164, %c0_165], %672 {strides = array<i32>} : memref<8x8x128xf32, #tpu.memory_space<vmem>>, vector<1x8x128xf32>,
    %c0_166 = arith.constant 0 : index
    %c0_167 = arith.constant 0 : index
    %c0_168 = arith.constant 0 : index
    %673 = vector.load %arg3[%c0_166, %c0_167, %c0_168] : memref<8x8x384xbf16, #tpu.memory_space<vmem>>, vector<1x8x384xbf16>
    %674 = vector.shape_cast %673 : vector<1x8x384xbf16> to vector<8x384xbf16>
    %675 = arith.extf %674 : vector<8x384xbf16> to vector<8x384xf32>
    %676 = arith.truncf %621 : vector<8x128xf32> to vector<8x128xbf16>
    %cst_169 = arith.constant dense<0.000000e+00> : vector<8x384xf32>
    %677 = tpu.matmul %676, %8, %cst_169 {dimension_numbers = #tpu.dot_dimension_numbers<[1], [0], [0], [1], [0, 0, 1, 1], [], []>} : vector<8x128xbf16>, vector<128x384xbf16>, vector<8x384xf32> -> vector<8x384xf32>
    %678 = vector.extract_strided_slice %675 {offsets = [0, 0], sizes = [8, 128], strides = [1, 1]} : vector<8x384xf32> to vector<8x128xf32>
    %679 = vector.extract_strided_slice %677 {offsets = [0, 0], sizes = [8, 128], strides = [1, 1]} : vector<8x384xf32> to vector<8x128xf32>
    %680 = arith.addf %678, %679 : vector<8x128xf32>
    %681 = arith.negf %680 : vector<8x128xf32>
    %682 = math.exp %681 : vector<8x128xf32>
    %cst_170 = arith.constant 1.000000e+00 : f32
    %683 = vector.broadcast %cst_170 : f32 to vector<8x128xf32>
    %684 = arith.addf %683, %682 : vector<8x128xf32>
    %685 = arith.divf %683, %684 : vector<8x128xf32>
    %686 = vector.extract_strided_slice %675 {offsets = [0, 128], sizes = [8, 128], strides = [1, 1]} : vector<8x384xf32> to vector<8x128xf32>
    %687 = vector.extract_strided_slice %677 {offsets = [0, 128], sizes = [8, 128], strides = [1, 1]} : vector<8x384xf32> to vector<8x128xf32>
    %688 = arith.addf %686, %687 : vector<8x128xf32>
    %689 = arith.negf %688 : vector<8x128xf32>
    %690 = math.exp %689 : vector<8x128xf32>
    %cst_171 = arith.constant 1.000000e+00 : f32
    %691 = vector.broadcast %cst_171 : f32 to vector<8x128xf32>
    %692 = arith.addf %691, %690 : vector<8x128xf32>
    %693 = arith.divf %691, %692 : vector<8x128xf32>
    %694 = vector.extract_strided_slice %675 {offsets = [0, 256], sizes = [8, 128], strides = [1, 1]} : vector<8x384xf32> to vector<8x128xf32>
    %695 = vector.extract_strided_slice %677 {offsets = [0, 256], sizes = [8, 128], strides = [1, 1]} : vector<8x384xf32> to vector<8x128xf32>
    %696 = vector.broadcast %10 : vector<1x128xf32> to vector<8x128xf32>
    %697 = arith.addf %695, %696 : vector<8x128xf32>
    %698 = arith.mulf %685, %697 : vector<8x128xf32>
    %699 = arith.addf %694, %698 : vector<8x128xf32>
    %700 = math.tanh %699 : vector<8x128xf32>
    %701 = arith.subf %621, %700 : vector<8x128xf32>
    %702 = arith.mulf %693, %701 : vector<8x128xf32>
    %703 = arith.addf %700, %702 : vector<8x128xf32>
    %c0_i32_172 = arith.constant 0 : i32
    %704 = arith.addi %6, %c0_i32_172 : i32
    %705 = vector.broadcast %704 : i32 to vector<8x1xi32>
    %706 = arith.cmpi sgt, %3, %705 : vector<8x1xi32>
    %707 = vector.shape_cast %706 : vector<8x1xi1> to vector<8x1xi1>
    %708 = vector.broadcast %707 : vector<8x1xi1> to vector<8x128xi1>
    %709 = arith.select %708, %703, %621 : vector<8x128xi1>, vector<8x128xf32>
    %cst_173 = arith.constant 0.000000e+00 : f32
    %710 = vector.shape_cast %706 : vector<8x1xi1> to vector<8x1xi1>
    %711 = vector.broadcast %710 : vector<8x1xi1> to vector<8x128xi1>
    %712 = vector.broadcast %cst_173 : f32 to vector<8x128xf32>
    %713 = arith.select %711, %703, %712 : vector<8x128xi1>, vector<8x128xf32>
    %c0_174 = arith.constant 0 : index
    %c0_175 = arith.constant 0 : index
    %c0_176 = arith.constant 0 : index
    %714 = vector.load %arg10[%c0_174, %c0_175, %c0_176] : memref<8x8x128xf32, #tpu.memory_space<vmem>>, vector<1x8x128xf32>
    %715 = vector.shape_cast %714 : vector<1x8x128xf32> to vector<8x128xf32>
    %716 = vector.shape_cast %713 : vector<8x128xf32> to vector<1x8x128xf32>
    tpu.vector_store %arg10[%c0_174, %c0_175, %c0_176], %716 {strides = array<i32>} : memref<8x8x128xf32, #tpu.memory_space<vmem>>, vector<1x8x128xf32>,
    %c0_177 = arith.constant 0 : index
    %c0_178 = arith.constant 0 : index
    %717 = vector.load %arg11[%c0_177, %c0_178] : memref<8x128xf32, #tpu.memory_space<vmem>>, vector<8x128xf32>
    tpu.vector_store %arg11[%c0_177, %c0_178], %665 {strides = array<i32>} : memref<8x128xf32, #tpu.memory_space<vmem>>, vector<8x128xf32>,
    %c0_179 = arith.constant 0 : index
    %c0_180 = arith.constant 0 : index
    %718 = vector.load %arg12[%c0_179, %c0_180] : memref<8x128xf32, #tpu.memory_space<vmem>>, vector<8x128xf32>
    tpu.vector_store %arg12[%c0_179, %c0_180], %709 {strides = array<i32>} : memref<8x128xf32, #tpu.memory_space<vmem>>, vector<8x128xf32>,
    return
  }
  func.func @transform_0(%arg0: i32, %arg1: i32) -> (i32, i32, i32) {
    %c0_i32 = arith.constant 0 : i32
    %c0_i32_0 = arith.constant 0 : i32
    return %arg1, %arg0, %c0_i32 : i32, i32, i32
  }
  func.func @transform_1(%arg0: i32, %arg1: i32) -> (i32, i32, i32) {
    %c0_i32 = arith.constant 0 : i32
    %0 = arith.subi %c0_i32, %arg1 : i32
    %c1_i32 = arith.constant 1 : i32
    %c0_i32_0 = arith.constant 0 : i32
    return %0, %arg0, %c1_i32 : i32, i32, i32
  }
  func.func @transform_2(%arg0: i32, %arg1: i32) -> (i32, i32) {
    %c0_i32 = arith.constant 0 : i32
    %c0_i32_0 = arith.constant 0 : i32
    %c0_i32_1 = arith.constant 0 : i32
    return %c0_i32, %c0_i32_0 : i32, i32
  }
  func.func @transform_3(%arg0: i32, %arg1: i32) -> (i32, i32) {
    %c0_i32 = arith.constant 0 : i32
    %c0_i32_0 = arith.constant 0 : i32
    %c0_i32_1 = arith.constant 0 : i32
    return %c0_i32, %c0_i32_0 : i32, i32
  }
  func.func @transform_4(%arg0: i32, %arg1: i32) -> (i32, i32) {
    %c0_i32 = arith.constant 0 : i32
    %c0_i32_0 = arith.constant 0 : i32
    %c0_i32_1 = arith.constant 0 : i32
    return %c0_i32, %c0_i32_0 : i32, i32
  }
  func.func @transform_5(%arg0: i32, %arg1: i32) -> (i32, i32) {
    %c0_i32 = arith.constant 0 : i32
    %c0_i32_0 = arith.constant 0 : i32
    %c0_i32_1 = arith.constant 0 : i32
    return %c0_i32, %c0_i32_0 : i32, i32
  }
  func.func @transform_6(%arg0: i32, %arg1: i32) -> (i32, i32) {
    %c0_i32 = arith.constant 0 : i32
    %c0_i32_0 = arith.constant 0 : i32
    return %arg0, %c0_i32 : i32, i32
  }
  func.func @transform_7(%arg0: i32, %arg1: i32) -> (i32, i32, i32) {
    %c0_i32 = arith.constant 0 : i32
    %c0_i32_0 = arith.constant 0 : i32
    return %arg1, %arg0, %c0_i32 : i32, i32, i32
  }
  func.func @transform_8(%arg0: i32, %arg1: i32) -> (i32, i32, i32) {
    %c0_i32 = arith.constant 0 : i32
    %0 = arith.subi %c0_i32, %arg1 : i32
    %c0_i32_0 = arith.constant 0 : i32
    %c0_i32_1 = arith.constant 0 : i32
    return %0, %arg0, %c0_i32_0 : i32, i32, i32
  }
}

</mosaic_0001>

<bundles_post_ra>
// kernel: rnn_block_forward.4
= control target key start
LH: loop header
LB: loop body
LE: loop exit
PB: predicated region body
PF: predicated region fallthrough
CT: control target
= control target key end

     0   :  { %10 = vsyncpa [#allocation3], 0  ;;  %s1041_s0 = inlined_call_operand.hbm [shape: f32[64,16], index: 0, kind: input, shape index: {}]   ;;  %s1042_s1 = inlined_call_operand.hbm [shape: f32[1,16], index: 1, kind: input, shape index: {}]   ;;  %s1043_s2 = inlined_call_operand.hbm [shape: f32[1,16], index: 2, kind: input, shape index: {}]   ;;  %s1044_s3 = inlined_call_operand.hbm [shape: bf16[16,768], index: 3, kind: input, shape index: {}]   ;;  %s1045_s4 = inlined_call_operand.hbm [shape: f32[1,768], index: 4, kind: input, shape index: {}]   ;;  %s1046_s5 = inlined_call_operand.hbm [shape: bf16[64,768], index: 5, kind: output, shape index: {}]  }
   0x1   :  { %11 = vsyncpa [#allocation6], 0 }
   0x2   :  { %12 = vsyncpa [#allocation9], 0 }
   0x3   :  { %13 = vsyncpa [#allocation4], 0  ;;  %s851_s18 = smov [#allocation5]   ;;  %s852_s20 = smov [#allocation8]  }
   0x4   :  { %s32_s19 = sshll.u32 %s851_s18, 4  ;;  %s51_s21 = sshll.u32 %s852_s20, 4  ;;  %s33_s19 = int_to_ptr.vmem [resolvable:$true] %s32_s19  ;;  %s892_s21 = int_to_ptr.vmem [resolvable:$true] %s51_s21 }
   0x5   :  { %s711_s24 = scalar_lea.hbm %s1042_s1, 16 }
   0x6   :  { %p712_p0 = scmp.ne.s32.totalorder %s1042_s1, %s711_s24  ;;  %p715_p1 = scmp.lt.u32.totalorder %s711_s24, %s1042_s1 }
   0x8   :  { %p717_p2 = pnand %p715_p1, %p712_p0 }
   0xa   :  { %720 = shalt.err (!%p717_p2)
}
   0xb   :  { %s721_s29 = scalar_lea.vmem %s33_s19, 16  ;;  %s725_s30 = scalar_lea.vmem %s33_s19, 32 }
   0xc   :  { %p722_p3 = scmp.ne.s32.totalorder %s33_s19, %s721_s29  ;;  %p726_p4 = scmp.lt.s32.totalorder %s33_s19, %s33_s19 }
   0xd   :  { %p727_p5 = scmp.lt.s32.totalorder %s725_s30, %s721_s29 }
   0xf   :  { %p728_p6 = por %p727_p5, %p726_p4 }
  0x11   :  { %p729_p7 = pnand %p728_p6, %p722_p3 }
  0x13   :  { %732 = shalt.err (!%p729_p7)
}
  0x14   :  { %35 = dma.hbm_to_vmem [thread:$0]  %s1042_s1, 16, %s33_s19, [#allocation6]  }
  0x15   :  { %s733_s10 = scalar_lea.hbm %s1044_s3, 768 }
  0x16   :  { %p734_p8 = scmp.ne.s32.totalorder %s1044_s3, %s733_s10  ;;  %p737_p9 = scmp.lt.u32.totalorder %s733_s10, %s1044_s3 }
  0x18   :  { %p739_p10 = pnand %p737_p9, %p734_p8 }
  0x1a   :  { %742 = shalt.err (!%p739_p10)
}
  0x1b   :  { %s743_s15 = scalar_lea.vmem %s892_s21, 768  ;;  %p748_p12 = scmp.lt.s32.totalorder %s892_s21, %s892_s21 }
  0x1c   :  { %p744_p11 = scmp.ne.s32.totalorder %s892_s21, %s743_s15  ;;  %p749_p13 = scmp.lt.s32.totalorder %s743_s15, %s743_s15 }
  0x1e   :  { %p750_p0 = por %p749_p13, %p748_p12 }
  0x20   :  { %p751_p1 = pnand %p750_p0, %p744_p11 }
  0x22   :  { %754 = shalt.err (!%p751_p1)
}
  0x23   :  { %s853_s1 = smov 384   ;;  %s854_s16 = smov 24  }
  0x24   :  { %57 = dma.hbm_to_vmem [thread:$0]  %s1044_s3, 768, %s892_s21, [#allocation9], %s853_s1, %s853_s1, %s854_s16  }
  0x25   :  { %s855_s19 = smov [#allocation2]   ;;  %s755_s24 = scalar_lea.hbm %s1041_s0, 1024 }
  0x26   :  { %s19_s20 = sshll.u32 %s855_s19, 4  ;;  %p756_p2 = scmp.ne.s32.totalorder %s1041_s0, %s755_s24  ;;  %s20_s20 = int_to_ptr.vmem [resolvable:$true] %s19_s20 }
  0x27   :  { %p759_p3 = scmp.lt.u32.totalorder %s755_s24, %s1041_s0 }
  0x29   :  { %p761_p4 = pnand %p759_p3, %p756_p2 }
  0x2b   :  { %764 = shalt.err (!%p761_p4)
}
  0x2c   :  { %s765_s29 = scalar_lea.vmem %s20_s20, 1024  ;;  %p770_p6 = scmp.lt.s32.totalorder %s20_s20, %s20_s20 }
  0x2d   :  { %p766_p5 = scmp.ne.s32.totalorder %s20_s20, %s765_s29  ;;  %p771_p7 = scmp.lt.s32.totalorder %s765_s29, %s765_s29 }
  0x2f   :  { %p772_p8 = por %p771_p7, %p770_p6 }
  0x31   :  { %p773_p9 = pnand %p772_p8, %p766_p5 }
  0x33   :  { %776 = shalt.err (!%p773_p9)
}
  0x34   :  { %s856_s3 = smov 128   ;;  %s857_s21 = smov 8  }
  0x35   :  { %25 = dma.hbm_to_vmem [thread:$0]  %s1041_s0, 1024, %s20_s20, [#allocation3], %s856_s3, %s856_s3, %s857_s21  }
  0x36   :  { %s858_s7 = smov [#allocation7]   ;;  %s859_s9 = smov [#allocation10]  }
  0x37   :  { %s42_s8 = sshll.u32 %s858_s7, 4  ;;  %s64_s10 = sshll.u32 %s859_s9, 4  ;;  %s43_s8 = int_to_ptr.vmem [resolvable:$true] %s42_s8  ;;  %s65_s10 = int_to_ptr.vmem [resolvable:$true] %s64_s10 }
  0x38   :  { %s777_s13 = scalar_lea.hbm %s1043_s2, 16 }
  0x39   :  { %p778_p10 = scmp.ne.s32.totalorder %s1043_s2, %s777_s13  ;;  %p781_p11 = scmp.lt.u32.totalorder %s777_s13, %s1043_s2 }
  0x3b   :  { %p783_p12 = pnand %p781_p11, %p778_p10 }
  0x3d   :  { %786 = shalt.err (!%p783_p12)
}
  0x3e   :  { %s787_s0 = scalar_lea.vmem %s43_s8, 16  ;;  %s791_s19 = scalar_lea.vmem %s43_s8, 32 }
  0x3f   :  { %p788_p13 = scmp.ne.s32.totalorder %s43_s8, %s787_s0  ;;  %p792_p0 = scmp.lt.s32.totalorder %s43_s8, %s43_s8 }
  0x40   :  { %p793_p1 = scmp.lt.s32.totalorder %s791_s19, %s787_s0 }
  0x42   :  { %p794_p2 = por %p793_p1, %p792_p0 }
  0x44   :  { %p795_p3 = pnand %p794_p2, %p788_p13 }
  0x46   :  { %798 = shalt.err (!%p795_p3)
}
  0x47   :  { %45 = dma.hbm_to_vmem [thread:$0]  %s1043_s2, 16, %s43_s8, [#allocation6]  }
  0x48   :  { %s799_s25 = scalar_lea.hbm %s1045_s4, 96 }
  0x49   :  { %p800_p4 = scmp.ne.s32.totalorder %s1045_s4, %s799_s25  ;;  %p803_p5 = scmp.lt.u32.totalorder %s799_s25, %s1045_s4 }
  0x4b   :  { %p805_p6 = pnand %p803_p5, %p800_p4 }
  0x4d   :  { %808 = shalt.err (!%p805_p6)
}
  0x4e   :  { %s809_s3 = scalar_lea.vmem %s65_s10, 96  ;;  %p814_p8 = scmp.lt.s32.totalorder %s65_s10, %s65_s10 }
  0x4f   :  { %p810_p7 = scmp.ne.s32.totalorder %s65_s10, %s809_s3  ;;  %p815_p9 = scmp.lt.s32.totalorder %s809_s3, %s809_s3 }
  0x51   :  { %p816_p10 = por %p815_p9, %p814_p8 }
  0x53   :  { %p817_p11 = pnand %p816_p10, %p810_p7 }
  0x55   :  { %820 = shalt.err (!%p817_p11)
}
  0x56   :  { %67 = dma.hbm_to_vmem [thread:$0]  %s1045_s4, 96, %s65_s10, [#allocation9]  }
  0x57   :  { %843 = dma.done.wait [#allocation3], 1024  }
  0x58   :  { %844 = vsyncadd [#allocation3], 4294966272 }
  0x59   :  { %845 = dma.done.wait [#allocation6], 32  }
  0x5a   :  { %846 = vsyncadd [#allocation6], 4294967264 }
  0x5b   :  { %847 = dma.done.wait [#allocation9], 864  }
  0x5c   :  { %848 = vsyncadd [#allocation9], 4294966432  ;;  %v860_v0 = vmov 0   ;;  %v702_v1 = vld [vmem:[#allocation8 + $0x4] ss:$24 sps:$4 sm:$0xff]   ;;  %vm202_vm0 = vcmask 130048   ;;  %v142_v45 = vlaneseq }
  0x5d   :  { %247 = vmatprep.mubr.bf16.mxu0 %v860_v0  ;;  %267 = vmatprep.mubr.bf16.mxu1 %v860_v0  ;;  %v704_v2 = vld [vmem:[#allocation8] ss:$24 sps:$4 sm:$0xff]   ;;  %v707_v3 = vld [vmem:[#allocation8 + $0xc] ss:$24 sps:$4 sm:$0xff]   ;;  %v621_v7 = vld [vmem:[#allocation5] ss:$0 sm:$0xff] }
  0x5e   :  { %215 = vmatprep.subr.bf16.mxu0 %v702_v1  ;;  %689 = vmatprep.subr.bf16.mxu1 %v702_v1  ;;  %v710_v4 = vld [vmem:[#allocation8 + $0x14] ss:$24 sps:$4 sm:$0xff]   ;;  %v84_v5 = vld [vmem:[#allocation2] sm:$0xff]  ;;  %v85_v6 = vld [vmem:[#allocation2 + $0x8] sm:$0xff]  ;;  %v143_v46 = vshrl.u32 %v142_v45, 7  ;;  %s861_s4 = smov [#allocation11]  }
  0x5f   :  { %216 = vmatpush1.bf16.msra.mxu0 %v704_v2  ;;  %690 = vmatpush1.bf16.msra.mxu1 %v704_v2  ;;  %v99_v8 = vmul.f32 %v621_v7, %v84_v5  ;;  %v100_v9 = vmul.f32 %v621_v7, %v85_v6  ;;  %v622_v10 = vld [vmem:[#allocation7] ss:$0 sm:$0xff]  ;;  %v89_v12 = vld [vmem:[#allocation2 + $0x28] sm:$0xff]  ;;  %v86_v15 = vld [vmem:[#allocation2 + $0x10] sm:$0xff]  ;;  %s607_s30 = sshll.u32 %s861_s4, 4  ;;  %s608_s30 = int_to_ptr.vmem [resolvable:$true] %s607_s30 }
  0x60   :  { %288 = vmatprep.subr.bf16.mxu1 %v707_v3  ;;  %361 = vmatprep.subr.bf16.mxu0 %v710_v4  ;;  %v88_v11 = vld [vmem:[#allocation2 + $0x20] sm:$0xff]  ;;  %v104_v14 = vmul.f32 %v621_v7, %v89_v12  ;;  %v87_v16 = vld [vmem:[#allocation2 + $0x18] sm:$0xff]  ;;  %v90_v17 = vld [vmem:[#allocation2 + $0x30] sm:$0xff]  ;;  %v101_v20 = vmul.f32 %v621_v7, %v86_v15  ;;  %v144_v47 = vsub.s32 0, %v143_v46  ;;  %v148_v49 = vsub.s32 1, %v143_v46  ;;  %s821_s6 = scalar_lea.vmem %s608_s30, 3072  ;;  %p826_p13 = scmp.lt.s32.totalorder %s608_s30, %s608_s30 }
  0x61   :  { %v103_v13 = vmul.f32 %v621_v7, %v88_v11  ;;  %v114_v18 = vadd.f32 %v622_v10, %v99_v8  ;;  %v115_v19 = vadd.f32 %v622_v10, %v100_v9  ;;  %v102_v21 = vmul.f32 %v621_v7, %v87_v16  ;;  %v91_v22 = vld [vmem:[#allocation2 + $0x38] sm:$0xff]  ;;  %v708_v31 = vld [vmem:[#allocation8 + $0x10] ss:$24 sps:$4 sm:$0xff]   ;;  %p822_p12 = scmp.ne.s32.totalorder %s608_s30, %s821_s6  ;;  %p827_p0 = scmp.lt.s32.totalorder %s821_s6, %s821_s6 }
  0x62   :  { %v119_v24 = vadd.f32 %v622_v10, %v104_v14  ;;  %v105_v25 = vmul.f32 %v621_v7, %v90_v17  ;;  %v106_v26 = vmul.f32 %v621_v7, %v91_v22  ;;  %v116_v29 = vadd.f32 %v622_v10, %v101_v20  ;;  %v705_v36 = vld [vmem:[#allocation8 + $0x8] ss:$24 sps:$4 sm:$0xff]   ;;  %v140_v48 = vld [vmem:[#allocation10] sm:$0x3f] }
  0x63   :  { %v118_v23 = vadd.f32 %v622_v10, %v103_v13  ;;  %v122_v27 = vmax.f32 %v114_v18, 0.0  ;;  %v123_v28 = vmax.f32 %v115_v19, 0.0  ;;  %v117_v30 = vadd.f32 %v622_v10, %v102_v21  ;;  %p828_p1 = por %p827_p0, %p826_p13 }
  0x64   :  { %v127_v33 = vmax.f32 %v119_v24, 0.0  ;;  %v120_v34 = vadd.f32 %v622_v10, %v105_v25  ;;  %v121_v35 = vadd.f32 %v622_v10, %v106_v26  ;;  %v124_v39 = vmax.f32 %v116_v29, 0.0 }
  0x65   :  { %v126_v32 = vmax.f32 %v118_v23, 0.0  ;;  %v130_v37 = vpack.c.bf16 %v123_v28, %v122_v27  ;;  %v125_v40 = vmax.f32 %v117_v30, 0.0  ;;  %v145_v50 = vrot.slane %v140_v48, %v144_v47  ;;  %p829_p2 = pnand %p828_p1, %p822_p12 }
  0x66   :  { %v128_v41 = vmax.f32 %v120_v34, 0.0  ;;  %v129_v42 = vmax.f32 %v121_v35, 0.0  ;;  %v149_v51 = vrot.slane %v140_v48, %v148_v49  ;;  %v160_v12 = vsub.s32 4, %v143_v46 }
  0x67   :  { %v132_v38 = vpack.c.bf16 %v127_v33, %v126_v32  ;;  %629 = vmatmul.mubr.msk.bf16.vlgmr.msra.gmra.mrb[0].mxu0 %vm202_vm0, %v130_v37  ;;  %v131_v43 = vpack.c.bf16 %v125_v40, %v124_v39  ;;  %v152_v17 = vsub.s32 2, %v143_v46  ;;  %v164_v18 = vsub.s32 5, %v143_v46 }
  0x68   :  { %362 = vmatpush1.bf16.msra.mxu0 %v708_v31  ;;  %257 = vmatprep.mubr.bf16.mxu0 %v860_v0  ;;  %v133_v44 = vpack.c.bf16 %v129_v42, %v128_v41  ;;  %v156_v23 = vsub.s32 3, %v143_v46  ;;  %v986_v30 = vrot.slane %v140_v48, %v160_v12 }
  0x69   :  { %631 = vmatmul.mubr.msk.bf16.vlgmr.msra.gmra.mrb[0].mxu1 %vm202_vm0, %v132_v38  ;;  %v988_v32 = vrot.slane %v140_v48, %v152_v17  ;;  %v990_v33 = vrot.slane %v140_v48, %v164_v18 }
  0x6a   :  { %289 = vmatpush1.bf16.msra.mxu1 %v705_v36  ;;  %277 = vmatprep.mubr.bf16.mxu1 %v860_v0  ;;  %v992_v35 = vrot.slane %v140_v48, %v156_v23 }
  0x6f   :  { %630 = vmatmul.mubr.msk.bf16.gmra.mrb[4].mxu0 %vm202_vm0, %v131_v43 }
  0x70   :  { %393 = vmatprep.mubr.bf16.mxu0 %v860_v0 }
  0x71   :  { %632 = vmatmul.mubr.msk.bf16.gmra.mrb[4].mxu1 %vm202_vm0, %v133_v44 }
  0x72   :  { %320 = vmatprep.mubr.bf16.mxu1 %v860_v0 }
  0x77   :  { %637 = vmatmul.mubr.msk.bf16.vlgmr.msra.gmra.mrb[8].mxu0 %vm202_vm0, %v130_v37 }
  0x78   :  { %403 = vmatprep.mubr.bf16.mxu0 %v860_v0 }
  0x79   :  { %633 = vmatmul.mubr.msk.bf16.vlgmr.msra.gmra.mrb[8].mxu1 %vm202_vm0, %v130_v37 }
  0x7a   :  { %330 = vmatprep.mubr.bf16.mxu1 %v860_v0 }
  0x7f   :  { %638 = vmatmul.mubr.msk.bf16.gmra.mrb[12].mxu0 %vm202_vm0, %v131_v43 }
  0x80   :  { %413 = vmatprep.mubr.bf16.mxu0 %v860_v0 }
  0x81   :  { %634 = vmatmul.mubr.msk.bf16.gmra.mrb[12].mxu1 %vm202_vm0, %v131_v43 }
  0x82   :  { %340 = vmatprep.mubr.bf16.mxu1 %v860_v0 }
  0x87   :  { %639 = vmatmul.mubr.msk.bf16.gmra.mrb[16].mxu0 %vm202_vm0, %v132_v38 }
  0x88   :  { %423 = vmatprep.mubr.bf16.mxu0 %v860_v0 }
  0x89   :  { %635 = vmatmul.mubr.msk.bf16.gmra.mrb[16].mxu1 %vm202_vm0, %v132_v38 }
  0x8a   :  { %350 = vmatprep.mubr.bf16.mxu1 %v860_v0 }
  0x8f   :  { %640 = vmatmul.mubr.msk.bf16.gmra.mrb[20].mxu0 %vm202_vm0, %v133_v44 }
  0x91   :  { %636 = vmatmul.mubr.msk.bf16.gmra.mrb[20].mxu1 %vm202_vm0, %v133_v44 }
 0x13a   :  { %v249_v52 = vpop.f32.mrb[0].mxu0 }
 0x13b   :  { %v250_v53 = vadd.f32 %v249_v52, %v145_v50  ;;  %v251_v55 = vpop.f32.mrb[1].mxu0 }
 0x13c   :  { %v269_v54 = vpop.f32.mrb[0].mxu1  ;;  %v252_v57 = vadd.f32 %v251_v55, %v149_v51  ;;  %v253_v59 = vpop.f32.mrb[2].mxu0 }
 0x13d   :  { %v270_v56 = vadd.f32 %v269_v54, %v145_v50  ;;  %v271_v58 = vpop.f32.mrb[1].mxu1  ;;  %v254_v61 = vadd.f32 %v253_v59, %v145_v50  ;;  %v255_v63 = vpop.f32.mrb[3].mxu0 }
 0x13e   :  { %v272_v60 = vadd.f32 %v271_v58, %v149_v51  ;;  %v273_v62 = vpop.f32.mrb[2].mxu1  ;;  %v665_v0 = vpack.c.bf16 %v252_v57, %v250_v53  ;;  %v256_v2 = vadd.f32 %v255_v63, %v149_v51 }
 0x13f   :  { %v274_v1 = vadd.f32 %v273_v62, %v145_v50  ;;  %v275_v3 = vpop.f32.mrb[3].mxu1 }
 0x140   :  { %v677_v4 = vpack.c.bf16 %v272_v60, %v270_v56  ;;  %v276_v5 = vadd.f32 %v275_v3, %v149_v51  ;;  %578 = vst [vmem:[#allocation11] sm:$0xff] %v665_v0  ;;  %v668_v6 = vpack.c.bf16 %v256_v2, %v254_v61 }
 0x142   :  { %590 = vst [vmem:[#allocation11 + $0x60] sm:$0xff] %v677_v4  ;;  %v680_v7 = vpack.c.bf16 %v276_v5, %v274_v1  ;;  %581 = vst [vmem:[#allocation11 + $0x18] sm:$0xff] %v668_v6  ;;  %v259_v8 = vpop.f32.mrb[4].mxu0 }
 0x143   :  { %v260_v9 = vadd.f32 %v259_v8, %v145_v50  ;;  %v261_v11 = vpop.f32.mrb[5].mxu0 }
 0x144   :  { %593 = vst [vmem:[#allocation11 + $0x78] sm:$0xff] %v680_v7  ;;  %v279_v10 = vpop.f32.mrb[4].mxu1  ;;  %v262_v14 = vadd.f32 %v261_v11, %v149_v51  ;;  %v263_v16 = vpop.f32.mrb[6].mxu0 }
 0x145   :  { %v280_v13 = vadd.f32 %v279_v10, %v145_v50  ;;  %v281_v15 = vpop.f32.mrb[5].mxu1  ;;  %v264_v20 = vadd.f32 %v263_v16, %v145_v50  ;;  %v265_v22 = vpop.f32.mrb[7].mxu0 }
 0x146   :  { %v282_v19 = vadd.f32 %v281_v15, %v149_v51  ;;  %v283_v21 = vpop.f32.mrb[6].mxu1  ;;  %v671_v24 = vpack.c.bf16 %v262_v14, %v260_v9  ;;  %v266_v26 = vadd.f32 %v265_v22, %v149_v51 }
 0x147   :  { %v284_v25 = vadd.f32 %v283_v21, %v145_v50  ;;  %v285_v27 = vpop.f32.mrb[7].mxu1 }
 0x148   :  { %v683_v28 = vpack.c.bf16 %v282_v19, %v280_v13  ;;  %v286_v29 = vadd.f32 %v285_v27, %v149_v51  ;;  %584 = vst [vmem:[#allocation11 + $0x30] sm:$0xff] %v671_v24  ;;  %v674_v31 = vpack.c.bf16 %v266_v26, %v264_v20 }
 0x14a   :  { %596 = vst [vmem:[#allocation11 + $0x90] sm:$0xff] %v683_v28  ;;  %v686_v34 = vpack.c.bf16 %v286_v29, %v284_v25  ;;  %587 = vst [vmem:[#allocation11 + $0x48] sm:$0xff] %v674_v31  ;;  %v395_v36 = vpop.f32.mrb[8].mxu0 }
 0x14b   :  { %v396_v38 = vadd.f32 %v395_v36, %v986_v30  ;;  %v397_v39 = vpop.f32.mrb[9].mxu0 }
 0x14c   :  { %599 = vst [vmem:[#allocation11 + $0xa8] sm:$0xff] %v686_v34  ;;  %v322_v37 = vpop.f32.mrb[8].mxu1  ;;  %v398_v42 = vadd.f32 %v397_v39, %v990_v33  ;;  %v399_v43 = vpop.f32.mrb[10].mxu0 }
 0x14d   :  { %v323_v40 = vadd.f32 %v322_v37, %v988_v32  ;;  %v324_v41 = vpop.f32.mrb[9].mxu1  ;;  %v400_v46 = vadd.f32 %v399_v43, %v986_v30  ;;  %v401_v47 = vpop.f32.mrb[11].mxu0 }
 0x14e   :  { %v325_v44 = vadd.f32 %v324_v41, %v992_v35  ;;  %v326_v45 = vpop.f32.mrb[10].mxu1  ;;  %v667_v48 = vpack.c.bf16 %v398_v42, %v396_v38  ;;  %v402_v51 = vadd.f32 %v401_v47, %v990_v33 }
 0x14f   :  { %v327_v49 = vadd.f32 %v326_v45, %v988_v32  ;;  %v328_v50 = vpop.f32.mrb[11].mxu1 }
 0x150   :  { %v666_v52 = vpack.c.bf16 %v325_v44, %v323_v40  ;;  %v329_v53 = vadd.f32 %v328_v50, %v992_v35  ;;  %580 = vst [vmem:[#allocation11 + $0x10] sm:$0xff] %v667_v48  ;;  %v670_v54 = vpack.c.bf16 %v402_v51, %v400_v46 }
 0x152   :  { %579 = vst [vmem:[#allocation11 + $0x8] sm:$0xff] %v666_v52  ;;  %v669_v55 = vpack.c.bf16 %v329_v53, %v327_v49  ;;  %583 = vst [vmem:[#allocation11 + $0x28] sm:$0xff] %v670_v54  ;;  %v405_v56 = vpop.f32.mrb[12].mxu0 }
 0x153   :  { %v406_v58 = vadd.f32 %v405_v56, %v986_v30  ;;  %v407_v59 = vpop.f32.mrb[13].mxu0 }
 0x154   :  { %582 = vst [vmem:[#allocation11 + $0x20] sm:$0xff] %v669_v55  ;;  %v332_v57 = vpop.f32.mrb[12].mxu1  ;;  %v408_v62 = vadd.f32 %v407_v59, %v990_v33  ;;  %v409_v63 = vpop.f32.mrb[14].mxu0 }
 0x155   :  { %v333_v60 = vadd.f32 %v332_v57, %v988_v32  ;;  %v334_v61 = vpop.f32.mrb[13].mxu1  ;;  %v410_v2 = vadd.f32 %v409_v63, %v986_v30  ;;  %v411_v3 = vpop.f32.mrb[15].mxu0 }
 0x156   :  { %v335_v0 = vadd.f32 %v334_v61, %v992_v35  ;;  %v336_v1 = vpop.f32.mrb[14].mxu1  ;;  %v673_v4 = vpack.c.bf16 %v408_v62, %v406_v58  ;;  %v412_v7 = vadd.f32 %v411_v3, %v990_v33 }
 0x157   :  { %v337_v5 = vadd.f32 %v336_v1, %v988_v32  ;;  %v338_v6 = vpop.f32.mrb[15].mxu1 }
 0x158   :  { %v672_v8 = vpack.c.bf16 %v335_v0, %v333_v60  ;;  %v339_v9 = vadd.f32 %v338_v6, %v992_v35  ;;  %586 = vst [vmem:[#allocation11 + $0x40] sm:$0xff] %v673_v4  ;;  %v676_v10 = vpack.c.bf16 %v412_v7, %v410_v2 }
 0x15a   :  { %585 = vst [vmem:[#allocation11 + $0x38] sm:$0xff] %v672_v8  ;;  %v675_v11 = vpack.c.bf16 %v339_v9, %v337_v5  ;;  %589 = vst [vmem:[#allocation11 + $0x58] sm:$0xff] %v676_v10  ;;  %v415_v12 = vpop.f32.mrb[16].mxu0 }
 0x15b   :  { %v416_v14 = vadd.f32 %v415_v12, %v986_v30  ;;  %v417_v15 = vpop.f32.mrb[17].mxu0 }
 0x15c   :  { %588 = vst [vmem:[#allocation11 + $0x50] sm:$0xff] %v675_v11  ;;  %v342_v13 = vpop.f32.mrb[16].mxu1  ;;  %v418_v18 = vadd.f32 %v417_v15, %v990_v33  ;;  %v419_v19 = vpop.f32.mrb[18].mxu0 }
 0x15d   :  { %v343_v16 = vadd.f32 %v342_v13, %v988_v32  ;;  %v344_v17 = vpop.f32.mrb[17].mxu1  ;;  %v420_v22 = vadd.f32 %v419_v19, %v986_v30  ;;  %v421_v23 = vpop.f32.mrb[19].mxu0 }
 0x15e   :  { %v345_v20 = vadd.f32 %v344_v17, %v992_v35  ;;  %v346_v21 = vpop.f32.mrb[18].mxu1  ;;  %v679_v24 = vpack.c.bf16 %v418_v18, %v416_v14  ;;  %v422_v27 = vadd.f32 %v421_v23, %v990_v33 }
 0x15f   :  { %v347_v25 = vadd.f32 %v346_v21, %v988_v32  ;;  %v348_v26 = vpop.f32.mrb[19].mxu1 }
 0x160   :  { %v678_v28 = vpack.c.bf16 %v345_v20, %v343_v16  ;;  %v349_v29 = vadd.f32 %v348_v26, %v992_v35  ;;  %592 = vst [vmem:[#allocation11 + $0x70] sm:$0xff] %v679_v24  ;;  %v682_v31 = vpack.c.bf16 %v422_v27, %v420_v22 }
 0x162   :  { %591 = vst [vmem:[#allocation11 + $0x68] sm:$0xff] %v678_v28  ;;  %v681_v34 = vpack.c.bf16 %v349_v29, %v347_v25  ;;  %595 = vst [vmem:[#allocation11 + $0x88] sm:$0xff] %v682_v31  ;;  %v425_v36 = vpop.f32.mrb[20].mxu0 }
 0x163   :  { %v426_v38 = vadd.f32 %v425_v36, %v986_v30  ;;  %v427_v39 = vpop.f32.mrb[21].mxu0 }
 0x164   :  { %594 = vst [vmem:[#allocation11 + $0x80] sm:$0xff] %v681_v34  ;;  %v352_v37 = vpop.f32.mrb[20].mxu1  ;;  %v428_v42 = vadd.f32 %v427_v39, %v990_v33  ;;  %v429_v43 = vpop.f32.mrb[22].mxu0 }
 0x165   :  { %v353_v40 = vadd.f32 %v352_v37, %v988_v32  ;;  %v354_v41 = vpop.f32.mrb[21].mxu1  ;;  %v430_v46 = vadd.f32 %v429_v43, %v986_v30  ;;  %v431_v47 = vpop.f32.mrb[23].mxu0 }
 0x166   :  { %v355_v44 = vadd.f32 %v354_v41, %v992_v35  ;;  %v356_v45 = vpop.f32.mrb[22].mxu1  ;;  %v685_v48 = vpack.c.bf16 %v428_v42, %v426_v38  ;;  %v432_v51 = vadd.f32 %v431_v47, %v990_v33 }
 0x167   :  { %v357_v49 = vadd.f32 %v356_v45, %v988_v32  ;;  %v358_v50 = vpop.f32.mrb[23].mxu1 }
 0x168   :  { %v684_v52 = vpack.c.bf16 %v355_v44, %v353_v40  ;;  %v359_v53 = vadd.f32 %v358_v50, %v992_v35  ;;  %598 = vst [vmem:[#allocation11 + $0xa0] sm:$0xff] %v685_v48  ;;  %v688_v54 = vpack.c.bf16 %v432_v51, %v430_v46 }
 0x16a   :  { %597 = vst [vmem:[#allocation11 + $0x98] sm:$0xff] %v684_v52  ;;  %v687_v55 = vpack.c.bf16 %v359_v53, %v357_v49  ;;  %601 = vst [vmem:[#allocation11 + $0xb8] sm:$0xff] %v688_v54 }
 0x16c   :  { %600 = vst [vmem:[#allocation11 + $0xb0] sm:$0xff] %v687_v55 }
 0x16d   :  { %832 = shalt.err (!%p829_p2)
}
 0x16e   :  { %s833_s9 = scalar_lea.hbm %s1046_s5, 3072 }
 0x16f   :  { %p834_p3 = scmp.ne.s32.totalorder %s1046_s5, %s833_s9  ;;  %p837_p4 = scmp.lt.u32.totalorder %s833_s9, %s1046_s5 }
 0x171   :  { %p839_p5 = pnand %p837_p4, %p834_p3 }
 0x173   :  { %842 = shalt.err (!%p839_p5)
}
 0x174   :  { %613 = dma.vmem_to_hbm [thread:$0]  %s608_s30, 3072, %s1046_s5, [#allocation4], %s853_s1, %s853_s1, %s854_s16  }
 0x175   :  { %849 = dma.done.wait [#allocation4], 3072  }
 0x176   :  { %850 = vsyncadd [#allocation4], 4294964224 }
 0x177   :  { %617 = vsyncpa [#allocation3], 1 }
 0x178   :  { %618 = vsyncpa [#allocation6], 1 }
 0x179   :  { %619 = vsyncpa [#allocation9], 1 }
 0x17a   :  { %620 = vsyncpa [#allocation4], 1 }

// kernel: rnn_block_forward.6
= control target key start
LH: loop header
LB: loop body
LE: loop exit
PB: predicated region body
PF: predicated region fallthrough
CT: control target
= control target key end

     0   :  { %9 = vsyncpa [#allocation3], 0  ;;  %s1814_s0 = inlined_call_operand.hbm [shape: bf16[64,128], index: 0, kind: input, shape index: {}]   ;;  %s1815_s1 = inlined_call_operand.hbm [shape: bf16[64,128], index: 1, kind: input, shape index: {}]   ;;  %s1816_s2 = inlined_call_operand.hbm [shape: bf16[256,768], index: 2, kind: input, shape index: {}]   ;;  %s1817_s3 = inlined_call_operand.hbm [shape: f32[1,768], index: 3, kind: input, shape index: {}]   ;;  %s1818_s4 = inlined_call_operand.hbm [shape: bf16[64,768], index: 4, kind: output, shape index: {}]  }
   0x1   :  { %10 = vsyncpa [#allocation6], 0 }
   0x2   :  { %11 = vsyncpa [#allocation9], 0 }
   0x3   :  { %12 = vsyncpa [#allocation4], 0  ;;  %s1612_s15 = smov [#allocation5]   ;;  %s1613_s17 = smov [#allocation2]  }
   0x4   :  { %s30_s16 = sshll.u32 %s1612_s15, 4  ;;  %s18_s18 = sshll.u32 %s1613_s17, 4  ;;  %s31_s16 = int_to_ptr.vmem [resolvable:$true] %s30_s16  ;;  %s1646_s18 = int_to_ptr.vmem [resolvable:$true] %s18_s18 }
   0x5   :  { %s1494_s21 = scalar_lea.hbm %s1815_s1, 512 }
   0x6   :  { %p1495_p0 = scmp.ne.s32.totalorder %s1815_s1, %s1494_s21  ;;  %p1498_p1 = scmp.lt.u32.totalorder %s1494_s21, %s1815_s1 }
   0x8   :  { %p1500_p2 = pnand %p1498_p1, %p1495_p0 }
   0xa   :  { %1503 = shalt.err (!%p1500_p2)
}
   0xb   :  { %s1504_s26 = scalar_lea.vmem %s31_s16, 512  ;;  %p1509_p4 = scmp.lt.s32.totalorder %s31_s16, %s31_s16 }
   0xc   :  { %p1505_p3 = scmp.ne.s32.totalorder %s31_s16, %s1504_s26  ;;  %p1510_p5 = scmp.lt.s32.totalorder %s1504_s26, %s1504_s26 }
   0xe   :  { %p1511_p6 = por %p1510_p5, %p1509_p4 }
  0x10   :  { %p1512_p7 = pnand %p1511_p6, %p1505_p3 }
  0x12   :  { %1515 = shalt.err (!%p1512_p7)
}
  0x13   :  { %s1614_s27 = smov 64   ;;  %s1615_s28 = smov 4  }
  0x14   :  { %36 = dma.hbm_to_vmem [thread:$0]  %s1815_s1, 512, %s31_s16, [#allocation6], %s1614_s27, %s1614_s27, %s1615_s28  }
  0x15   :  { %s1516_s7 = scalar_lea.hbm %s1814_s0, 512 }
  0x16   :  { %p1517_p8 = scmp.ne.s32.totalorder %s1814_s0, %s1516_s7  ;;  %p1520_p9 = scmp.lt.u32.totalorder %s1516_s7, %s1814_s0 }
  0x18   :  { %p1522_p10 = pnand %p1520_p9, %p1517_p8 }
  0x1a   :  { %1525 = shalt.err (!%p1522_p10)
}
  0x1b   :  { %s1526_s12 = scalar_lea.vmem %s1646_s18, 512  ;;  %p1531_p12 = scmp.lt.s32.totalorder %s1646_s18, %s1646_s18 }
  0x1c   :  { %p1527_p11 = scmp.ne.s32.totalorder %s1646_s18, %s1526_s12  ;;  %p1532_p13 = scmp.lt.s32.totalorder %s1526_s12, %s1526_s12 }
  0x1e   :  { %p1533_p0 = por %p1532_p13, %p1531_p12 }
  0x20   :  { %p1534_p1 = pnand %p1533_p0, %p1527_p11 }
  0x22   :  { %1537 = shalt.err (!%p1534_p1)
}
  0x23   :  { %24 = dma.hbm_to_vmem [thread:$0]  %s1814_s0, 512, %s1646_s18, [#allocation3], %s1614_s27, %s1614_s27, %s1615_s28  }
  0x24   :  { %s1616_s14 = smov [#allocation7]   ;;  %s1538_s19 = scalar_lea.hbm %s1816_s2, 12288 }
  0x25   :  { %s42_s15 = sshll.u32 %s1616_s14, 4  ;;  %p1539_p2 = scmp.ne.s32.totalorder %s1816_s2, %s1538_s19  ;;  %s43_s15 = int_to_ptr.vmem [resolvable:$true] %s42_s15 }
  0x26   :  { %p1542_p3 = scmp.lt.u32.totalorder %s1538_s19, %s1816_s2 }
  0x28   :  { %p1544_p4 = pnand %p1542_p3, %p1539_p2 }
  0x2a   :  { %1547 = shalt.err (!%p1544_p4)
}
  0x2b   :  { %s1548_s24 = scalar_lea.vmem %s43_s15, 12288  ;;  %p1553_p6 = scmp.lt.s32.totalorder %s43_s15, %s43_s15 }
  0x2c   :  { %p1549_p5 = scmp.ne.s32.totalorder %s43_s15, %s1548_s24  ;;  %p1554_p7 = scmp.lt.s32.totalorder %s1548_s24, %s1548_s24 }
  0x2e   :  { %p1555_p8 = por %p1554_p7, %p1553_p6 }
  0x30   :  { %p1556_p9 = pnand %p1555_p8, %p1549_p5 }
  0x32   :  { %1559 = shalt.err (!%p1556_p9)
}
  0x33   :  { %s1617_s0 = smov 384   ;;  %s1618_s18 = smov 24  }
  0x34   :  { %48 = dma.hbm_to_vmem [thread:$0]  %s1816_s2, 12288, %s43_s15, [#allocation6], %s1617_s0, %s1617_s0, %s1618_s18  }
  0x35   :  { %s1619_s27 = smov [#allocation8]   ;;  %s1560_s5 = scalar_lea.hbm %s1817_s3, 96 }
  0x36   :  { %s55_s28 = sshll.u32 %s1619_s27, 4  ;;  %p1561_p10 = scmp.ne.s32.totalorder %s1817_s3, %s1560_s5  ;;  %s56_s28 = int_to_ptr.vmem [resolvable:$true] %s55_s28 }
  0x37   :  { %p1564_p11 = scmp.lt.u32.totalorder %s1560_s5, %s1817_s3 }
  0x39   :  { %p1566_p12 = pnand %p1564_p11, %p1561_p10 }
  0x3b   :  { %1569 = shalt.err (!%p1566_p12)
}
  0x3c   :  { %s1570_s10 = scalar_lea.vmem %s56_s28, 96  ;;  %p1575_p0 = scmp.lt.s32.totalorder %s56_s28, %s56_s28 }
  0x3d   :  { %p1571_p13 = scmp.ne.s32.totalorder %s56_s28, %s1570_s10  ;;  %p1576_p1 = scmp.lt.s32.totalorder %s1570_s10, %s1570_s10 }
  0x3f   :  { %p1577_p2 = por %p1576_p1, %p1575_p0 }
  0x41   :  { %p1578_p3 = pnand %p1577_p2, %p1571_p13 }
  0x43   :  { %1581 = shalt.err (!%p1578_p3)
}
  0x44   :  { %58 = dma.hbm_to_vmem [thread:$0]  %s1817_s3, 96, %s56_s28, [#allocation9]  }
  0x45   :  { %1604 = dma.done.wait [#allocation3], 512  }
  0x46   :  { %1605 = vsyncadd [#allocation3], 4294966784 }
  0x47   :  { %1606 = dma.done.wait [#allocation6], 12800  }
  0x48   :  { %1607 = vsyncadd [#allocation6], 4294954496 }
  0x49   :  { %1608 = dma.done.wait [#allocation9], 96  }
  0x4a   :  { %1609 = vsyncadd [#allocation9], 4294967200  ;;  %v1342_v0 = vld [vmem:[#allocation7 + $0x4] ss:$24 sps:$4 sm:$0xff]   ;;  %v1346_v2 = vld [vmem:[#allocation7] ss:$24 sps:$4 sm:$0xff]  }
  0x4b   :  { %v1344_v1 = vld [vmem:[#allocation7 + $0xc] ss:$24 sps:$4 sm:$0xff]   ;;  %743 = vmatprep.subr.bf16.mxu0 %v1342_v0  ;;  %v1347_v3 = vld [vmem:[#allocation7 + $0x8] ss:$24 sps:$4 sm:$0xff]   ;;  %v1350_v5 = vld [vmem:[#allocation7 + $0x3c] ss:$24 sps:$4 sm:$0xff]  }
  0x4c   :  { %816 = vmatprep.subr.bf16.mxu1 %v1344_v1  ;;  %v1348_v4 = vld [vmem:[#allocation7 + $0x34] ss:$24 sps:$4 sm:$0xff]   ;;  %744 = vmatpush1.bf16.msra.mxu0 %v1346_v2  ;;  %v1352_v6 = vld [vmem:[#allocation7 + $0x30] ss:$24 sps:$4 sm:$0xff]   ;;  %v1354_v8 = vld [vmem:[#allocation7 + $0x64] ss:$24 sps:$4 sm:$0xff]  }
  0x4d   :  { %817 = vmatpush1.bf16.msra.mxu1 %v1347_v3  ;;  %745 = vmatprep.subr.bf16.mxu0 %v1348_v4  ;;  %v1353_v7 = vld [vmem:[#allocation7 + $0x38] ss:$24 sps:$4 sm:$0xff]   ;;  %v1356_v9 = vld [vmem:[#allocation7 + $0x6c] ss:$24 sps:$4 sm:$0xff]   ;;  %v1359_v11 = vld [vmem:[#allocation7 + $0x68] ss:$24 sps:$4 sm:$0xff]  }
  0x4e   :  { %818 = vmatprep.subr.bf16.mxu1 %v1350_v5  ;;  %v1358_v10 = vld [vmem:[#allocation7 + $0x60] ss:$24 sps:$4 sm:$0xff]   ;;  %v1360_v12 = vld [vmem:[#allocation7 + $0x94] ss:$24 sps:$4 sm:$0xff]   ;;  %v1364_v14 = vld [vmem:[#allocation7 + $0x90] ss:$24 sps:$4 sm:$0xff]  }
  0x4f   :  { %v1362_v13 = vld [vmem:[#allocation7 + $0x9c] ss:$24 sps:$4 sm:$0xff]   ;;  %v1365_v15 = vld [vmem:[#allocation7 + $0x98] ss:$24 sps:$4 sm:$0xff]   ;;  %v1368_v17 = vld [vmem:[#allocation7 + $0xcc] ss:$24 sps:$4 sm:$0xff]  }
  0x50   :  { %746 = vmatpush1.bf16.msra.mxu0 %v1352_v6  ;;  %v1366_v16 = vld [vmem:[#allocation7 + $0xc4] ss:$24 sps:$4 sm:$0xff]   ;;  %v1370_v18 = vld [vmem:[#allocation7 + $0xc0] ss:$24 sps:$4 sm:$0xff]   ;;  %v1372_v20 = vld [vmem:[#allocation7 + $0xf4] ss:$24 sps:$4 sm:$0xff]  }
  0x51   :  { %819 = vmatpush1.bf16.msra.mxu1 %v1353_v7  ;;  %747 = vmatprep.subr.bf16.mxu0 %v1354_v8  ;;  %v1371_v19 = vld [vmem:[#allocation7 + $0xc8] ss:$24 sps:$4 sm:$0xff]   ;;  %v1374_v21 = vld [vmem:[#allocation7 + $0xfc] ss:$24 sps:$4 sm:$0xff]   ;;  %v1377_v23 = vld [vmem:[#allocation7 + $0xf8] ss:$24 sps:$4 sm:$0xff]  }
  0x52   :  { %820 = vmatprep.subr.bf16.mxu1 %v1356_v9  ;;  %v1376_v22 = vld [vmem:[#allocation7 + $0xf0] ss:$24 sps:$4 sm:$0xff]   ;;  %v1378_v24 = vld [vmem:[#allocation7 + $0x124] ss:$24 sps:$4 sm:$0xff]   ;;  %v1382_v26 = vld [vmem:[#allocation7 + $0x120] ss:$24 sps:$4 sm:$0xff]  }
  0x53   :  { %v1380_v25 = vld [vmem:[#allocation7 + $0x12c] ss:$24 sps:$4 sm:$0xff]   ;;  %v1383_v27 = vld [vmem:[#allocation7 + $0x128] ss:$24 sps:$4 sm:$0xff]   ;;  %v1386_v29 = vld [vmem:[#allocation7 + $0x15c] ss:$24 sps:$4 sm:$0xff]  }
  0x54   :  { %748 = vmatpush1.bf16.msra.mxu0 %v1358_v10  ;;  %v1384_v28 = vld [vmem:[#allocation7 + $0x154] ss:$24 sps:$4 sm:$0xff]   ;;  %v1388_v30 = vld [vmem:[#allocation7 + $0x150] ss:$24 sps:$4 sm:$0xff]   ;;  %v1390_v32 = vld [vmem:[#allocation7 + $0x184] ss:$24 sps:$4 sm:$0xff]  }
  0x55   :  { %821 = vmatpush1.bf16.msra.mxu1 %v1359_v11  ;;  %749 = vmatprep.subr.bf16.mxu0 %v1360_v12  ;;  %v1389_v31 = vld [vmem:[#allocation7 + $0x158] ss:$24 sps:$4 sm:$0xff]   ;;  %v1392_v33 = vld [vmem:[#allocation7 + $0x18c] ss:$24 sps:$4 sm:$0xff]   ;;  %v1395_v35 = vld [vmem:[#allocation7 + $0x188] ss:$24 sps:$4 sm:$0xff]  }
  0x56   :  { %822 = vmatprep.subr.bf16.mxu1 %v1362_v13  ;;  %v1394_v34 = vld [vmem:[#allocation7 + $0x180] ss:$24 sps:$4 sm:$0xff]   ;;  %v1396_v36 = vld [vmem:[#allocation7 + $0x1b4] ss:$24 sps:$4 sm:$0xff]   ;;  %v1400_v38 = vld [vmem:[#allocation7 + $0x1b0] ss:$24 sps:$4 sm:$0xff]  }
  0x57   :  { %v1398_v37 = vld [vmem:[#allocation7 + $0x1bc] ss:$24 sps:$4 sm:$0xff]   ;;  %v1401_v39 = vld [vmem:[#allocation7 + $0x1b8] ss:$24 sps:$4 sm:$0xff]   ;;  %v1404_v41 = vld [vmem:[#allocation7 + $0x1ec] ss:$24 sps:$4 sm:$0xff]  }
  0x58   :  { %750 = vmatpush1.bf16.msra.mxu0 %v1364_v14  ;;  %v1402_v40 = vld [vmem:[#allocation7 + $0x1e4] ss:$24 sps:$4 sm:$0xff]   ;;  %v1406_v42 = vld [vmem:[#allocation7 + $0x1e0] ss:$24 sps:$4 sm:$0xff]   ;;  %v1408_v44 = vld [vmem:[#allocation7 + $0x214] ss:$24 sps:$4 sm:$0xff]  }
  0x59   :  { %823 = vmatpush1.bf16.msra.mxu1 %v1365_v15  ;;  %751 = vmatprep.subr.bf16.mxu0 %v1366_v16  ;;  %v1407_v43 = vld [vmem:[#allocation7 + $0x1e8] ss:$24 sps:$4 sm:$0xff]   ;;  %v1410_v45 = vld [vmem:[#allocation7 + $0x21c] ss:$24 sps:$4 sm:$0xff]   ;;  %v1413_v48 = vld [vmem:[#allocation7 + $0x218] ss:$24 sps:$4 sm:$0xff]  }
  0x5a   :  { %824 = vmatprep.subr.bf16.mxu1 %v1368_v17  ;;  %v1412_v46 = vld [vmem:[#allocation7 + $0x210] ss:$24 sps:$4 sm:$0xff]   ;;  %v1704_v47 = vld [vmem:[#allocation5] sm:$0xff]   ;;  %v1420_v53 = vld [vmem:[#allocation7 + $0x274] ss:$24 sps:$4 sm:$0xff]   ;;  %s1620_s3 = smov [#allocation10]  }
  0x5b   :  { %v1414_v49 = vld [vmem:[#allocation7 + $0x244] ss:$24 sps:$4 sm:$0xff]   ;;  %775 = vmatprep.mubr.bf16.mxu0 %v1704_v47  ;;  %848 = vmatprep.mubr.bf16.mxu1 %v1704_v47  ;;  %v1418_v51 = vld [vmem:[#allocation7 + $0x240] ss:$24 sps:$4 sm:$0xff]   ;;  %v1424_v55 = vld [vmem:[#allocation7 + $0x270] ss:$24 sps:$4 sm:$0xff]  }
  0x5c   :  { %752 = vmatpush1.bf16.msra.mxu0 %v1370_v18  ;;  %v1416_v50 = vld [vmem:[#allocation7 + $0x24c] ss:$24 sps:$4 sm:$0xff]   ;;  %v1419_v52 = vld [vmem:[#allocation7 + $0x248] ss:$24 sps:$4 sm:$0xff]   ;;  %v1422_v54 = vld [vmem:[#allocation7 + $0x27c] ss:$24 sps:$4 sm:$0xff]  }
  0x5d   :  { %825 = vmatpush1.bf16.msra.mxu1 %v1371_v19  ;;  %753 = vmatprep.subr.bf16.mxu0 %v1372_v20  ;;  %v1425_v56 = vld [vmem:[#allocation7 + $0x278] ss:$24 sps:$4 sm:$0xff]   ;;  %v1426_v57 = vld [vmem:[#allocation7 + $0x2a4] ss:$24 sps:$4 sm:$0xff]   ;;  %v1431_v60 = vld [vmem:[#allocation7 + $0x2a8] ss:$24 sps:$4 sm:$0xff]  }
  0x5e   :  { %826 = vmatprep.subr.bf16.mxu1 %v1374_v21  ;;  %v1428_v58 = vld [vmem:[#allocation7 + $0x2ac] ss:$24 sps:$4 sm:$0xff]   ;;  %v1430_v59 = vld [vmem:[#allocation7 + $0x2a0] ss:$24 sps:$4 sm:$0xff]   ;;  %v1434_v62 = vld [vmem:[#allocation7 + $0x2dc] ss:$24 sps:$4 sm:$0xff]  }
  0x5f   :  { %v1432_v61 = vld [vmem:[#allocation7 + $0x2d4] ss:$24 sps:$4 sm:$0xff]   ;;  %v1436_v63 = vld [vmem:[#allocation7 + $0x2d0] ss:$24 sps:$4 sm:$0xff]   ;;  %v1708_v2 = vld [vmem:[#allocation2] sm:$0xff]   ;;  %s1135_s12 = sshll.u32 %s1620_s3, 4  ;;  %s1136_s12 = int_to_ptr.vmem [resolvable:$true] %s1135_s12 }
  0x60   :  { %754 = vmatpush1.bf16.msra.mxu0 %v1376_v22  ;;  %v1437_v0 = vld [vmem:[#allocation7 + $0x2d8] ss:$24 sps:$4 sm:$0xff]   ;;  %v1442_v1 = vld [vmem:[#allocation7 + $0x14] ss:$24 sps:$4 sm:$0xff]   ;;  %v1445_v4 = vld [vmem:[#allocation7 + $0x44] ss:$24 sps:$4 sm:$0xff]   ;;  %p1587_p5 = scmp.lt.s32.totalorder %s1136_s12, %s1136_s12 }
  0x61   :  { %827 = vmatpush1.bf16.msra.mxu1 %v1377_v23  ;;  %755 = vmatprep.subr.bf16.mxu0 %v1378_v24  ;;  %v1440_v3 = vld [vmem:[#allocation7 + $0x10] ss:$24 sps:$4 sm:$0xff]   ;;  %v1443_v6 = vld [vmem:[#allocation7 + $0x40] ss:$24 sps:$4 sm:$0xff]   ;;  %v1448_v7 = vld [vmem:[#allocation7 + $0x74] ss:$24 sps:$4 sm:$0xff]  }
  0x62   :  { %828 = vmatprep.subr.bf16.mxu1 %v1380_v25  ;;  %v1710_v5 = vld [vmem:[#allocation5 + $0x8] sm:$0xff]   ;;  %v1451_v10 = vld [vmem:[#allocation7 + $0xa4] ss:$24 sps:$4 sm:$0xff]   ;;  %v1475_v11 = vld [vmem:[#allocation5 + $0x10] sm:$0xff]   ;;  %s1582_s1 = scalar_lea.vmem %s1136_s12, 3072 }
  0x63   :  { %v1716_v8 = vld [vmem:[#allocation2 + $0x8] sm:$0xff]   ;;  %v1449_v12 = vld [vmem:[#allocation7 + $0xa0] ss:$24 sps:$4 sm:$0xff]   ;;  %v1720_v14 = vld [vmem:[#allocation2 + $0x10] sm:$0xff]   ;;  %p1583_p4 = scmp.ne.s32.totalorder %s1136_s12, %s1582_s1  ;;  %p1588_p6 = scmp.lt.s32.totalorder %s1582_s1, %s1582_s1 }
  0x64   :  { %756 = vmatpush1.bf16.msra.mxu0 %v1382_v26  ;;  %v1446_v9 = vld [vmem:[#allocation7 + $0x70] ss:$24 sps:$4 sm:$0xff]   ;;  %v1454_v13 = vld [vmem:[#allocation7 + $0xd4] ss:$24 sps:$4 sm:$0xff]   ;;  %v1457_v16 = vld [vmem:[#allocation7 + $0x104] ss:$24 sps:$4 sm:$0xff]  }
  0x65   :  { %829 = vmatpush1.bf16.msra.mxu1 %v1383_v27  ;;  %757 = vmatprep.subr.bf16.mxu0 %v1384_v28  ;;  %v1452_v15 = vld [vmem:[#allocation7 + $0xd0] ss:$24 sps:$4 sm:$0xff]   ;;  %v1722_v17 = vld [vmem:[#allocation5 + $0x18] sm:$0xff]   ;;  %v1460_v19 = vld [vmem:[#allocation7 + $0x134] ss:$24 sps:$4 sm:$0xff]   ;;  %p1589_p7 = por %p1588_p6, %p1587_p5 }
  0x66   :  { %830 = vmatprep.subr.bf16.mxu1 %v1386_v29  ;;  %v1455_v18 = vld [vmem:[#allocation7 + $0x100] ss:$24 sps:$4 sm:$0xff]   ;;  %v1458_v21 = vld [vmem:[#allocation7 + $0x130] ss:$24 sps:$4 sm:$0xff]   ;;  %v1463_v22 = vld [vmem:[#allocation7 + $0x164] ss:$24 sps:$4 sm:$0xff]  }
  0x67   :  { %v1728_v20 = vld [vmem:[#allocation2 + $0x18] sm:$0xff]   ;;  %v1466_v24 = vld [vmem:[#allocation7 + $0x194] ss:$24 sps:$4 sm:$0xff]   ;;  %v1464_v25 = vld [vmem:[#allocation7 + $0x190] ss:$24 sps:$4 sm:$0xff]   ;;  %p1590_p8 = pnand %p1589_p7, %p1583_p4 }
  0x68   :  { %758 = vmatpush1.bf16.msra.mxu0 %v1388_v30  ;;  %v1461_v23 = vld [vmem:[#allocation7 + $0x160] ss:$24 sps:$4 sm:$0xff]   ;;  %v1470_v26 = vld [vmem:[#allocation7 + $0x1c4] ss:$24 sps:$4 sm:$0xff]   ;;  %v1474_v28 = vld [vmem:[#allocation7 + $0x1f4] ss:$24 sps:$4 sm:$0xff]  }
  0x69   :  { %831 = vmatpush1.bf16.msra.mxu1 %v1389_v31  ;;  %759 = vmatprep.subr.bf16.mxu0 %v1390_v32  ;;  %v1468_v27 = vld [vmem:[#allocation7 + $0x1c0] ss:$24 sps:$4 sm:$0xff]   ;;  %v1472_v29 = vld [vmem:[#allocation7 + $0x1f0] ss:$24 sps:$4 sm:$0xff]   ;;  %v1478_v30 = vld [vmem:[#allocation7 + $0x224] ss:$24 sps:$4 sm:$0xff]  }
  0x6a   :  { %832 = vmatprep.subr.bf16.mxu1 %v1392_v33  ;;  %v1476_v31 = vld [vmem:[#allocation7 + $0x220] ss:$24 sps:$4 sm:$0xff]   ;;  %v1482_v32 = vld [vmem:[#allocation7 + $0x254] ss:$24 sps:$4 sm:$0xff]   ;;  %v1480_v33 = vld [vmem:[#allocation7 + $0x250] ss:$24 sps:$4 sm:$0xff]  }
  0x6c   :  { %760 = vmatpush1.bf16.msra.mxu0 %v1394_v34  ;;  %v1486_v34 = vld [vmem:[#allocation7 + $0x284] ss:$24 sps:$4 sm:$0xff]  }
  0x6d   :  { %833 = vmatpush1.bf16.msra.mxu1 %v1395_v35  ;;  %761 = vmatprep.subr.bf16.mxu0 %v1396_v36  ;;  %v1484_v35 = vld [vmem:[#allocation7 + $0x280] ss:$24 sps:$4 sm:$0xff]   ;;  %v1490_v36 = vld [vmem:[#allocation7 + $0x2b4] ss:$24 sps:$4 sm:$0xff]  }
  0x6e   :  { %834 = vmatprep.subr.bf16.mxu1 %v1398_v37  ;;  %v1488_v37 = vld [vmem:[#allocation7 + $0x2b0] ss:$24 sps:$4 sm:$0xff]  }
  0x70   :  { %762 = vmatpush1.bf16.msra.mxu0 %v1400_v38  ;;  %v1493_v38 = vld [vmem:[#allocation7 + $0x2e4] ss:$24 sps:$4 sm:$0xff]  }
  0x71   :  { %835 = vmatpush1.bf16.msra.mxu1 %v1401_v39  ;;  %763 = vmatprep.subr.bf16.mxu0 %v1402_v40  ;;  %v1491_v39 = vld [vmem:[#allocation7 + $0x2e0] ss:$24 sps:$4 sm:$0xff]   ;;  %v233_v40 = vlaneseq }
  0x72   :  { %836 = vmatprep.subr.bf16.mxu1 %v1404_v41 }
  0x73   :  { %v234_v41 = vshrl.u32 %v233_v40, 7 }
  0x74   :  { %764 = vmatpush1.bf16.msra.mxu0 %v1406_v42 }
  0x75   :  { %837 = vmatpush1.bf16.msra.mxu1 %v1407_v43  ;;  %765 = vmatprep.subr.bf16.mxu0 %v1408_v44  ;;  %v251_v42 = vsub.s32 4, %v234_v41  ;;  %v231_v43 = vld [vmem:[#allocation8] sm:$0x3f] }
  0x76   :  { %838 = vmatprep.subr.bf16.mxu1 %v1410_v45  ;;  %v255_v45 = vsub.s32 5, %v234_v41 }
  0x77   :  { %v1739_v44 = vrot.slane %v231_v43, %v251_v42 }
  0x78   :  { %766 = vmatpush1.bf16.msra.mxu0 %v1412_v46  ;;  %v1741_v46 = vrot.slane %v231_v43, %v255_v45 }
  0x79   :  { %839 = vmatpush1.bf16.msra.mxu1 %v1413_v48  ;;  %767 = vmatprep.subr.bf16.mxu0 %v1414_v49  ;;  %v243_v48 = vsub.s32 2, %v234_v41  ;;  %v239_v49 = vsub.s32 1, %v234_v41 }
  0x7a   :  { %840 = vmatprep.subr.bf16.mxu1 %v1416_v50  ;;  %v247_v50 = vsub.s32 3, %v234_v41 }
  0x7c   :  { %768 = vmatpush1.bf16.msra.mxu0 %v1418_v51 }
  0x7d   :  { %841 = vmatpush1.bf16.msra.mxu1 %v1419_v52  ;;  %769 = vmatprep.subr.bf16.mxu0 %v1420_v53  ;;  %v1745_v52 = vrot.slane %v231_v43, %v243_v48  ;;  %v1747_v53 = vrot.slane %v231_v43, %v239_v49 }
  0x7e   :  { %842 = vmatprep.subr.bf16.mxu1 %v1422_v54  ;;  %v1749_v54 = vrot.slane %v231_v43, %v247_v50 }
  0x80   :  { %770 = vmatpush1.bf16.msra.mxu0 %v1424_v55 }
  0x81   :  { %843 = vmatpush1.bf16.msra.mxu1 %v1425_v56  ;;  %771 = vmatprep.subr.bf16.mxu0 %v1426_v57 }
  0x82   :  { %844 = vmatprep.subr.bf16.mxu1 %v1428_v58 }
  0x84   :  { %772 = vmatpush1.bf16.msra.mxu0 %v1430_v59 }
  0x85   :  { %845 = vmatpush1.bf16.msra.mxu1 %v1431_v60  ;;  %773 = vmatprep.subr.bf16.mxu0 %v1432_v61 }
  0x86   :  { %846 = vmatprep.subr.bf16.mxu1 %v1434_v62 }
  0x88   :  { %774 = vmatpush1.bf16.msra.mxu0 %v1436_v63 }
  0x89   :  { %847 = vmatpush1.bf16.msra.mxu1 %v1437_v0  ;;  %889 = vmatprep.subr.bf16.mxu0 %v1442_v1 }
  0x8a   :  { %1301 = vmatprep.subr.bf16.mxu1 %v1442_v1 }
  0x8b   :  { %776 = vmatmul.mubr.bf16.vlgmr.msra.gmra.mrb[0].mxu0 %v1708_v2 }
  0x8c   :  { %849 = vmatmul.mubr.bf16.vlgmr.msra.gmra.mrb[0].mxu1 %v1708_v2  ;;  %890 = vmatpush1.bf16.msra.mxu0 %v1440_v3 }
  0x8d   :  { %1317 = vmatpush1.bf16.msra.mxu1 %v1440_v3  ;;  %891 = vmatprep.subr.bf16.mxu0 %v1445_v4 }
  0x8e   :  { %1302 = vmatprep.subr.bf16.mxu1 %v1445_v4  ;;  %785 = vmatprep.mubr.bf16.mxu0 %v1710_v5 }
  0x8f   :  { %858 = vmatprep.mubr.bf16.mxu1 %v1710_v5 }
  0x90   :  { %892 = vmatpush1.bf16.msra.mxu0 %v1443_v6 }
  0x91   :  { %1318 = vmatpush1.bf16.msra.mxu1 %v1443_v6  ;;  %893 = vmatprep.subr.bf16.mxu0 %v1448_v7 }
  0x92   :  { %1303 = vmatprep.subr.bf16.mxu1 %v1448_v7 }
  0x93   :  { %786 = vmatmul.mubr.bf16.gmra.mrb[4].mxu0 %v1716_v8 }
  0x94   :  { %859 = vmatmul.mubr.bf16.gmra.mrb[4].mxu1 %v1716_v8  ;;  %894 = vmatpush1.bf16.msra.mxu0 %v1446_v9 }
  0x95   :  { %1319 = vmatpush1.bf16.msra.mxu1 %v1446_v9  ;;  %895 = vmatprep.subr.bf16.mxu0 %v1451_v10 }
  0x96   :  { %1304 = vmatprep.subr.bf16.mxu1 %v1451_v10  ;;  %795 = vmatprep.mubr.bf16.mxu0 %v1475_v11 }
  0x97   :  { %868 = vmatprep.mubr.bf16.mxu1 %v1475_v11 }
  0x98   :  { %896 = vmatpush1.bf16.msra.mxu0 %v1449_v12 }
  0x99   :  { %1320 = vmatpush1.bf16.msra.mxu1 %v1449_v12  ;;  %897 = vmatprep.subr.bf16.mxu0 %v1454_v13 }
  0x9a   :  { %1305 = vmatprep.subr.bf16.mxu1 %v1454_v13 }
  0x9b   :  { %796 = vmatmul.mubr.bf16.gmra.mrb[8].mxu0 %v1720_v14 }
  0x9c   :  { %869 = vmatmul.mubr.bf16.gmra.mrb[8].mxu1 %v1720_v14  ;;  %898 = vmatpush1.bf16.msra.mxu0 %v1452_v15 }
  0x9d   :  { %1321 = vmatpush1.bf16.msra.mxu1 %v1452_v15  ;;  %899 = vmatprep.subr.bf16.mxu0 %v1457_v16 }
  0x9e   :  { %1306 = vmatprep.subr.bf16.mxu1 %v1457_v16  ;;  %805 = vmatprep.mubr.bf16.mxu0 %v1722_v17 }
  0x9f   :  { %878 = vmatprep.mubr.bf16.mxu1 %v1722_v17 }
  0xa0   :  { %900 = vmatpush1.bf16.msra.mxu0 %v1455_v18 }
  0xa1   :  { %1322 = vmatpush1.bf16.msra.mxu1 %v1455_v18  ;;  %901 = vmatprep.subr.bf16.mxu0 %v1460_v19 }
  0xa2   :  { %1307 = vmatprep.subr.bf16.mxu1 %v1460_v19 }
  0xa3   :  { %806 = vmatmul.mubr.bf16.gmra.mrb[12].mxu0 %v1728_v20 }
  0xa4   :  { %879 = vmatmul.mubr.bf16.gmra.mrb[12].mxu1 %v1728_v20  ;;  %902 = vmatpush1.bf16.msra.mxu0 %v1458_v21 }
  0xa5   :  { %1323 = vmatpush1.bf16.msra.mxu1 %v1458_v21  ;;  %903 = vmatprep.subr.bf16.mxu0 %v1463_v22 }
  0xa6   :  { %1308 = vmatprep.subr.bf16.mxu1 %v1463_v22  ;;  %921 = vmatprep.mubr.bf16.mxu0 %v1704_v47  ;;  %v235_v47 = vsub.s32 0, %v234_v41 }
  0xa7   :  { %941 = vmatprep.mubr.bf16.mxu1 %v1475_v11 }
  0xa8   :  { %904 = vmatpush1.bf16.msra.mxu0 %v1461_v23  ;;  %v1743_v51 = vrot.slane %v231_v43, %v235_v47 }
  0xa9   :  { %1324 = vmatpush1.bf16.msra.mxu1 %v1461_v23  ;;  %905 = vmatprep.subr.bf16.mxu0 %v1466_v24 }
  0xaa   :  { %1309 = vmatprep.subr.bf16.mxu1 %v1466_v24 }
  0xac   :  { %906 = vmatpush1.bf16.msra.mxu0 %v1464_v25 }
  0xad   :  { %1325 = vmatpush1.bf16.msra.mxu1 %v1464_v25  ;;  %907 = vmatprep.subr.bf16.mxu0 %v1470_v26 }
  0xae   :  { %1310 = vmatprep.subr.bf16.mxu1 %v1470_v26 }
  0xb0   :  { %908 = vmatpush1.bf16.msra.mxu0 %v1468_v27 }
  0xb1   :  { %1326 = vmatpush1.bf16.msra.mxu1 %v1468_v27  ;;  %909 = vmatprep.subr.bf16.mxu0 %v1474_v28 }
  0xb2   :  { %1311 = vmatprep.subr.bf16.mxu1 %v1474_v28 }
  0xb4   :  { %910 = vmatpush1.bf16.msra.mxu0 %v1472_v29 }
  0xb5   :  { %1327 = vmatpush1.bf16.msra.mxu1 %v1472_v29  ;;  %911 = vmatprep.subr.bf16.mxu0 %v1478_v30 }
  0xb6   :  { %1312 = vmatprep.subr.bf16.mxu1 %v1478_v30 }
  0xb8   :  { %912 = vmatpush1.bf16.msra.mxu0 %v1476_v31 }
  0xb9   :  { %1328 = vmatpush1.bf16.msra.mxu1 %v1476_v31  ;;  %913 = vmatprep.subr.bf16.mxu0 %v1482_v32 }
  0xba   :  { %1313 = vmatprep.subr.bf16.mxu1 %v1482_v32 }
  0xbc   :  { %914 = vmatpush1.bf16.msra.mxu0 %v1480_v33 }
  0xbd   :  { %1329 = vmatpush1.bf16.msra.mxu1 %v1480_v33  ;;  %915 = vmatprep.subr.bf16.mxu0 %v1486_v34 }
  0xbe   :  { %1314 = vmatprep.subr.bf16.mxu1 %v1486_v34 }
  0xc0   :  { %916 = vmatpush1.bf16.msra.mxu0 %v1484_v35 }
  0xc1   :  { %1330 = vmatpush1.bf16.msra.mxu1 %v1484_v35  ;;  %917 = vmatprep.subr.bf16.mxu0 %v1490_v36 }
  0xc2   :  { %1315 = vmatprep.subr.bf16.mxu1 %v1490_v36 }
  0xc4   :  { %918 = vmatpush1.bf16.msra.mxu0 %v1488_v37 }
  0xc5   :  { %1331 = vmatpush1.bf16.msra.mxu1 %v1488_v37  ;;  %919 = vmatprep.subr.bf16.mxu0 %v1493_v38 }
  0xc6   :  { %1316 = vmatprep.subr.bf16.mxu1 %v1493_v38 }
  0xc8   :  { %920 = vmatpush1.bf16.msra.mxu0 %v1491_v39 }
  0xc9   :  { %1332 = vmatpush1.bf16.msra.mxu1 %v1491_v39 }
  0xcb   :  { %922 = vmatmul.mubr.bf16.vlgmr.msra.gmra.mrb[16].mxu0 %v1708_v2 }
  0xcc   :  { %942 = vmatmul.mubr.bf16.vlgmr.msra.gmra.mrb[16].mxu1 %v1720_v14  ;;  %931 = vmatprep.mubr.bf16.mxu0 %v1710_v5 }
  0xcd   :  { %951 = vmatprep.mubr.bf16.mxu1 %v1722_v17 }
  0xd3   :  { %932 = vmatmul.mubr.bf16.gmra.mrb[20].mxu0 %v1716_v8 }
  0xd4   :  { %952 = vmatmul.mubr.bf16.gmra.mrb[20].mxu1 %v1728_v20 }
 0x15e   :  { %v777_v55 = vpop.f32.mrb[0].mxu0 }
 0x15f   :  { %v850_v56 = vpop.f32.mrb[0].mxu1  ;;  %v778_v57 = vadd.f32 %v777_v55, %v1743_v51  ;;  %v779_v59 = vpop.f32.mrb[1].mxu0 }
 0x160   :  { %v851_v58 = vadd.f32 %v850_v56, %v1745_v52  ;;  %v852_v60 = vpop.f32.mrb[1].mxu1  ;;  %v780_v61 = vadd.f32 %v779_v59, %v1747_v53  ;;  %v781_v63 = vpop.f32.mrb[2].mxu0 }
 0x161   :  { %v853_v62 = vadd.f32 %v852_v60, %v1749_v54  ;;  %v854_v0 = vpop.f32.mrb[2].mxu1  ;;  %v782_v1 = vadd.f32 %v781_v63, %v1743_v51  ;;  %v783_v3 = vpop.f32.mrb[3].mxu0 }
 0x162   :  { %v855_v2 = vadd.f32 %v854_v0, %v1745_v52  ;;  %v856_v4 = vpop.f32.mrb[3].mxu1  ;;  %v1277_v5 = vpack.c.bf16 %v780_v61, %v778_v57  ;;  %v784_v7 = vadd.f32 %v783_v3, %v1747_v53 }
 0x163   :  { %v1278_v6 = vpack.c.bf16 %v853_v62, %v851_v58  ;;  %v857_v8 = vadd.f32 %v856_v4, %v1749_v54 }
 0x164   :  { %1106 = vst [vmem:[#allocation10] sm:$0xff] %v1277_v5  ;;  %v1280_v9 = vpack.c.bf16 %v784_v7, %v782_v1 }
 0x165   :  { %1107 = vst [vmem:[#allocation10 + $0x8] sm:$0xff] %v1278_v6  ;;  %v1281_v10 = vpack.c.bf16 %v857_v8, %v855_v2 }
 0x166   :  { %1109 = vst [vmem:[#allocation10 + $0x18] sm:$0xff] %v1280_v9  ;;  %v787_v11 = vpop.f32.mrb[4].mxu0 }
 0x167   :  { %1110 = vst [vmem:[#allocation10 + $0x20] sm:$0xff] %v1281_v10  ;;  %v860_v12 = vpop.f32.mrb[4].mxu1  ;;  %v788_v13 = vadd.f32 %v787_v11, %v1743_v51  ;;  %v789_v15 = vpop.f32.mrb[5].mxu0 }
 0x168   :  { %v861_v14 = vadd.f32 %v860_v12, %v1745_v52  ;;  %v862_v16 = vpop.f32.mrb[5].mxu1  ;;  %v790_v17 = vadd.f32 %v789_v15, %v1747_v53  ;;  %v791_v19 = vpop.f32.mrb[6].mxu0 }
 0x169   :  { %v863_v18 = vadd.f32 %v862_v16, %v1749_v54  ;;  %v864_v20 = vpop.f32.mrb[6].mxu1  ;;  %v792_v21 = vadd.f32 %v791_v19, %v1743_v51  ;;  %v793_v23 = vpop.f32.mrb[7].mxu0 }
 0x16a   :  { %v865_v22 = vadd.f32 %v864_v20, %v1745_v52  ;;  %v866_v24 = vpop.f32.mrb[7].mxu1  ;;  %v1283_v25 = vpack.c.bf16 %v790_v17, %v788_v13  ;;  %v794_v27 = vadd.f32 %v793_v23, %v1747_v53 }
 0x16b   :  { %v1284_v26 = vpack.c.bf16 %v863_v18, %v861_v14  ;;  %v867_v28 = vadd.f32 %v866_v24, %v1749_v54 }
 0x16c   :  { %1112 = vst [vmem:[#allocation10 + $0x30] sm:$0xff] %v1283_v25  ;;  %v1286_v29 = vpack.c.bf16 %v794_v27, %v792_v21 }
 0x16d   :  { %1113 = vst [vmem:[#allocation10 + $0x38] sm:$0xff] %v1284_v26  ;;  %v1287_v30 = vpack.c.bf16 %v867_v28, %v865_v22 }
 0x16e   :  { %1115 = vst [vmem:[#allocation10 + $0x48] sm:$0xff] %v1286_v29  ;;  %v797_v31 = vpop.f32.mrb[8].mxu0 }
 0x16f   :  { %1116 = vst [vmem:[#allocation10 + $0x50] sm:$0xff] %v1287_v30  ;;  %v870_v32 = vpop.f32.mrb[8].mxu1  ;;  %v798_v33 = vadd.f32 %v797_v31, %v1743_v51  ;;  %v799_v35 = vpop.f32.mrb[9].mxu0 }
 0x170   :  { %v871_v34 = vadd.f32 %v870_v32, %v1745_v52  ;;  %v872_v36 = vpop.f32.mrb[9].mxu1  ;;  %v800_v37 = vadd.f32 %v799_v35, %v1747_v53  ;;  %v801_v39 = vpop.f32.mrb[10].mxu0 }
 0x171   :  { %v873_v38 = vadd.f32 %v872_v36, %v1749_v54  ;;  %v874_v40 = vpop.f32.mrb[10].mxu1  ;;  %v802_v41 = vadd.f32 %v801_v39, %v1743_v51  ;;  %v803_v43 = vpop.f32.mrb[11].mxu0 }
 0x172   :  { %v875_v42 = vadd.f32 %v874_v40, %v1745_v52  ;;  %v876_v45 = vpop.f32.mrb[11].mxu1  ;;  %v1289_v47 = vpack.c.bf16 %v800_v37, %v798_v33  ;;  %v804_v49 = vadd.f32 %v803_v43, %v1747_v53 }
 0x173   :  { %v1290_v48 = vpack.c.bf16 %v873_v38, %v871_v34  ;;  %v877_v50 = vadd.f32 %v876_v45, %v1749_v54 }
 0x174   :  { %1118 = vst [vmem:[#allocation10 + $0x60] sm:$0xff] %v1289_v47  ;;  %v1292_v55 = vpack.c.bf16 %v804_v49, %v802_v41 }
 0x175   :  { %1119 = vst [vmem:[#allocation10 + $0x68] sm:$0xff] %v1290_v48  ;;  %v1293_v56 = vpack.c.bf16 %v877_v50, %v875_v42 }
 0x176   :  { %1121 = vst [vmem:[#allocation10 + $0x78] sm:$0xff] %v1292_v55  ;;  %v807_v57 = vpop.f32.mrb[12].mxu0 }
 0x177   :  { %1122 = vst [vmem:[#allocation10 + $0x80] sm:$0xff] %v1293_v56  ;;  %v880_v58 = vpop.f32.mrb[12].mxu1  ;;  %v808_v59 = vadd.f32 %v807_v57, %v1743_v51  ;;  %v809_v61 = vpop.f32.mrb[13].mxu0 }
 0x178   :  { %v881_v60 = vadd.f32 %v880_v58, %v1745_v52  ;;  %v882_v62 = vpop.f32.mrb[13].mxu1  ;;  %v810_v63 = vadd.f32 %v809_v61, %v1747_v53  ;;  %v811_v1 = vpop.f32.mrb[14].mxu0 }
 0x179   :  { %v883_v0 = vadd.f32 %v882_v62, %v1749_v54  ;;  %v884_v2 = vpop.f32.mrb[14].mxu1  ;;  %v812_v3 = vadd.f32 %v811_v1, %v1743_v51  ;;  %v813_v5 = vpop.f32.mrb[15].mxu0 }
 0x17a   :  { %v885_v4 = vadd.f32 %v884_v2, %v1745_v52  ;;  %v886_v6 = vpop.f32.mrb[15].mxu1  ;;  %v1295_v7 = vpack.c.bf16 %v810_v63, %v808_v59  ;;  %v814_v9 = vadd.f32 %v813_v5, %v1747_v53 }
 0x17b   :  { %v1296_v8 = vpack.c.bf16 %v883_v0, %v881_v60  ;;  %v887_v10 = vadd.f32 %v886_v6, %v1749_v54 }
 0x17c   :  { %1124 = vst [vmem:[#allocation10 + $0x90] sm:$0xff] %v1295_v7  ;;  %v1298_v11 = vpack.c.bf16 %v814_v9, %v812_v3 }
 0x17d   :  { %1125 = vst [vmem:[#allocation10 + $0x98] sm:$0xff] %v1296_v8  ;;  %v1299_v12 = vpack.c.bf16 %v887_v10, %v885_v4 }
 0x17e   :  { %1127 = vst [vmem:[#allocation10 + $0xa8] sm:$0xff] %v1298_v11 }
 0x17f   :  { %1128 = vst [vmem:[#allocation10 + $0xb0] sm:$0xff] %v1299_v12 }
 0x19e   :  { %v923_v13 = vpop.f32.mrb[16].mxu0 }
 0x19f   :  { %v943_v14 = vpop.f32.mrb[16].mxu1  ;;  %v924_v51 = vadd.f32 %v923_v13, %v1739_v44  ;;  %v925_v15 = vpop.f32.mrb[17].mxu0 }
 0x1a0   :  { %v944_v52 = vadd.f32 %v943_v14, %v1739_v44  ;;  %v945_v16 = vpop.f32.mrb[17].mxu1  ;;  %v926_v17 = vadd.f32 %v925_v15, %v1741_v46  ;;  %v927_v18 = vpop.f32.mrb[18].mxu0 }
 0x1a1   :  { %v946_v53 = vadd.f32 %v945_v16, %v1741_v46  ;;  %v947_v54 = vpop.f32.mrb[18].mxu1  ;;  %v928_v19 = vadd.f32 %v927_v18, %v1739_v44  ;;  %v929_v21 = vpop.f32.mrb[19].mxu0 }
 0x1a2   :  { %v948_v20 = vadd.f32 %v947_v54, %v1739_v44  ;;  %v949_v22 = vpop.f32.mrb[19].mxu1  ;;  %v1279_v23 = vpack.c.bf16 %v926_v17, %v924_v51  ;;  %v930_v25 = vadd.f32 %v929_v21, %v1741_v46 }
 0x1a3   :  { %v1291_v24 = vpack.c.bf16 %v946_v53, %v944_v52  ;;  %v950_v26 = vadd.f32 %v949_v22, %v1741_v46 }
 0x1a4   :  { %1108 = vst [vmem:[#allocation10 + $0x10] sm:$0xff] %v1279_v23  ;;  %v1282_v27 = vpack.c.bf16 %v930_v25, %v928_v19 }
 0x1a5   :  { %1120 = vst [vmem:[#allocation10 + $0x70] sm:$0xff] %v1291_v24  ;;  %v1294_v28 = vpack.c.bf16 %v950_v26, %v948_v20 }
 0x1a6   :  { %1111 = vst [vmem:[#allocation10 + $0x28] sm:$0xff] %v1282_v27  ;;  %v933_v29 = vpop.f32.mrb[20].mxu0 }
 0x1a7   :  { %1123 = vst [vmem:[#allocation10 + $0x88] sm:$0xff] %v1294_v28  ;;  %v953_v30 = vpop.f32.mrb[20].mxu1  ;;  %v934_v31 = vadd.f32 %v933_v29, %v1739_v44  ;;  %v935_v33 = vpop.f32.mrb[21].mxu0 }
 0x1a8   :  { %v954_v32 = vadd.f32 %v953_v30, %v1739_v44  ;;  %v955_v34 = vpop.f32.mrb[21].mxu1  ;;  %v936_v35 = vadd.f32 %v935_v33, %v1741_v46  ;;  %v937_v37 = vpop.f32.mrb[22].mxu0 }
 0x1a9   :  { %v956_v36 = vadd.f32 %v955_v34, %v1741_v46  ;;  %v957_v38 = vpop.f32.mrb[22].mxu1  ;;  %v938_v39 = vadd.f32 %v937_v37, %v1739_v44  ;;  %v939_v41 = vpop.f32.mrb[23].mxu0 }
 0x1aa   :  { %v958_v40 = vadd.f32 %v957_v38, %v1739_v44  ;;  %v959_v42 = vpop.f32.mrb[23].mxu1  ;;  %v1285_v43 = vpack.c.bf16 %v936_v35, %v934_v31  ;;  %v940_v47 = vadd.f32 %v939_v41, %v1741_v46 }
 0x1ab   :  { %v1297_v45 = vpack.c.bf16 %v956_v36, %v954_v32  ;;  %v960_v48 = vadd.f32 %v959_v42, %v1741_v46 }
 0x1ac   :  { %1114 = vst [vmem:[#allocation10 + $0x40] sm:$0xff] %v1285_v43  ;;  %v1288_v49 = vpack.c.bf16 %v940_v47, %v938_v39 }
 0x1ad   :  { %1126 = vst [vmem:[#allocation10 + $0xa0] sm:$0xff] %v1297_v45  ;;  %v1300_v50 = vpack.c.bf16 %v960_v48, %v958_v40 }
 0x1ae   :  { %1117 = vst [vmem:[#allocation10 + $0x58] sm:$0xff] %v1288_v49 }
 0x1af   :  { %1129 = vst [vmem:[#allocation10 + $0xb8] sm:$0xff] %v1300_v50 }
 0x1b0   :  { %1593 = shalt.err (!%p1590_p8)
}
 0x1b1   :  { %s1594_s15 = scalar_lea.hbm %s1818_s4, 3072 }
 0x1b2   :  { %p1595_p9 = scmp.ne.s32.totalorder %s1818_s4, %s1594_s15  ;;  %p1598_p10 = scmp.lt.u32.totalorder %s1594_s15, %s1818_s4 }
 0x1b4   :  { %p1600_p11 = pnand %p1598_p10, %p1595_p9 }
 0x1b6   :  { %1603 = shalt.err (!%p1600_p11)
}
 0x1b7   :  { %1141 = dma.vmem_to_hbm [thread:$0]  %s1136_s12, 3072, %s1818_s4, [#allocation4], %s1617_s0, %s1617_s0, %s1618_s18  }
 0x1b8   :  { %1610 = dma.done.wait [#allocation4], 3072  }
 0x1b9   :  { %1611 = vsyncadd [#allocation4], 4294964224 }
 0x1ba   :  { %1145 = vsyncpa [#allocation3], 1 }
 0x1bb   :  { %1146 = vsyncpa [#allocation6], 1 }
 0x1bc   :  { %1147 = vsyncpa [#allocation9], 1 }
 0x1bd   :  { %1148 = vsyncpa [#allocation4], 1 }

// kernel: rnn_block_forward.5
= control target key start
LH: loop header
LB: loop body
LE: loop exit
PB: predicated region body
PF: predicated region fallthrough
CT: control target
= control target key end

     0   :  { %14 = vsyncpa [#allocation5], 0  ;;  %s4677_s0 = inlined_call_operand.hbm [shape: bf16[8,8,768], index: 0, kind: input, shape index: {}, may-alias: {0,1}]   ;;  %s4678_s1 = inlined_call_operand.hbm [shape: bf16[8,8,768], index: 1, kind: input, shape index: {}, may-alias: {0,1}]   ;;  %s4679_s2 = inlined_call_operand.hbm [shape: bf16[128,384], index: 2, kind: input, shape index: {}]   ;;  %s4680_s3 = inlined_call_operand.hbm [shape: bf16[128,384], index: 3, kind: input, shape index: {}]   ;;  %s4681_s4 = inlined_call_operand.hbm [shape: f32[1,128], index: 4, kind: input, shape index: {}]   ;;  %s4682_s5 = inlined_call_operand.hbm [shape: f32[1,128], index: 5, kind: input, shape index: {}]   ;;  %s4683_s6 = inlined_call_operand.hbm [shape: s32[8,1], index: 6, kind: input, shape index: {}]   ;;  %s4684_s7 = inlined_call_operand.hbm [shape: bf16[8,8,128], index: 7, kind: output, shape index: {0}]   ;;  %s4685_s8 = inlined_call_operand.hbm [shape: bf16[8,8,128], index: 8, kind: output, shape index: {1}]  }
   0x1   :  { %15 = vsyncpa [#allocation8], 0 }
   0x2   :  { %16 = vsyncpa [#allocation11], 0 }
   0x3   :  { %17 = vsyncpa [#allocation14], 0 }
   0x4   :  { %18 = vsyncpa [#allocation6], 0 }
   0x5   :  { %19 = vsyncpa [#allocation18], 0  ;;  %s3612_s29 = scalar_lea.hbm %s4678_s1, 192  ;;  %s3546_s30 = smov [#allocation7]  }
   0x6   :  { %s43_s9 = sshll.u32 %s3546_s30, 4  ;;  %s3547_s10 = smov [#allocation10]   ;;  %s44_s9 = int_to_ptr.vmem [resolvable:$true] %s43_s9 }
   0x7   :  { %s67_s11 = sshll.u32 %s3547_s10, 4  ;;  %s3357_s14 = scalar_lea.hbm %s4678_s1, 1728  ;;  %s3614_s11 = int_to_ptr.vmem [resolvable:$true] %s67_s11 }
   0x8   :  { %p3334_p0 = scmp.ne.s32.totalorder %s3612_s29, %s3357_s14  ;;  %s3335_s17 = scalar_lea.hbm %s4678_s1, 3072 }
   0x9   :  { %p3336_p1 = scmp.lt.u32.totalorder %s3612_s29, %s4678_s1  ;;  %p3337_p2 = scmp.lt.u32.totalorder %s3335_s17, %s3357_s14 }
   0xa   :  { %p3339_p4 = scmp.lt.u32.totalorder %s3357_s14, %s3612_s29 }
   0xb   :  { %p3338_p3 = por %p3337_p2, %p3336_p1 }
   0xd   :  { %p3340_p5 = por %p3339_p4, %p3338_p3 }
   0xf   :  { %p3341_p6 = pnand %p3340_p5, %p3334_p0 }
  0x11   :  { %3344 = shalt.err (!%p3341_p6)
}
  0x12   :  { %s3345_s20 = scalar_lea.vmem %s44_s9, 1536  ;;  %p3350_p8 = scmp.lt.s32.totalorder %s44_s9, %s44_s9 }
  0x13   :  { %p3346_p7 = scmp.ne.s32.totalorder %s44_s9, %s3345_s20  ;;  %p3351_p9 = scmp.lt.s32.totalorder %s3345_s20, %s3345_s20 }
  0x15   :  { %p3352_p10 = por %p3351_p9, %p3350_p8 }
  0x17   :  { %p3353_p11 = pnand %p3352_p10, %p3346_p7 }
  0x19   :  { %3356 = shalt.err (!%p3353_p11)
}
  0x1a   :  { %s3548_s21 = smov 384   ;;  %s3549_s22 = smov 192  }
  0x1b   :  { %s3550_s23 = smov 12   ;;  %s3358_s25 = scalar_lea.hbm %s4680_s3, 3072 }
  0x1c   :  { %49 = dma.hbm_to_vmem [thread:$0]  %s3612_s29, 1536, %s44_s9, [#allocation8], %s3548_s21, %s3549_s22, %s3550_s23  }
  0x1d   :  { %p3359_p12 = scmp.ne.s32.totalorder %s4680_s3, %s3358_s25  ;;  %p3362_p13 = scmp.lt.u32.totalorder %s3358_s25, %s4680_s3 }
  0x1f   :  { %p3364_p0 = pnand %p3362_p13, %p3359_p12 }
  0x21   :  { %3367 = shalt.err (!%p3364_p0)
}
  0x22   :  { %s3368_s10 = scalar_lea.vmem %s3614_s11, 3072  ;;  %p3373_p2 = scmp.lt.s32.totalorder %s3614_s11, %s3614_s11 }
  0x23   :  { %p3369_p1 = scmp.ne.s32.totalorder %s3614_s11, %s3368_s10  ;;  %p3374_p3 = scmp.lt.s32.totalorder %s3368_s10, %s3368_s10 }
  0x25   :  { %p3375_p4 = por %p3374_p3, %p3373_p2 }
  0x27   :  { %p3376_p5 = pnand %p3375_p4, %p3369_p1 }
  0x29   :  { %3379 = shalt.err (!%p3376_p5)
}
  0x2a   :  { %73 = dma.hbm_to_vmem [thread:$0]  %s4680_s3, 3072, %s3614_s11, [#allocation11], %s3549_s22, %s3549_s22, %s3550_s23  }
  0x2b   :  { %s3551_s12 = smov [#allocation13]   ;;  %s3552_s14 = smov [#allocation4]  }
  0x2c   :  { %s90_s13 = sshll.u32 %s3551_s12, 4  ;;  %s25_s15 = sshll.u32 %s3552_s14, 4  ;;  %s91_s13 = int_to_ptr.vmem [resolvable:$true] %s90_s13  ;;  %s3652_s15 = int_to_ptr.vmem [resolvable:$true] %s25_s15 }
  0x2d   :  { %s3380_s18 = scalar_lea.hbm %s4682_s5, 16 }
  0x2e   :  { %p3381_p6 = scmp.ne.s32.totalorder %s4682_s5, %s3380_s18  ;;  %p3384_p7 = scmp.lt.u32.totalorder %s3380_s18, %s4682_s5 }
  0x30   :  { %p3386_p8 = pnand %p3384_p7, %p3381_p6 }
  0x32   :  { %3389 = shalt.err (!%p3386_p8)
}
  0x33   :  { %s3390_s3 = scalar_lea.vmem %s91_s13, 16  ;;  %s3394_s11 = scalar_lea.vmem %s91_s13, 32 }
  0x34   :  { %p3391_p9 = scmp.ne.s32.totalorder %s91_s13, %s3390_s3  ;;  %p3395_p10 = scmp.lt.s32.totalorder %s91_s13, %s91_s13 }
  0x35   :  { %p3396_p11 = scmp.lt.s32.totalorder %s3394_s11, %s3390_s3 }
  0x37   :  { %p3397_p12 = por %p3396_p11, %p3395_p10 }
  0x39   :  { %p3398_p13 = pnand %p3397_p12, %p3391_p9 }
  0x3b   :  { %3401 = shalt.err (!%p3398_p13)
}
  0x3c   :  { %93 = dma.hbm_to_vmem [thread:$0]  %s4682_s5, 16, %s91_s13, [#allocation14]  }
  0x3d   :  { %s3402_s30 = scalar_lea.hbm %s4677_s0, 1536  ;;  %s3404_s14 = scalar_lea.hbm %s4677_s0, 3072 }
  0x3e   :  { %p3403_p0 = scmp.ne.s32.totalorder %s4677_s0, %s3402_s30  ;;  %p3405_p1 = scmp.lt.u32.totalorder %s3404_s14, %s3402_s30 }
  0x3f   :  { %p3406_p2 = scmp.lt.u32.totalorder %s3402_s30, %s4677_s0 }
  0x41   :  { %p3407_p3 = por %p3406_p2, %p3405_p1 }
  0x43   :  { %p3408_p4 = pnand %p3407_p3, %p3403_p0 }
  0x45   :  { %3411 = shalt.err (!%p3408_p4)
}
  0x46   :  { %s3412_s5 = scalar_lea.vmem %s3652_s15, 1536  ;;  %p3417_p6 = scmp.lt.s32.totalorder %s3652_s15, %s3652_s15 }
  0x47   :  { %p3413_p5 = scmp.ne.s32.totalorder %s3652_s15, %s3412_s5  ;;  %p3418_p7 = scmp.lt.s32.totalorder %s3412_s5, %s3412_s5 }
  0x49   :  { %p3419_p8 = por %p3418_p7, %p3417_p6 }
  0x4b   :  { %p3420_p9 = pnand %p3419_p8, %p3413_p5 }
  0x4d   :  { %3423 = shalt.err (!%p3420_p9)
}
  0x4e   :  { %31 = dma.hbm_to_vmem [thread:$0]  %s4677_s0, 1536, %s3652_s15, [#allocation5], %s3548_s21, %s3549_s22, %s3550_s23  }
  0x4f   :  { %s3553_s19 = smov [#allocation9]   ;;  %s3554_s1 = smov [#allocation12]  }
  0x50   :  { %s55_s20 = sshll.u32 %s3553_s19, 4  ;;  %s80_s24 = sshll.u32 %s3554_s1, 4  ;;  %s56_s20 = int_to_ptr.vmem [resolvable:$true] %s55_s20  ;;  %s81_s24 = int_to_ptr.vmem [resolvable:$true] %s80_s24 }
  0x51   :  { %s3424_s25 = scalar_lea.hbm %s4679_s2, 3072 }
  0x52   :  { %p3425_p10 = scmp.ne.s32.totalorder %s4679_s2, %s3424_s25  ;;  %p3428_p11 = scmp.lt.u32.totalorder %s3424_s25, %s4679_s2 }
  0x54   :  { %p3430_p12 = pnand %p3428_p11, %p3425_p10 }
  0x56   :  { %3433 = shalt.err (!%p3430_p12)
}
  0x57   :  { %s3434_s0 = scalar_lea.vmem %s56_s20, 3072  ;;  %p3439_p0 = scmp.lt.s32.totalorder %s56_s20, %s56_s20 }
  0x58   :  { %p3435_p13 = scmp.ne.s32.totalorder %s56_s20, %s3434_s0  ;;  %p3440_p1 = scmp.lt.s32.totalorder %s3434_s0, %s3434_s0 }
  0x5a   :  { %p3441_p2 = por %p3440_p1, %p3439_p0 }
  0x5c   :  { %p3442_p3 = pnand %p3441_p2, %p3435_p13 }
  0x5e   :  { %3445 = shalt.err (!%p3442_p3)
}
  0x5f   :  { %61 = dma.hbm_to_vmem [thread:$0]  %s4679_s2, 3072, %s56_s20, [#allocation8], %s3549_s22, %s3549_s22, %s3550_s23  }
  0x60   :  { %s3446_s9 = scalar_lea.hbm %s4681_s4, 16 }
  0x61   :  { %p3447_p4 = scmp.ne.s32.totalorder %s4681_s4, %s3446_s9  ;;  %p3450_p5 = scmp.lt.u32.totalorder %s3446_s9, %s4681_s4 }
  0x63   :  { %p3452_p6 = pnand %p3450_p5, %p3447_p4 }
  0x65   :  { %3455 = shalt.err (!%p3452_p6)
}
  0x66   :  { %s3456_s5 = scalar_lea.vmem %s81_s24, 16  ;;  %s3460_s13 = scalar_lea.vmem %s81_s24, 32 }
  0x67   :  { %p3457_p7 = scmp.ne.s32.totalorder %s81_s24, %s3456_s5  ;;  %p3461_p8 = scmp.lt.s32.totalorder %s81_s24, %s81_s24 }
  0x68   :  { %p3462_p9 = scmp.lt.s32.totalorder %s3460_s13, %s3456_s5 }
  0x6a   :  { %p3463_p10 = por %p3462_p9, %p3461_p8 }
  0x6c   :  { %p3464_p11 = pnand %p3463_p10, %p3457_p7 }
  0x6e   :  { %3467 = shalt.err (!%p3464_p11)
}
  0x6f   :  { %83 = dma.hbm_to_vmem [thread:$0]  %s4681_s4, 16, %s81_s24, [#allocation11]  }
  0x70   :  { %s3555_s23 = smov [#allocation15]   ;;  %s3468_s1 = scalar_lea.hbm %s4683_s6, 128 }
  0x71   :  { %s100_s18 = sshll.u32 %s3555_s23, 4  ;;  %p3469_p12 = scmp.ne.s32.totalorder %s4683_s6, %s3468_s1  ;;  %s101_s18 = int_to_ptr.vmem [resolvable:$true] %s100_s18 }
  0x72   :  { %p3472_p13 = scmp.lt.u32.totalorder %s3468_s1, %s4683_s6 }
  0x74   :  { %p3474_p0 = pnand %p3472_p13, %p3469_p12 }
  0x76   :  { %3477 = shalt.err (!%p3474_p0)
}
  0x77   :  { %s3478_s27 = scalar_lea.vmem %s101_s18, 128  ;;  %p3483_p2 = scmp.lt.s32.totalorder %s101_s18, %s101_s18 }
  0x78   :  { %p3479_p1 = scmp.ne.s32.totalorder %s101_s18, %s3478_s27  ;;  %p3484_p3 = scmp.lt.s32.totalorder %s3478_s27, %s3478_s27 }
  0x7a   :  { %p3485_p4 = por %p3484_p3, %p3483_p2 }
  0x7c   :  { %p3486_p5 = pnand %p3485_p4, %p3479_p1 }
  0x7e   :  { %3489 = shalt.err (!%p3486_p5)
}
  0x7f   :  { %103 = dma.hbm_to_vmem [thread:$0]  %s4683_s6, 128, %s101_s18, [#allocation14]  }
  0x80   :  { %3534 = dma.done.wait [#allocation5], 1536  }
  0x81   :  { %3535 = vsyncadd [#allocation5], 4294965760 }
  0x82   :  { %3536 = dma.done.wait [#allocation8], 4608  }
  0x83   :  { %3537 = vsyncadd [#allocation8], 4294962688 }
  0x84   :  { %3538 = dma.done.wait [#allocation11], 3088  }
  0x85   :  { %3539 = vsyncadd [#allocation11], 4294964208 }
  0x86   :  { %3540 = dma.done.wait [#allocation14], 144  }
  0x87   :  { %3541 = vsyncadd [#allocation14], 4294967152  ;;  %v4688_v0 = vmov 0.0   ;;  %v4686_v1 = vmov 0   ;;  %vm3558_vm0 = vmmov 0   ;;  %v3559_v28 = vmov 0.0|0.0  }
  0x88   :  { %2708 = vmatprep.subr.bf16.mxu1 %v4688_v0  ;;  %374 = vmatprep.mubr.bf16.mxu0 %v4686_v1  ;;  %v3734_v2 = vld [vmem:[#allocation9 + $0x4] ss:$12 sps:$4 sm:$0xff]   ;;  %v3736_v3 = vld [vmem:[#allocation9] ss:$12 sps:$4 sm:$0xff]   ;;  %v3739_v4 = vld [vmem:[#allocation9 + $0x1c] ss:$12 sps:$4 sm:$0xff]  }
  0x89   :  { %2724 = vmatprep.mubr.msk.bf16.mxu1 %vm3558_vm0, %v4688_v0  ;;  %3046 = vset.pattern.permute.xlu0 %v4686_v1  ;;  %v3742_v5 = vld [vmem:[#allocation9 + $0x18] ss:$12 sps:$4 sm:$0xff]   ;;  %v3745_v6 = vld [vmem:[#allocation9 + $0x34] ss:$12 sps:$4 sm:$0xff]   ;;  %v3748_v7 = vld [vmem:[#allocation9 + $0x30] ss:$12 sps:$4 sm:$0xff]  }
  0x8a   :  { %3047 = vset.pattern.permute.xlu1 %v4686_v1  ;;  %342 = vmatprep.subr.bf16.mxu0 %v3734_v2  ;;  %v3751_v8 = vld [vmem:[#allocation9 + $0x4c] ss:$12 sps:$4 sm:$0xff]   ;;  %v3753_v9 = vld [vmem:[#allocation9 + $0x8] ss:$12 sps:$4 sm:$0xff]   ;;  %v3760_v11 = vld [vmem:[#allocation9 + $0x64] ss:$12 sps:$4 sm:$0xff]  }
  0x8b   :  { %343 = vmatpush1.bf16.msra.mxu0 %v3736_v3  ;;  %v3756_v10 = vld [vmem:[#allocation9 + $0x48] ss:$12 sps:$4 sm:$0xff]   ;;  %2709 = vmatpush3.bf16.msra.mxu1 %v3753_v9  ;;  %v3763_v12 = vld [vmem:[#allocation9 + $0x20] ss:$12 sps:$4 sm:$0xff]   ;;  %v3769_v14 = vld [vmem:[#allocation9 + $0x38] ss:$12 sps:$4 sm:$0xff]  }
  0x8c   :  { %344 = vmatprep.subr.bf16.mxu0 %v3739_v4  ;;  %2710 = vmatprep.subr.bf16.mxu1 %v4688_v0  ;;  %v3765_v13 = vld [vmem:[#allocation9 + $0x60] ss:$12 sps:$4 sm:$0xff]   ;;  %v3772_v15 = vld [vmem:[#allocation9 + $0x7c] ss:$12 sps:$4 sm:$0xff]   ;;  %v3776_v16 = vld [vmem:[#allocation9 + $0x78] ss:$12 sps:$4 sm:$0xff]  }
  0x8d   :  { %v3779_v17 = vld [vmem:[#allocation9 + $0x50] ss:$12 sps:$4 sm:$0xff]   ;;  %v3782_v18 = vld [vmem:[#allocation9 + $0x94] ss:$12 sps:$4 sm:$0xff]   ;;  %v3792_v21 = vld [vmem:[#allocation9 + $0xac] ss:$12 sps:$4 sm:$0xff]  }
  0x8e   :  { %v3785_v19 = vld [vmem:[#allocation9 + $0x90] ss:$12 sps:$4 sm:$0xff]   ;;  %v3789_v20 = vld [vmem:[#allocation9 + $0x68] ss:$12 sps:$4 sm:$0xff]   ;;  %4729 = vst [vmem:[#allocation26_spill] sm:$0xff] %v3792_v21  ;;  %v208_v60 = vld [vmem:[#allocation4] sm:$0xff] }
  0x8f   :  { %345 = vmatpush1.bf16.msra.mxu0 %v3742_v5  ;;  %2711 = vmatpush3.bf16.msra.mxu1 %v3763_v12  ;;  %4728 = vst [vmem:[#allocation25_spill] sm:$0xff] %v3785_v19  ;;  %v3795_v22 = vld [vmem:[#allocation9 + $0xa8] ss:$12 sps:$4 sm:$0xff]   ;;  %v3799_v23 = vld [vmem:[#allocation9 + $0x80] ss:$12 sps:$4 sm:$0xff]   ;;  %v210_v61 = vunpack.c.l.bf16 %v208_v60  ;;  %s3560_s6 = smov [#allocation16]  }
  0x90   :  { %346 = vmatprep.subr.bf16.mxu0 %v3745_v6  ;;  %2712 = vmatprep.subr.bf16.mxu1 %v4688_v0  ;;  %4730 = vst [vmem:[#allocation27_spill] sm:$0xff] %v3795_v22  ;;  %v3802_v24 = vld [vmem:[#allocation10 + $0x4] ss:$12 sps:$4 sm:$0xff]   ;;  %v3805_v25 = vld [vmem:[#allocation10] ss:$12 sps:$4 sm:$0xff]   ;;  %s2429_s28 = sshll.u32 %s3560_s6, 4  ;;  %s2430_s28 = int_to_ptr.vmem [resolvable:$true] %s2429_s28 }
  0x91   :  { %4731 = vst [vmem:[#allocation28_spill] sm:$0xff] %v3802_v24  ;;  %v3809_v26 = vld [vmem:[#allocation9 + $0x98] ss:$12 sps:$4 sm:$0xff]   ;;  %v3812_v27 = vld [vmem:[#allocation10 + $0x1c] ss:$12 sps:$4 sm:$0xff]   ;;  %s3490_s30 = scalar_lea.vmem %s2430_s28, 512  ;;  %p3495_p7 = scmp.lt.s32.totalorder %s2430_s28, %s2430_s28 }
  0x92   :  { %4732 = vst [vmem:[#allocation29_spill] sm:$0xff] %v3809_v26  ;;  %v3816_v29 = vld [vmem:[#allocation10 + $0x18] ss:$12 sps:$4 sm:$0xff]   ;;  %v3820_v30 = vld [vmem:[#allocation9 + $0xb0] ss:$12 sps:$4 sm:$0xff]   ;;  %p3491_p6 = scmp.ne.s32.totalorder %s2430_s28, %s3490_s30  ;;  %p3496_p8 = scmp.lt.s32.totalorder %s3490_s30, %s3490_s30 }
  0x93   :  { %347 = vmatpush1.bf16.msra.mxu0 %v3748_v7  ;;  %2713 = vmatpush3.bf16.msra.mxu1 %v3769_v14  ;;  %4733 = vst [vmem:[#allocation30_spill] sm:$0xff] %v3820_v30  ;;  %v3823_v31 = vld [vmem:[#allocation10 + $0x34] ss:$12 sps:$4 sm:$0xff]   ;;  %v3827_v32 = vld [vmem:[#allocation15] sm:$0xff]  ;;  %v3831_v33 = vld [vmem:[#allocation10 + $0x30] ss:$12 sps:$4 sm:$0xff]  }
  0x94   :  { %348 = vmatprep.subr.bf16.mxu0 %v3751_v8  ;;  %2714 = vmatprep.subr.bf16.mxu1 %v4688_v0  ;;  %vm451_vm1 = vcmp.gt.s32.totalorder %v3827_v32, 0  ;;  %v3834_v34 = vld [vmem:[#allocation10 + $0x8] ss:$12 sps:$4 sm:$0xff]   ;;  %vm706_vm2 = vcmp.gt.s32.totalorder %v3827_v32, 7  ;;  %v3841_v36 = vld [vmem:[#allocation10 + $0x4c] ss:$12 sps:$4 sm:$0xff]   ;;  %p3497_p9 = por %p3496_p8, %p3495_p7 }
  0x95   :  { %v3837_v35 = vsel %vm451_vm1, 1, %v4686_v1  ;;  %v707_v37 = vsel %vm706_vm2, 1, %v4686_v1  ;;  %v3848_v38 = vld [vmem:[#allocation10 + $0x48] ss:$12 sps:$4 sm:$0xff]   ;;  %v3851_v39 = vld [vmem:[#allocation10 + $0x20] ss:$12 sps:$4 sm:$0xff]  }
  0x96   :  { %454 = vperm.xlu0 %3046, %v3837_v35   ;;  %vm1072_vm3 = vcmp.gt.s32.totalorder %v3827_v32, 2  ;;  %v3855_v40 = vld [vmem:[#allocation10 + $0x64] ss:$12 sps:$4 sm:$0xff]   ;;  %v3864_v42 = vld [vmem:[#allocation10 + $0x60] ss:$12 sps:$4 sm:$0xff]   ;;  %vm1316_vm4 = vcmp.gt.s32.totalorder %v3827_v32, 3  ;;  %p3498_p10 = pnand %p3497_p9, %p3491_p6 }
  0x97   :  { %349 = vmatpush1.bf16.msra.mxu0 %v3756_v10  ;;  %2715 = vmatpush3.bf16.msra.mxu1 %v3779_v17  ;;  %v3861_v41 = vsel %vm1072_vm3, 1, %v4686_v1  ;;  %v3867_v43 = vld [vmem:[#allocation10 + $0x38] ss:$12 sps:$4 sm:$0xff]   ;;  %v3871_v44 = vld [vmem:[#allocation10 + $0x7c] ss:$12 sps:$4 sm:$0xff]   ;;  %v3876_v45 = vsel %vm1316_vm4, 1, %v4686_v1 }
  0x98   :  { %350 = vmatprep.subr.bf16.mxu0 %v3760_v11  ;;  %2716 = vmatprep.subr.bf16.mxu1 %v4688_v0  ;;  %v3879_v46 = vld [vmem:[#allocation10 + $0x78] ss:$12 sps:$4 sm:$0xff]   ;;  %v3882_v47 = vld [vmem:[#allocation10 + $0x50] ss:$12 sps:$4 sm:$0xff]   ;;  %vm1438_vm5 = vcmp.gt.s32.totalorder %v3827_v32, 4  ;;  %vm1194_vm6 = vcmp.gt.s32.totalorder %v3827_v32, 5 }
  0x99   :  { %v3886_v48 = vld [vmem:[#allocation10 + $0x94] ss:$12 sps:$4 sm:$0xff]   ;;  %v3891_v49 = vsel %vm1438_vm5, 1, %v4686_v1  ;;  %v3894_v50 = vld [vmem:[#allocation10 + $0x90] ss:$12 sps:$4 sm:$0xff]   ;;  %v1195_v53 = vsel %vm1194_vm6, 1, %v4686_v1 }
  0x9a   :  { %709 = vperm.xlu0 %3046, %v707_v37   ;;  %v3897_v51 = vld [vmem:[#allocation10 + $0x68] ss:$12 sps:$4 sm:$0xff]   ;;  %v3901_v52 = vld [vmem:[#allocation10 + $0xac] ss:$12 sps:$4 sm:$0xff]   ;;  %vm950_vm7 = vcmp.gt.s32.totalorder %v3827_v32, 6  ;;  %vm828_vm8 = vcmp.gt.s32.totalorder %v3827_v32, 1 }
  0x9b   :  { %351 = vmatpush1.bf16.msra.mxu0 %v3765_v13  ;;  %2717 = vmatpush3.bf16.msra.mxu1 %v3789_v20  ;;  %v3907_v54 = vld [vmem:[#allocation10 + $0xa8] ss:$12 sps:$4 sm:$0xff]   ;;  %v3910_v55 = vld [vmem:[#allocation10 + $0x80] ss:$12 sps:$4 sm:$0xff]   ;;  %v951_v56 = vsel %vm950_vm7, 1, %v4686_v1  ;;  %v829_v59 = vsel %vm828_vm8, 1, %v4686_v1 }
  0x9c   :  { %352 = vmatprep.subr.bf16.mxu0 %v3772_v15  ;;  %2718 = vmatprep.subr.bf16.mxu1 %v4688_v0  ;;  %v3918_v57 = vld [vmem:[#allocation10 + $0x98] ss:$12 sps:$4 sm:$0xff]   ;;  %v3924_v58 = vld [vmem:[#allocation10 + $0xb0] ss:$12 sps:$4 sm:$0xff]  }
  0x9d   :  { %831 = vperm.xlu1 %3047, %v829_v59  }
  0x9e   :  { %1075 = vperm.xlu0 %3046, %v3861_v41  }
  0x9f   :  { %353 = vmatpush1.bf16.msra.mxu0 %v3776_v16  ;;  %2719 = vmatpush3.bf16.msra.mxu1 %v3799_v23 }
  0xa0   :  { %354 = vmatprep.subr.bf16.mxu0 %v3782_v18  ;;  %2720 = vmatprep.subr.bf16.mxu1 %v4688_v0 }
  0xa1   :  { %953 = vperm.xlu1 %3047, %v951_v56  }
  0xa2   :  { %1319 = vperm.xlu0 %3046, %v3876_v45  }
  0xa3   :  { %355 = vmatpush1.bf16.msra.mxu0 %v3785_v19  ;;  %2721 = vmatpush3.bf16.msra.mxu1 %v3809_v26 }
  0xa4   :  { %356 = vmatprep.subr.bf16.mxu0 %v3792_v21  ;;  %2722 = vmatprep.subr.bf16.mxu1 %v4688_v0 }
  0xa5   :  { %1197 = vperm.xlu1 %3047, %v1195_v53  }
  0xa6   :  { %1563 = vperm.xlu0 %3046, %v3891_v49  }
  0xa7   :  { %357 = vmatpush1.bf16.msra.mxu0 %v3795_v22  ;;  %2723 = vmatpush3.bf16.msra.mxu1 %v3820_v30 }
  0xa8   :  { %596 = vmatprep.subr.bf16.mxu0 %v3802_v24  ;;  %2728 = vmatprep.subr.bf16.mxu1 %v4688_v0 }
  0xa9   :  { %1441 = vperm.xlu1 %3047, %v3891_v49  }
  0xaa   :  { %375 = vmatmul.mubr.bf16.vlgmr.msra.gmra.mrb[0].mxu0 %v3559_v28  ;;  %2725 = vmatmul.mubr.bf16.vlgmr.msra.gmra.mrb[0].mxu1 %v3559_v28 }
  0xab   :  { %597 = vmatpush1.bf16.msra.mxu0 %v3805_v25  ;;  %628 = vmatprep.mubr.bf16.mxu0 %v4686_v1 }
  0xac   :  { %598 = vmatprep.subr.bf16.mxu0 %v3812_v27  ;;  %2729 = vmatpush3.bf16.msra.mxu1 %v3834_v34 }
  0xad   :  { %2730 = vmatprep.subr.bf16.mxu1 %v4688_v0  ;;  %2744 = vmatprep.mubr.msk.bf16.mxu1 %vm3558_vm0, %v4688_v0 }
  0xae   :  { %1807 = vperm.xlu0 %3046, %v1195_v53   ;;  %1685 = vperm.xlu1 %3047, %v3876_v45  }
  0xaf   :  { %599 = vmatpush1.bf16.msra.mxu0 %v3816_v29 }
  0xb0   :  { %600 = vmatprep.subr.bf16.mxu0 %v3823_v31  ;;  %2731 = vmatpush3.bf16.msra.mxu1 %v3851_v39 }
  0xb1   :  { %2732 = vmatprep.subr.bf16.mxu1 %v4688_v0 }
  0xb2   :  { %2051 = vperm.xlu0 %3046, %v951_v56   ;;  %1929 = vperm.xlu1 %3047, %v3861_v41   ;;  %v211_v56 = vunpack.c.h.bf16 %v208_v60 }
  0xb3   :  { %601 = vmatpush1.bf16.msra.mxu0 %v3831_v33 }
  0xb4   :  { %602 = vmatprep.subr.bf16.mxu0 %v3841_v36  ;;  %2733 = vmatpush3.bf16.msra.mxu1 %v3867_v43 }
  0xb5   :  { %2734 = vmatprep.subr.bf16.mxu1 %v4688_v0 }
  0xb6   :  { %2295 = vperm.xlu0 %3046, %v707_v37   ;;  %2173 = vperm.xlu1 %3047, %v829_v59  }
  0xb7   :  { %603 = vmatpush1.bf16.msra.mxu0 %v3848_v38 }
  0xb8   :  { %604 = vmatprep.subr.bf16.mxu0 %v3855_v40  ;;  %2735 = vmatpush3.bf16.msra.mxu1 %v3882_v47 }
  0xb9   :  { %2736 = vmatprep.subr.bf16.mxu1 %v4688_v0 }
  0xba   :  { %2415 = vperm.xlu1 %3047, %v3837_v35   ;;  %v3971_v35 = vld [vmem:[#allocation12] ss:$0 sm:$0xff] }
  0xbb   :  { %605 = vmatpush1.bf16.msra.mxu0 %v3864_v42  ;;  %4734 = vst [vmem:[#allocation31_spill] sm:$0xff] %v3971_v35 }
  0xbc   :  { %606 = vmatprep.subr.bf16.mxu0 %v3871_v44  ;;  %2737 = vmatpush3.bf16.msra.mxu1 %v3897_v51 }
  0xbd   :  { %2738 = vmatprep.subr.bf16.mxu1 %v4688_v0 }
  0xbf   :  { %607 = vmatpush1.bf16.msra.mxu0 %v3879_v46 }
  0xc0   :  { %608 = vmatprep.subr.bf16.mxu0 %v3886_v48  ;;  %2739 = vmatpush3.bf16.msra.mxu1 %v3910_v55 }
  0xc1   :  { %2740 = vmatprep.subr.bf16.mxu1 %v4688_v0 }
  0xc3   :  { %609 = vmatpush1.bf16.msra.mxu0 %v3894_v50 }
  0xc4   :  { %610 = vmatprep.subr.bf16.mxu0 %v3901_v52  ;;  %2741 = vmatpush3.bf16.msra.mxu1 %v3918_v57 }
  0xc5   :  { %2742 = vmatprep.subr.bf16.mxu1 %v4688_v0 }
  0xc7   :  { %611 = vmatpush1.bf16.msra.mxu0 %v3907_v54 }
  0xc8   :  { %724 = vmatprep.subr.bf16.mxu0 %v3734_v2  ;;  %2743 = vmatpush3.bf16.msra.mxu1 %v3924_v58 }
  0xc9   :  { %2748 = vmatprep.subr.bf16.mxu1 %v4688_v0 }
  0xca   :  { %629 = vmatmul.mubr.bf16.vlgmr.msra.gmra.mrb[4].mxu0 %v3559_v28 }
  0xcb   :  { %725 = vmatpush1.bf16.msra.mxu0 %v3736_v3  ;;  %756 = vmatprep.mubr.bf16.mxu0 %v4686_v1 }
  0xcc   :  { %726 = vmatprep.subr.bf16.mxu0 %v3739_v4  ;;  %2745 = vmatmul.mubr.bf16.vlgmr.msra.gmra.mrb[4].mxu1 %v3559_v28 }
  0xcd   :  { %2749 = vmatpush3.bf16.msra.mxu1 %v3753_v9  ;;  %2764 = vmatprep.mubr.msk.bf16.mxu1 %vm3558_vm0, %v4688_v0 }
  0xce   :  { %2750 = vmatprep.subr.bf16.mxu1 %v4688_v0 }
  0xcf   :  { %727 = vmatpush1.bf16.msra.mxu0 %v3742_v5 }
  0xd0   :  { %728 = vmatprep.subr.bf16.mxu0 %v3745_v6 }
  0xd1   :  { %2751 = vmatpush3.bf16.msra.mxu1 %v3763_v12 }
  0xd2   :  { %2752 = vmatprep.subr.bf16.mxu1 %v4688_v0 }
  0xd3   :  { %729 = vmatpush1.bf16.msra.mxu0 %v3748_v7 }
  0xd4   :  { %730 = vmatprep.subr.bf16.mxu0 %v3751_v8 }
  0xd5   :  { %2753 = vmatpush3.bf16.msra.mxu1 %v3769_v14 }
  0xd6   :  { %2754 = vmatprep.subr.bf16.mxu1 %v4688_v0 }
  0xd7   :  { %731 = vmatpush1.bf16.msra.mxu0 %v3756_v10 }
  0xd8   :  { %732 = vmatprep.subr.bf16.mxu0 %v3760_v11 }
  0xd9   :  { %2755 = vmatpush3.bf16.msra.mxu1 %v3779_v17 }
  0xda   :  { %2756 = vmatprep.subr.bf16.mxu1 %v4688_v0 }
  0xdb   :  { %733 = vmatpush1.bf16.msra.mxu0 %v3765_v13 }
  0xdc   :  { %734 = vmatprep.subr.bf16.mxu0 %v3772_v15 }
  0xdd   :  { %2757 = vmatpush3.bf16.msra.mxu1 %v3789_v20 }
  0xde   :  { %2758 = vmatprep.subr.bf16.mxu1 %v4688_v0 }
  0xdf   :  { %735 = vmatpush1.bf16.msra.mxu0 %v3776_v16 }
  0xe0   :  { %736 = vmatprep.subr.bf16.mxu0 %v3782_v18 }
  0xe1   :  { %2759 = vmatpush3.bf16.msra.mxu1 %v3799_v23 }
  0xe2   :  { %2760 = vmatprep.subr.bf16.mxu1 %v4688_v0 }
  0xe3   :  { %737 = vmatpush1.bf16.msra.mxu0 %v3785_v19 }
  0xe4   :  { %738 = vmatprep.subr.bf16.mxu0 %v3792_v21 }
  0xe5   :  { %2761 = vmatpush3.bf16.msra.mxu1 %v3809_v26 }
  0xe6   :  { %2762 = vmatprep.subr.bf16.mxu1 %v4688_v0 }
  0xe7   :  { %739 = vmatpush1.bf16.msra.mxu0 %v3795_v22  ;;  %v3973_v22 = vld [vmem:[#allocation4 + $0x8] ss:$12 sps:$4 sm:$0xff]  }
  0xe8   :  { %846 = vmatprep.subr.bf16.mxu0 %v3802_v24  ;;  %4735 = vst [vmem:[#allocation32_spill] sm:$0xff] %v3973_v22  ;;  %v212_v60 = vunpack.c.l.bf16 %v3973_v22 }
  0xe9   :  { %2763 = vmatpush3.bf16.msra.mxu1 %v3820_v30 }
  0xea   :  { %2768 = vmatprep.subr.bf16.mxu1 %v4688_v0 }
 0x17d   :  { %v376_v62 = vpop.f32.mrb[0].mxu0  ;;  %v417_v53 = vpop.f32.mrb[0].mxu1 }
 0x17e   :  { %v423_v63 = vadd.f32 %v376_v62, %v210_v61  ;;  %v378_v28 = vpop.f32.mrb[1].mxu0  ;;  %v2726_v49 = vpop.f32.mrb[1].mxu1  ;;  %v443_v61 = vadd.f32 %v3971_v35, %v417_v53  ;;  %v462_v62 = vld [vmem:[#allocation7 + $0x54] sm:$0xff] }
 0x17f   :  { %v380_v32 = vpop.f32.mrb[2].mxu0  ;;  %v430_v0 = vadd.f32 %v378_v28, %v211_v56  ;;  %v420_v24 = vpop.f32.mrb[2].mxu1 }
 0x180   :  { %v2494_v37 = vmul.f32 -1.442695, %v423_v63  ;;  %v381_v1 = vpop.f32.mrb[3].mxu0  ;;  %v2727_v45 = vpop.f32.mrb[3].mxu1  ;;  %v464_v32 = vunpack.c.l.bf16 %v462_v62 }
 0x181   :  { %v2495_v30 = vmul.f32 -1.442695, %v430_v0 }
 0x182   :  { %3112 = vpow2.f32 %v2494_v37 }
 0x183   :  { %3114 = vpow2.f32 %v2495_v30 }
 0x18c   :  { %v3113_v41 = vpop.eup %3112 }
 0x18d   :  { %v427_v59 = vadd.f32 1.0, %v3113_v41  ;;  %v3115_v1 = vpop.eup %3114 }
 0x18e   :  { %v434_v24 = vadd.f32 1.0, %v3115_v1  ;;  %v455_v1 = vpop.permute.xlu0 %454 }
 0x18f   :  { %3116 = vrcp.f32 %v427_v59  ;;  %v465_v59 = vunpack.c.h.bf16 %v462_v62  ;;  %vm456_vm9 = vcmp.eq.s32.totalorder %v455_v1, 1 }
 0x190   :  { %vm2552_vm10 = vmpackc.low %vm456_vm9, %vm456_vm9 }
 0x199   :  { %v3117_v63 = vpop.eup %3116 }
 0x19a   :  { %v444_v28 = vmul.f32 %v3117_v63, %v443_v61 }
 0x19c   :  { %v445_v37 = vadd.f32 %v444_v28, %v212_v60 }
 0x19d   :  { %v630_v0 = vpop.f32.mrb[4].mxu0 }
 0x19e   :  { %3118 = vtanh.f32 %v445_v37  ;;  %v677_v56 = vadd.f32 %v630_v0, %v464_v32  ;;  %v632_v30 = vpop.f32.mrb[5].mxu0 }
 0x19f   :  { %v634_v49 = vpop.f32.mrb[6].mxu0  ;;  %3120 = vrcp.f32 %v434_v24  ;;  %v671_v53 = vpop.f32.mrb[4].mxu1  ;;  %v684_v35 = vadd.f32 %v632_v30, %v465_v59 }
 0x1a0   :  { %v2521_v45 = vmul.f32 -1.442695, %v677_v56  ;;  %v635_v41 = vpop.f32.mrb[7].mxu0  ;;  %v2746_v21 = vpop.f32.mrb[5].mxu1 }
 0x1a1   :  { %v674_v26 = vpop.f32.mrb[6].mxu1  ;;  %v2522_v60 = vmul.f32 -1.442695, %v684_v35  ;;  %v3990_v35 = vld [vmem:[#allocation7 + $0x50] ss:$12 sps:$4 sm:$0xff]  }
 0x1a2   :  { %3122 = vpow2.f32 %v2521_v45  ;;  %v2747_v19 = vpop.f32.mrb[7].mxu1  ;;  %v4737_v26 = vmov 0   ;;  %v466_v49 = vunpack.c.h.bf16 %v3990_v35 }
 0x1a3   :  { %3124 = vpow2.f32 %v2522_v60  ;;  %v3983_v19 = vld [vmem:[#allocation13] ss:$0 sm:$0xff] }
 0x1a4   :  { %v697_v56 = vadd.f32 %v3983_v19, %v671_v53 }
 0x1a8   :  { %v3119_v22 = vpop.eup %3118 }
 0x1a9   :  { %v447_v61 = vsub.f32 0.0, %v3119_v22  ;;  %v3121_v63 = vpop.eup %3120 }
 0x1ab   :  { %v448_v28 = vmul.f32 %v3121_v63, %v447_v61 }
 0x1ac   :  { %v3123_v32 = vpop.eup %3122 }
 0x1ad   :  { %v681_v37 = vadd.f32 1.0, %v3123_v32  ;;  %v449_v0 = vadd.f32 %v3119_v22, %v448_v28  ;;  %v4736_v22 = vmov 0.0   ;;  %v3125_v30 = vpop.eup %3124  ;;  %v710_v28 = vpop.permute.xlu0 %709 }
 0x1ae   :  { %v688_v59 = vadd.f32 1.0, %v3125_v30  ;;  %vm711_vm11 = vcmp.eq.s32.totalorder %v710_v28, 1 }
 0x1af   :  { %3126 = vrcp.f32 %v681_v37  ;;  %v2553_v24 = vpack.c.bf16 %v449_v0, %v449_v0  ;;  %v3977_v62 = vsel %vm456_vm9, %v449_v0, 0.0  ;;  %vm2558_vm12 = vmpackc.low %vm711_vm11, %vm711_vm11 }
 0x1b0   :  { %v459_v21 = vpack.c.bf16 %v3977_v62, %v3977_v62 }
 0x1b1   :  { %2554 = vmatmul.mubr.msk.bf16.vlgmr.msra.gmra.mrb[8].mxu0 %vm2552_vm10, %v2553_v24  ;;  %2765 = vmatmul.mubr.msk.bf16.vlgmr.msra.gmra.mrb[8].mxu1 %vm2552_vm10, %v2553_v24 }
 0x1b2   :  { %847 = vmatpush1.bf16.msra.mxu0 %v3805_v25  ;;  %2769 = vmatpush3.bf16.msra.mxu1 %v3834_v34  ;;  %460 = vst [vmem:[#allocation16] sm:$0xf] %v459_v21 }
 0x1b3   :  { %848 = vmatprep.subr.bf16.mxu0 %v3812_v27  ;;  %2770 = vmatprep.subr.bf16.mxu1 %v4736_v22 }
 0x1b4   :  { %878 = vmatprep.mubr.bf16.mxu0 %v4737_v26  ;;  %2784 = vmatprep.mubr.msk.bf16.mxu1 %vm3558_vm0, %v4736_v22 }
 0x1b6   :  { %849 = vmatpush1.bf16.msra.mxu0 %v3816_v29  ;;  %2771 = vmatpush3.bf16.msra.mxu1 %v3851_v39 }
 0x1b7   :  { %850 = vmatprep.subr.bf16.mxu0 %v3823_v31  ;;  %2772 = vmatprep.subr.bf16.mxu1 %v4736_v22 }
 0x1b9   :  { %v3127_v45 = vpop.eup %3126 }
 0x1ba   :  { %v698_v41 = vmul.f32 %v3127_v45, %v697_v56  ;;  %851 = vmatpush1.bf16.msra.mxu0 %v3831_v33  ;;  %2773 = vmatpush3.bf16.msra.mxu1 %v3867_v43 }
 0x1bb   :  { %852 = vmatprep.subr.bf16.mxu0 %v3841_v36  ;;  %2774 = vmatprep.subr.bf16.mxu1 %v4736_v22 }
 0x1bc   :  { %v699_v53 = vadd.f32 %v698_v41, %v466_v49 }
 0x1be   :  { %3128 = vtanh.f32 %v699_v53  ;;  %853 = vmatpush1.bf16.msra.mxu0 %v3848_v38  ;;  %2775 = vmatpush3.bf16.msra.mxu1 %v3882_v47 }
 0x1bf   :  { %854 = vmatprep.subr.bf16.mxu0 %v3855_v40  ;;  %2776 = vmatprep.subr.bf16.mxu1 %v4736_v22  ;;  %3130 = vrcp.f32 %v688_v59 }
 0x1c2   :  { %855 = vmatpush1.bf16.msra.mxu0 %v3864_v42  ;;  %2777 = vmatpush3.bf16.msra.mxu1 %v3897_v51 }
 0x1c3   :  { %856 = vmatprep.subr.bf16.mxu0 %v3871_v44  ;;  %2778 = vmatprep.subr.bf16.mxu1 %v4736_v22 }
 0x1c6   :  { %857 = vmatpush1.bf16.msra.mxu0 %v3879_v46  ;;  %2779 = vmatpush3.bf16.msra.mxu1 %v3910_v55 }
 0x1c7   :  { %858 = vmatprep.subr.bf16.mxu0 %v3886_v48  ;;  %2780 = vmatprep.subr.bf16.mxu1 %v4736_v22 }
 0x1c8   :  { %v3129_v61 = vpop.eup %3128 }
 0x1c9   :  { %v701_v63 = vsub.f32 0.0, %v3129_v61  ;;  %v3131_v1 = vpop.eup %3130 }
 0x1ca   :  { %859 = vmatpush1.bf16.msra.mxu0 %v3894_v50  ;;  %2781 = vmatpush3.bf16.msra.mxu1 %v3918_v57 }
 0x1cb   :  { %860 = vmatprep.subr.bf16.mxu0 %v3901_v52  ;;  %2782 = vmatprep.subr.bf16.mxu1 %v4736_v22  ;;  %v702_v60 = vmul.f32 %v3131_v1, %v701_v63 }
 0x1cd   :  { %v703_v32 = vadd.f32 %v3129_v61, %v702_v60 }
 0x1ce   :  { %861 = vmatpush1.bf16.msra.mxu0 %v3907_v54  ;;  %2783 = vmatpush3.bf16.msra.mxu1 %v3924_v58 }
 0x1cf   :  { %v2559_v37 = vpack.c.bf16 %v703_v32, %v703_v32  ;;  %968 = vmatprep.subr.bf16.mxu0 %v3734_v2  ;;  %2788 = vmatprep.subr.bf16.mxu1 %v4736_v22  ;;  %v4022_v0 = vsel %vm711_vm11, %v703_v32, 0.0  ;;  %v4738_v2 = vld [vmem:[#allocation25_spill] sm:$0xff] }
 0x1d0   :  { %v714_v24 = vpack.c.bf16 %v4022_v0, %v4022_v0 }
 0x1d1   :  { %2560 = vmatmul.mubr.msk.bf16.vlgmr.msra.gmra.mrb[12].mxu0 %vm2558_vm12, %v2559_v37  ;;  %2785 = vmatmul.mubr.msk.bf16.vlgmr.msra.gmra.mrb[12].mxu1 %vm2558_vm12, %v2559_v37 }
 0x1d2   :  { %969 = vmatpush1.bf16.msra.mxu0 %v3736_v3  ;;  %2789 = vmatpush3.bf16.msra.mxu1 %v3753_v9  ;;  %716 = vst [vmem:[#allocation17 + $0x1c] sm:$0xf] %v714_v24  ;;  %v4739_v3 = vld [vmem:[#allocation29_spill] sm:$0xff] }
 0x1d3   :  { %970 = vmatprep.subr.bf16.mxu0 %v3739_v4  ;;  %2790 = vmatprep.subr.bf16.mxu1 %v4736_v22  ;;  %v4740_v4 = vld [vmem:[#allocation26_spill] sm:$0xff] }
 0x1d4   :  { %1000 = vmatprep.mubr.bf16.mxu0 %v4737_v26  ;;  %2804 = vmatprep.mubr.msk.bf16.mxu1 %vm3558_vm0, %v4736_v22 }
 0x1d6   :  { %971 = vmatpush1.bf16.msra.mxu0 %v3742_v5  ;;  %2791 = vmatpush3.bf16.msra.mxu1 %v3763_v12  ;;  %v4741_v5 = vld [vmem:[#allocation27_spill] sm:$0xff] }
 0x1d7   :  { %972 = vmatprep.subr.bf16.mxu0 %v3745_v6  ;;  %2792 = vmatprep.subr.bf16.mxu1 %v4736_v22  ;;  %v4742_v6 = vld [vmem:[#allocation30_spill] sm:$0xff] }
 0x1da   :  { %973 = vmatpush1.bf16.msra.mxu0 %v3748_v7  ;;  %2793 = vmatpush3.bf16.msra.mxu1 %v3769_v14  ;;  %v4743_v7 = vld [vmem:[#allocation28_spill] sm:$0xff] }
 0x1db   :  { %974 = vmatprep.subr.bf16.mxu0 %v3751_v8  ;;  %2794 = vmatprep.subr.bf16.mxu1 %v4736_v22  ;;  %v718_v8 = vld [vmem:[#allocation4 + $0xc] sm:$0xff] }
 0x1dc   :  { %v720_v21 = vunpack.c.l.bf16 %v718_v8  ;;  %v721_v60 = vunpack.c.h.bf16 %v718_v8 }
 0x1de   :  { %975 = vmatpush1.bf16.msra.mxu0 %v3756_v10  ;;  %2795 = vmatpush3.bf16.msra.mxu1 %v3779_v17 }
 0x1df   :  { %976 = vmatprep.subr.bf16.mxu0 %v3760_v11  ;;  %2796 = vmatprep.subr.bf16.mxu1 %v4736_v22 }
 0x1e2   :  { %977 = vmatpush1.bf16.msra.mxu0 %v3765_v13  ;;  %2797 = vmatpush3.bf16.msra.mxu1 %v3789_v20 }
 0x1e3   :  { %978 = vmatprep.subr.bf16.mxu0 %v3772_v15  ;;  %2798 = vmatprep.subr.bf16.mxu1 %v4736_v22 }
 0x1e6   :  { %979 = vmatpush1.bf16.msra.mxu0 %v3776_v16  ;;  %2799 = vmatpush3.bf16.msra.mxu1 %v3799_v23 }
 0x1e7   :  { %980 = vmatprep.subr.bf16.mxu0 %v3782_v18  ;;  %2800 = vmatprep.subr.bf16.mxu1 %v4736_v22 }
 0x1ea   :  { %981 = vmatpush1.bf16.msra.mxu0 %v4738_v2  ;;  %2801 = vmatpush3.bf16.msra.mxu1 %v4739_v3 }
 0x1eb   :  { %982 = vmatprep.subr.bf16.mxu0 %v4740_v4  ;;  %2802 = vmatprep.subr.bf16.mxu1 %v4736_v22 }
 0x1ee   :  { %983 = vmatpush1.bf16.msra.mxu0 %v4741_v5  ;;  %2803 = vmatpush3.bf16.msra.mxu1 %v4742_v6  ;;  %v4744_v5 = vld [vmem:[#allocation32_spill] sm:$0xff] }
 0x1ef   :  { %1090 = vmatprep.subr.bf16.mxu0 %v4743_v7  ;;  %2808 = vmatprep.subr.bf16.mxu1 %v4736_v22  ;;  %v840_v7 = vld [vmem:[#allocation7 + $0x48] sm:$0xff]  ;;  %v722_v4 = vunpack.c.h.bf16 %v4744_v5 }
 0x1f0   :  { %v843_v5 = vunpack.c.h.bf16 %v840_v7 }
 0x284   :  { %v758_v56 = vpop.f32.mrb[8].mxu0  ;;  %v799_v30 = vpop.f32.mrb[8].mxu1 }
 0x285   :  { %v805_v49 = vadd.f32 %v758_v56, %v720_v21  ;;  %v760_v45 = vpop.f32.mrb[9].mxu0  ;;  %v2766_v41 = vpop.f32.mrb[9].mxu1  ;;  %v4745_v21 = vld [vmem:[#allocation31_spill] sm:$0xff] }
 0x286   :  { %v762_v59 = vpop.f32.mrb[10].mxu0  ;;  %v802_v53 = vpop.f32.mrb[10].mxu1  ;;  %v812_v28 = vadd.f32 %v760_v45, %v721_v60  ;;  %v819_v56 = vadd.f32 %v4745_v21, %v799_v30 }
 0x287   :  { %v2524_v61 = vmul.f32 -1.442695, %v805_v49  ;;  %v763_v63 = vpop.f32.mrb[11].mxu0  ;;  %v2767_v1 = vpop.f32.mrb[11].mxu1  ;;  %v842_v53 = vunpack.c.l.bf16 %v840_v7 }
 0x288   :  { %v2525_v32 = vmul.f32 -1.442695, %v812_v28 }
 0x289   :  { %3132 = vpow2.f32 %v2524_v61 }
 0x28a   :  { %3134 = vpow2.f32 %v2525_v32 }
 0x293   :  { %v3133_v37 = vpop.eup %3132 }
 0x294   :  { %v809_v24 = vadd.f32 1.0, %v3133_v37  ;;  %v3135_v6 = vpop.eup %3134 }
 0x295   :  { %v816_v63 = vadd.f32 1.0, %v3135_v6 }
 0x296   :  { %3136 = vrcp.f32 %v809_v24 }
 0x2a0   :  { %v3137_v41 = vpop.eup %3136 }
 0x2a1   :  { %v820_v59 = vmul.f32 %v3137_v41, %v819_v56  ;;  %v832_v41 = vpop.permute.xlu1 %831 }
 0x2a2   :  { %vm833_vm13 = vcmp.eq.s32.totalorder %v832_v41, 1  ;;  %v4125_v41 = vld [vmem:[#allocation9 + $0x18] ss:$12 sps:$4 sm:$0xff]  }
 0x2a3   :  { %v821_v49 = vadd.f32 %v820_v59, %v722_v4 }
 0x2a4   :  { %v880_v1 = vpop.f32.mrb[12].mxu0  ;;  %v921_v61 = vpop.f32.mrb[12].mxu1 }
 0x2a5   :  { %3138 = vtanh.f32 %v821_v49  ;;  %v927_v8 = vadd.f32 %v880_v1, %v842_v53  ;;  %v882_v45 = vpop.f32.mrb[13].mxu0  ;;  %v2786_v60 = vpop.f32.mrb[13].mxu1 }
 0x2a6   :  { %v884_v28 = vpop.f32.mrb[14].mxu0  ;;  %v924_v32 = vpop.f32.mrb[14].mxu1  ;;  %3140 = vrcp.f32 %v816_v63  ;;  %v934_v30 = vadd.f32 %v882_v45, %v843_v5 }
 0x2a7   :  { %v2526_v37 = vmul.f32 -1.442695, %v927_v8  ;;  %v885_v24 = vpop.f32.mrb[15].mxu0  ;;  %v2787_v3 = vpop.f32.mrb[15].mxu1 }
 0x2a8   :  { %v2527_v6 = vmul.f32 -1.442695, %v934_v30  ;;  %v954_v32 = vpop.permute.xlu1 %953 }
 0x2a9   :  { %3142 = vpow2.f32 %v2526_v37  ;;  %vm955_vm14 = vcmp.eq.s32.totalorder %v954_v32, 1 }
 0x2aa   :  { %3144 = vpow2.f32 %v2527_v6  ;;  %v4114_v6 = vld [vmem:[#allocation9] ss:$12 sps:$4 sm:$0xff]  }
 0x2af   :  { %v3139_v21 = vpop.eup %3138 }
 0x2b0   :  { %v823_v56 = vsub.f32 %v3977_v62, %v3139_v21  ;;  %v3141_v4 = vpop.eup %3140 }
 0x2b2   :  { %v824_v59 = vmul.f32 %v3141_v4, %v823_v56  ;;  %v4110_v4 = vld [vmem:[#allocation9 + $0x4] ss:$12 sps:$4 sm:$0xff]  }
 0x2b3   :  { %v3143_v49 = vpop.eup %3142 }
 0x2b4   :  { %v825_v53 = vadd.f32 %v3139_v21, %v824_v59  ;;  %v931_v1 = vadd.f32 1.0, %v3143_v49  ;;  %v844_v21 = vunpack.c.l.bf16 %v3990_v35  ;;  %v4129_v59 = vld [vmem:[#allocation9 + $0x34] ss:$12 sps:$4 sm:$0xff]   ;;  %v4137_v49 = vld [vmem:[#allocation9 + $0x4c] ss:$12 sps:$4 sm:$0xff]  }
 0x2b6   :  { %v4065_v63 = vsel %vm833_vm13, %v825_v53, %v3977_v62  ;;  %v835_v8 = vsel %vm833_vm13, %v825_v53, 0.0  ;;  %3146 = vrcp.f32 %v931_v1  ;;  %v3145_v62 = vpop.eup %3144 }
 0x2b7   :  { %v836_v3 = vpack.c.bf16 %v835_v8, %v835_v8  ;;  %v967_v7 = vpack.c.bf16 %v4065_v63, %v4065_v63  ;;  %v938_v28 = vadd.f32 1.0, %v3145_v62 }
 0x2b9   :  { %838 = vst [vmem:[#allocation16 + $0x4] sm:$0xf] %v836_v3  ;;  %1001 = vmatmul.mubr.bf16.vlgmr.msra.gmra.mrb[16].mxu0 %v967_v7  ;;  %2805 = vmatmul.mubr.bf16.vlgmr.msra.gmra.mrb[16].mxu1 %v967_v7 }
 0x2ba   :  { %1091 = vmatpush1.bf16.msra.mxu0 %v3805_v25  ;;  %2809 = vmatpush3.bf16.msra.mxu1 %v3834_v34  ;;  %v941_v25 = vadd.f32 %v3983_v19, %v921_v61 }
 0x2bb   :  { %1092 = vmatprep.subr.bf16.mxu0 %v3812_v27  ;;  %2810 = vmatprep.subr.bf16.mxu1 %v4736_v22 }
 0x2bc   :  { %1122 = vmatprep.mubr.bf16.mxu0 %v4737_v26  ;;  %2824 = vmatprep.mubr.msk.bf16.mxu1 %vm3558_vm0, %v4736_v22 }
 0x2be   :  { %1093 = vmatpush1.bf16.msra.mxu0 %v3816_v29  ;;  %2811 = vmatpush3.bf16.msra.mxu1 %v3851_v39 }
 0x2bf   :  { %1094 = vmatprep.subr.bf16.mxu0 %v3823_v31  ;;  %2812 = vmatprep.subr.bf16.mxu1 %v4736_v22 }
 0x2c0   :  { %v3147_v27 = vpop.eup %3146 }
 0x2c1   :  { %v942_v45 = vmul.f32 %v3147_v27, %v941_v25 }
 0x2c2   :  { %1095 = vmatpush1.bf16.msra.mxu0 %v3831_v33  ;;  %2813 = vmatpush3.bf16.msra.mxu1 %v3867_v43 }
 0x2c3   :  { %v943_v60 = vadd.f32 %v942_v45, %v844_v21  ;;  %1096 = vmatprep.subr.bf16.mxu0 %v3841_v36  ;;  %2814 = vmatprep.subr.bf16.mxu1 %v4736_v22 }
 0x2c5   :  { %3148 = vtanh.f32 %v943_v60  ;;  %v4161_v60 = vld [vmem:[#allocation4 + $0x20] ss:$12 sps:$4 sm:$0xff]  }
 0x2c6   :  { %1097 = vmatpush1.bf16.msra.mxu0 %v3848_v38  ;;  %2815 = vmatpush3.bf16.msra.mxu1 %v3882_v47  ;;  %3150 = vrcp.f32 %v938_v28  ;;  %v1084_v28 = vld [vmem:[#allocation7 + $0x3c] sm:$0xff] }
 0x2c7   :  { %1098 = vmatprep.subr.bf16.mxu0 %v3855_v40  ;;  %2816 = vmatprep.subr.bf16.mxu1 %v4736_v22 }
 0x2ca   :  { %1099 = vmatpush1.bf16.msra.mxu0 %v3864_v42  ;;  %2817 = vmatpush3.bf16.msra.mxu1 %v3897_v51 }
 0x2cb   :  { %1100 = vmatprep.subr.bf16.mxu0 %v3871_v44  ;;  %2818 = vmatprep.subr.bf16.mxu1 %v4736_v22 }
 0x2ce   :  { %1101 = vmatpush1.bf16.msra.mxu0 %v3879_v46  ;;  %2819 = vmatpush3.bf16.msra.mxu1 %v3910_v55 }
 0x2cf   :  { %v3149_v29 = vpop.eup %3148  ;;  %1102 = vmatprep.subr.bf16.mxu0 %v3886_v48  ;;  %2820 = vmatprep.subr.bf16.mxu1 %v4736_v22 }
 0x2d0   :  { %v945_v31 = vsub.f32 %v4022_v0, %v3149_v29  ;;  %v3151_v35 = vpop.eup %3150 }
 0x2d2   :  { %1103 = vmatpush1.bf16.msra.mxu0 %v3894_v50  ;;  %2821 = vmatpush3.bf16.msra.mxu1 %v3918_v57  ;;  %v946_v61 = vmul.f32 %v3151_v35, %v945_v31  ;;  %v966_v31 = vunpack.c.l.bf16 %v4161_v60  ;;  %v4751_v35 = vld [vmem:[#allocation31_spill] sm:$0xff] }
 0x2d3   :  { %1104 = vmatprep.subr.bf16.mxu0 %v3901_v52  ;;  %2822 = vmatprep.subr.bf16.mxu1 %v4736_v22 }
 0x2d4   :  { %v947_v37 = vadd.f32 %v3149_v29, %v946_v61 }
 0x2d6   :  { %1105 = vmatpush1.bf16.msra.mxu0 %v3907_v54  ;;  %2823 = vmatpush3.bf16.msra.mxu1 %v3924_v58  ;;  %v4106_v24 = vsel %vm955_vm14, %v947_v37, %v4022_v0  ;;  %v957_v5 = vsel %vm955_vm14, %v947_v37, 0.0  ;;  %v4118_v0 = vld [vmem:[#allocation9 + $0x1c] ss:$12 sps:$4 sm:$0xff]  }
 0x2d7   :  { %v958_v30 = vpack.c.bf16 %v957_v5, %v957_v5  ;;  %v1089_v56 = vpack.c.bf16 %v4106_v24, %v4106_v24  ;;  %1212 = vmatprep.subr.bf16.mxu0 %v4110_v4  ;;  %2828 = vmatprep.subr.bf16.mxu1 %v4736_v22  ;;  %v1086_v5 = vunpack.c.l.bf16 %v1084_v28 }
 0x2d9   :  { %960 = vst [vmem:[#allocation17 + $0x18] sm:$0xf] %v958_v30  ;;  %1123 = vmatmul.mubr.bf16.vlgmr.msra.gmra.mrb[20].mxu0 %v1089_v56  ;;  %2825 = vmatmul.mubr.bf16.vlgmr.msra.gmra.mrb[20].mxu1 %v1089_v56 }
 0x2da   :  { %1213 = vmatpush1.bf16.msra.mxu0 %v4114_v6  ;;  %2829 = vmatpush3.bf16.msra.mxu1 %v3753_v9  ;;  %v4133_v9 = vld [vmem:[#allocation9 + $0x30] ss:$12 sps:$4 sm:$0xff]  }
 0x2db   :  { %1214 = vmatprep.subr.bf16.mxu0 %v4118_v0  ;;  %2830 = vmatprep.subr.bf16.mxu1 %v4736_v22 }
 0x2dc   :  { %1244 = vmatprep.mubr.bf16.mxu0 %v4737_v26  ;;  %2844 = vmatprep.mubr.msk.bf16.mxu1 %vm3558_vm0, %v4736_v22 }
 0x2de   :  { %1215 = vmatpush1.bf16.msra.mxu0 %v4125_v41  ;;  %2831 = vmatpush3.bf16.msra.mxu1 %v3763_v12  ;;  %v4748_v12 = vld [vmem:[#allocation27_spill] sm:$0xff] }
 0x2df   :  { %1216 = vmatprep.subr.bf16.mxu0 %v4129_v59  ;;  %2832 = vmatprep.subr.bf16.mxu1 %v4736_v22 }
 0x2e2   :  { %1217 = vmatpush1.bf16.msra.mxu0 %v4133_v9  ;;  %2833 = vmatpush3.bf16.msra.mxu1 %v3769_v14  ;;  %v4750_v14 = vld [vmem:[#allocation28_spill] sm:$0xff] }
 0x2e3   :  { %1218 = vmatprep.subr.bf16.mxu0 %v4137_v49  ;;  %2834 = vmatprep.subr.bf16.mxu1 %v4736_v22 }
 0x2e6   :  { %1219 = vmatpush1.bf16.msra.mxu0 %v3756_v10  ;;  %2835 = vmatpush3.bf16.msra.mxu1 %v3779_v17  ;;  %v4746_v10 = vld [vmem:[#allocation29_spill] sm:$0xff] }
 0x2e7   :  { %1220 = vmatprep.subr.bf16.mxu0 %v3760_v11  ;;  %2836 = vmatprep.subr.bf16.mxu1 %v4736_v22  ;;  %v4747_v11 = vld [vmem:[#allocation26_spill] sm:$0xff] }
 0x2ea   :  { %1221 = vmatpush1.bf16.msra.mxu0 %v3765_v13  ;;  %2837 = vmatpush3.bf16.msra.mxu1 %v3789_v20  ;;  %v4749_v13 = vld [vmem:[#allocation30_spill] sm:$0xff] }
 0x2eb   :  { %1222 = vmatprep.subr.bf16.mxu0 %v3772_v15  ;;  %2838 = vmatprep.subr.bf16.mxu1 %v4736_v22  ;;  %v962_v15 = vld [vmem:[#allocation4 + $0x18] sm:$0xff] }
 0x2ec   :  { %v965_v62 = vunpack.c.h.bf16 %v962_v15 }
 0x2ee   :  { %1223 = vmatpush1.bf16.msra.mxu0 %v3776_v16  ;;  %2839 = vmatpush3.bf16.msra.mxu1 %v3799_v23  ;;  %v964_v16 = vunpack.c.l.bf16 %v962_v15 }
 0x2ef   :  { %1224 = vmatprep.subr.bf16.mxu0 %v3782_v18  ;;  %2840 = vmatprep.subr.bf16.mxu1 %v4736_v22 }
 0x2f2   :  { %1225 = vmatpush1.bf16.msra.mxu0 %v4738_v2  ;;  %2841 = vmatpush3.bf16.msra.mxu1 %v4746_v10 }
 0x2f3   :  { %1226 = vmatprep.subr.bf16.mxu0 %v4747_v11  ;;  %2842 = vmatprep.subr.bf16.mxu1 %v4736_v22 }
 0x2f6   :  { %1227 = vmatpush1.bf16.msra.mxu0 %v4748_v12  ;;  %2843 = vmatpush3.bf16.msra.mxu1 %v4749_v13 }
 0x2f7   :  { %1334 = vmatprep.subr.bf16.mxu0 %v4750_v14  ;;  %2848 = vmatprep.subr.bf16.mxu1 %v4736_v22 }
 0x38c   :  { %v1002_v17 = vpop.f32.mrb[16].mxu0  ;;  %v1043_v18 = vpop.f32.mrb[16].mxu1 }
 0x38d   :  { %v1049_v20 = vadd.f32 %v1002_v17, %v964_v16  ;;  %v1004_v23 = vpop.f32.mrb[17].mxu0  ;;  %v2806_v2 = vpop.f32.mrb[17].mxu1  ;;  %v1063_v61 = vadd.f32 %v4751_v35, %v1043_v18 }
 0x38e   :  { %v1006_v53 = vpop.f32.mrb[18].mxu0  ;;  %v1046_v1 = vpop.f32.mrb[18].mxu1  ;;  %v1056_v21 = vadd.f32 %v1004_v23, %v965_v62  ;;  %v1087_v2 = vunpack.c.h.bf16 %v1084_v28 }
 0x38f   :  { %v2528_v8 = vmul.f32 -1.442695, %v1049_v20  ;;  %v1007_v3 = vpop.f32.mrb[19].mxu0  ;;  %v2807_v7 = vpop.f32.mrb[19].mxu1 }
 0x390   :  { %v2529_v25 = vmul.f32 -1.442695, %v1056_v21  ;;  %v1076_v21 = vpop.permute.xlu0 %1075 }
 0x391   :  { %3152 = vpow2.f32 %v2528_v8  ;;  %vm1077_vm15 = vcmp.eq.s32.totalorder %v1076_v21, 1 }
 0x392   :  { %3154 = vpow2.f32 %v2529_v25 }
 0x39b   :  { %v3153_v27 = vpop.eup %3152 }
 0x39c   :  { %v1053_v45 = vadd.f32 1.0, %v3153_v27  ;;  %v3155_v29 = vpop.eup %3154 }
 0x39d   :  { %v1060_v56 = vadd.f32 1.0, %v3155_v29 }
 0x39e   :  { %3156 = vrcp.f32 %v1053_v45 }
 0x3a8   :  { %v3157_v32 = vpop.eup %3156 }
 0x3a9   :  { %v1064_v37 = vmul.f32 %v3157_v32, %v1063_v61  ;;  %v4171_v61 = vld [vmem:[#allocation10] ss:$12 sps:$4 sm:$0xff]   ;;  %v4175_v32 = vld [vmem:[#allocation10 + $0x1c] ss:$12 sps:$4 sm:$0xff]  }
 0x3ab   :  { %v1065_v30 = vadd.f32 %v1064_v37, %v966_v31  ;;  %v4184_v37 = vld [vmem:[#allocation10 + $0x18] ss:$12 sps:$4 sm:$0xff]  }
 0x3ac   :  { %v1124_v10 = vpop.f32.mrb[20].mxu0  ;;  %v1165_v11 = vpop.f32.mrb[20].mxu1 }
 0x3ad   :  { %3158 = vtanh.f32 %v1065_v30  ;;  %v1171_v12 = vadd.f32 %v1124_v10, %v1086_v5  ;;  %v1126_v13 = vpop.f32.mrb[21].mxu0  ;;  %v2826_v14 = vpop.f32.mrb[21].mxu1  ;;  %v1185_v30 = vadd.f32 %v3983_v19, %v1165_v11  ;;  %v4265_v11 = vld [vmem:[#allocation9 + $0x78] ss:$12 sps:$4 sm:$0xff]  }
 0x3ae   :  { %v1128_v15 = vpop.f32.mrb[22].mxu0  ;;  %v1168_v16 = vpop.f32.mrb[22].mxu1  ;;  %3160 = vrcp.f32 %v1060_v56  ;;  %v1178_v18 = vadd.f32 %v1126_v13, %v1087_v2  ;;  %v4190_v56 = vld [vmem:[#allocation10 + $0x34] ss:$12 sps:$4 sm:$0xff]   ;;  %4753 = vst [vmem:[#allocation32_spill] sm:$0xff] %v4265_v11 }
 0x3af   :  { %v2530_v17 = vmul.f32 -1.442695, %v1171_v12  ;;  %v1129_v20 = vpop.f32.mrb[23].mxu0  ;;  %v2827_v23 = vpop.f32.mrb[23].mxu1  ;;  %v4268_v15 = vld [vmem:[#allocation9 + $0x80] ss:$12 sps:$4 sm:$0xff]  }
 0x3b0   :  { %v2531_v3 = vmul.f32 -1.442695, %v1178_v18  ;;  %4754 = vst [vmem:[#allocation29_spill] sm:$0xff] %v4268_v15  ;;  %v4271_v16 = vld [vmem:[#allocation9 + $0x94] ss:$12 sps:$4 sm:$0xff]  }
 0x3b1   :  { %3162 = vpow2.f32 %v2530_v17  ;;  %4755 = vst [vmem:[#allocation26_spill] sm:$0xff] %v4271_v16  ;;  %v4275_v17 = vld [vmem:[#allocation9 + $0x90] ss:$12 sps:$4 sm:$0xff]   ;;  %v4278_v20 = vld [vmem:[#allocation9 + $0x98] ss:$12 sps:$4 sm:$0xff]  }
 0x3b2   :  { %3164 = vpow2.f32 %v2531_v3  ;;  %4756 = vst [vmem:[#allocation27_spill] sm:$0xff] %v4275_v17  ;;  %4757 = vst [vmem:[#allocation30_spill] sm:$0xff] %v4278_v20  ;;  %v4281_v23 = vld [vmem:[#allocation9 + $0xac] ss:$12 sps:$4 sm:$0xff]   ;;  %v4285_v2 = vld [vmem:[#allocation9 + $0xa8] ss:$12 sps:$4 sm:$0xff]  }
 0x3b3   :  { %4758 = vst [vmem:[#allocation28_spill] sm:$0xff] %v4281_v23  ;;  %4759 = vst [vmem:[#allocation31_spill] sm:$0xff] %v4285_v2  ;;  %v4288_v18 = vld [vmem:[#allocation9 + $0xb0] ss:$12 sps:$4 sm:$0xff]  }
 0x3b4   :  { %4760 = vst [vmem:[#allocation33_spill] sm:$0xff] %v4288_v18 }
 0x3b7   :  { %v3159_v53 = vpop.eup %3158 }
 0x3b8   :  { %v1067_v1 = vsub.f32 %v4065_v63, %v3159_v53  ;;  %v3161_v8 = vpop.eup %3160 }
 0x3ba   :  { %v1068_v7 = vmul.f32 %v3161_v8, %v1067_v1  ;;  %v1206_v1 = vld [vmem:[#allocation4 + $0x24] sm:$0xff] }
 0x3bb   :  { %v3163_v62 = vpop.eup %3162  ;;  %v1208_v8 = vunpack.c.l.bf16 %v1206_v1 }
 0x3bc   :  { %v1175_v25 = vadd.f32 1.0, %v3163_v62  ;;  %v1069_v27 = vadd.f32 %v3159_v53, %v1068_v7  ;;  %v4291_v53 = vld [vmem:[#allocation10 + $0x4] ss:$12 sps:$4 sm:$0xff]  }
 0x3bd   :  { %4761 = vst [vmem:[#allocation34_spill] sm:$0xff] %v4291_v53 }
 0x3be   :  { %3166 = vrcp.f32 %v1175_v25  ;;  %v4167_v45 = vsel %vm1077_vm15, %v1069_v27, %v4065_v63  ;;  %v1079_v29 = vsel %vm1077_vm15, %v1069_v27, 0.0  ;;  %v4179_v63 = vld [vmem:[#allocation7 + $0x38] ss:$12 sps:$4 sm:$0xff]  }
 0x3bf   :  { %v1080_v31 = vpack.c.bf16 %v1079_v29, %v1079_v29  ;;  %v1211_v28 = vpack.c.bf16 %v4167_v45, %v4167_v45  ;;  %v1088_v5 = vunpack.c.h.bf16 %v4179_v63 }
 0x3c1   :  { %1082 = vst [vmem:[#allocation16 + $0x8] sm:$0xf] %v1080_v31  ;;  %1245 = vmatmul.mubr.bf16.vlgmr.msra.gmra.mrb[24].mxu0 %v1211_v28  ;;  %2845 = vmatmul.mubr.bf16.vlgmr.msra.gmra.mrb[24].mxu1 %v1211_v28 }
 0x3c2   :  { %1335 = vmatpush1.bf16.msra.mxu0 %v4171_v61  ;;  %2849 = vmatpush3.bf16.msra.mxu1 %v3834_v34  ;;  %v3165_v34 = vpop.eup %3164 }
 0x3c3   :  { %1336 = vmatprep.subr.bf16.mxu0 %v4175_v32  ;;  %2850 = vmatprep.subr.bf16.mxu1 %v4736_v22  ;;  %v1182_v14 = vadd.f32 1.0, %v3165_v34 }
 0x3c4   :  { %1366 = vmatprep.mubr.bf16.mxu0 %v4737_v26  ;;  %2864 = vmatprep.mubr.msk.bf16.mxu1 %vm3558_vm0, %v4736_v22 }
 0x3c6   :  { %1337 = vmatpush1.bf16.msra.mxu0 %v4184_v37  ;;  %2851 = vmatpush3.bf16.msra.mxu1 %v3851_v39 }
 0x3c7   :  { %1338 = vmatprep.subr.bf16.mxu0 %v4190_v56  ;;  %2852 = vmatprep.subr.bf16.mxu1 %v4736_v22 }
 0x3c8   :  { %v3167_v10 = vpop.eup %3166 }
 0x3c9   :  { %v1186_v12 = vmul.f32 %v3167_v10, %v1185_v30 }
 0x3ca   :  { %1339 = vmatpush1.bf16.msra.mxu0 %v3831_v33  ;;  %2853 = vmatpush3.bf16.msra.mxu1 %v3867_v43 }
 0x3cb   :  { %v1187_v13 = vadd.f32 %v1186_v12, %v1088_v5  ;;  %1340 = vmatprep.subr.bf16.mxu0 %v3841_v36  ;;  %2854 = vmatprep.subr.bf16.mxu1 %v4736_v22  ;;  %v1209_v5 = vunpack.c.h.bf16 %v1206_v1 }
 0x3cd   :  { %3168 = vtanh.f32 %v1187_v13 }
 0x3ce   :  { %1341 = vmatpush1.bf16.msra.mxu0 %v3848_v38  ;;  %2855 = vmatpush3.bf16.msra.mxu1 %v3882_v47  ;;  %3170 = vrcp.f32 %v1182_v14  ;;  %v1328_v14 = vld [vmem:[#allocation7 + $0x30] sm:$0xff] }
 0x3cf   :  { %1342 = vmatprep.subr.bf16.mxu0 %v3855_v40  ;;  %2856 = vmatprep.subr.bf16.mxu1 %v4736_v22  ;;  %v1198_v40 = vpop.permute.xlu1 %1197 }
 0x3d0   :  { %vm1199_vm1 = vcmp.eq.s32.totalorder %v1198_v40, 1 }
 0x3d2   :  { %1343 = vmatpush1.bf16.msra.mxu0 %v3864_v42  ;;  %2857 = vmatpush3.bf16.msra.mxu1 %v3897_v51  ;;  %v4240_v51 = vld [vmem:[#allocation9 + $0x38] ss:$12 sps:$4 sm:$0xff]  }
 0x3d3   :  { %1344 = vmatprep.subr.bf16.mxu0 %v3871_v44  ;;  %2858 = vmatprep.subr.bf16.mxu1 %v4736_v22 }
 0x3d6   :  { %1345 = vmatpush1.bf16.msra.mxu0 %v3879_v46  ;;  %2859 = vmatpush3.bf16.msra.mxu1 %v3910_v55  ;;  %v4251_v55 = vld [vmem:[#allocation9 + $0x64] ss:$12 sps:$4 sm:$0xff]  }
 0x3d7   :  { %v3169_v33 = vpop.eup %3168  ;;  %1346 = vmatprep.subr.bf16.mxu0 %v3886_v48  ;;  %2860 = vmatprep.subr.bf16.mxu1 %v4736_v22  ;;  %v4225_v48 = vld [vmem:[#allocation9 + $0x8] ss:$12 sps:$4 sm:$0xff]  }
 0x3d8   :  { %v1189_v36 = vsub.f32 %v4106_v24, %v3169_v33  ;;  %v3171_v38 = vpop.eup %3170 }
 0x3da   :  { %v1190_v39 = vmul.f32 %v3171_v38, %v1189_v36  ;;  %1347 = vmatpush1.bf16.msra.mxu0 %v3894_v50  ;;  %2861 = vmatpush3.bf16.msra.mxu1 %v3918_v57  ;;  %v4234_v50 = vld [vmem:[#allocation9 + $0x20] ss:$12 sps:$4 sm:$0xff]   ;;  %v1210_v36 = vunpack.c.h.bf16 %v4161_v60  ;;  %v1331_v60 = vunpack.c.h.bf16 %v1328_v14 }
 0x3db   :  { %1348 = vmatprep.subr.bf16.mxu0 %v3901_v52  ;;  %2862 = vmatprep.subr.bf16.mxu1 %v4736_v22  ;;  %v4245_v52 = vld [vmem:[#allocation9 + $0x48] ss:$12 sps:$4 sm:$0xff]   ;;  %v4255_v57 = vld [vmem:[#allocation9 + $0x60] ss:$12 sps:$4 sm:$0xff]  }
 0x3dc   :  { %v1191_v42 = vadd.f32 %v3169_v33, %v1190_v39 }
 0x3de   :  { %1349 = vmatpush1.bf16.msra.mxu0 %v3907_v54  ;;  %2863 = vmatpush3.bf16.msra.mxu1 %v3924_v58  ;;  %v4218_v43 = vsel %vm1199_vm1, %v1191_v42, %v4106_v24  ;;  %v1201_v44 = vsel %vm1199_vm1, %v1191_v42, 0.0  ;;  %v4248_v54 = vld [vmem:[#allocation9 + $0x50] ss:$12 sps:$4 sm:$0xff]   ;;  %v4258_v58 = vld [vmem:[#allocation9 + $0x68] ss:$12 sps:$4 sm:$0xff]   ;;  %v1330_v42 = vunpack.c.l.bf16 %v1328_v14 }
 0x3df   :  { %v1202_v46 = vpack.c.bf16 %v1201_v44, %v1201_v44  ;;  %v1333_v47 = vpack.c.bf16 %v4218_v43, %v4218_v43  ;;  %1456 = vmatprep.subr.bf16.mxu0 %v4110_v4  ;;  %2868 = vmatprep.subr.bf16.mxu1 %v4736_v22  ;;  %v4261_v24 = vld [vmem:[#allocation9 + $0x7c] ss:$12 sps:$4 sm:$0xff]  }
 0x3e0   :  { %4752 = vst [vmem:[#allocation25_spill] sm:$0xff] %v4261_v24 }
 0x3e1   :  { %1204 = vst [vmem:[#allocation17 + $0x14] sm:$0xf] %v1202_v46  ;;  %1367 = vmatmul.mubr.bf16.vlgmr.msra.gmra.mrb[28].mxu0 %v1333_v47  ;;  %2865 = vmatmul.mubr.bf16.vlgmr.msra.gmra.mrb[28].mxu1 %v1333_v47 }
 0x3e2   :  { %1457 = vmatpush1.bf16.msra.mxu0 %v4114_v6  ;;  %2869 = vmatpush3.bf16.msra.mxu1 %v4225_v48 }
 0x3e3   :  { %1458 = vmatprep.subr.bf16.mxu0 %v4118_v0  ;;  %2870 = vmatprep.subr.bf16.mxu1 %v4736_v22 }
 0x3e4   :  { %1488 = vmatprep.mubr.bf16.mxu0 %v4737_v26  ;;  %2884 = vmatprep.mubr.msk.bf16.mxu1 %vm3558_vm0, %v4736_v22 }
 0x3e6   :  { %1459 = vmatpush1.bf16.msra.mxu0 %v4125_v41  ;;  %2871 = vmatpush3.bf16.msra.mxu1 %v4234_v50 }
 0x3e7   :  { %1460 = vmatprep.subr.bf16.mxu0 %v4129_v59  ;;  %2872 = vmatprep.subr.bf16.mxu1 %v4736_v22 }
 0x3ea   :  { %1461 = vmatpush1.bf16.msra.mxu0 %v4133_v9  ;;  %2873 = vmatpush3.bf16.msra.mxu1 %v4240_v51 }
 0x3eb   :  { %1462 = vmatprep.subr.bf16.mxu0 %v4137_v49  ;;  %2874 = vmatprep.subr.bf16.mxu1 %v4736_v22 }
 0x3ee   :  { %1463 = vmatpush1.bf16.msra.mxu0 %v4245_v52  ;;  %2875 = vmatpush3.bf16.msra.mxu1 %v4248_v54 }
 0x3ef   :  { %1464 = vmatprep.subr.bf16.mxu0 %v4251_v55  ;;  %2876 = vmatprep.subr.bf16.mxu1 %v4736_v22 }
 0x3f2   :  { %1465 = vmatpush1.bf16.msra.mxu0 %v4255_v57  ;;  %2877 = vmatpush3.bf16.msra.mxu1 %v4258_v58 }
 0x3f3   :  { %1466 = vmatprep.subr.bf16.mxu0 %v4261_v24  ;;  %2878 = vmatprep.subr.bf16.mxu1 %v4736_v22 }
 0x3f6   :  { %1467 = vmatpush1.bf16.msra.mxu0 %v4265_v11  ;;  %2879 = vmatpush3.bf16.msra.mxu1 %v4268_v15 }
 0x3f7   :  { %1468 = vmatprep.subr.bf16.mxu0 %v4271_v16  ;;  %2880 = vmatprep.subr.bf16.mxu1 %v4736_v22 }
 0x3fa   :  { %1469 = vmatpush1.bf16.msra.mxu0 %v4275_v17  ;;  %2881 = vmatpush3.bf16.msra.mxu1 %v4278_v20 }
 0x3fb   :  { %1470 = vmatprep.subr.bf16.mxu0 %v4281_v23  ;;  %2882 = vmatprep.subr.bf16.mxu1 %v4736_v22 }
 0x3fe   :  { %1471 = vmatpush1.bf16.msra.mxu0 %v4285_v2  ;;  %2883 = vmatpush3.bf16.msra.mxu1 %v4288_v18 }
 0x3ff   :  { %1578 = vmatprep.subr.bf16.mxu0 %v4291_v53  ;;  %2888 = vmatprep.subr.bf16.mxu1 %v4736_v22 }
 0x494   :  { %v1246_v3 = vpop.f32.mrb[24].mxu0  ;;  %v1287_v7 = vpop.f32.mrb[24].mxu1 }
 0x495   :  { %v1293_v62 = vadd.f32 %v1246_v3, %v1208_v8  ;;  %v1248_v21 = vpop.f32.mrb[25].mxu0  ;;  %v2846_v25 = vpop.f32.mrb[25].mxu1  ;;  %v1307_v38 = vadd.f32 %v4751_v35, %v1287_v7 }
 0x496   :  { %v1250_v27 = vpop.f32.mrb[26].mxu0  ;;  %v1290_v29 = vpop.f32.mrb[26].mxu1  ;;  %v1300_v30 = vadd.f32 %v1248_v21, %v1209_v5 }
 0x497   :  { %v2532_v31 = vmul.f32 -1.442695, %v1293_v62  ;;  %v1251_v28 = vpop.f32.mrb[27].mxu0  ;;  %v2847_v34 = vpop.f32.mrb[27].mxu1 }
 0x498   :  { %v2533_v10 = vmul.f32 -1.442695, %v1300_v30 }
 0x499   :  { %3172 = vpow2.f32 %v2532_v31 }
 0x49a   :  { %3174 = vpow2.f32 %v2533_v10 }
 0x4a3   :  { %v3173_v12 = vpop.eup %3172 }
 0x4a4   :  { %v1297_v13 = vadd.f32 1.0, %v3173_v12  ;;  %v3175_v33 = vpop.eup %3174  ;;  %v1320_v12 = vpop.permute.xlu0 %1319 }
 0x4a5   :  { %v1304_v46 = vadd.f32 1.0, %v3175_v33  ;;  %vm1321_vm2 = vcmp.eq.s32.totalorder %v1320_v12, 1  ;;  %v4361_v12 = vld [vmem:[#allocation10 + $0x90] ss:$12 sps:$4 sm:$0xff]  }
 0x4a6   :  { %3176 = vrcp.f32 %v1297_v13 }
 0x4b0   :  { %v3177_v39 = vpop.eup %3176 }
 0x4b1   :  { %v1308_v40 = vmul.f32 %v3177_v39, %v1307_v38 }
 0x4b3   :  { %v1309_v44 = vadd.f32 %v1308_v40, %v1210_v36  ;;  %v4304_v40 = vld [vmem:[#allocation10 + $0x8] ss:$12 sps:$4 sm:$0xff]  }
 0x4b4   :  { %v1368_v47 = vpop.f32.mrb[28].mxu0  ;;  %v1409_v8 = vpop.f32.mrb[28].mxu1 }
 0x4b5   :  { %3178 = vtanh.f32 %v1309_v44  ;;  %v1415_v1 = vadd.f32 %v1368_v47, %v1330_v42  ;;  %v1370_v3 = vpop.f32.mrb[29].mxu0  ;;  %v2866_v62 = vpop.f32.mrb[29].mxu1  ;;  %v1332_v44 = vunpack.c.l.bf16 %v4179_v63  ;;  %v4333_v63 = vld [vmem:[#allocation10 + $0x50] ss:$12 sps:$4 sm:$0xff]  }
 0x4b6   :  { %v1372_v21 = vpop.f32.mrb[30].mxu0  ;;  %v1412_v25 = vpop.f32.mrb[30].mxu1  ;;  %3180 = vrcp.f32 %v1304_v46  ;;  %v1422_v35 = vadd.f32 %v1370_v3, %v1331_v60  ;;  %v1429_v46 = vadd.f32 %v3983_v19, %v1409_v8  ;;  %v4320_v3 = vld [vmem:[#allocation10 + $0x30] ss:$12 sps:$4 sm:$0xff]   ;;  %v4323_v62 = vld [vmem:[#allocation10 + $0x38] ss:$12 sps:$4 sm:$0xff]  }
 0x4b7   :  { %v2534_v27 = vmul.f32 -1.442695, %v1415_v1  ;;  %v1373_v29 = vpop.f32.mrb[31].mxu0  ;;  %v2867_v31 = vpop.f32.mrb[31].mxu1  ;;  %v4330_v19 = vld [vmem:[#allocation10 + $0x48] ss:$12 sps:$4 sm:$0xff]  }
 0x4b8   :  { %v2535_v5 = vmul.f32 -1.442695, %v1422_v35  ;;  %v4336_v8 = vld [vmem:[#allocation10 + $0x64] ss:$12 sps:$4 sm:$0xff]   ;;  %v4340_v29 = vld [vmem:[#allocation10 + $0x60] ss:$12 sps:$4 sm:$0xff]  }
 0x4b9   :  { %3182 = vpow2.f32 %v2534_v27  ;;  %v4326_v27 = vld [vmem:[#allocation10 + $0x4c] ss:$12 sps:$4 sm:$0xff]   ;;  %v4343_v31 = vld [vmem:[#allocation10 + $0x68] ss:$12 sps:$4 sm:$0xff]  }
 0x4ba   :  { %3184 = vpow2.f32 %v2535_v5  ;;  %v4346_v60 = vld [vmem:[#allocation10 + $0x7c] ss:$12 sps:$4 sm:$0xff]   ;;  %v4350_v35 = vld [vmem:[#allocation10 + $0x78] ss:$12 sps:$4 sm:$0xff]  }
 0x4bf   :  { %v3179_v7 = vpop.eup %3178 }
 0x4c0   :  { %v1311_v28 = vsub.f32 %v4167_v45, %v3179_v7  ;;  %v3181_v34 = vpop.eup %3180 }
 0x4c2   :  { %v1312_v30 = vmul.f32 %v3181_v34, %v1311_v28  ;;  %v4356_v34 = vld [vmem:[#allocation10 + $0x94] ss:$12 sps:$4 sm:$0xff]  }
 0x4c3   :  { %v3183_v10 = vpop.eup %3182 }
 0x4c4   :  { %v1419_v13 = vadd.f32 1.0, %v3183_v10  ;;  %v1313_v33 = vadd.f32 %v3179_v7, %v1312_v30  ;;  %v3185_v42 = vpop.eup %3184  ;;  %v4353_v7 = vld [vmem:[#allocation10 + $0x80] ss:$12 sps:$4 sm:$0xff]  }
 0x4c5   :  { %v1426_v25 = vadd.f32 1.0, %v3185_v42  ;;  %v4374_v42 = vld [vmem:[#allocation10 + $0xb0] ss:$12 sps:$4 sm:$0xff]  }
 0x4c6   :  { %3186 = vrcp.f32 %v1419_v13  ;;  %v4299_v36 = vsel %vm1321_vm2, %v1313_v33, %v4167_v45  ;;  %v1323_v38 = vsel %vm1321_vm2, %v1313_v33, 0.0  ;;  %v4313_v45 = vld [vmem:[#allocation10 + $0x20] ss:$12 sps:$4 sm:$0xff]   ;;  %v4364_v13 = vld [vmem:[#allocation10 + $0x98] ss:$12 sps:$4 sm:$0xff]  }
 0x4c7   :  { %v1324_v39 = vpack.c.bf16 %v1323_v38, %v1323_v38  ;;  %v1455_v14 = vpack.c.bf16 %v4299_v36, %v4299_v36  ;;  %v4367_v33 = vld [vmem:[#allocation10 + $0xac] ss:$12 sps:$4 sm:$0xff]   ;;  %v1442_v38 = vpop.permute.xlu1 %1441 }
 0x4c8   :  { %vm1443_vm3 = vcmp.eq.s32.totalorder %v1442_v38, 1 }
 0x4c9   :  { %1326 = vst [vmem:[#allocation16 + $0xc] sm:$0xf] %v1324_v39  ;;  %1489 = vmatmul.mubr.bf16.vlgmr.msra.gmra.mrb[32].mxu0 %v1455_v14  ;;  %2885 = vmatmul.mubr.bf16.vlgmr.msra.gmra.mrb[32].mxu1 %v1455_v14  ;;  %v4371_v14 = vld [vmem:[#allocation10 + $0xa8] ss:$12 sps:$4 sm:$0xff]  }
 0x4ca   :  { %1579 = vmatpush1.bf16.msra.mxu0 %v4171_v61  ;;  %2889 = vmatpush3.bf16.msra.mxu1 %v4304_v40 }
 0x4cb   :  { %1580 = vmatprep.subr.bf16.mxu0 %v4175_v32  ;;  %2890 = vmatprep.subr.bf16.mxu1 %v4736_v22 }
 0x4cc   :  { %1610 = vmatprep.mubr.bf16.mxu0 %v4737_v26  ;;  %2904 = vmatprep.mubr.msk.bf16.mxu1 %vm3558_vm0, %v4736_v22 }
 0x4ce   :  { %1581 = vmatpush1.bf16.msra.mxu0 %v4184_v37  ;;  %2891 = vmatpush3.bf16.msra.mxu1 %v4313_v45 }
 0x4cf   :  { %1582 = vmatprep.subr.bf16.mxu0 %v4190_v56  ;;  %2892 = vmatprep.subr.bf16.mxu1 %v4736_v22 }
 0x4d0   :  { %v3187_v47 = vpop.eup %3186 }
 0x4d1   :  { %v1430_v1 = vmul.f32 %v3187_v47, %v1429_v46 }
 0x4d2   :  { %1583 = vmatpush1.bf16.msra.mxu0 %v4320_v3  ;;  %2893 = vmatpush3.bf16.msra.mxu1 %v4323_v62 }
 0x4d3   :  { %v1431_v21 = vadd.f32 %v1430_v1, %v1332_v44  ;;  %1584 = vmatprep.subr.bf16.mxu0 %v4326_v27  ;;  %2894 = vmatprep.subr.bf16.mxu1 %v4736_v22 }
 0x4d5   :  { %3188 = vtanh.f32 %v1431_v21 }
 0x4d6   :  { %1585 = vmatpush1.bf16.msra.mxu0 %v4330_v19  ;;  %2895 = vmatpush3.bf16.msra.mxu1 %v4333_v63  ;;  %3190 = vrcp.f32 %v1426_v25 }
 0x4d7   :  { %1586 = vmatprep.subr.bf16.mxu0 %v4336_v8  ;;  %2896 = vmatprep.subr.bf16.mxu1 %v4736_v22 }
 0x4da   :  { %1587 = vmatpush1.bf16.msra.mxu0 %v4340_v29  ;;  %2897 = vmatpush3.bf16.msra.mxu1 %v4343_v31 }
 0x4db   :  { %1588 = vmatprep.subr.bf16.mxu0 %v4346_v60  ;;  %2898 = vmatprep.subr.bf16.mxu1 %v4736_v22 }
 0x4de   :  { %1589 = vmatpush1.bf16.msra.mxu0 %v4350_v35  ;;  %2899 = vmatpush3.bf16.msra.mxu1 %v4353_v7 }
 0x4df   :  { %v3189_v28 = vpop.eup %3188  ;;  %1590 = vmatprep.subr.bf16.mxu0 %v4356_v34  ;;  %2900 = vmatprep.subr.bf16.mxu1 %v4736_v22 }
 0x4e0   :  { %v1433_v5 = vsub.f32 %v4218_v43, %v3189_v28  ;;  %v3191_v30 = vpop.eup %3190 }
 0x4e2   :  { %v1434_v10 = vmul.f32 %v3191_v30, %v1433_v5  ;;  %1591 = vmatpush1.bf16.msra.mxu0 %v4361_v12  ;;  %2901 = vmatpush3.bf16.msra.mxu1 %v4364_v13 }
 0x4e3   :  { %1592 = vmatprep.subr.bf16.mxu0 %v4367_v33  ;;  %2902 = vmatprep.subr.bf16.mxu1 %v4736_v22 }
 0x4e4   :  { %v1435_v39 = vadd.f32 %v3189_v28, %v1434_v10 }
 0x4e6   :  { %1593 = vmatpush1.bf16.msra.mxu0 %v4371_v14  ;;  %2903 = vmatpush3.bf16.msra.mxu1 %v4374_v42  ;;  %v4378_v44 = vsel %vm1443_vm3, %v1435_v39, %v4218_v43  ;;  %v1445_v46 = vsel %vm1443_vm3, %v1435_v39, 0.0  ;;  %v1450_v43 = vld [vmem:[#allocation4 + $0x30] sm:$0xff] }
 0x4e7   :  { %v1446_v47 = vpack.c.bf16 %v1445_v46, %v1445_v46  ;;  %v1577_v1 = vpack.c.bf16 %v4378_v44, %v4378_v44  ;;  %1700 = vmatprep.subr.bf16.mxu0 %v4110_v4  ;;  %2908 = vmatprep.subr.bf16.mxu1 %v4736_v22  ;;  %v1452_v21 = vunpack.c.l.bf16 %v1450_v43 }
 0x4e9   :  { %1448 = vst [vmem:[#allocation17 + $0x10] sm:$0xf] %v1446_v47  ;;  %1611 = vmatmul.mubr.bf16.vlgmr.msra.gmra.mrb[36].mxu0 %v1577_v1  ;;  %2905 = vmatmul.mubr.bf16.vlgmr.msra.gmra.mrb[36].mxu1 %v1577_v1 }
 0x4ea   :  { %1701 = vmatpush1.bf16.msra.mxu0 %v4114_v6  ;;  %2909 = vmatpush3.bf16.msra.mxu1 %v4225_v48 }
 0x4eb   :  { %1702 = vmatprep.subr.bf16.mxu0 %v4118_v0  ;;  %2910 = vmatprep.subr.bf16.mxu1 %v4736_v22 }
 0x4ec   :  { %1732 = vmatprep.mubr.bf16.mxu0 %v4737_v26  ;;  %2924 = vmatprep.mubr.msk.bf16.mxu1 %vm3558_vm0, %v4736_v22 }
 0x4ee   :  { %1703 = vmatpush1.bf16.msra.mxu0 %v4125_v41  ;;  %2911 = vmatpush3.bf16.msra.mxu1 %v4234_v50 }
 0x4ef   :  { %1704 = vmatprep.subr.bf16.mxu0 %v4129_v59  ;;  %2912 = vmatprep.subr.bf16.mxu1 %v4736_v22 }
 0x4f2   :  { %1705 = vmatpush1.bf16.msra.mxu0 %v4133_v9  ;;  %2913 = vmatpush3.bf16.msra.mxu1 %v4240_v51 }
 0x4f3   :  { %1706 = vmatprep.subr.bf16.mxu0 %v4137_v49  ;;  %2914 = vmatprep.subr.bf16.mxu1 %v4736_v22 }
 0x4f6   :  { %1707 = vmatpush1.bf16.msra.mxu0 %v4245_v52  ;;  %2915 = vmatpush3.bf16.msra.mxu1 %v4248_v54 }
 0x4f7   :  { %1708 = vmatprep.subr.bf16.mxu0 %v4251_v55  ;;  %2916 = vmatprep.subr.bf16.mxu1 %v4736_v22 }
 0x4fa   :  { %1709 = vmatpush1.bf16.msra.mxu0 %v4255_v57  ;;  %2917 = vmatpush3.bf16.msra.mxu1 %v4258_v58 }
 0x4fb   :  { %1710 = vmatprep.subr.bf16.mxu0 %v4261_v24  ;;  %2918 = vmatprep.subr.bf16.mxu1 %v4736_v22 }
 0x4fe   :  { %1711 = vmatpush1.bf16.msra.mxu0 %v4265_v11  ;;  %2919 = vmatpush3.bf16.msra.mxu1 %v4268_v15 }
 0x4ff   :  { %1712 = vmatprep.subr.bf16.mxu0 %v4271_v16  ;;  %2920 = vmatprep.subr.bf16.mxu1 %v4736_v22  ;;  %v1572_v16 = vld [vmem:[#allocation7 + $0x24] sm:$0xff] }
 0x500   :  { %v1575_v24 = vunpack.c.h.bf16 %v1572_v16 }
 0x502   :  { %1713 = vmatpush1.bf16.msra.mxu0 %v4275_v17  ;;  %2921 = vmatpush3.bf16.msra.mxu1 %v4278_v20  ;;  %v4419_v17 = vld [vmem:[#allocation4 + $0x38] ss:$12 sps:$4 sm:$0xff]  }
 0x503   :  { %1714 = vmatprep.subr.bf16.mxu0 %v4281_v23  ;;  %2922 = vmatprep.subr.bf16.mxu1 %v4736_v22  ;;  %4762 = vst [vmem:[#allocation35_spill] sm:$0xff] %v4419_v17 }
 0x506   :  { %1715 = vmatpush1.bf16.msra.mxu0 %v4285_v2  ;;  %2923 = vmatpush3.bf16.msra.mxu1 %v4288_v18  ;;  %v1453_v2 = vunpack.c.h.bf16 %v1450_v43 }
 0x507   :  { %1822 = vmatprep.subr.bf16.mxu0 %v4291_v53  ;;  %2928 = vmatprep.subr.bf16.mxu1 %v4736_v22 }
 0x59c   :  { %v1490_v25 = vpop.f32.mrb[32].mxu0  ;;  %v1531_v28 = vpop.f32.mrb[32].mxu1 }
 0x59d   :  { %v1537_v5 = vadd.f32 %v1490_v25, %v1452_v21  ;;  %v1492_v30 = vpop.f32.mrb[33].mxu0  ;;  %v2886_v10 = vpop.f32.mrb[33].mxu1  ;;  %v1454_v21 = vunpack.c.l.bf16 %v4419_v17  ;;  %v4422_v25 = vld [vmem:[#allocation12] ss:$0 sm:$0xff] }
 0x59e   :  { %v1494_v38 = vpop.f32.mrb[34].mxu0  ;;  %v1534_v39 = vpop.f32.mrb[34].mxu1  ;;  %v1544_v23 = vadd.f32 %v1492_v30, %v1453_v2  ;;  %4763 = vst [vmem:[#allocation36_spill] sm:$0xff] %v4422_v25 }
 0x59f   :  { %v2536_v46 = vmul.f32 -1.442695, %v1537_v5  ;;  %v1495_v47 = vpop.f32.mrb[35].mxu0  ;;  %v2887_v1 = vpop.f32.mrb[35].mxu1  ;;  %v1551_v5 = vadd.f32 %v4422_v25, %v1531_v28  ;;  %v1574_v39 = vunpack.c.l.bf16 %v1572_v16  ;;  %v4435_v16 = vld [vmem:[#allocation7 + $0x20] ss:$12 sps:$4 sm:$0xff]  }
 0x5a0   :  { %v2537_v18 = vmul.f32 -1.442695, %v1544_v23 }
 0x5a1   :  { %3192 = vpow2.f32 %v2536_v46 }
 0x5a2   :  { %3194 = vpow2.f32 %v2537_v18 }
 0x5ab   :  { %v3193_v20 = vpop.eup %3192 }
 0x5ac   :  { %v1541_v53 = vadd.f32 1.0, %v3193_v20  ;;  %v3195_v15 = vpop.eup %3194 }
 0x5ad   :  { %v1548_v2 = vadd.f32 1.0, %v3195_v15 }
 0x5ae   :  { %3196 = vrcp.f32 %v1541_v53 }
 0x5b8   :  { %v3197_v10 = vpop.eup %3196 }
 0x5b9   :  { %v1552_v38 = vmul.f32 %v3197_v10, %v1551_v5 }
 0x5bb   :  { %v1553_v43 = vadd.f32 %v1552_v38, %v1454_v21 }
 0x5bc   :  { %v1612_v23 = vpop.f32.mrb[36].mxu0  ;;  %v1653_v30 = vpop.f32.mrb[36].mxu1 }
 0x5bd   :  { %3198 = vtanh.f32 %v1553_v43  ;;  %v1659_v20 = vadd.f32 %v1612_v23, %v1574_v39  ;;  %v1614_v18 = vpop.f32.mrb[37].mxu0  ;;  %v2906_v53 = vpop.f32.mrb[37].mxu1 }
 0x5be   :  { %v1616_v46 = vpop.f32.mrb[38].mxu0  ;;  %v1656_v47 = vpop.f32.mrb[38].mxu1  ;;  %3200 = vrcp.f32 %v1548_v2  ;;  %v1666_v28 = vadd.f32 %v1614_v18, %v1575_v24 }
 0x5bf   :  { %v2538_v1 = vmul.f32 -1.442695, %v1659_v20  ;;  %v1617_v17 = vpop.f32.mrb[39].mxu0  ;;  %v2907_v11 = vpop.f32.mrb[39].mxu1  ;;  %v4443_v20 = vld [vmem:[#allocation13] ss:$0 sm:$0xff] }
 0x5c0   :  { %v2539_v15 = vmul.f32 -1.442695, %v1666_v28  ;;  %v1564_v43 = vpop.permute.xlu0 %1563  ;;  %v1673_v18 = vadd.f32 %v4443_v20, %v1653_v30 }
 0x5c1   :  { %3202 = vpow2.f32 %v2538_v1  ;;  %vm1565_vm4 = vcmp.eq.s32.totalorder %v1564_v43, 1 }
 0x5c2   :  { %3204 = vpow2.f32 %v2539_v15  ;;  %v1686_v15 = vpop.permute.xlu1 %1685 }
 0x5c3   :  { %vm1687_vm5 = vcmp.eq.s32.totalorder %v1686_v15, 1 }
 0x5c7   :  { %v3199_v25 = vpop.eup %3198 }
 0x5c8   :  { %v1555_v5 = vsub.f32 %v4299_v36, %v3199_v25  ;;  %v3201_v21 = vpop.eup %3200 }
 0x5ca   :  { %v1556_v10 = vmul.f32 %v3201_v21, %v1555_v5 }
 0x5cb   :  { %v3203_v38 = vpop.eup %3202 }
 0x5cc   :  { %v1663_v39 = vadd.f32 1.0, %v3203_v38  ;;  %v1557_v23 = vadd.f32 %v3199_v25, %v1556_v10  ;;  %v1576_v25 = vunpack.c.h.bf16 %v4435_v16 }
 0x5ce   :  { %3206 = vrcp.f32 %v1663_v39  ;;  %v4427_v2 = vsel %vm1565_vm4, %v1557_v23, %v4299_v36  ;;  %v1567_v11 = vsel %vm1565_vm4, %v1557_v23, 0.0  ;;  %v3205_v36 = vpop.eup %3204 }
 0x5cf   :  { %v1568_v17 = vpack.c.bf16 %v1567_v11, %v1567_v11  ;;  %v1699_v24 = vpack.c.bf16 %v4427_v2, %v4427_v2  ;;  %v1670_v1 = vadd.f32 1.0, %v3205_v36  ;;  %v4772_v11 = vld [vmem:[#allocation33_spill] sm:$0xff] }
 0x5d1   :  { %1570 = vst [vmem:[#allocation16 + $0x10] sm:$0xf] %v1568_v17  ;;  %1733 = vmatmul.mubr.bf16.vlgmr.msra.gmra.mrb[40].mxu0 %v1699_v24  ;;  %2925 = vmatmul.mubr.bf16.vlgmr.msra.gmra.mrb[40].mxu1 %v1699_v24  ;;  %v4773_v17 = vld [vmem:[#allocation34_spill] sm:$0xff]  ;;  %v1694_v24 = vld [vmem:[#allocation4 + $0x3c] sm:$0xff] }
 0x5d2   :  { %1823 = vmatpush1.bf16.msra.mxu0 %v4171_v61  ;;  %2929 = vmatpush3.bf16.msra.mxu1 %v4304_v40  ;;  %v1696_v36 = vunpack.c.l.bf16 %v1694_v24  ;;  %v1697_v15 = vunpack.c.h.bf16 %v1694_v24 }
 0x5d3   :  { %1824 = vmatprep.subr.bf16.mxu0 %v4175_v32  ;;  %2930 = vmatprep.subr.bf16.mxu1 %v4736_v22 }
 0x5d4   :  { %1854 = vmatprep.mubr.bf16.mxu0 %v4737_v26  ;;  %2944 = vmatprep.mubr.msk.bf16.mxu1 %vm3558_vm0, %v4736_v22 }
 0x5d6   :  { %1825 = vmatpush1.bf16.msra.mxu0 %v4184_v37  ;;  %2931 = vmatpush3.bf16.msra.mxu1 %v4313_v45 }
 0x5d7   :  { %1826 = vmatprep.subr.bf16.mxu0 %v4190_v56  ;;  %2932 = vmatprep.subr.bf16.mxu1 %v4736_v22 }
 0x5d8   :  { %v3207_v53 = vpop.eup %3206 }
 0x5d9   :  { %v1674_v46 = vmul.f32 %v3207_v53, %v1673_v18 }
 0x5da   :  { %1827 = vmatpush1.bf16.msra.mxu0 %v4320_v3  ;;  %2933 = vmatpush3.bf16.msra.mxu1 %v4323_v62 }
 0x5db   :  { %v1675_v47 = vadd.f32 %v1674_v46, %v1576_v25  ;;  %1828 = vmatprep.subr.bf16.mxu0 %v4326_v27  ;;  %2934 = vmatprep.subr.bf16.mxu1 %v4736_v22 }
 0x5dd   :  { %3208 = vtanh.f32 %v1675_v47 }
 0x5de   :  { %1829 = vmatpush1.bf16.msra.mxu0 %v4330_v19  ;;  %2935 = vmatpush3.bf16.msra.mxu1 %v4333_v63  ;;  %3210 = vrcp.f32 %v1670_v1 }
 0x5df   :  { %1830 = vmatprep.subr.bf16.mxu0 %v4336_v8  ;;  %2936 = vmatprep.subr.bf16.mxu1 %v4736_v22 }
 0x5e2   :  { %1831 = vmatpush1.bf16.msra.mxu0 %v4340_v29  ;;  %2937 = vmatpush3.bf16.msra.mxu1 %v4343_v31 }
 0x5e3   :  { %1832 = vmatprep.subr.bf16.mxu0 %v4346_v60  ;;  %2938 = vmatprep.subr.bf16.mxu1 %v4736_v22 }
 0x5e6   :  { %1833 = vmatpush1.bf16.msra.mxu0 %v4350_v35  ;;  %2939 = vmatpush3.bf16.msra.mxu1 %v4353_v7 }
 0x5e7   :  { %v3209_v30 = vpop.eup %3208  ;;  %1834 = vmatprep.subr.bf16.mxu0 %v4356_v34  ;;  %2940 = vmatprep.subr.bf16.mxu1 %v4736_v22 }
 0x5e8   :  { %v1677_v28 = vsub.f32 %v4378_v44, %v3209_v30  ;;  %v3211_v5 = vpop.eup %3210 }
 0x5ea   :  { %v1678_v21 = vmul.f32 %v3211_v5, %v1677_v28  ;;  %1835 = vmatpush1.bf16.msra.mxu0 %v4361_v12  ;;  %2941 = vmatpush3.bf16.msra.mxu1 %v4364_v13 }
 0x5eb   :  { %1836 = vmatprep.subr.bf16.mxu0 %v4367_v33  ;;  %2942 = vmatprep.subr.bf16.mxu1 %v4736_v22 }
 0x5ec   :  { %v1679_v10 = vadd.f32 %v3209_v30, %v1678_v21 }
 0x5ee   :  { %1837 = vmatpush1.bf16.msra.mxu0 %v4371_v14  ;;  %2943 = vmatpush3.bf16.msra.mxu1 %v4374_v42  ;;  %v4472_v38 = vsel %vm1687_vm5, %v1679_v10, %v4378_v44  ;;  %v1689_v43 = vsel %vm1687_vm5, %v1679_v10, 0.0  ;;  %v4771_v44 = vld [vmem:[#allocation31_spill] sm:$0xff] }
 0x5ef   :  { %v1690_v39 = vpack.c.bf16 %v1689_v43, %v1689_v43  ;;  %v1821_v23 = vpack.c.bf16 %v4472_v38, %v4472_v38  ;;  %1944 = vmatprep.subr.bf16.mxu0 %v4110_v4  ;;  %2948 = vmatprep.subr.bf16.mxu1 %v4736_v22  ;;  %v4764_v4 = vld [vmem:[#allocation25_spill] sm:$0xff] }
 0x5f1   :  { %1692 = vst [vmem:[#allocation17 + $0xc] sm:$0xf] %v1690_v39  ;;  %1855 = vmatmul.mubr.bf16.vlgmr.msra.gmra.mrb[44].mxu0 %v1821_v23  ;;  %2945 = vmatmul.mubr.bf16.vlgmr.msra.gmra.mrb[44].mxu1 %v1821_v23 }
 0x5f2   :  { %1945 = vmatpush1.bf16.msra.mxu0 %v4114_v6  ;;  %2949 = vmatpush3.bf16.msra.mxu1 %v4225_v48  ;;  %v4765_v6 = vld [vmem:[#allocation32_spill] sm:$0xff] }
 0x5f3   :  { %1946 = vmatprep.subr.bf16.mxu0 %v4118_v0  ;;  %2950 = vmatprep.subr.bf16.mxu1 %v4736_v22  ;;  %v4766_v0 = vld [vmem:[#allocation29_spill] sm:$0xff] }
 0x5f4   :  { %1976 = vmatprep.mubr.bf16.mxu0 %v4737_v26  ;;  %2964 = vmatprep.mubr.msk.bf16.mxu1 %vm3558_vm0, %v4736_v22 }
 0x5f6   :  { %1947 = vmatpush1.bf16.msra.mxu0 %v4125_v41  ;;  %2951 = vmatpush3.bf16.msra.mxu1 %v4234_v50  ;;  %v4767_v41 = vld [vmem:[#allocation26_spill] sm:$0xff] }
 0x5f7   :  { %1948 = vmatprep.subr.bf16.mxu0 %v4129_v59  ;;  %2952 = vmatprep.subr.bf16.mxu1 %v4736_v22  ;;  %v4768_v59 = vld [vmem:[#allocation27_spill] sm:$0xff] }
 0x5fa   :  { %1949 = vmatpush1.bf16.msra.mxu0 %v4133_v9  ;;  %2953 = vmatpush3.bf16.msra.mxu1 %v4240_v51  ;;  %v4769_v9 = vld [vmem:[#allocation30_spill] sm:$0xff] }
 0x5fb   :  { %1950 = vmatprep.subr.bf16.mxu0 %v4137_v49  ;;  %2954 = vmatprep.subr.bf16.mxu1 %v4736_v22  ;;  %v4770_v49 = vld [vmem:[#allocation28_spill] sm:$0xff] }
 0x5fe   :  { %1951 = vmatpush1.bf16.msra.mxu0 %v4245_v52  ;;  %2955 = vmatpush3.bf16.msra.mxu1 %v4248_v54 }
 0x5ff   :  { %1952 = vmatprep.subr.bf16.mxu0 %v4251_v55  ;;  %2956 = vmatprep.subr.bf16.mxu1 %v4736_v22 }
 0x602   :  { %1953 = vmatpush1.bf16.msra.mxu0 %v4255_v57  ;;  %2957 = vmatpush3.bf16.msra.mxu1 %v4258_v58 }
 0x603   :  { %1954 = vmatprep.subr.bf16.mxu0 %v4764_v4  ;;  %2958 = vmatprep.subr.bf16.mxu1 %v4736_v22 }
 0x606   :  { %1955 = vmatpush1.bf16.msra.mxu0 %v4765_v6  ;;  %2959 = vmatpush3.bf16.msra.mxu1 %v4766_v0 }
 0x607   :  { %1956 = vmatprep.subr.bf16.mxu0 %v4767_v41  ;;  %2960 = vmatprep.subr.bf16.mxu1 %v4736_v22 }
 0x60a   :  { %1957 = vmatpush1.bf16.msra.mxu0 %v4768_v59  ;;  %2961 = vmatpush3.bf16.msra.mxu1 %v4769_v9 }
 0x60b   :  { %1958 = vmatprep.subr.bf16.mxu0 %v4770_v49  ;;  %2962 = vmatprep.subr.bf16.mxu1 %v4736_v22 }
 0x60e   :  { %1959 = vmatpush1.bf16.msra.mxu0 %v4771_v44  ;;  %2963 = vmatpush3.bf16.msra.mxu1 %v4772_v11  ;;  %v4774_v44 = vld [vmem:[#allocation35_spill] sm:$0xff] }
 0x60f   :  { %2066 = vmatprep.subr.bf16.mxu0 %v4773_v17  ;;  %2968 = vmatprep.subr.bf16.mxu1 %v4736_v22  ;;  %v1816_v17 = vld [vmem:[#allocation7 + $0x18] sm:$0xff]  ;;  %v1698_v49 = vunpack.c.h.bf16 %v4774_v44 }
 0x610   :  { %v1819_v44 = vunpack.c.h.bf16 %v1816_v17 }
 0x6a4   :  { %v1734_v25 = vpop.f32.mrb[40].mxu0  ;;  %v1775_v18 = vpop.f32.mrb[40].mxu1 }
 0x6a5   :  { %v1781_v53 = vadd.f32 %v1734_v25, %v1696_v36  ;;  %v1736_v46 = vpop.f32.mrb[41].mxu0  ;;  %v2926_v47 = vpop.f32.mrb[41].mxu1  ;;  %v4775_v36 = vld [vmem:[#allocation36_spill] sm:$0xff] }
 0x6a6   :  { %v1738_v1 = vpop.f32.mrb[42].mxu0  ;;  %v1778_v30 = vpop.f32.mrb[42].mxu1  ;;  %v1788_v10 = vadd.f32 %v1736_v46, %v1697_v15  ;;  %v1795_v25 = vadd.f32 %v4775_v36, %v1775_v18 }
 0x6a7   :  { %v2540_v28 = vmul.f32 -1.442695, %v1781_v53  ;;  %v1739_v5 = vpop.f32.mrb[43].mxu0  ;;  %v2927_v21 = vpop.f32.mrb[43].mxu1  ;;  %v1818_v30 = vunpack.c.l.bf16 %v1816_v17 }
 0x6a8   :  { %v2541_v43 = vmul.f32 -1.442695, %v1788_v10 }
 0x6a9   :  { %3212 = vpow2.f32 %v2540_v28 }
 0x6aa   :  { %3214 = vpow2.f32 %v2541_v43 }
 0x6b3   :  { %v3213_v39 = vpop.eup %3212 }
 0x6b4   :  { %v1785_v23 = vadd.f32 1.0, %v3213_v39  ;;  %v3215_v11 = vpop.eup %3214 }
 0x6b5   :  { %v1792_v5 = vadd.f32 1.0, %v3215_v11 }
 0x6b6   :  { %3216 = vrcp.f32 %v1785_v23 }
 0x6c0   :  { %v3217_v47 = vpop.eup %3216 }
 0x6c1   :  { %v1796_v1 = vmul.f32 %v3217_v47, %v1795_v25 }
 0x6c3   :  { %v1797_v53 = vadd.f32 %v1796_v1, %v1698_v49 }
 0x6c4   :  { %v1856_v21 = vpop.f32.mrb[44].mxu0  ;;  %v1897_v28 = vpop.f32.mrb[44].mxu1 }
 0x6c5   :  { %3218 = vtanh.f32 %v1797_v53  ;;  %v1903_v24 = vadd.f32 %v1856_v21, %v1818_v30  ;;  %v1858_v46 = vpop.f32.mrb[45].mxu0  ;;  %v2946_v15 = vpop.f32.mrb[45].mxu1 }
 0x6c6   :  { %v1860_v10 = vpop.f32.mrb[46].mxu0  ;;  %v1900_v43 = vpop.f32.mrb[46].mxu1  ;;  %3220 = vrcp.f32 %v1792_v5  ;;  %v1910_v18 = vadd.f32 %v1858_v46, %v1819_v44 }
 0x6c7   :  { %v2542_v39 = vmul.f32 -1.442695, %v1903_v24  ;;  %v1861_v23 = vpop.f32.mrb[47].mxu0  ;;  %v2947_v9 = vpop.f32.mrb[47].mxu1 }
 0x6c8   :  { %v2543_v11 = vmul.f32 -1.442695, %v1910_v18  ;;  %v1808_v53 = vpop.permute.xlu0 %1807  ;;  %v1930_v43 = vpop.permute.xlu1 %1929 }
 0x6c9   :  { %3222 = vpow2.f32 %v2542_v39  ;;  %vm1809_vm6 = vcmp.eq.s32.totalorder %v1808_v53, 1  ;;  %vm1931_vm7 = vcmp.eq.s32.totalorder %v1930_v43, 1  ;;  %v3327_v53 = vld [vmem:[#allocation9 + $0x30] ss:$12 sps:$4 sm:$0xff]  }
 0x6ca   :  { %3224 = vpow2.f32 %v2543_v11  ;;  %v3323_v11 = vld [vmem:[#allocation9] ss:$12 sps:$4 sm:$0xff]  }
 0x6cf   :  { %v3219_v36 = vpop.eup %3218 }
 0x6d0   :  { %v1799_v25 = vsub.f32 %v4427_v2, %v3219_v36  ;;  %v3221_v49 = vpop.eup %3220 }
 0x6d2   :  { %v1800_v47 = vmul.f32 %v3221_v49, %v1799_v25  ;;  %v3322_v49 = vld [vmem:[#allocation9 + $0x4] ss:$12 sps:$4 sm:$0xff]  }
 0x6d3   :  { %v3223_v1 = vpop.eup %3222 }
 0x6d4   :  { %v1907_v30 = vadd.f32 1.0, %v3223_v1  ;;  %v1801_v21 = vadd.f32 %v3219_v36, %v1800_v47  ;;  %v1820_v36 = vunpack.c.l.bf16 %v4435_v16  ;;  %v3324_v47 = vld [vmem:[#allocation9 + $0x1c] ss:$12 sps:$4 sm:$0xff]   ;;  %v3326_v1 = vld [vmem:[#allocation9 + $0x34] ss:$12 sps:$4 sm:$0xff]  }
 0x6d6   :  { %3226 = vrcp.f32 %v1907_v30  ;;  %v4517_v5 = vsel %vm1809_vm6, %v1801_v21, %v4427_v2  ;;  %v1811_v9 = vsel %vm1809_vm6, %v1801_v21, 0.0  ;;  %v3225_v2 = vpop.eup %3224 }
 0x6d7   :  { %v1812_v24 = vpack.c.bf16 %v1811_v9, %v1811_v9  ;;  %v1943_v17 = vpack.c.bf16 %v4517_v5, %v4517_v5  ;;  %v1914_v10 = vadd.f32 1.0, %v3225_v2 }
 0x6d9   :  { %1814 = vst [vmem:[#allocation16 + $0x14] sm:$0xf] %v1812_v24  ;;  %1977 = vmatmul.mubr.bf16.vlgmr.msra.gmra.mrb[48].mxu0 %v1943_v17  ;;  %2965 = vmatmul.mubr.bf16.vlgmr.msra.gmra.mrb[48].mxu1 %v1943_v17 }
 0x6da   :  { %2067 = vmatpush1.bf16.msra.mxu0 %v4171_v61  ;;  %2969 = vmatpush3.bf16.msra.mxu1 %v4304_v40  ;;  %v1917_v61 = vadd.f32 %v4443_v20, %v1897_v28 }
 0x6db   :  { %2068 = vmatprep.subr.bf16.mxu0 %v4175_v32  ;;  %2970 = vmatprep.subr.bf16.mxu1 %v4736_v22 }
 0x6dc   :  { %2098 = vmatprep.mubr.bf16.mxu0 %v4737_v26  ;;  %2984 = vmatprep.mubr.msk.bf16.mxu1 %vm3558_vm0, %v4736_v22 }
 0x6de   :  { %2069 = vmatpush1.bf16.msra.mxu0 %v4184_v37  ;;  %2971 = vmatpush3.bf16.msra.mxu1 %v4313_v45 }
 0x6df   :  { %2070 = vmatprep.subr.bf16.mxu0 %v4190_v56  ;;  %2972 = vmatprep.subr.bf16.mxu1 %v4736_v22 }
 0x6e0   :  { %v3227_v32 = vpop.eup %3226 }
 0x6e1   :  { %v1918_v46 = vmul.f32 %v3227_v32, %v1917_v61 }
 0x6e2   :  { %2071 = vmatpush1.bf16.msra.mxu0 %v4320_v3  ;;  %2973 = vmatpush3.bf16.msra.mxu1 %v4323_v62 }
 0x6e3   :  { %v1919_v15 = vadd.f32 %v1918_v46, %v1820_v36  ;;  %2072 = vmatprep.subr.bf16.mxu0 %v4326_v27  ;;  %2974 = vmatprep.subr.bf16.mxu1 %v4736_v22 }
 0x6e5   :  { %3228 = vtanh.f32 %v1919_v15  ;;  %v4592_v15 = vld [vmem:[#allocation4 + $0x50] ss:$12 sps:$4 sm:$0xff]  }
 0x6e6   :  { %2073 = vmatpush1.bf16.msra.mxu0 %v4330_v19  ;;  %2975 = vmatpush3.bf16.msra.mxu1 %v4333_v63  ;;  %3230 = vrcp.f32 %v1914_v10  ;;  %v2060_v10 = vld [vmem:[#allocation7 + $0xc] sm:$0xff] }
 0x6e7   :  { %2074 = vmatprep.subr.bf16.mxu0 %v4336_v8  ;;  %2976 = vmatprep.subr.bf16.mxu1 %v4736_v22 }
 0x6ea   :  { %2075 = vmatpush1.bf16.msra.mxu0 %v4340_v29  ;;  %2977 = vmatpush3.bf16.msra.mxu1 %v4343_v31 }
 0x6eb   :  { %2076 = vmatprep.subr.bf16.mxu0 %v4346_v60  ;;  %2978 = vmatprep.subr.bf16.mxu1 %v4736_v22 }
 0x6ee   :  { %2077 = vmatpush1.bf16.msra.mxu0 %v4350_v35  ;;  %2979 = vmatpush3.bf16.msra.mxu1 %v4353_v7 }
 0x6ef   :  { %v3229_v37 = vpop.eup %3228  ;;  %2078 = vmatprep.subr.bf16.mxu0 %v4356_v34  ;;  %2980 = vmatprep.subr.bf16.mxu1 %v4736_v22 }
 0x6f0   :  { %v1921_v56 = vsub.f32 %v4472_v38, %v3229_v37  ;;  %v3231_v16 = vpop.eup %3230 }
 0x6f2   :  { %v1922_v28 = vmul.f32 %v3231_v16, %v1921_v56  ;;  %2079 = vmatpush1.bf16.msra.mxu0 %v4361_v12  ;;  %2981 = vmatpush3.bf16.msra.mxu1 %v4364_v13  ;;  %v1942_v56 = vunpack.c.l.bf16 %v4592_v15  ;;  %v4781_v16 = vld [vmem:[#allocation36_spill] sm:$0xff] }
 0x6f3   :  { %2080 = vmatprep.subr.bf16.mxu0 %v4367_v33  ;;  %2982 = vmatprep.subr.bf16.mxu1 %v4736_v22 }
 0x6f4   :  { %v1923_v39 = vadd.f32 %v3229_v37, %v1922_v28 }
 0x6f6   :  { %2081 = vmatpush1.bf16.msra.mxu0 %v4371_v14  ;;  %2983 = vmatpush3.bf16.msra.mxu1 %v4374_v42  ;;  %v4558_v23 = vsel %vm1931_vm7, %v1923_v39, %v4472_v38  ;;  %v1933_v44 = vsel %vm1931_vm7, %v1923_v39, 0.0  ;;  %v3325_v38 = vld [vmem:[#allocation9 + $0x18] ss:$12 sps:$4 sm:$0xff]  }
 0x6f7   :  { %v1934_v18 = vpack.c.bf16 %v1933_v44, %v1933_v44  ;;  %v2065_v25 = vpack.c.bf16 %v4558_v23, %v4558_v23  ;;  %2188 = vmatprep.subr.bf16.mxu0 %v3322_v49  ;;  %2988 = vmatprep.subr.bf16.mxu1 %v4736_v22  ;;  %v2062_v44 = vunpack.c.l.bf16 %v2060_v10 }
 0x6f9   :  { %1936 = vst [vmem:[#allocation17 + $0x8] sm:$0xf] %v1934_v18  ;;  %2099 = vmatmul.mubr.bf16.vlgmr.msra.gmra.mrb[52].mxu0 %v2065_v25  ;;  %2985 = vmatmul.mubr.bf16.vlgmr.msra.gmra.mrb[52].mxu1 %v2065_v25 }
 0x6fa   :  { %2189 = vmatpush1.bf16.msra.mxu0 %v3323_v11  ;;  %2989 = vmatpush3.bf16.msra.mxu1 %v4225_v48  ;;  %v3328_v48 = vld [vmem:[#allocation9 + $0x4c] ss:$12 sps:$4 sm:$0xff]  }
 0x6fb   :  { %2190 = vmatprep.subr.bf16.mxu0 %v3324_v47  ;;  %2990 = vmatprep.subr.bf16.mxu1 %v4736_v22 }
 0x6fc   :  { %2220 = vmatprep.mubr.bf16.mxu0 %v4737_v26  ;;  %3004 = vmatprep.mubr.msk.bf16.mxu1 %vm3558_vm0, %v4736_v22 }
 0x6fe   :  { %2191 = vmatpush1.bf16.msra.mxu0 %v3325_v38  ;;  %2991 = vmatpush3.bf16.msra.mxu1 %v4234_v50  ;;  %v4776_v50 = vld [vmem:[#allocation30_spill] sm:$0xff] }
 0x6ff   :  { %2192 = vmatprep.subr.bf16.mxu0 %v3326_v1  ;;  %2992 = vmatprep.subr.bf16.mxu1 %v4736_v22 }
 0x702   :  { %2193 = vmatpush1.bf16.msra.mxu0 %v3327_v53  ;;  %2993 = vmatpush3.bf16.msra.mxu1 %v4240_v51  ;;  %v4777_v51 = vld [vmem:[#allocation28_spill] sm:$0xff] }
 0x703   :  { %2194 = vmatprep.subr.bf16.mxu0 %v3328_v48  ;;  %2994 = vmatprep.subr.bf16.mxu1 %v4736_v22 }
 0x706   :  { %2195 = vmatpush1.bf16.msra.mxu0 %v4245_v52  ;;  %2995 = vmatpush3.bf16.msra.mxu1 %v4248_v54  ;;  %v4778_v52 = vld [vmem:[#allocation31_spill] sm:$0xff]  ;;  %v4779_v54 = vld [vmem:[#allocation33_spill] sm:$0xff] }
 0x707   :  { %2196 = vmatprep.subr.bf16.mxu0 %v4251_v55  ;;  %2996 = vmatprep.subr.bf16.mxu1 %v4736_v22  ;;  %v4780_v55 = vld [vmem:[#allocation34_spill] sm:$0xff] }
 0x70a   :  { %2197 = vmatpush1.bf16.msra.mxu0 %v4255_v57  ;;  %2997 = vmatpush3.bf16.msra.mxu1 %v4258_v58  ;;  %v1938_v57 = vld [vmem:[#allocation4 + $0x48] sm:$0xff] }
 0x70b   :  { %2198 = vmatprep.subr.bf16.mxu0 %v4764_v4  ;;  %2998 = vmatprep.subr.bf16.mxu1 %v4736_v22  ;;  %v1940_v58 = vunpack.c.l.bf16 %v1938_v57  ;;  %v1941_v2 = vunpack.c.h.bf16 %v1938_v57 }
 0x70e   :  { %2199 = vmatpush1.bf16.msra.mxu0 %v4765_v6  ;;  %2999 = vmatpush3.bf16.msra.mxu1 %v4766_v0 }
 0x70f   :  { %2200 = vmatprep.subr.bf16.mxu0 %v4767_v41  ;;  %3000 = vmatprep.subr.bf16.mxu1 %v4736_v22 }
 0x712   :  { %2201 = vmatpush1.bf16.msra.mxu0 %v4768_v59  ;;  %3001 = vmatpush3.bf16.msra.mxu1 %v4776_v50 }
 0x713   :  { %2202 = vmatprep.subr.bf16.mxu0 %v4777_v51  ;;  %3002 = vmatprep.subr.bf16.mxu1 %v4736_v22 }
 0x716   :  { %2203 = vmatpush1.bf16.msra.mxu0 %v4778_v52  ;;  %3003 = vmatpush3.bf16.msra.mxu1 %v4779_v54  ;;  %v2063_v54 = vunpack.c.h.bf16 %v2060_v10 }
 0x717   :  { %2309 = vmatprep.subr.bf16.mxu0 %v4780_v55  ;;  %3008 = vmatprep.subr.bf16.mxu1 %v4736_v22 }
 0x7ac   :  { %v1978_v4 = vpop.f32.mrb[48].mxu0  ;;  %v2019_v6 = vpop.f32.mrb[48].mxu1 }
 0x7ad   :  { %v2025_v0 = vadd.f32 %v1978_v4, %v1940_v58  ;;  %v1980_v41 = vpop.f32.mrb[49].mxu0  ;;  %v2966_v59 = vpop.f32.mrb[49].mxu1  ;;  %v2039_v28 = vadd.f32 %v4781_v16, %v2019_v6 }
 0x7ae   :  { %v1982_v30 = vpop.f32.mrb[50].mxu0  ;;  %v2022_v21 = vpop.f32.mrb[50].mxu1  ;;  %v2032_v36 = vadd.f32 %v1980_v41, %v1941_v2 }
 0x7af   :  { %v2544_v9 = vmul.f32 -1.442695, %v2025_v0  ;;  %v1983_v24 = vpop.f32.mrb[51].mxu0  ;;  %v2967_v17 = vpop.f32.mrb[51].mxu1 }
 0x7b0   :  { %v2545_v61 = vmul.f32 -1.442695, %v2032_v36  ;;  %v2052_v59 = vpop.permute.xlu0 %2051  ;;  %v3329_v36 = vld [vmem:[#allocation10] ss:$12 sps:$4 sm:$0xff]  }
 0x7b1   :  { %3232 = vpow2.f32 %v2544_v9  ;;  %vm2053_vm8 = vcmp.eq.s32.totalorder %v2052_v59, 1 }
 0x7b2   :  { %3234 = vpow2.f32 %v2545_v61  ;;  %v3330_v61 = vld [vmem:[#allocation10 + $0x1c] ss:$12 sps:$4 sm:$0xff]  }
 0x7bb   :  { %v3233_v32 = vpop.eup %3232 }
 0x7bc   :  { %v2029_v46 = vadd.f32 1.0, %v3233_v32  ;;  %v3235_v37 = vpop.eup %3234  ;;  %v4604_v32 = vld [vmem:[#allocation7 + $0x8] ss:$12 sps:$4 sm:$0xff]  }
 0x7bd   :  { %v2036_v25 = vadd.f32 1.0, %v3235_v37  ;;  %v2064_v10 = vunpack.c.h.bf16 %v4604_v32  ;;  %v3332_v37 = vld [vmem:[#allocation10 + $0x34] ss:$12 sps:$4 sm:$0xff]  }
 0x7be   :  { %3236 = vrcp.f32 %v2029_v46 }
 0x7c8   :  { %v3237_v43 = vpop.eup %3236 }
 0x7c9   :  { %v2040_v39 = vmul.f32 %v3237_v43, %v2039_v28 }
 0x7cb   :  { %v2041_v18 = vadd.f32 %v2040_v39, %v1942_v56 }
 0x7cc   :  { %v2100_v49 = vpop.f32.mrb[52].mxu0  ;;  %v2141_v11 = vpop.f32.mrb[52].mxu1 }
 0x7cd   :  { %3238 = vtanh.f32 %v2041_v18  ;;  %v2147_v47 = vadd.f32 %v2100_v49, %v2062_v44  ;;  %v2102_v38 = vpop.f32.mrb[53].mxu0  ;;  %v2986_v1 = vpop.f32.mrb[53].mxu1 }
 0x7ce   :  { %v2104_v53 = vpop.f32.mrb[54].mxu0  ;;  %v2144_v48 = vpop.f32.mrb[54].mxu1  ;;  %3240 = vrcp.f32 %v2036_v25  ;;  %v2154_v55 = vadd.f32 %v2102_v38, %v2063_v54  ;;  %v2303_v38 = vld [vmem:[#allocation7] sm:$0xff] }
 0x7cf   :  { %v2546_v50 = vmul.f32 -1.442695, %v2147_v47  ;;  %v2105_v51 = vpop.f32.mrb[55].mxu0  ;;  %v2987_v52 = vpop.f32.mrb[55].mxu1  ;;  %v2186_v53 = vunpack.c.h.bf16 %v4592_v15  ;;  %v2306_v15 = vunpack.c.h.bf16 %v2303_v38 }
 0x7d0   :  { %v2547_v6 = vmul.f32 -1.442695, %v2154_v55  ;;  %v2305_v52 = vunpack.c.l.bf16 %v2303_v38 }
 0x7d1   :  { %3242 = vpow2.f32 %v2546_v50 }
 0x7d2   :  { %3244 = vpow2.f32 %v2547_v6 }
 0x7d7   :  { %v3239_v57 = vpop.eup %3238 }
 0x7d8   :  { %v2043_v58 = vsub.f32 %v4517_v5, %v3239_v57  ;;  %v3241_v4 = vpop.eup %3240 }
 0x7da   :  { %v2044_v0 = vmul.f32 %v3241_v4, %v2043_v58 }
 0x7db   :  { %v3243_v41 = vpop.eup %3242 }
 0x7dc   :  { %v2151_v30 = vadd.f32 1.0, %v3243_v41  ;;  %v2045_v21 = vadd.f32 %v3239_v57, %v2044_v0  ;;  %v3245_v46 = vpop.eup %3244 }
 0x7dd   :  { %v2158_v43 = vadd.f32 1.0, %v3245_v46 }
 0x7de   :  { %3246 = vrcp.f32 %v2151_v30  ;;  %v4598_v9 = vsel %vm2053_vm8, %v2045_v21, %v4517_v5  ;;  %v2055_v24 = vsel %vm2053_vm8, %v2045_v21, 0.0  ;;  %v3331_v5 = vld [vmem:[#allocation10 + $0x18] ss:$12 sps:$4 sm:$0xff]  }
 0x7df   :  { %v2056_v17 = vpack.c.bf16 %v2055_v24, %v2055_v24  ;;  %v2187_v2 = vpack.c.bf16 %v4598_v9, %v4598_v9 }
 0x7e1   :  { %2058 = vst [vmem:[#allocation16 + $0x18] sm:$0xf] %v2056_v17  ;;  %2221 = vmatmul.mubr.bf16.vlgmr.msra.gmra.mrb[56].mxu0 %v2187_v2  ;;  %3005 = vmatmul.mubr.bf16.vlgmr.msra.gmra.mrb[56].mxu1 %v2187_v2 }
 0x7e2   :  { %2310 = vmatpush1.bf16.msra.mxu0 %v3329_v36  ;;  %3009 = vmatpush3.bf16.msra.mxu1 %v4304_v40  ;;  %v2161_v40 = vadd.f32 %v4443_v20, %v2141_v11 }
 0x7e3   :  { %2311 = vmatprep.subr.bf16.mxu0 %v3330_v61  ;;  %3010 = vmatprep.subr.bf16.mxu1 %v4736_v22 }
 0x7e4   :  { %2341 = vmatprep.mubr.bf16.mxu0 %v4737_v26  ;;  %3024 = vmatprep.mubr.msk.bf16.mxu1 %vm3558_vm0, %v4736_v22 }
 0x7e6   :  { %2312 = vmatpush1.bf16.msra.mxu0 %v3331_v5  ;;  %3011 = vmatpush3.bf16.msra.mxu1 %v4313_v45  ;;  %v2296_v5 = vpop.permute.xlu0 %2295 }
 0x7e7   :  { %2313 = vmatprep.subr.bf16.mxu0 %v3332_v37  ;;  %3012 = vmatprep.subr.bf16.mxu1 %v4736_v22  ;;  %vm2297_vm9 = vcmp.eq.s32.totalorder %v2296_v5, 1 }
 0x7e8   :  { %v3247_v56 = vpop.eup %3246 }
 0x7e9   :  { %v2162_v28 = vmul.f32 %v3247_v56, %v2161_v40 }
 0x7ea   :  { %2314 = vmatpush1.bf16.msra.mxu0 %v4320_v3  ;;  %3013 = vmatpush3.bf16.msra.mxu1 %v4323_v62 }
 0x7eb   :  { %v2163_v26 = vadd.f32 %v2162_v28, %v2064_v10  ;;  %2315 = vmatprep.subr.bf16.mxu0 %v4326_v27  ;;  %3014 = vmatprep.subr.bf16.mxu1 %v4736_v22 }
 0x7ed   :  { %3248 = vtanh.f32 %v2163_v26 }
 0x7ee   :  { %2316 = vmatpush1.bf16.msra.mxu0 %v4330_v19  ;;  %3015 = vmatpush3.bf16.msra.mxu1 %v4333_v63  ;;  %3250 = vrcp.f32 %v2158_v43  ;;  %v2174_v19 = vpop.permute.xlu1 %2173 }
 0x7ef   :  { %2317 = vmatprep.subr.bf16.mxu0 %v4336_v8  ;;  %3016 = vmatprep.subr.bf16.mxu1 %v4736_v22  ;;  %vm2175_vm0 = vcmp.eq.s32.totalorder %v2174_v19, 1 }
 0x7f2   :  { %2318 = vmatpush1.bf16.msra.mxu0 %v4340_v29  ;;  %3017 = vmatpush3.bf16.msra.mxu1 %v4343_v31 }
 0x7f3   :  { %2319 = vmatprep.subr.bf16.mxu0 %v4346_v60  ;;  %3018 = vmatprep.subr.bf16.mxu1 %v4736_v22 }
 0x7f6   :  { %2320 = vmatpush1.bf16.msra.mxu0 %v4350_v35  ;;  %3019 = vmatpush3.bf16.msra.mxu1 %v4353_v7  ;;  %v2182_v35 = vld [vmem:[#allocation4 + $0x54] sm:$0xff] }
 0x7f7   :  { %v3249_v45 = vpop.eup %3248  ;;  %2321 = vmatprep.subr.bf16.mxu0 %v4356_v34  ;;  %3020 = vmatprep.subr.bf16.mxu1 %v4736_v22  ;;  %v2185_v18 = vunpack.c.h.bf16 %v2182_v35 }
 0x7f8   :  { %v2165_v3 = vsub.f32 %v4558_v23, %v3249_v45  ;;  %v3251_v62 = vpop.eup %3250 }
 0x7fa   :  { %2322 = vmatpush1.bf16.msra.mxu0 %v4361_v12  ;;  %3021 = vmatpush3.bf16.msra.mxu1 %v4364_v13  ;;  %v2166_v27 = vmul.f32 %v3251_v62, %v2165_v3 }
 0x7fb   :  { %2323 = vmatprep.subr.bf16.mxu0 %v4367_v33  ;;  %3022 = vmatprep.subr.bf16.mxu1 %v4736_v22  ;;  %v2184_v22 = vunpack.c.l.bf16 %v2182_v35 }
 0x7fc   :  { %v2167_v63 = vadd.f32 %v3249_v45, %v2166_v27 }
 0x7fe   :  { %2324 = vmatpush1.bf16.msra.mxu0 %v4371_v14  ;;  %3023 = vmatpush3.bf16.msra.mxu1 %v4374_v42  ;;  %v4637_v8 = vsel %vm2175_vm0, %v2167_v63, %v4558_v23  ;;  %v2177_v29 = vsel %vm2175_vm0, %v2167_v63, 0.0 }
 0x7ff   :  { %v2178_v31 = vpack.c.bf16 %v2177_v29, %v2177_v29  ;;  %v2308_v60 = vpack.c.bf16 %v4637_v8, %v4637_v8 }
 0x801   :  { %2180 = vst [vmem:[#allocation17 + $0x4] sm:$0xf] %v2178_v31  ;;  %2342 = vmatmul.mubr.bf16.vlgmr.msra.gmra.mrb[60].mxu0 %v2308_v60  ;;  %3025 = vmatmul.mubr.bf16.vlgmr.msra.gmra.mrb[60].mxu1 %v2308_v60 }
 0x8b4   :  { %v2222_v7 = vpop.f32.mrb[56].mxu0  ;;  %v2263_v34 = vpop.f32.mrb[56].mxu1 }
 0x8b5   :  { %v2269_v12 = vadd.f32 %v2222_v7, %v2184_v22  ;;  %v2224_v13 = vpop.f32.mrb[57].mxu0  ;;  %v3006_v33 = vpop.f32.mrb[57].mxu1  ;;  %v2283_v48 = vadd.f32 %v4781_v16, %v2263_v34 }
 0x8b6   :  { %v2226_v14 = vpop.f32.mrb[58].mxu0  ;;  %v2266_v42 = vpop.f32.mrb[58].mxu1  ;;  %v2276_v25 = vadd.f32 %v2224_v13, %v2185_v18 }
 0x8b7   :  { %v2548_v39 = vmul.f32 -1.442695, %v2269_v12  ;;  %v2227_v23 = vpop.f32.mrb[59].mxu0  ;;  %v3007_v44 = vpop.f32.mrb[59].mxu1 }
 0x8b8   :  { %v2549_v49 = vmul.f32 -1.442695, %v2276_v25 }
 0x8b9   :  { %3252 = vpow2.f32 %v2548_v39 }
 0x8ba   :  { %3254 = vpow2.f32 %v2549_v49 }
 0x8c3   :  { %v3253_v11 = vpop.eup %3252 }
 0x8c4   :  { %v2273_v47 = vadd.f32 1.0, %v3253_v11  ;;  %v3255_v1 = vpop.eup %3254 }
 0x8c5   :  { %v2280_v55 = vadd.f32 1.0, %v3255_v1 }
 0x8c6   :  { %3256 = vrcp.f32 %v2273_v47 }
 0x8d0   :  { %v3257_v50 = vpop.eup %3256 }
 0x8d1   :  { %v2284_v51 = vmul.f32 %v3257_v50, %v2283_v48 }
 0x8d3   :  { %v2285_v54 = vadd.f32 %v2284_v51, %v2186_v53 }
 0x8d4   :  { %v2343_v57 = vpop.f32.mrb[60].mxu0  ;;  %v2384_v58 = vpop.f32.mrb[60].mxu1 }
 0x8d5   :  { %3258 = vtanh.f32 %v2285_v54  ;;  %v2390_v4 = vadd.f32 %v2343_v57, %v2305_v52  ;;  %v2345_v6 = vpop.f32.mrb[61].mxu0  ;;  %v3026_v0 = vpop.f32.mrb[61].mxu1 }
 0x8d6   :  { %v2347_v41 = vpop.f32.mrb[62].mxu0  ;;  %v2387_v59 = vpop.f32.mrb[62].mxu1  ;;  %3260 = vrcp.f32 %v2280_v55  ;;  %v2397_v16 = vadd.f32 %v2345_v6, %v2306_v15 }
 0x8d7   :  { %v2550_v30 = vmul.f32 -1.442695, %v2390_v4  ;;  %v2348_v21 = vpop.f32.mrb[63].mxu0  ;;  %v3027_v24 = vpop.f32.mrb[63].mxu1 }
 0x8d8   :  { %v2551_v61 = vmul.f32 -1.442695, %v2397_v16 }
 0x8d9   :  { %3262 = vpow2.f32 %v2550_v30 }
 0x8da   :  { %3264 = vpow2.f32 %v2551_v61 }
 0x8df   :  { %v3259_v17 = vpop.eup %3258 }
 0x8e0   :  { %v2287_v2 = vsub.f32 %v4598_v9, %v3259_v17  ;;  %v3261_v36 = vpop.eup %3260 }
 0x8e2   :  { %v2288_v46 = vmul.f32 %v3261_v36, %v2287_v2 }
 0x8e3   :  { %v3263_v10 = vpop.eup %3262 }
 0x8e4   :  { %v2289_v40 = vadd.f32 %v3259_v17, %v2288_v46  ;;  %v2394_v37 = vadd.f32 1.0, %v3263_v10 }
 0x8e6   :  { %v2299_v56 = vsel %vm2297_vm9, %v2289_v40, 0.0  ;;  %3266 = vrcp.f32 %v2394_v37 }
 0x8e7   :  { %v2300_v28 = vpack.c.bf16 %v2299_v56, %v2299_v56 }
 0x8e9   :  { %2302 = vst [vmem:[#allocation16 + $0x1c] sm:$0xf] %v2300_v28 }
 0x8ea   :  { %3501 = shalt.err (!%p3498_p10)
}
 0x8eb   :  { %s3502_s15 = scalar_lea.hbm %s4684_s7, 512 }
 0x8ec   :  { %p3503_p11 = scmp.ne.s32.totalorder %s4684_s7, %s3502_s15  ;;  %p3506_p12 = scmp.lt.u32.totalorder %s3502_s15, %s4684_s7 }
 0x8ee   :  { %p3508_p13 = pnand %p3506_p12, %p3503_p11 }
 0x8f0   :  { %3511 = shalt.err (!%p3508_p13)
}
 0x8f1   :  { %s3561_s14 = smov 64   ;;  %s3562_s16 = smov 4   ;;  %v3265_v9 = vpop.eup %3264  ;;  %v2307_v26 = vunpack.c.l.bf16 %v4604_v32  ;;  %v2404_v43 = vadd.f32 %v4443_v20, %v2384_v58  ;;  %v2416_v31 = vpop.permute.xlu1 %2415 }
 0x8f2   :  { %2435 = dma.vmem_to_hbm [thread:$0]  %s2430_s28, 512, %s4684_s7, [#allocation6], %s3561_s14, %s3561_s14, %s3562_s16   ;;  %v3267_v45 = vpop.eup %3266  ;;  %v2401_v27 = vadd.f32 1.0, %v3265_v9  ;;  %vm2417_vm10 = vcmp.eq.s32.totalorder %v2416_v31, 1 }
 0x8f3   :  { %v2405_v3 = vmul.f32 %v3267_v45, %v2404_v43  ;;  %s3563_s13 = smov [#allocation17]  }
 0x8f4   :  { %s2445_s7 = sshll.u32 %s3563_s13, 4  ;;  %s2446_s7 = int_to_ptr.vmem [resolvable:$true] %s2445_s7 }
 0x8f5   :  { %v2406_v62 = vadd.f32 %v2405_v3, %v2307_v26  ;;  %s3512_s2 = scalar_lea.vmem %s2446_s7, 512  ;;  %p3517_p1 = scmp.lt.s32.totalorder %s2446_s7, %s2446_s7 }
 0x8f6   :  { %p3513_p0 = scmp.ne.s32.totalorder %s2446_s7, %s3512_s2  ;;  %p3518_p2 = scmp.lt.s32.totalorder %s3512_s2, %s3512_s2 }
 0x8f7   :  { %3268 = vtanh.f32 %v2406_v62 }
 0x8f8   :  { %3270 = vrcp.f32 %v2401_v27  ;;  %p3519_p3 = por %p3518_p2, %p3517_p1 }
 0x8fa   :  { %p3520_p4 = pnand %p3519_p3, %p3513_p0 }
 0x901   :  { %v3269_v19 = vpop.eup %3268 }
 0x902   :  { %v2408_v63 = vsub.f32 %v4637_v8, %v3269_v19  ;;  %v3271_v29 = vpop.eup %3270 }
 0x904   :  { %v2409_v60 = vmul.f32 %v3271_v29, %v2408_v63 }
 0x906   :  { %v2410_v35 = vadd.f32 %v3269_v19, %v2409_v60 }
 0x908   :  { %v2419_v22 = vsel %vm2417_vm10, %v2410_v35, 0.0 }
 0x909   :  { %v2420_v32 = vpack.c.bf16 %v2419_v22, %v2419_v22 }
 0x90b   :  { %2421 = vst [vmem:[#allocation17] sm:$0xf] %v2420_v32 }
 0x90c   :  { %3523 = shalt.err (!%p3520_p4)
}
 0x90d   :  { %s3524_s18 = scalar_lea.hbm %s4685_s8, 512 }
 0x90e   :  { %p3525_p5 = scmp.ne.s32.totalorder %s4685_s8, %s3524_s18  ;;  %p3528_p6 = scmp.lt.u32.totalorder %s3524_s18, %s4685_s8 }
 0x910   :  { %p3530_p7 = pnand %p3528_p6, %p3525_p5 }
 0x912   :  { %3533 = shalt.err (!%p3530_p7)
}
 0x913   :  { %2451 = dma.vmem_to_hbm [thread:$0]  %s2446_s7, 512, %s4685_s8, [#allocation18], %s3561_s14, %s3561_s14, %s3562_s16  }
 0x914   :  { %3542 = dma.done.wait [#allocation6], 512  }
 0x915   :  { %3543 = vsyncadd [#allocation6], 4294966784 }
 0x916   :  { %3544 = dma.done.wait [#allocation18], 512  }
 0x917   :  { %3545 = vsyncadd [#allocation18], 4294966784 }
 0x918   :  { %2458 = vsyncpa [#allocation5], 1 }
 0x919   :  { %2459 = vsyncpa [#allocation8], 1 }
 0x91a   :  { %2460 = vsyncpa [#allocation11], 1 }
 0x91b   :  { %2461 = vsyncpa [#allocation14], 1 }
 0x91c   :  { %2462 = vsyncpa [#allocation6], 1 }
 0x91d   :  { %2463 = vsyncpa [#allocation18], 1 }

// kernel: rnn_block_forward.7
= control target key start
LH: loop header
LB: loop body
LE: loop exit
PB: predicated region body
PF: predicated region fallthrough
CT: control target
= control target key end

     0   :  { %14 = vsyncpa [#allocation5], 0  ;;  %s4659_s0 = inlined_call_operand.hbm [shape: bf16[8,8,768], index: 0, kind: input, shape index: {}, may-alias: {0,1}]   ;;  %s4660_s1 = inlined_call_operand.hbm [shape: bf16[8,8,768], index: 1, kind: input, shape index: {}, may-alias: {0,1}]   ;;  %s4661_s2 = inlined_call_operand.hbm [shape: bf16[128,384], index: 2, kind: input, shape index: {}]   ;;  %s4662_s3 = inlined_call_operand.hbm [shape: bf16[128,384], index: 3, kind: input, shape index: {}]   ;;  %s4663_s4 = inlined_call_operand.hbm [shape: f32[1,128], index: 4, kind: input, shape index: {}]   ;;  %s4664_s5 = inlined_call_operand.hbm [shape: f32[1,128], index: 5, kind: input, shape index: {}]   ;;  %s4665_s6 = inlined_call_operand.hbm [shape: s32[8,1], index: 6, kind: input, shape index: {}]   ;;  %s4666_s7 = inlined_call_operand.hbm [shape: f32[8,8,128], index: 7, kind: output, shape index: {0}]   ;;  %s4667_s8 = inlined_call_operand.hbm [shape: f32[8,8,128], index: 8, kind: output, shape index: {1}]  }
   0x1   :  { %15 = vsyncpa [#allocation8], 0 }
   0x2   :  { %16 = vsyncpa [#allocation11], 0 }
   0x3   :  { %17 = vsyncpa [#allocation14], 0 }
   0x4   :  { %18 = vsyncpa [#allocation6], 0 }
   0x5   :  { %19 = vsyncpa [#allocation18], 0  ;;  %s3595_s29 = scalar_lea.hbm %s4660_s1, 192  ;;  %s3529_s30 = smov [#allocation7]  }
   0x6   :  { %s43_s9 = sshll.u32 %s3529_s30, 4  ;;  %s3530_s10 = smov [#allocation10]   ;;  %s44_s9 = int_to_ptr.vmem [resolvable:$true] %s43_s9 }
   0x7   :  { %s67_s11 = sshll.u32 %s3530_s10, 4  ;;  %s3340_s14 = scalar_lea.hbm %s4660_s1, 1728  ;;  %s3597_s11 = int_to_ptr.vmem [resolvable:$true] %s67_s11 }
   0x8   :  { %p3317_p0 = scmp.ne.s32.totalorder %s3595_s29, %s3340_s14  ;;  %s3318_s17 = scalar_lea.hbm %s4660_s1, 3072 }
   0x9   :  { %p3319_p1 = scmp.lt.u32.totalorder %s3595_s29, %s4660_s1  ;;  %p3320_p2 = scmp.lt.u32.totalorder %s3318_s17, %s3340_s14 }
   0xa   :  { %p3322_p4 = scmp.lt.u32.totalorder %s3340_s14, %s3595_s29 }
   0xb   :  { %p3321_p3 = por %p3320_p2, %p3319_p1 }
   0xd   :  { %p3323_p5 = por %p3322_p4, %p3321_p3 }
   0xf   :  { %p3324_p6 = pnand %p3323_p5, %p3317_p0 }
  0x11   :  { %3327 = shalt.err (!%p3324_p6)
}
  0x12   :  { %s3328_s20 = scalar_lea.vmem %s44_s9, 1536  ;;  %p3333_p8 = scmp.lt.s32.totalorder %s44_s9, %s44_s9 }
  0x13   :  { %p3329_p7 = scmp.ne.s32.totalorder %s44_s9, %s3328_s20  ;;  %p3334_p9 = scmp.lt.s32.totalorder %s3328_s20, %s3328_s20 }
  0x15   :  { %p3335_p10 = por %p3334_p9, %p3333_p8 }
  0x17   :  { %p3336_p11 = pnand %p3335_p10, %p3329_p7 }
  0x19   :  { %3339 = shalt.err (!%p3336_p11)
}
  0x1a   :  { %s3531_s21 = smov 384   ;;  %s3532_s22 = smov 192  }
  0x1b   :  { %s3533_s23 = smov 12   ;;  %s3341_s25 = scalar_lea.hbm %s4662_s3, 3072 }
  0x1c   :  { %49 = dma.hbm_to_vmem [thread:$0]  %s3595_s29, 1536, %s44_s9, [#allocation8], %s3531_s21, %s3532_s22, %s3533_s23  }
  0x1d   :  { %p3342_p12 = scmp.ne.s32.totalorder %s4662_s3, %s3341_s25  ;;  %p3345_p13 = scmp.lt.u32.totalorder %s3341_s25, %s4662_s3 }
  0x1f   :  { %p3347_p0 = pnand %p3345_p13, %p3342_p12 }
  0x21   :  { %3350 = shalt.err (!%p3347_p0)
}
  0x22   :  { %s3351_s10 = scalar_lea.vmem %s3597_s11, 3072  ;;  %p3356_p2 = scmp.lt.s32.totalorder %s3597_s11, %s3597_s11 }
  0x23   :  { %p3352_p1 = scmp.ne.s32.totalorder %s3597_s11, %s3351_s10  ;;  %p3357_p3 = scmp.lt.s32.totalorder %s3351_s10, %s3351_s10 }
  0x25   :  { %p3358_p4 = por %p3357_p3, %p3356_p2 }
  0x27   :  { %p3359_p5 = pnand %p3358_p4, %p3352_p1 }
  0x29   :  { %3362 = shalt.err (!%p3359_p5)
}
  0x2a   :  { %73 = dma.hbm_to_vmem [thread:$0]  %s4662_s3, 3072, %s3597_s11, [#allocation11], %s3532_s22, %s3532_s22, %s3533_s23  }
  0x2b   :  { %s3534_s12 = smov [#allocation13]   ;;  %s3535_s14 = smov [#allocation4]  }
  0x2c   :  { %s90_s13 = sshll.u32 %s3534_s12, 4  ;;  %s25_s15 = sshll.u32 %s3535_s14, 4  ;;  %s91_s13 = int_to_ptr.vmem [resolvable:$true] %s90_s13  ;;  %s3635_s15 = int_to_ptr.vmem [resolvable:$true] %s25_s15 }
  0x2d   :  { %s3363_s18 = scalar_lea.hbm %s4664_s5, 16 }
  0x2e   :  { %p3364_p6 = scmp.ne.s32.totalorder %s4664_s5, %s3363_s18  ;;  %p3367_p7 = scmp.lt.u32.totalorder %s3363_s18, %s4664_s5 }
  0x30   :  { %p3369_p8 = pnand %p3367_p7, %p3364_p6 }
  0x32   :  { %3372 = shalt.err (!%p3369_p8)
}
  0x33   :  { %s3373_s3 = scalar_lea.vmem %s91_s13, 16  ;;  %s3377_s11 = scalar_lea.vmem %s91_s13, 32 }
  0x34   :  { %p3374_p9 = scmp.ne.s32.totalorder %s91_s13, %s3373_s3  ;;  %p3378_p10 = scmp.lt.s32.totalorder %s91_s13, %s91_s13 }
  0x35   :  { %p3379_p11 = scmp.lt.s32.totalorder %s3377_s11, %s3373_s3 }
  0x37   :  { %p3380_p12 = por %p3379_p11, %p3378_p10 }
  0x39   :  { %p3381_p13 = pnand %p3380_p12, %p3374_p9 }
  0x3b   :  { %3384 = shalt.err (!%p3381_p13)
}
  0x3c   :  { %93 = dma.hbm_to_vmem [thread:$0]  %s4664_s5, 16, %s91_s13, [#allocation14]  }
  0x3d   :  { %s3385_s30 = scalar_lea.hbm %s4659_s0, 1536  ;;  %s3387_s14 = scalar_lea.hbm %s4659_s0, 3072 }
  0x3e   :  { %p3386_p0 = scmp.ne.s32.totalorder %s4659_s0, %s3385_s30  ;;  %p3388_p1 = scmp.lt.u32.totalorder %s3387_s14, %s3385_s30 }
  0x3f   :  { %p3389_p2 = scmp.lt.u32.totalorder %s3385_s30, %s4659_s0 }
  0x41   :  { %p3390_p3 = por %p3389_p2, %p3388_p1 }
  0x43   :  { %p3391_p4 = pnand %p3390_p3, %p3386_p0 }
  0x45   :  { %3394 = shalt.err (!%p3391_p4)
}
  0x46   :  { %s3395_s5 = scalar_lea.vmem %s3635_s15, 1536  ;;  %p3400_p6 = scmp.lt.s32.totalorder %s3635_s15, %s3635_s15 }
  0x47   :  { %p3396_p5 = scmp.ne.s32.totalorder %s3635_s15, %s3395_s5  ;;  %p3401_p7 = scmp.lt.s32.totalorder %s3395_s5, %s3395_s5 }
  0x49   :  { %p3402_p8 = por %p3401_p7, %p3400_p6 }
  0x4b   :  { %p3403_p9 = pnand %p3402_p8, %p3396_p5 }
  0x4d   :  { %3406 = shalt.err (!%p3403_p9)
}
  0x4e   :  { %31 = dma.hbm_to_vmem [thread:$0]  %s4659_s0, 1536, %s3635_s15, [#allocation5], %s3531_s21, %s3532_s22, %s3533_s23  }
  0x4f   :  { %s3536_s19 = smov [#allocation9]   ;;  %s3537_s1 = smov [#allocation12]  }
  0x50   :  { %s55_s20 = sshll.u32 %s3536_s19, 4  ;;  %s80_s24 = sshll.u32 %s3537_s1, 4  ;;  %s56_s20 = int_to_ptr.vmem [resolvable:$true] %s55_s20  ;;  %s81_s24 = int_to_ptr.vmem [resolvable:$true] %s80_s24 }
  0x51   :  { %s3407_s25 = scalar_lea.hbm %s4661_s2, 3072 }
  0x52   :  { %p3408_p10 = scmp.ne.s32.totalorder %s4661_s2, %s3407_s25  ;;  %p3411_p11 = scmp.lt.u32.totalorder %s3407_s25, %s4661_s2 }
  0x54   :  { %p3413_p12 = pnand %p3411_p11, %p3408_p10 }
  0x56   :  { %3416 = shalt.err (!%p3413_p12)
}
  0x57   :  { %s3417_s0 = scalar_lea.vmem %s56_s20, 3072  ;;  %p3422_p0 = scmp.lt.s32.totalorder %s56_s20, %s56_s20 }
  0x58   :  { %p3418_p13 = scmp.ne.s32.totalorder %s56_s20, %s3417_s0  ;;  %p3423_p1 = scmp.lt.s32.totalorder %s3417_s0, %s3417_s0 }
  0x5a   :  { %p3424_p2 = por %p3423_p1, %p3422_p0 }
  0x5c   :  { %p3425_p3 = pnand %p3424_p2, %p3418_p13 }
  0x5e   :  { %3428 = shalt.err (!%p3425_p3)
}
  0x5f   :  { %61 = dma.hbm_to_vmem [thread:$0]  %s4661_s2, 3072, %s56_s20, [#allocation8], %s3532_s22, %s3532_s22, %s3533_s23  }
  0x60   :  { %s3429_s9 = scalar_lea.hbm %s4663_s4, 16 }
  0x61   :  { %p3430_p4 = scmp.ne.s32.totalorder %s4663_s4, %s3429_s9  ;;  %p3433_p5 = scmp.lt.u32.totalorder %s3429_s9, %s4663_s4 }
  0x63   :  { %p3435_p6 = pnand %p3433_p5, %p3430_p4 }
  0x65   :  { %3438 = shalt.err (!%p3435_p6)
}
  0x66   :  { %s3439_s5 = scalar_lea.vmem %s81_s24, 16  ;;  %s3443_s13 = scalar_lea.vmem %s81_s24, 32 }
  0x67   :  { %p3440_p7 = scmp.ne.s32.totalorder %s81_s24, %s3439_s5  ;;  %p3444_p8 = scmp.lt.s32.totalorder %s81_s24, %s81_s24 }
  0x68   :  { %p3445_p9 = scmp.lt.s32.totalorder %s3443_s13, %s3439_s5 }
  0x6a   :  { %p3446_p10 = por %p3445_p9, %p3444_p8 }
  0x6c   :  { %p3447_p11 = pnand %p3446_p10, %p3440_p7 }
  0x6e   :  { %3450 = shalt.err (!%p3447_p11)
}
  0x6f   :  { %83 = dma.hbm_to_vmem [thread:$0]  %s4663_s4, 16, %s81_s24, [#allocation11]  }
  0x70   :  { %s3538_s23 = smov [#allocation15]   ;;  %s3451_s1 = scalar_lea.hbm %s4665_s6, 128 }
  0x71   :  { %s100_s18 = sshll.u32 %s3538_s23, 4  ;;  %p3452_p12 = scmp.ne.s32.totalorder %s4665_s6, %s3451_s1  ;;  %s101_s18 = int_to_ptr.vmem [resolvable:$true] %s100_s18 }
  0x72   :  { %p3455_p13 = scmp.lt.u32.totalorder %s3451_s1, %s4665_s6 }
  0x74   :  { %p3457_p0 = pnand %p3455_p13, %p3452_p12 }
  0x76   :  { %3460 = shalt.err (!%p3457_p0)
}
  0x77   :  { %s3461_s27 = scalar_lea.vmem %s101_s18, 128  ;;  %p3466_p2 = scmp.lt.s32.totalorder %s101_s18, %s101_s18 }
  0x78   :  { %p3462_p1 = scmp.ne.s32.totalorder %s101_s18, %s3461_s27  ;;  %p3467_p3 = scmp.lt.s32.totalorder %s3461_s27, %s3461_s27 }
  0x7a   :  { %p3468_p4 = por %p3467_p3, %p3466_p2 }
  0x7c   :  { %p3469_p5 = pnand %p3468_p4, %p3462_p1 }
  0x7e   :  { %3472 = shalt.err (!%p3469_p5)
}
  0x7f   :  { %103 = dma.hbm_to_vmem [thread:$0]  %s4665_s6, 128, %s101_s18, [#allocation14]  }
  0x80   :  { %3517 = dma.done.wait [#allocation5], 1536  }
  0x81   :  { %3518 = vsyncadd [#allocation5], 4294965760 }
  0x82   :  { %3519 = dma.done.wait [#allocation8], 4608  }
  0x83   :  { %3520 = vsyncadd [#allocation8], 4294962688 }
  0x84   :  { %3521 = dma.done.wait [#allocation11], 3088  }
  0x85   :  { %3522 = vsyncadd [#allocation11], 4294964208 }
  0x86   :  { %3523 = dma.done.wait [#allocation14], 144  }
  0x87   :  { %3524 = vsyncadd [#allocation14], 4294967152  ;;  %v4670_v0 = vmov 0.0   ;;  %v4668_v1 = vmov 0   ;;  %vm3541_vm0 = vmmov 0   ;;  %v3542_v28 = vmov 0.0|0.0  }
  0x88   :  { %2692 = vmatprep.subr.bf16.mxu1 %v4670_v0  ;;  %374 = vmatprep.mubr.bf16.mxu0 %v4668_v1  ;;  %v3717_v2 = vld [vmem:[#allocation9 + $0x4] ss:$12 sps:$4 sm:$0xff]   ;;  %v3719_v3 = vld [vmem:[#allocation9] ss:$12 sps:$4 sm:$0xff]   ;;  %v3722_v4 = vld [vmem:[#allocation9 + $0x1c] ss:$12 sps:$4 sm:$0xff]  }
  0x89   :  { %2708 = vmatprep.mubr.msk.bf16.mxu1 %vm3541_vm0, %v4670_v0  ;;  %3030 = vset.pattern.permute.xlu0 %v4668_v1  ;;  %v3725_v5 = vld [vmem:[#allocation9 + $0x18] ss:$12 sps:$4 sm:$0xff]   ;;  %v3728_v6 = vld [vmem:[#allocation9 + $0x34] ss:$12 sps:$4 sm:$0xff]   ;;  %v3731_v7 = vld [vmem:[#allocation9 + $0x30] ss:$12 sps:$4 sm:$0xff]  }
  0x8a   :  { %3031 = vset.pattern.permute.xlu1 %v4668_v1  ;;  %342 = vmatprep.subr.bf16.mxu0 %v3717_v2  ;;  %v3734_v8 = vld [vmem:[#allocation9 + $0x4c] ss:$12 sps:$4 sm:$0xff]   ;;  %v3736_v9 = vld [vmem:[#allocation9 + $0x8] ss:$12 sps:$4 sm:$0xff]   ;;  %v3743_v11 = vld [vmem:[#allocation9 + $0x64] ss:$12 sps:$4 sm:$0xff]  }
  0x8b   :  { %343 = vmatpush1.bf16.msra.mxu0 %v3719_v3  ;;  %v3739_v10 = vld [vmem:[#allocation9 + $0x48] ss:$12 sps:$4 sm:$0xff]   ;;  %2693 = vmatpush3.bf16.msra.mxu1 %v3736_v9  ;;  %v3746_v12 = vld [vmem:[#allocation9 + $0x20] ss:$12 sps:$4 sm:$0xff]   ;;  %v3752_v14 = vld [vmem:[#allocation9 + $0x38] ss:$12 sps:$4 sm:$0xff]  }
  0x8c   :  { %344 = vmatprep.subr.bf16.mxu0 %v3722_v4  ;;  %2694 = vmatprep.subr.bf16.mxu1 %v4670_v0  ;;  %v3748_v13 = vld [vmem:[#allocation9 + $0x60] ss:$12 sps:$4 sm:$0xff]   ;;  %v3755_v15 = vld [vmem:[#allocation9 + $0x7c] ss:$12 sps:$4 sm:$0xff]   ;;  %v3759_v16 = vld [vmem:[#allocation9 + $0x78] ss:$12 sps:$4 sm:$0xff]  }
  0x8d   :  { %v3762_v17 = vld [vmem:[#allocation9 + $0x50] ss:$12 sps:$4 sm:$0xff]   ;;  %v3765_v18 = vld [vmem:[#allocation9 + $0x94] ss:$12 sps:$4 sm:$0xff]   ;;  %v3775_v21 = vld [vmem:[#allocation9 + $0xac] ss:$12 sps:$4 sm:$0xff]  }
  0x8e   :  { %v3768_v19 = vld [vmem:[#allocation9 + $0x90] ss:$12 sps:$4 sm:$0xff]   ;;  %v3772_v20 = vld [vmem:[#allocation9 + $0x68] ss:$12 sps:$4 sm:$0xff]   ;;  %4711 = vst [vmem:[#allocation26_spill] sm:$0xff] %v3775_v21  ;;  %v208_v60 = vld [vmem:[#allocation4] sm:$0xff] }
  0x8f   :  { %345 = vmatpush1.bf16.msra.mxu0 %v3725_v5  ;;  %2695 = vmatpush3.bf16.msra.mxu1 %v3746_v12  ;;  %4710 = vst [vmem:[#allocation25_spill] sm:$0xff] %v3768_v19  ;;  %v3778_v22 = vld [vmem:[#allocation9 + $0xa8] ss:$12 sps:$4 sm:$0xff]   ;;  %v3782_v23 = vld [vmem:[#allocation9 + $0x80] ss:$12 sps:$4 sm:$0xff]   ;;  %v210_v61 = vunpack.c.l.bf16 %v208_v60  ;;  %s3543_s6 = smov [#allocation16]  }
  0x90   :  { %346 = vmatprep.subr.bf16.mxu0 %v3728_v6  ;;  %2696 = vmatprep.subr.bf16.mxu1 %v4670_v0  ;;  %4712 = vst [vmem:[#allocation27_spill] sm:$0xff] %v3778_v22  ;;  %v3785_v24 = vld [vmem:[#allocation10 + $0x4] ss:$12 sps:$4 sm:$0xff]   ;;  %v3788_v25 = vld [vmem:[#allocation10] ss:$12 sps:$4 sm:$0xff]   ;;  %s2413_s28 = sshll.u32 %s3543_s6, 4  ;;  %s2414_s28 = int_to_ptr.vmem [resolvable:$true] %s2413_s28 }
  0x91   :  { %4713 = vst [vmem:[#allocation28_spill] sm:$0xff] %v3785_v24  ;;  %v3792_v26 = vld [vmem:[#allocation9 + $0x98] ss:$12 sps:$4 sm:$0xff]   ;;  %v3795_v27 = vld [vmem:[#allocation10 + $0x1c] ss:$12 sps:$4 sm:$0xff]   ;;  %s3473_s30 = scalar_lea.vmem %s2414_s28, 1024  ;;  %p3478_p7 = scmp.lt.s32.totalorder %s2414_s28, %s2414_s28 }
  0x92   :  { %4714 = vst [vmem:[#allocation29_spill] sm:$0xff] %v3792_v26  ;;  %v3799_v29 = vld [vmem:[#allocation10 + $0x18] ss:$12 sps:$4 sm:$0xff]   ;;  %v3803_v30 = vld [vmem:[#allocation9 + $0xb0] ss:$12 sps:$4 sm:$0xff]   ;;  %p3474_p6 = scmp.ne.s32.totalorder %s2414_s28, %s3473_s30  ;;  %p3479_p8 = scmp.lt.s32.totalorder %s3473_s30, %s3473_s30 }
  0x93   :  { %347 = vmatpush1.bf16.msra.mxu0 %v3731_v7  ;;  %2697 = vmatpush3.bf16.msra.mxu1 %v3752_v14  ;;  %4715 = vst [vmem:[#allocation30_spill] sm:$0xff] %v3803_v30  ;;  %v3806_v31 = vld [vmem:[#allocation10 + $0x34] ss:$12 sps:$4 sm:$0xff]   ;;  %v3810_v32 = vld [vmem:[#allocation15] sm:$0xff]  ;;  %v3814_v33 = vld [vmem:[#allocation10 + $0x30] ss:$12 sps:$4 sm:$0xff]  }
  0x94   :  { %348 = vmatprep.subr.bf16.mxu0 %v3734_v8  ;;  %2698 = vmatprep.subr.bf16.mxu1 %v4670_v0  ;;  %vm451_vm1 = vcmp.gt.s32.totalorder %v3810_v32, 0  ;;  %v3817_v34 = vld [vmem:[#allocation10 + $0x8] ss:$12 sps:$4 sm:$0xff]   ;;  %vm705_vm2 = vcmp.gt.s32.totalorder %v3810_v32, 7  ;;  %v3824_v36 = vld [vmem:[#allocation10 + $0x4c] ss:$12 sps:$4 sm:$0xff]   ;;  %p3480_p9 = por %p3479_p8, %p3478_p7 }
  0x95   :  { %v3820_v35 = vsel %vm451_vm1, 1, %v4668_v1  ;;  %v706_v37 = vsel %vm705_vm2, 1, %v4668_v1  ;;  %v3831_v38 = vld [vmem:[#allocation10 + $0x48] ss:$12 sps:$4 sm:$0xff]   ;;  %v3834_v39 = vld [vmem:[#allocation10 + $0x20] ss:$12 sps:$4 sm:$0xff]  }
  0x96   :  { %454 = vperm.xlu0 %3030, %v3820_v35   ;;  %vm1068_vm3 = vcmp.gt.s32.totalorder %v3810_v32, 2  ;;  %v3838_v40 = vld [vmem:[#allocation10 + $0x64] ss:$12 sps:$4 sm:$0xff]   ;;  %v3847_v42 = vld [vmem:[#allocation10 + $0x60] ss:$12 sps:$4 sm:$0xff]   ;;  %vm1310_vm4 = vcmp.gt.s32.totalorder %v3810_v32, 3  ;;  %p3481_p10 = pnand %p3480_p9, %p3474_p6 }
  0x97   :  { %349 = vmatpush1.bf16.msra.mxu0 %v3739_v10  ;;  %2699 = vmatpush3.bf16.msra.mxu1 %v3762_v17  ;;  %v3844_v41 = vsel %vm1068_vm3, 1, %v4668_v1  ;;  %v3850_v43 = vld [vmem:[#allocation10 + $0x38] ss:$12 sps:$4 sm:$0xff]   ;;  %v3854_v44 = vld [vmem:[#allocation10 + $0x7c] ss:$12 sps:$4 sm:$0xff]   ;;  %v3859_v45 = vsel %vm1310_vm4, 1, %v4668_v1 }
  0x98   :  { %350 = vmatprep.subr.bf16.mxu0 %v3743_v11  ;;  %2700 = vmatprep.subr.bf16.mxu1 %v4670_v0  ;;  %v3862_v46 = vld [vmem:[#allocation10 + $0x78] ss:$12 sps:$4 sm:$0xff]   ;;  %v3865_v47 = vld [vmem:[#allocation10 + $0x50] ss:$12 sps:$4 sm:$0xff]   ;;  %vm1431_vm5 = vcmp.gt.s32.totalorder %v3810_v32, 4  ;;  %vm1189_vm6 = vcmp.gt.s32.totalorder %v3810_v32, 5 }
  0x99   :  { %v3869_v48 = vld [vmem:[#allocation10 + $0x94] ss:$12 sps:$4 sm:$0xff]   ;;  %v3874_v49 = vsel %vm1431_vm5, 1, %v4668_v1  ;;  %v3877_v50 = vld [vmem:[#allocation10 + $0x90] ss:$12 sps:$4 sm:$0xff]   ;;  %v1190_v53 = vsel %vm1189_vm6, 1, %v4668_v1 }
  0x9a   :  { %708 = vperm.xlu0 %3030, %v706_v37   ;;  %v3880_v51 = vld [vmem:[#allocation10 + $0x68] ss:$12 sps:$4 sm:$0xff]   ;;  %v3884_v52 = vld [vmem:[#allocation10 + $0xac] ss:$12 sps:$4 sm:$0xff]   ;;  %vm947_vm7 = vcmp.gt.s32.totalorder %v3810_v32, 6  ;;  %vm826_vm8 = vcmp.gt.s32.totalorder %v3810_v32, 1 }
  0x9b   :  { %351 = vmatpush1.bf16.msra.mxu0 %v3748_v13  ;;  %2701 = vmatpush3.bf16.msra.mxu1 %v3772_v20  ;;  %v3890_v54 = vld [vmem:[#allocation10 + $0xa8] ss:$12 sps:$4 sm:$0xff]   ;;  %v3893_v55 = vld [vmem:[#allocation10 + $0x80] ss:$12 sps:$4 sm:$0xff]   ;;  %v948_v56 = vsel %vm947_vm7, 1, %v4668_v1  ;;  %v827_v59 = vsel %vm826_vm8, 1, %v4668_v1 }
  0x9c   :  { %352 = vmatprep.subr.bf16.mxu0 %v3755_v15  ;;  %2702 = vmatprep.subr.bf16.mxu1 %v4670_v0  ;;  %v3901_v57 = vld [vmem:[#allocation10 + $0x98] ss:$12 sps:$4 sm:$0xff]   ;;  %v3907_v58 = vld [vmem:[#allocation10 + $0xb0] ss:$12 sps:$4 sm:$0xff]  }
  0x9d   :  { %829 = vperm.xlu1 %3031, %v827_v59  }
  0x9e   :  { %1071 = vperm.xlu0 %3030, %v3844_v41  }
  0x9f   :  { %353 = vmatpush1.bf16.msra.mxu0 %v3759_v16  ;;  %2703 = vmatpush3.bf16.msra.mxu1 %v3782_v23 }
  0xa0   :  { %354 = vmatprep.subr.bf16.mxu0 %v3765_v18  ;;  %2704 = vmatprep.subr.bf16.mxu1 %v4670_v0 }
  0xa1   :  { %950 = vperm.xlu1 %3031, %v948_v56  }
  0xa2   :  { %1313 = vperm.xlu0 %3030, %v3859_v45  }
  0xa3   :  { %355 = vmatpush1.bf16.msra.mxu0 %v3768_v19  ;;  %2705 = vmatpush3.bf16.msra.mxu1 %v3792_v26 }
  0xa4   :  { %356 = vmatprep.subr.bf16.mxu0 %v3775_v21  ;;  %2706 = vmatprep.subr.bf16.mxu1 %v4670_v0 }
  0xa5   :  { %1192 = vperm.xlu1 %3031, %v1190_v53  }
  0xa6   :  { %1555 = vperm.xlu0 %3030, %v3874_v49  }
  0xa7   :  { %357 = vmatpush1.bf16.msra.mxu0 %v3778_v22  ;;  %2707 = vmatpush3.bf16.msra.mxu1 %v3803_v30 }
  0xa8   :  { %595 = vmatprep.subr.bf16.mxu0 %v3785_v24  ;;  %2712 = vmatprep.subr.bf16.mxu1 %v4670_v0 }
  0xa9   :  { %1434 = vperm.xlu1 %3031, %v3874_v49  }
  0xaa   :  { %375 = vmatmul.mubr.bf16.vlgmr.msra.gmra.mrb[0].mxu0 %v3542_v28  ;;  %2709 = vmatmul.mubr.bf16.vlgmr.msra.gmra.mrb[0].mxu1 %v3542_v28 }
  0xab   :  { %596 = vmatpush1.bf16.msra.mxu0 %v3788_v25  ;;  %627 = vmatprep.mubr.bf16.mxu0 %v4668_v1 }
  0xac   :  { %597 = vmatprep.subr.bf16.mxu0 %v3795_v27  ;;  %2713 = vmatpush3.bf16.msra.mxu1 %v3817_v34 }
  0xad   :  { %2714 = vmatprep.subr.bf16.mxu1 %v4670_v0  ;;  %2728 = vmatprep.mubr.msk.bf16.mxu1 %vm3541_vm0, %v4670_v0 }
  0xae   :  { %1797 = vperm.xlu0 %3030, %v1190_v53   ;;  %1676 = vperm.xlu1 %3031, %v3859_v45  }
  0xaf   :  { %598 = vmatpush1.bf16.msra.mxu0 %v3799_v29 }
  0xb0   :  { %599 = vmatprep.subr.bf16.mxu0 %v3806_v31  ;;  %2715 = vmatpush3.bf16.msra.mxu1 %v3834_v39 }
  0xb1   :  { %2716 = vmatprep.subr.bf16.mxu1 %v4670_v0 }
  0xb2   :  { %2039 = vperm.xlu0 %3030, %v948_v56   ;;  %1918 = vperm.xlu1 %3031, %v3844_v41   ;;  %v211_v56 = vunpack.c.h.bf16 %v208_v60 }
  0xb3   :  { %600 = vmatpush1.bf16.msra.mxu0 %v3814_v33 }
  0xb4   :  { %601 = vmatprep.subr.bf16.mxu0 %v3824_v36  ;;  %2717 = vmatpush3.bf16.msra.mxu1 %v3850_v43 }
  0xb5   :  { %2718 = vmatprep.subr.bf16.mxu1 %v4670_v0 }
  0xb6   :  { %2281 = vperm.xlu0 %3030, %v706_v37   ;;  %2160 = vperm.xlu1 %3031, %v827_v59  }
  0xb7   :  { %602 = vmatpush1.bf16.msra.mxu0 %v3831_v38 }
  0xb8   :  { %603 = vmatprep.subr.bf16.mxu0 %v3838_v40  ;;  %2719 = vmatpush3.bf16.msra.mxu1 %v3865_v47 }
  0xb9   :  { %2720 = vmatprep.subr.bf16.mxu1 %v4670_v0 }
  0xba   :  { %2400 = vperm.xlu1 %3031, %v3820_v35   ;;  %v3954_v35 = vld [vmem:[#allocation12] ss:$0 sm:$0xff] }
  0xbb   :  { %604 = vmatpush1.bf16.msra.mxu0 %v3847_v42  ;;  %4716 = vst [vmem:[#allocation31_spill] sm:$0xff] %v3954_v35 }
  0xbc   :  { %605 = vmatprep.subr.bf16.mxu0 %v3854_v44  ;;  %2721 = vmatpush3.bf16.msra.mxu1 %v3880_v51 }
  0xbd   :  { %2722 = vmatprep.subr.bf16.mxu1 %v4670_v0 }
  0xbf   :  { %606 = vmatpush1.bf16.msra.mxu0 %v3862_v46 }
  0xc0   :  { %607 = vmatprep.subr.bf16.mxu0 %v3869_v48  ;;  %2723 = vmatpush3.bf16.msra.mxu1 %v3893_v55 }
  0xc1   :  { %2724 = vmatprep.subr.bf16.mxu1 %v4670_v0 }
  0xc3   :  { %608 = vmatpush1.bf16.msra.mxu0 %v3877_v50 }
  0xc4   :  { %609 = vmatprep.subr.bf16.mxu0 %v3884_v52  ;;  %2725 = vmatpush3.bf16.msra.mxu1 %v3901_v57 }
  0xc5   :  { %2726 = vmatprep.subr.bf16.mxu1 %v4670_v0 }
  0xc7   :  { %610 = vmatpush1.bf16.msra.mxu0 %v3890_v54 }
  0xc8   :  { %722 = vmatprep.subr.bf16.mxu0 %v3717_v2  ;;  %2727 = vmatpush3.bf16.msra.mxu1 %v3907_v58 }
  0xc9   :  { %2732 = vmatprep.subr.bf16.mxu1 %v4670_v0 }
  0xca   :  { %628 = vmatmul.mubr.bf16.vlgmr.msra.gmra.mrb[4].mxu0 %v3542_v28 }
  0xcb   :  { %723 = vmatpush1.bf16.msra.mxu0 %v3719_v3  ;;  %754 = vmatprep.mubr.bf16.mxu0 %v4668_v1 }
  0xcc   :  { %724 = vmatprep.subr.bf16.mxu0 %v3722_v4  ;;  %2729 = vmatmul.mubr.bf16.vlgmr.msra.gmra.mrb[4].mxu1 %v3542_v28 }
  0xcd   :  { %2733 = vmatpush3.bf16.msra.mxu1 %v3736_v9  ;;  %2748 = vmatprep.mubr.msk.bf16.mxu1 %vm3541_vm0, %v4670_v0 }
  0xce   :  { %2734 = vmatprep.subr.bf16.mxu1 %v4670_v0 }
  0xcf   :  { %725 = vmatpush1.bf16.msra.mxu0 %v3725_v5 }
  0xd0   :  { %726 = vmatprep.subr.bf16.mxu0 %v3728_v6 }
  0xd1   :  { %2735 = vmatpush3.bf16.msra.mxu1 %v3746_v12 }
  0xd2   :  { %2736 = vmatprep.subr.bf16.mxu1 %v4670_v0 }
  0xd3   :  { %727 = vmatpush1.bf16.msra.mxu0 %v3731_v7 }
  0xd4   :  { %728 = vmatprep.subr.bf16.mxu0 %v3734_v8 }
  0xd5   :  { %2737 = vmatpush3.bf16.msra.mxu1 %v3752_v14 }
  0xd6   :  { %2738 = vmatprep.subr.bf16.mxu1 %v4670_v0 }
  0xd7   :  { %729 = vmatpush1.bf16.msra.mxu0 %v3739_v10 }
  0xd8   :  { %730 = vmatprep.subr.bf16.mxu0 %v3743_v11 }
  0xd9   :  { %2739 = vmatpush3.bf16.msra.mxu1 %v3762_v17 }
  0xda   :  { %2740 = vmatprep.subr.bf16.mxu1 %v4670_v0 }
  0xdb   :  { %731 = vmatpush1.bf16.msra.mxu0 %v3748_v13 }
  0xdc   :  { %732 = vmatprep.subr.bf16.mxu0 %v3755_v15 }
  0xdd   :  { %2741 = vmatpush3.bf16.msra.mxu1 %v3772_v20 }
  0xde   :  { %2742 = vmatprep.subr.bf16.mxu1 %v4670_v0 }
  0xdf   :  { %733 = vmatpush1.bf16.msra.mxu0 %v3759_v16 }
  0xe0   :  { %734 = vmatprep.subr.bf16.mxu0 %v3765_v18 }
  0xe1   :  { %2743 = vmatpush3.bf16.msra.mxu1 %v3782_v23 }
  0xe2   :  { %2744 = vmatprep.subr.bf16.mxu1 %v4670_v0 }
  0xe3   :  { %735 = vmatpush1.bf16.msra.mxu0 %v3768_v19 }
  0xe4   :  { %736 = vmatprep.subr.bf16.mxu0 %v3775_v21 }
  0xe5   :  { %2745 = vmatpush3.bf16.msra.mxu1 %v3792_v26 }
  0xe6   :  { %2746 = vmatprep.subr.bf16.mxu1 %v4670_v0 }
  0xe7   :  { %737 = vmatpush1.bf16.msra.mxu0 %v3778_v22  ;;  %v3956_v22 = vld [vmem:[#allocation4 + $0x8] ss:$12 sps:$4 sm:$0xff]  }
  0xe8   :  { %843 = vmatprep.subr.bf16.mxu0 %v3785_v24  ;;  %4717 = vst [vmem:[#allocation32_spill] sm:$0xff] %v3956_v22  ;;  %v212_v60 = vunpack.c.l.bf16 %v3956_v22 }
  0xe9   :  { %2747 = vmatpush3.bf16.msra.mxu1 %v3803_v30 }
  0xea   :  { %2752 = vmatprep.subr.bf16.mxu1 %v4670_v0 }
 0x17d   :  { %v376_v62 = vpop.f32.mrb[0].mxu0  ;;  %v417_v53 = vpop.f32.mrb[0].mxu1 }
 0x17e   :  { %v423_v63 = vadd.f32 %v376_v62, %v210_v61  ;;  %v378_v28 = vpop.f32.mrb[1].mxu0  ;;  %v2710_v49 = vpop.f32.mrb[1].mxu1  ;;  %v443_v61 = vadd.f32 %v3954_v35, %v417_v53  ;;  %v461_v62 = vld [vmem:[#allocation7 + $0x54] sm:$0xff] }
 0x17f   :  { %v380_v32 = vpop.f32.mrb[2].mxu0  ;;  %v430_v0 = vadd.f32 %v378_v28, %v211_v56  ;;  %v420_v24 = vpop.f32.mrb[2].mxu1 }
 0x180   :  { %v2478_v37 = vmul.f32 -1.442695, %v423_v63  ;;  %v381_v1 = vpop.f32.mrb[3].mxu0  ;;  %v2711_v45 = vpop.f32.mrb[3].mxu1  ;;  %v463_v32 = vunpack.c.l.bf16 %v461_v62 }
 0x181   :  { %v2479_v30 = vmul.f32 -1.442695, %v430_v0 }
 0x182   :  { %3096 = vpow2.f32 %v2478_v37 }
 0x183   :  { %3098 = vpow2.f32 %v2479_v30 }
 0x18c   :  { %v3097_v41 = vpop.eup %3096 }
 0x18d   :  { %v427_v59 = vadd.f32 1.0, %v3097_v41  ;;  %v3099_v1 = vpop.eup %3098 }
 0x18e   :  { %v434_v24 = vadd.f32 1.0, %v3099_v1  ;;  %v455_v1 = vpop.permute.xlu0 %454 }
 0x18f   :  { %3100 = vrcp.f32 %v427_v59  ;;  %v464_v59 = vunpack.c.h.bf16 %v461_v62  ;;  %vm456_vm9 = vcmp.eq.s32.totalorder %v455_v1, 1 }
 0x190   :  { %vm2536_vm10 = vmpackc.low %vm456_vm9, %vm456_vm9 }
 0x199   :  { %v3101_v63 = vpop.eup %3100 }
 0x19a   :  { %v444_v28 = vmul.f32 %v3101_v63, %v443_v61 }
 0x19c   :  { %v445_v37 = vadd.f32 %v444_v28, %v212_v60 }
 0x19d   :  { %v629_v0 = vpop.f32.mrb[4].mxu0 }
 0x19e   :  { %3102 = vtanh.f32 %v445_v37  ;;  %v676_v56 = vadd.f32 %v629_v0, %v463_v32  ;;  %v631_v30 = vpop.f32.mrb[5].mxu0 }
 0x19f   :  { %v633_v49 = vpop.f32.mrb[6].mxu0  ;;  %3104 = vrcp.f32 %v434_v24  ;;  %v670_v53 = vpop.f32.mrb[4].mxu1  ;;  %v683_v35 = vadd.f32 %v631_v30, %v464_v59 }
 0x1a0   :  { %v2505_v45 = vmul.f32 -1.442695, %v676_v56  ;;  %v634_v41 = vpop.f32.mrb[7].mxu0  ;;  %v2730_v21 = vpop.f32.mrb[5].mxu1 }
 0x1a1   :  { %v673_v26 = vpop.f32.mrb[6].mxu1  ;;  %v2506_v60 = vmul.f32 -1.442695, %v683_v35  ;;  %v4718_v21 = vmov 0.0  }
 0x1a2   :  { %3106 = vpow2.f32 %v2505_v45  ;;  %v2731_v19 = vpop.f32.mrb[7].mxu1  ;;  %v3972_v26 = vld [vmem:[#allocation7 + $0x50] ss:$12 sps:$4 sm:$0xff]  }
 0x1a3   :  { %3108 = vpow2.f32 %v2506_v60  ;;  %v3965_v19 = vld [vmem:[#allocation13] ss:$0 sm:$0xff]  ;;  %v465_v30 = vunpack.c.h.bf16 %v3972_v26  ;;  %v709_v60 = vpop.permute.xlu0 %708 }
 0x1a4   :  { %v696_v35 = vadd.f32 %v3965_v19, %v670_v53  ;;  %vm710_vm11 = vcmp.eq.s32.totalorder %v709_v60, 1 }
 0x1a5   :  { %vm2542_vm12 = vmpackc.low %vm710_vm11, %vm710_vm11 }
 0x1a8   :  { %v3103_v22 = vpop.eup %3102 }
 0x1a9   :  { %v447_v61 = vsub.f32 0.0, %v3103_v22  ;;  %v3105_v63 = vpop.eup %3104 }
 0x1ab   :  { %v448_v28 = vmul.f32 %v3105_v63, %v447_v61 }
 0x1ac   :  { %v3107_v32 = vpop.eup %3106 }
 0x1ad   :  { %v680_v37 = vadd.f32 1.0, %v3107_v32  ;;  %v449_v0 = vadd.f32 %v3103_v22, %v448_v28  ;;  %v4719_v22 = vmov 0   ;;  %v3109_v56 = vpop.eup %3108 }
 0x1ae   :  { %v687_v41 = vadd.f32 1.0, %v3109_v56 }
 0x1af   :  { %3110 = vrcp.f32 %v680_v37  ;;  %v2537_v24 = vpack.c.bf16 %v449_v0, %v449_v0  ;;  %v3960_v62 = vsel %vm456_vm9, %v449_v0, 0.0 }
 0x1b0   :  { %459 = vst [vmem:[#allocation16] sm:$0xff] %v3960_v62 }
 0x1b1   :  { %2538 = vmatmul.mubr.msk.bf16.vlgmr.msra.gmra.mrb[8].mxu0 %vm2536_vm10, %v2537_v24  ;;  %2749 = vmatmul.mubr.msk.bf16.vlgmr.msra.gmra.mrb[8].mxu1 %vm2536_vm10, %v2537_v24 }
 0x1b2   :  { %844 = vmatpush1.bf16.msra.mxu0 %v3788_v25  ;;  %2753 = vmatpush3.bf16.msra.mxu1 %v3817_v34 }
 0x1b3   :  { %845 = vmatprep.subr.bf16.mxu0 %v3795_v27  ;;  %2754 = vmatprep.subr.bf16.mxu1 %v4718_v21 }
 0x1b4   :  { %875 = vmatprep.mubr.bf16.mxu0 %v4719_v22  ;;  %2768 = vmatprep.mubr.msk.bf16.mxu1 %vm3541_vm0, %v4718_v21 }
 0x1b6   :  { %846 = vmatpush1.bf16.msra.mxu0 %v3799_v29  ;;  %2755 = vmatpush3.bf16.msra.mxu1 %v3834_v39 }
 0x1b7   :  { %847 = vmatprep.subr.bf16.mxu0 %v3806_v31  ;;  %2756 = vmatprep.subr.bf16.mxu1 %v4718_v21 }
 0x1b9   :  { %v3111_v49 = vpop.eup %3110 }
 0x1ba   :  { %v697_v45 = vmul.f32 %v3111_v49, %v696_v35  ;;  %848 = vmatpush1.bf16.msra.mxu0 %v3814_v33  ;;  %2757 = vmatpush3.bf16.msra.mxu1 %v3850_v43 }
 0x1bb   :  { %849 = vmatprep.subr.bf16.mxu0 %v3824_v36  ;;  %2758 = vmatprep.subr.bf16.mxu1 %v4718_v21 }
 0x1bc   :  { %v698_v59 = vadd.f32 %v697_v45, %v465_v30 }
 0x1be   :  { %3112 = vtanh.f32 %v698_v59  ;;  %850 = vmatpush1.bf16.msra.mxu0 %v3831_v38  ;;  %2759 = vmatpush3.bf16.msra.mxu1 %v3865_v47 }
 0x1bf   :  { %851 = vmatprep.subr.bf16.mxu0 %v3838_v40  ;;  %2760 = vmatprep.subr.bf16.mxu1 %v4718_v21  ;;  %3114 = vrcp.f32 %v687_v41 }
 0x1c2   :  { %852 = vmatpush1.bf16.msra.mxu0 %v3847_v42  ;;  %2761 = vmatpush3.bf16.msra.mxu1 %v3880_v51 }
 0x1c3   :  { %853 = vmatprep.subr.bf16.mxu0 %v3854_v44  ;;  %2762 = vmatprep.subr.bf16.mxu1 %v4718_v21 }
 0x1c6   :  { %854 = vmatpush1.bf16.msra.mxu0 %v3862_v46  ;;  %2763 = vmatpush3.bf16.msra.mxu1 %v3893_v55 }
 0x1c7   :  { %855 = vmatprep.subr.bf16.mxu0 %v3869_v48  ;;  %2764 = vmatprep.subr.bf16.mxu1 %v4718_v21 }
 0x1c8   :  { %v3113_v53 = vpop.eup %3112 }
 0x1c9   :  { %v700_v61 = vsub.f32 0.0, %v3113_v53  ;;  %v3115_v63 = vpop.eup %3114 }
 0x1ca   :  { %856 = vmatpush1.bf16.msra.mxu0 %v3877_v50  ;;  %2765 = vmatpush3.bf16.msra.mxu1 %v3901_v57 }
 0x1cb   :  { %857 = vmatprep.subr.bf16.mxu0 %v3884_v52  ;;  %2766 = vmatprep.subr.bf16.mxu1 %v4718_v21  ;;  %v701_v1 = vmul.f32 %v3115_v63, %v700_v61 }
 0x1cd   :  { %v702_v28 = vadd.f32 %v3113_v53, %v701_v1 }
 0x1ce   :  { %858 = vmatpush1.bf16.msra.mxu0 %v3890_v54  ;;  %2767 = vmatpush3.bf16.msra.mxu1 %v3907_v58 }
 0x1cf   :  { %v2543_v32 = vpack.c.bf16 %v702_v28, %v702_v28  ;;  %964 = vmatprep.subr.bf16.mxu0 %v3717_v2  ;;  %2772 = vmatprep.subr.bf16.mxu1 %v4718_v21  ;;  %v4004_v37 = vsel %vm710_vm11, %v702_v28, 0.0  ;;  %v4720_v2 = vld [vmem:[#allocation25_spill] sm:$0xff] }
 0x1d0   :  { %714 = vst [vmem:[#allocation17 + $0x38] sm:$0xff] %v4004_v37 }
 0x1d1   :  { %2544 = vmatmul.mubr.msk.bf16.vlgmr.msra.gmra.mrb[12].mxu0 %vm2542_vm12, %v2543_v32  ;;  %2769 = vmatmul.mubr.msk.bf16.vlgmr.msra.gmra.mrb[12].mxu1 %vm2542_vm12, %v2543_v32 }
 0x1d2   :  { %965 = vmatpush1.bf16.msra.mxu0 %v3719_v3  ;;  %2773 = vmatpush3.bf16.msra.mxu1 %v3736_v9  ;;  %v4721_v3 = vld [vmem:[#allocation29_spill] sm:$0xff] }
 0x1d3   :  { %966 = vmatprep.subr.bf16.mxu0 %v3722_v4  ;;  %2774 = vmatprep.subr.bf16.mxu1 %v4718_v21  ;;  %v4722_v4 = vld [vmem:[#allocation26_spill] sm:$0xff] }
 0x1d4   :  { %996 = vmatprep.mubr.bf16.mxu0 %v4719_v22  ;;  %2788 = vmatprep.mubr.msk.bf16.mxu1 %vm3541_vm0, %v4718_v21 }
 0x1d6   :  { %967 = vmatpush1.bf16.msra.mxu0 %v3725_v5  ;;  %2775 = vmatpush3.bf16.msra.mxu1 %v3746_v12  ;;  %v4723_v5 = vld [vmem:[#allocation27_spill] sm:$0xff] }
 0x1d7   :  { %968 = vmatprep.subr.bf16.mxu0 %v3728_v6  ;;  %2776 = vmatprep.subr.bf16.mxu1 %v4718_v21  ;;  %v4724_v6 = vld [vmem:[#allocation30_spill] sm:$0xff] }
 0x1da   :  { %969 = vmatpush1.bf16.msra.mxu0 %v3731_v7  ;;  %2777 = vmatpush3.bf16.msra.mxu1 %v3752_v14  ;;  %v4725_v7 = vld [vmem:[#allocation28_spill] sm:$0xff] }
 0x1db   :  { %970 = vmatprep.subr.bf16.mxu0 %v3734_v8  ;;  %2778 = vmatprep.subr.bf16.mxu1 %v4718_v21  ;;  %v716_v8 = vld [vmem:[#allocation4 + $0xc] sm:$0xff] }
 0x1dc   :  { %v718_v0 = vunpack.c.l.bf16 %v716_v8  ;;  %v719_v63 = vunpack.c.h.bf16 %v716_v8 }
 0x1de   :  { %971 = vmatpush1.bf16.msra.mxu0 %v3739_v10  ;;  %2779 = vmatpush3.bf16.msra.mxu1 %v3762_v17 }
 0x1df   :  { %972 = vmatprep.subr.bf16.mxu0 %v3743_v11  ;;  %2780 = vmatprep.subr.bf16.mxu1 %v4718_v21 }
 0x1e2   :  { %973 = vmatpush1.bf16.msra.mxu0 %v3748_v13  ;;  %2781 = vmatpush3.bf16.msra.mxu1 %v3772_v20 }
 0x1e3   :  { %974 = vmatprep.subr.bf16.mxu0 %v3755_v15  ;;  %2782 = vmatprep.subr.bf16.mxu1 %v4718_v21 }
 0x1e6   :  { %975 = vmatpush1.bf16.msra.mxu0 %v3759_v16  ;;  %2783 = vmatpush3.bf16.msra.mxu1 %v3782_v23 }
 0x1e7   :  { %976 = vmatprep.subr.bf16.mxu0 %v3765_v18  ;;  %2784 = vmatprep.subr.bf16.mxu1 %v4718_v21 }
 0x1ea   :  { %977 = vmatpush1.bf16.msra.mxu0 %v4720_v2  ;;  %2785 = vmatpush3.bf16.msra.mxu1 %v4721_v3 }
 0x1eb   :  { %978 = vmatprep.subr.bf16.mxu0 %v4722_v4  ;;  %2786 = vmatprep.subr.bf16.mxu1 %v4718_v21 }
 0x1ee   :  { %979 = vmatpush1.bf16.msra.mxu0 %v4723_v5  ;;  %2787 = vmatpush3.bf16.msra.mxu1 %v4724_v6  ;;  %v4726_v5 = vld [vmem:[#allocation32_spill] sm:$0xff] }
 0x1ef   :  { %1085 = vmatprep.subr.bf16.mxu0 %v4725_v7  ;;  %2792 = vmatprep.subr.bf16.mxu1 %v4718_v21  ;;  %v837_v7 = vld [vmem:[#allocation7 + $0x48] sm:$0xff]  ;;  %v720_v4 = vunpack.c.h.bf16 %v4726_v5 }
 0x1f0   :  { %v840_v5 = vunpack.c.h.bf16 %v837_v7 }
 0x284   :  { %v756_v24 = vpop.f32.mrb[8].mxu0  ;;  %v797_v35 = vpop.f32.mrb[8].mxu1 }
 0x285   :  { %v803_v56 = vadd.f32 %v756_v24, %v718_v0  ;;  %v758_v30 = vpop.f32.mrb[9].mxu0  ;;  %v2750_v49 = vpop.f32.mrb[9].mxu1  ;;  %v4727_v0 = vld [vmem:[#allocation31_spill] sm:$0xff] }
 0x286   :  { %v760_v45 = vpop.f32.mrb[10].mxu0  ;;  %v800_v41 = vpop.f32.mrb[10].mxu1  ;;  %v810_v1 = vadd.f32 %v758_v30, %v719_v63  ;;  %v817_v24 = vadd.f32 %v4727_v0, %v797_v35 }
 0x287   :  { %v2508_v59 = vmul.f32 -1.442695, %v803_v56  ;;  %v761_v53 = vpop.f32.mrb[11].mxu0  ;;  %v2751_v61 = vpop.f32.mrb[11].mxu1  ;;  %v839_v41 = vunpack.c.l.bf16 %v837_v7  ;;  %v841_v7 = vunpack.c.l.bf16 %v3972_v26 }
 0x288   :  { %v2509_v60 = vmul.f32 -1.442695, %v810_v1 }
 0x289   :  { %3116 = vpow2.f32 %v2508_v59 }
 0x28a   :  { %3118 = vpow2.f32 %v2509_v60 }
 0x293   :  { %v3117_v28 = vpop.eup %3116 }
 0x294   :  { %v807_v32 = vadd.f32 1.0, %v3117_v28  ;;  %v3119_v6 = vpop.eup %3118 }
 0x295   :  { %v814_v53 = vadd.f32 1.0, %v3119_v6 }
 0x296   :  { %3120 = vrcp.f32 %v807_v32 }
 0x2a0   :  { %v3121_v49 = vpop.eup %3120 }
 0x2a1   :  { %v818_v45 = vmul.f32 %v3121_v49, %v817_v24  ;;  %v830_v49 = vpop.permute.xlu1 %829 }
 0x2a2   :  { %vm831_vm13 = vcmp.eq.s32.totalorder %v830_v49, 1  ;;  %v4110_v49 = vld [vmem:[#allocation9 + $0x34] ss:$12 sps:$4 sm:$0xff]  }
 0x2a3   :  { %v819_v56 = vadd.f32 %v818_v45, %v720_v4 }
 0x2a4   :  { %v877_v61 = vpop.f32.mrb[12].mxu0  ;;  %v918_v59 = vpop.f32.mrb[12].mxu1 }
 0x2a5   :  { %3122 = vtanh.f32 %v819_v56  ;;  %v924_v8 = vadd.f32 %v877_v61, %v839_v41  ;;  %v879_v30 = vpop.f32.mrb[13].mxu0  ;;  %v2770_v63 = vpop.f32.mrb[13].mxu1 }
 0x2a6   :  { %v881_v1 = vpop.f32.mrb[14].mxu0  ;;  %v921_v60 = vpop.f32.mrb[14].mxu1  ;;  %3124 = vrcp.f32 %v814_v53  ;;  %v931_v35 = vadd.f32 %v879_v30, %v840_v5 }
 0x2a7   :  { %v2510_v28 = vmul.f32 -1.442695, %v924_v8  ;;  %v882_v32 = vpop.f32.mrb[15].mxu0  ;;  %v2771_v3 = vpop.f32.mrb[15].mxu1 }
 0x2a8   :  { %v2511_v6 = vmul.f32 -1.442695, %v931_v35  ;;  %v951_v60 = vpop.permute.xlu1 %950 }
 0x2a9   :  { %3126 = vpow2.f32 %v2510_v28  ;;  %vm952_vm14 = vcmp.eq.s32.totalorder %v951_v60, 1 }
 0x2aa   :  { %3128 = vpow2.f32 %v2511_v6  ;;  %v4106_v6 = vld [vmem:[#allocation9 + $0x18] ss:$12 sps:$4 sm:$0xff]  }
 0x2af   :  { %v3123_v0 = vpop.eup %3122 }
 0x2b0   :  { %v821_v24 = vsub.f32 %v3960_v62, %v3123_v0  ;;  %v3125_v4 = vpop.eup %3124 }
 0x2b2   :  { %v822_v45 = vmul.f32 %v3125_v4, %v821_v24  ;;  %v4091_v24 = vld [vmem:[#allocation9 + $0x4] ss:$12 sps:$4 sm:$0xff]   ;;  %v4095_v4 = vld [vmem:[#allocation9] ss:$12 sps:$4 sm:$0xff]  }
 0x2b3   :  { %v3127_v56 = vpop.eup %3126 }
 0x2b4   :  { %v823_v41 = vadd.f32 %v3123_v0, %v822_v45  ;;  %v928_v61 = vadd.f32 1.0, %v3127_v56  ;;  %v4118_v45 = vld [vmem:[#allocation9 + $0x4c] ss:$12 sps:$4 sm:$0xff]  }
 0x2b6   :  { %v4046_v53 = vsel %vm831_vm13, %v823_v41, %v3960_v62  ;;  %v833_v8 = vsel %vm831_vm13, %v823_v41, 0.0  ;;  %3130 = vrcp.f32 %v928_v61  ;;  %v3129_v62 = vpop.eup %3128 }
 0x2b7   :  { %835 = vst [vmem:[#allocation16 + $0x8] sm:$0xff] %v833_v8  ;;  %v963_v3 = vpack.c.bf16 %v4046_v53, %v4046_v53  ;;  %v935_v63 = vadd.f32 1.0, %v3129_v62 }
 0x2b9   :  { %997 = vmatmul.mubr.bf16.vlgmr.msra.gmra.mrb[16].mxu0 %v963_v3  ;;  %2789 = vmatmul.mubr.bf16.vlgmr.msra.gmra.mrb[16].mxu1 %v963_v3 }
 0x2ba   :  { %1086 = vmatpush1.bf16.msra.mxu0 %v3788_v25  ;;  %2793 = vmatpush3.bf16.msra.mxu1 %v3817_v34  ;;  %v938_v25 = vadd.f32 %v3965_v19, %v918_v59 }
 0x2bb   :  { %1087 = vmatprep.subr.bf16.mxu0 %v3795_v27  ;;  %2794 = vmatprep.subr.bf16.mxu1 %v4718_v21 }
 0x2bc   :  { %1117 = vmatprep.mubr.bf16.mxu0 %v4719_v22  ;;  %2808 = vmatprep.mubr.msk.bf16.mxu1 %vm3541_vm0, %v4718_v21 }
 0x2be   :  { %1088 = vmatpush1.bf16.msra.mxu0 %v3799_v29  ;;  %2795 = vmatpush3.bf16.msra.mxu1 %v3834_v39 }
 0x2bf   :  { %1089 = vmatprep.subr.bf16.mxu0 %v3806_v31  ;;  %2796 = vmatprep.subr.bf16.mxu1 %v4718_v21 }
 0x2c0   :  { %v3131_v27 = vpop.eup %3130 }
 0x2c1   :  { %v939_v0 = vmul.f32 %v3131_v27, %v938_v25 }
 0x2c2   :  { %1090 = vmatpush1.bf16.msra.mxu0 %v3814_v33  ;;  %2797 = vmatpush3.bf16.msra.mxu1 %v3850_v43 }
 0x2c3   :  { %v940_v30 = vadd.f32 %v939_v0, %v841_v7  ;;  %1091 = vmatprep.subr.bf16.mxu0 %v3824_v36  ;;  %2798 = vmatprep.subr.bf16.mxu1 %v4718_v21 }
 0x2c5   :  { %3132 = vtanh.f32 %v940_v30  ;;  %v4142_v30 = vld [vmem:[#allocation4 + $0x20] ss:$12 sps:$4 sm:$0xff]  }
 0x2c6   :  { %1092 = vmatpush1.bf16.msra.mxu0 %v3831_v38  ;;  %2799 = vmatpush3.bf16.msra.mxu1 %v3865_v47  ;;  %3134 = vrcp.f32 %v935_v63  ;;  %v1079_v63 = vld [vmem:[#allocation7 + $0x3c] sm:$0xff] }
 0x2c7   :  { %1093 = vmatprep.subr.bf16.mxu0 %v3838_v40  ;;  %2800 = vmatprep.subr.bf16.mxu1 %v4718_v21 }
 0x2ca   :  { %1094 = vmatpush1.bf16.msra.mxu0 %v3847_v42  ;;  %2801 = vmatpush3.bf16.msra.mxu1 %v3880_v51 }
 0x2cb   :  { %1095 = vmatprep.subr.bf16.mxu0 %v3854_v44  ;;  %2802 = vmatprep.subr.bf16.mxu1 %v4718_v21 }
 0x2ce   :  { %1096 = vmatpush1.bf16.msra.mxu0 %v3862_v46  ;;  %2803 = vmatpush3.bf16.msra.mxu1 %v3893_v55 }
 0x2cf   :  { %v3133_v29 = vpop.eup %3132  ;;  %1097 = vmatprep.subr.bf16.mxu0 %v3869_v48  ;;  %2804 = vmatprep.subr.bf16.mxu1 %v4718_v21 }
 0x2d0   :  { %v942_v26 = vsub.f32 %v4004_v37, %v3133_v29  ;;  %v3135_v59 = vpop.eup %3134 }
 0x2d2   :  { %1098 = vmatpush1.bf16.msra.mxu0 %v3877_v50  ;;  %2805 = vmatpush3.bf16.msra.mxu1 %v3901_v57  ;;  %v943_v1 = vmul.f32 %v3135_v59, %v942_v26  ;;  %v962_v26 = vunpack.c.l.bf16 %v4142_v30  ;;  %v4733_v59 = vld [vmem:[#allocation31_spill] sm:$0xff] }
 0x2d3   :  { %1099 = vmatprep.subr.bf16.mxu0 %v3884_v52  ;;  %2806 = vmatprep.subr.bf16.mxu1 %v4718_v21 }
 0x2d4   :  { %v944_v28 = vadd.f32 %v3133_v29, %v943_v1 }
 0x2d6   :  { %1100 = vmatpush1.bf16.msra.mxu0 %v3890_v54  ;;  %2807 = vmatpush3.bf16.msra.mxu1 %v3907_v58  ;;  %v4087_v32 = vsel %vm952_vm14, %v944_v28, %v4004_v37  ;;  %v954_v5 = vsel %vm952_vm14, %v944_v28, 0.0  ;;  %v4099_v37 = vld [vmem:[#allocation9 + $0x1c] ss:$12 sps:$4 sm:$0xff]  }
 0x2d7   :  { %956 = vst [vmem:[#allocation17 + $0x30] sm:$0xff] %v954_v5  ;;  %v1084_v35 = vpack.c.bf16 %v4087_v32, %v4087_v32  ;;  %1206 = vmatprep.subr.bf16.mxu0 %v4091_v24  ;;  %2812 = vmatprep.subr.bf16.mxu1 %v4718_v21  ;;  %v1081_v5 = vunpack.c.l.bf16 %v1079_v63 }
 0x2d9   :  { %1118 = vmatmul.mubr.bf16.vlgmr.msra.gmra.mrb[20].mxu0 %v1084_v35  ;;  %2809 = vmatmul.mubr.bf16.vlgmr.msra.gmra.mrb[20].mxu1 %v1084_v35 }
 0x2da   :  { %1207 = vmatpush1.bf16.msra.mxu0 %v4095_v4  ;;  %2813 = vmatpush3.bf16.msra.mxu1 %v3736_v9  ;;  %v4114_v9 = vld [vmem:[#allocation9 + $0x30] ss:$12 sps:$4 sm:$0xff]  }
 0x2db   :  { %1208 = vmatprep.subr.bf16.mxu0 %v4099_v37  ;;  %2814 = vmatprep.subr.bf16.mxu1 %v4718_v21 }
 0x2dc   :  { %1238 = vmatprep.mubr.bf16.mxu0 %v4719_v22  ;;  %2828 = vmatprep.mubr.msk.bf16.mxu1 %vm3541_vm0, %v4718_v21 }
 0x2de   :  { %1209 = vmatpush1.bf16.msra.mxu0 %v4106_v6  ;;  %2815 = vmatpush3.bf16.msra.mxu1 %v3746_v12  ;;  %v4730_v12 = vld [vmem:[#allocation27_spill] sm:$0xff] }
 0x2df   :  { %1210 = vmatprep.subr.bf16.mxu0 %v4110_v49  ;;  %2816 = vmatprep.subr.bf16.mxu1 %v4718_v21 }
 0x2e2   :  { %1211 = vmatpush1.bf16.msra.mxu0 %v4114_v9  ;;  %2817 = vmatpush3.bf16.msra.mxu1 %v3752_v14  ;;  %v4732_v14 = vld [vmem:[#allocation28_spill] sm:$0xff] }
 0x2e3   :  { %1212 = vmatprep.subr.bf16.mxu0 %v4118_v45  ;;  %2818 = vmatprep.subr.bf16.mxu1 %v4718_v21 }
 0x2e6   :  { %1213 = vmatpush1.bf16.msra.mxu0 %v3739_v10  ;;  %2819 = vmatpush3.bf16.msra.mxu1 %v3762_v17  ;;  %v4728_v10 = vld [vmem:[#allocation29_spill] sm:$0xff] }
 0x2e7   :  { %1214 = vmatprep.subr.bf16.mxu0 %v3743_v11  ;;  %2820 = vmatprep.subr.bf16.mxu1 %v4718_v21  ;;  %v4729_v11 = vld [vmem:[#allocation26_spill] sm:$0xff] }
 0x2ea   :  { %1215 = vmatpush1.bf16.msra.mxu0 %v3748_v13  ;;  %2821 = vmatpush3.bf16.msra.mxu1 %v3772_v20  ;;  %v4731_v13 = vld [vmem:[#allocation30_spill] sm:$0xff] }
 0x2eb   :  { %1216 = vmatprep.subr.bf16.mxu0 %v3755_v15  ;;  %2822 = vmatprep.subr.bf16.mxu1 %v4718_v21  ;;  %v958_v15 = vld [vmem:[#allocation4 + $0x18] sm:$0xff] }
 0x2ec   :  { %v961_v62 = vunpack.c.h.bf16 %v958_v15 }
 0x2ee   :  { %1217 = vmatpush1.bf16.msra.mxu0 %v3759_v16  ;;  %2823 = vmatpush3.bf16.msra.mxu1 %v3782_v23  ;;  %v960_v16 = vunpack.c.l.bf16 %v958_v15 }
 0x2ef   :  { %1218 = vmatprep.subr.bf16.mxu0 %v3765_v18  ;;  %2824 = vmatprep.subr.bf16.mxu1 %v4718_v21 }
 0x2f2   :  { %1219 = vmatpush1.bf16.msra.mxu0 %v4720_v2  ;;  %2825 = vmatpush3.bf16.msra.mxu1 %v4728_v10 }
 0x2f3   :  { %1220 = vmatprep.subr.bf16.mxu0 %v4729_v11  ;;  %2826 = vmatprep.subr.bf16.mxu1 %v4718_v21 }
 0x2f6   :  { %1221 = vmatpush1.bf16.msra.mxu0 %v4730_v12  ;;  %2827 = vmatpush3.bf16.msra.mxu1 %v4731_v13 }
 0x2f7   :  { %1327 = vmatprep.subr.bf16.mxu0 %v4732_v14  ;;  %2832 = vmatprep.subr.bf16.mxu1 %v4718_v21 }
 0x38c   :  { %v998_v17 = vpop.f32.mrb[16].mxu0  ;;  %v1039_v18 = vpop.f32.mrb[16].mxu1 }
 0x38d   :  { %v1045_v20 = vadd.f32 %v998_v17, %v960_v16  ;;  %v1000_v23 = vpop.f32.mrb[17].mxu0  ;;  %v2790_v2 = vpop.f32.mrb[17].mxu1  ;;  %v1059_v1 = vadd.f32 %v4733_v59, %v1039_v18 }
 0x38e   :  { %v1002_v56 = vpop.f32.mrb[18].mxu0  ;;  %v1042_v41 = vpop.f32.mrb[18].mxu1  ;;  %v1052_v7 = vadd.f32 %v1000_v23, %v961_v62 }
 0x38f   :  { %v2512_v61 = vmul.f32 -1.442695, %v1045_v20  ;;  %v1003_v8 = vpop.f32.mrb[19].mxu0  ;;  %v2791_v3 = vpop.f32.mrb[19].mxu1  ;;  %v1082_v56 = vunpack.c.h.bf16 %v1079_v63 }
 0x390   :  { %v2513_v25 = vmul.f32 -1.442695, %v1052_v7 }
 0x391   :  { %3136 = vpow2.f32 %v2512_v61 }
 0x392   :  { %3138 = vpow2.f32 %v2513_v25  ;;  %v1072_v25 = vpop.permute.xlu0 %1071 }
 0x393   :  { %vm1073_vm15 = vcmp.eq.s32.totalorder %v1072_v25, 1 }
 0x39b   :  { %v3137_v27 = vpop.eup %3136 }
 0x39c   :  { %v1049_v0 = vadd.f32 1.0, %v3137_v27  ;;  %v3139_v29 = vpop.eup %3138 }
 0x39d   :  { %v1056_v10 = vadd.f32 1.0, %v3139_v29 }
 0x39e   :  { %3140 = vrcp.f32 %v1049_v0 }
 0x3a8   :  { %v3141_v60 = vpop.eup %3140 }
 0x3a9   :  { %v1060_v28 = vmul.f32 %v3141_v60, %v1059_v1  ;;  %v4152_v1 = vld [vmem:[#allocation10] ss:$12 sps:$4 sm:$0xff]   ;;  %v4156_v60 = vld [vmem:[#allocation10 + $0x1c] ss:$12 sps:$4 sm:$0xff]  }
 0x3ab   :  { %v1061_v35 = vadd.f32 %v1060_v28, %v962_v26  ;;  %v4165_v28 = vld [vmem:[#allocation10 + $0x18] ss:$12 sps:$4 sm:$0xff]  }
 0x3ac   :  { %v1119_v11 = vpop.f32.mrb[20].mxu0  ;;  %v1160_v12 = vpop.f32.mrb[20].mxu1 }
 0x3ad   :  { %3142 = vtanh.f32 %v1061_v35  ;;  %v1166_v13 = vadd.f32 %v1119_v11, %v1081_v5  ;;  %v1121_v14 = vpop.f32.mrb[21].mxu0  ;;  %v2810_v15 = vpop.f32.mrb[21].mxu1  ;;  %v1180_v35 = vadd.f32 %v3965_v19, %v1160_v12  ;;  %v4250_v12 = vld [vmem:[#allocation9 + $0x94] ss:$12 sps:$4 sm:$0xff]  }
 0x3ae   :  { %v1123_v16 = vpop.f32.mrb[22].mxu0  ;;  %v1163_v17 = vpop.f32.mrb[22].mxu1  ;;  %3144 = vrcp.f32 %v1056_v10  ;;  %v1173_v18 = vadd.f32 %v1121_v14, %v1082_v56  ;;  %4737 = vst [vmem:[#allocation26_spill] sm:$0xff] %v4250_v12  ;;  %v4254_v15 = vld [vmem:[#allocation9 + $0x90] ss:$12 sps:$4 sm:$0xff]   ;;  %v1200_v56 = vld [vmem:[#allocation4 + $0x24] sm:$0xff] }
 0x3af   :  { %v2514_v20 = vmul.f32 -1.442695, %v1166_v13  ;;  %v1124_v23 = vpop.f32.mrb[23].mxu0  ;;  %v2811_v2 = vpop.f32.mrb[23].mxu1  ;;  %4738 = vst [vmem:[#allocation27_spill] sm:$0xff] %v4254_v15 }
 0x3b0   :  { %v2515_v3 = vmul.f32 -1.442695, %v1173_v18  ;;  %v4257_v16 = vld [vmem:[#allocation9 + $0x98] ss:$12 sps:$4 sm:$0xff]   ;;  %v4267_v23 = vld [vmem:[#allocation9 + $0xb0] ss:$12 sps:$4 sm:$0xff]   ;;  %v1202_v18 = vunpack.c.l.bf16 %v1200_v56 }
 0x3b1   :  { %3146 = vpow2.f32 %v2514_v20  ;;  %4739 = vst [vmem:[#allocation30_spill] sm:$0xff] %v4257_v16  ;;  %v4260_v17 = vld [vmem:[#allocation9 + $0xac] ss:$12 sps:$4 sm:$0xff]   ;;  %v4264_v20 = vld [vmem:[#allocation9 + $0xa8] ss:$12 sps:$4 sm:$0xff]   ;;  %4742 = vst [vmem:[#allocation33_spill] sm:$0xff] %v4267_v23 }
 0x3b2   :  { %3148 = vpow2.f32 %v2515_v3  ;;  %4740 = vst [vmem:[#allocation28_spill] sm:$0xff] %v4260_v17  ;;  %4741 = vst [vmem:[#allocation31_spill] sm:$0xff] %v4264_v20  ;;  %v4270_v2 = vld [vmem:[#allocation10 + $0x4] ss:$12 sps:$4 sm:$0xff]  }
 0x3b3   :  { %4743 = vst [vmem:[#allocation34_spill] sm:$0xff] %v4270_v2 }
 0x3b7   :  { %v3143_v41 = vpop.eup %3142 }
 0x3b8   :  { %v1063_v61 = vsub.f32 %v4046_v53, %v3143_v41  ;;  %v3145_v8 = vpop.eup %3144 }
 0x3ba   :  { %v1064_v62 = vmul.f32 %v3145_v8, %v1063_v61 }
 0x3bb   :  { %v3147_v7 = vpop.eup %3146 }
 0x3bc   :  { %v1170_v27 = vadd.f32 1.0, %v3147_v7  ;;  %v1065_v0 = vadd.f32 %v3143_v41, %v1064_v62 }
 0x3be   :  { %3150 = vrcp.f32 %v1170_v27  ;;  %v4148_v29 = vsel %vm1073_vm15, %v1065_v0, %v4046_v53  ;;  %v1075_v26 = vsel %vm1073_vm15, %v1065_v0, 0.0  ;;  %v4160_v53 = vld [vmem:[#allocation7 + $0x38] ss:$12 sps:$4 sm:$0xff]  }
 0x3bf   :  { %1077 = vst [vmem:[#allocation16 + $0x10] sm:$0xff] %v1075_v26  ;;  %v1205_v63 = vpack.c.bf16 %v4148_v29, %v4148_v29  ;;  %v1083_v5 = vunpack.c.h.bf16 %v4160_v53 }
 0x3c1   :  { %1239 = vmatmul.mubr.bf16.vlgmr.msra.gmra.mrb[24].mxu0 %v1205_v63  ;;  %2829 = vmatmul.mubr.bf16.vlgmr.msra.gmra.mrb[24].mxu1 %v1205_v63  ;;  %v1203_v63 = vunpack.c.h.bf16 %v1200_v56 }
 0x3c2   :  { %1328 = vmatpush1.bf16.msra.mxu0 %v4152_v1  ;;  %2833 = vmatpush3.bf16.msra.mxu1 %v3817_v34  ;;  %v3149_v34 = vpop.eup %3148 }
 0x3c3   :  { %1329 = vmatprep.subr.bf16.mxu0 %v4156_v60  ;;  %2834 = vmatprep.subr.bf16.mxu1 %v4718_v21  ;;  %v1177_v14 = vadd.f32 1.0, %v3149_v34 }
 0x3c4   :  { %1359 = vmatprep.mubr.bf16.mxu0 %v4719_v22  ;;  %2848 = vmatprep.mubr.msk.bf16.mxu1 %vm3541_vm0, %v4718_v21 }
 0x3c6   :  { %1330 = vmatpush1.bf16.msra.mxu0 %v4165_v28  ;;  %2835 = vmatpush3.bf16.msra.mxu1 %v3834_v39  ;;  %v1193_v39 = vpop.permute.xlu1 %1192 }
 0x3c7   :  { %1331 = vmatprep.subr.bf16.mxu0 %v3806_v31  ;;  %2836 = vmatprep.subr.bf16.mxu1 %v4718_v21  ;;  %vm1194_vm1 = vcmp.eq.s32.totalorder %v1193_v39, 1 }
 0x3c8   :  { %v3151_v10 = vpop.eup %3150 }
 0x3c9   :  { %v1181_v11 = vmul.f32 %v3151_v10, %v1180_v35 }
 0x3ca   :  { %1332 = vmatpush1.bf16.msra.mxu0 %v3814_v33  ;;  %2837 = vmatpush3.bf16.msra.mxu1 %v3850_v43 }
 0x3cb   :  { %v1182_v13 = vadd.f32 %v1181_v11, %v1083_v5  ;;  %1333 = vmatprep.subr.bf16.mxu0 %v3824_v36  ;;  %2838 = vmatprep.subr.bf16.mxu1 %v4718_v21  ;;  %v1321_v11 = vld [vmem:[#allocation7 + $0x30] sm:$0xff] }
 0x3cd   :  { %3152 = vtanh.f32 %v1182_v13 }
 0x3ce   :  { %1334 = vmatpush1.bf16.msra.mxu0 %v3831_v38  ;;  %2839 = vmatpush3.bf16.msra.mxu1 %v3865_v47  ;;  %3154 = vrcp.f32 %v1177_v14  ;;  %v4213_v47 = vld [vmem:[#allocation9 + $0x20] ss:$12 sps:$4 sm:$0xff]   ;;  %v1204_v14 = vunpack.c.h.bf16 %v4142_v30  ;;  %v1324_v30 = vunpack.c.h.bf16 %v1321_v11 }
 0x3cf   :  { %1335 = vmatprep.subr.bf16.mxu0 %v3838_v40  ;;  %2840 = vmatprep.subr.bf16.mxu1 %v4718_v21 }
 0x3d2   :  { %1336 = vmatpush1.bf16.msra.mxu0 %v3847_v42  ;;  %2841 = vmatpush3.bf16.msra.mxu1 %v3880_v51  ;;  %v4227_v51 = vld [vmem:[#allocation9 + $0x50] ss:$12 sps:$4 sm:$0xff]  }
 0x3d3   :  { %1337 = vmatprep.subr.bf16.mxu0 %v3854_v44  ;;  %2842 = vmatprep.subr.bf16.mxu1 %v4718_v21 }
 0x3d6   :  { %1338 = vmatpush1.bf16.msra.mxu0 %v3862_v46  ;;  %2843 = vmatpush3.bf16.msra.mxu1 %v3893_v55  ;;  %v4204_v46 = vld [vmem:[#allocation9 + $0x8] ss:$12 sps:$4 sm:$0xff]  }
 0x3d7   :  { %v3153_v31 = vpop.eup %3152  ;;  %1339 = vmatprep.subr.bf16.mxu0 %v3869_v48  ;;  %2844 = vmatprep.subr.bf16.mxu1 %v4718_v21  ;;  %v4219_v48 = vld [vmem:[#allocation9 + $0x38] ss:$12 sps:$4 sm:$0xff]   ;;  %v4237_v55 = vld [vmem:[#allocation9 + $0x68] ss:$12 sps:$4 sm:$0xff]  }
 0x3d8   :  { %v1184_v33 = vsub.f32 %v4087_v32, %v3153_v31  ;;  %v3155_v36 = vpop.eup %3154 }
 0x3da   :  { %v1185_v38 = vmul.f32 %v3155_v36, %v1184_v33  ;;  %1340 = vmatpush1.bf16.msra.mxu0 %v3877_v50  ;;  %2845 = vmatpush3.bf16.msra.mxu1 %v3901_v57  ;;  %v4224_v50 = vld [vmem:[#allocation9 + $0x48] ss:$12 sps:$4 sm:$0xff]  }
 0x3db   :  { %1341 = vmatprep.subr.bf16.mxu0 %v3884_v52  ;;  %2846 = vmatprep.subr.bf16.mxu1 %v4718_v21  ;;  %v4230_v52 = vld [vmem:[#allocation9 + $0x64] ss:$12 sps:$4 sm:$0xff]   ;;  %v4240_v57 = vld [vmem:[#allocation9 + $0x7c] ss:$12 sps:$4 sm:$0xff]  }
 0x3dc   :  { %v1186_v40 = vadd.f32 %v3153_v31, %v1185_v38  ;;  %4734 = vst [vmem:[#allocation25_spill] sm:$0xff] %v4240_v57  ;;  %v1323_v38 = vunpack.c.l.bf16 %v1321_v11 }
 0x3de   :  { %1342 = vmatpush1.bf16.msra.mxu0 %v3890_v54  ;;  %2847 = vmatpush3.bf16.msra.mxu1 %v3907_v58  ;;  %v4197_v42 = vsel %vm1194_vm1, %v1186_v40, %v4087_v32  ;;  %v1196_v43 = vsel %vm1194_vm1, %v1186_v40, 0.0  ;;  %v4234_v54 = vld [vmem:[#allocation9 + $0x60] ss:$12 sps:$4 sm:$0xff]   ;;  %v4244_v58 = vld [vmem:[#allocation9 + $0x78] ss:$12 sps:$4 sm:$0xff]  }
 0x3df   :  { %1198 = vst [vmem:[#allocation17 + $0x28] sm:$0xff] %v1196_v43  ;;  %v1326_v44 = vpack.c.bf16 %v4197_v42, %v4197_v42  ;;  %1448 = vmatprep.subr.bf16.mxu0 %v4091_v24  ;;  %2852 = vmatprep.subr.bf16.mxu1 %v4718_v21  ;;  %4735 = vst [vmem:[#allocation32_spill] sm:$0xff] %v4244_v58  ;;  %v4247_v32 = vld [vmem:[#allocation9 + $0x80] ss:$12 sps:$4 sm:$0xff]  }
 0x3e0   :  { %4736 = vst [vmem:[#allocation29_spill] sm:$0xff] %v4247_v32 }
 0x3e1   :  { %1360 = vmatmul.mubr.bf16.vlgmr.msra.gmra.mrb[28].mxu0 %v1326_v44  ;;  %2849 = vmatmul.mubr.bf16.vlgmr.msra.gmra.mrb[28].mxu1 %v1326_v44 }
 0x3e2   :  { %1449 = vmatpush1.bf16.msra.mxu0 %v4095_v4  ;;  %2853 = vmatpush3.bf16.msra.mxu1 %v4204_v46 }
 0x3e3   :  { %1450 = vmatprep.subr.bf16.mxu0 %v4099_v37  ;;  %2854 = vmatprep.subr.bf16.mxu1 %v4718_v21 }
 0x3e4   :  { %1480 = vmatprep.mubr.bf16.mxu0 %v4719_v22  ;;  %2868 = vmatprep.mubr.msk.bf16.mxu1 %vm3541_vm0, %v4718_v21 }
 0x3e6   :  { %1451 = vmatpush1.bf16.msra.mxu0 %v4106_v6  ;;  %2855 = vmatpush3.bf16.msra.mxu1 %v4213_v47 }
 0x3e7   :  { %1452 = vmatprep.subr.bf16.mxu0 %v4110_v49  ;;  %2856 = vmatprep.subr.bf16.mxu1 %v4718_v21 }
 0x3ea   :  { %1453 = vmatpush1.bf16.msra.mxu0 %v4114_v9  ;;  %2857 = vmatpush3.bf16.msra.mxu1 %v4219_v48 }
 0x3eb   :  { %1454 = vmatprep.subr.bf16.mxu0 %v4118_v45  ;;  %2858 = vmatprep.subr.bf16.mxu1 %v4718_v21 }
 0x3ee   :  { %1455 = vmatpush1.bf16.msra.mxu0 %v4224_v50  ;;  %2859 = vmatpush3.bf16.msra.mxu1 %v4227_v51 }
 0x3ef   :  { %1456 = vmatprep.subr.bf16.mxu0 %v4230_v52  ;;  %2860 = vmatprep.subr.bf16.mxu1 %v4718_v21 }
 0x3f2   :  { %1457 = vmatpush1.bf16.msra.mxu0 %v4234_v54  ;;  %2861 = vmatpush3.bf16.msra.mxu1 %v4237_v55 }
 0x3f3   :  { %1458 = vmatprep.subr.bf16.mxu0 %v4240_v57  ;;  %2862 = vmatprep.subr.bf16.mxu1 %v4718_v21 }
 0x3f6   :  { %1459 = vmatpush1.bf16.msra.mxu0 %v4244_v58  ;;  %2863 = vmatpush3.bf16.msra.mxu1 %v4247_v32 }
 0x3f7   :  { %1460 = vmatprep.subr.bf16.mxu0 %v4250_v12  ;;  %2864 = vmatprep.subr.bf16.mxu1 %v4718_v21 }
 0x3fa   :  { %1461 = vmatpush1.bf16.msra.mxu0 %v4254_v15  ;;  %2865 = vmatpush3.bf16.msra.mxu1 %v4257_v16 }
 0x3fb   :  { %1462 = vmatprep.subr.bf16.mxu0 %v4260_v17  ;;  %2866 = vmatprep.subr.bf16.mxu1 %v4718_v21 }
 0x3fe   :  { %1463 = vmatpush1.bf16.msra.mxu0 %v4264_v20  ;;  %2867 = vmatpush3.bf16.msra.mxu1 %v4267_v23 }
 0x3ff   :  { %1569 = vmatprep.subr.bf16.mxu0 %v4270_v2  ;;  %2872 = vmatprep.subr.bf16.mxu1 %v4718_v21 }
 0x494   :  { %v1240_v41 = vpop.f32.mrb[24].mxu0  ;;  %v1281_v61 = vpop.f32.mrb[24].mxu1 }
 0x495   :  { %v1287_v8 = vadd.f32 %v1240_v41, %v1202_v18  ;;  %v1242_v3 = vpop.f32.mrb[25].mxu0  ;;  %v2830_v62 = vpop.f32.mrb[25].mxu1  ;;  %v1301_v31 = vadd.f32 %v4733_v59, %v1281_v61 }
 0x496   :  { %v1244_v7 = vpop.f32.mrb[26].mxu0  ;;  %v1284_v25 = vpop.f32.mrb[26].mxu1  ;;  %v1294_v34 = vadd.f32 %v1242_v3, %v1203_v63 }
 0x497   :  { %v2516_v27 = vmul.f32 -1.442695, %v1287_v8  ;;  %v1245_v0 = vpop.f32.mrb[27].mxu0  ;;  %v2831_v26 = vpop.f32.mrb[27].mxu1 }
 0x498   :  { %v2517_v5 = vmul.f32 -1.442695, %v1294_v34 }
 0x499   :  { %3156 = vpow2.f32 %v2516_v27 }
 0x49a   :  { %3158 = vpow2.f32 %v2517_v5  ;;  %v1314_v5 = vpop.permute.xlu0 %1313 }
 0x49b   :  { %vm1315_vm2 = vcmp.eq.s32.totalorder %v1314_v5, 1  ;;  %v4345_v5 = vld [vmem:[#allocation10 + $0x98] ss:$12 sps:$4 sm:$0xff]  }
 0x4a3   :  { %v3157_v35 = vpop.eup %3156 }
 0x4a4   :  { %v1291_v10 = vadd.f32 1.0, %v3157_v35  ;;  %v3159_v13 = vpop.eup %3158 }
 0x4a5   :  { %v1298_v40 = vadd.f32 1.0, %v3159_v13 }
 0x4a6   :  { %3160 = vrcp.f32 %v1291_v10 }
 0x4b0   :  { %v3161_v33 = vpop.eup %3160 }
 0x4b1   :  { %v1302_v36 = vmul.f32 %v3161_v33, %v1301_v31  ;;  %v4283_v31 = vld [vmem:[#allocation10 + $0x8] ss:$12 sps:$4 sm:$0xff]  }
 0x4b3   :  { %v1303_v39 = vadd.f32 %v1302_v36, %v1204_v14  ;;  %v1325_v36 = vunpack.c.l.bf16 %v4160_v53 }
 0x4b4   :  { %v1361_v43 = vpop.f32.mrb[28].mxu0  ;;  %v1402_v44 = vpop.f32.mrb[28].mxu1 }
 0x4b5   :  { %3162 = vtanh.f32 %v1303_v39  ;;  %v1408_v56 = vadd.f32 %v1361_v43, %v1323_v38  ;;  %v1363_v18 = vpop.f32.mrb[29].mxu0  ;;  %v2850_v41 = vpop.f32.mrb[29].mxu1  ;;  %v1422_v38 = vadd.f32 %v3965_v19, %v1402_v44  ;;  %v4297_v39 = vld [vmem:[#allocation10 + $0x34] ss:$12 sps:$4 sm:$0xff]   ;;  %v4314_v44 = vld [vmem:[#allocation10 + $0x50] ss:$12 sps:$4 sm:$0xff]  }
 0x4b6   :  { %v1365_v8 = vpop.f32.mrb[30].mxu0  ;;  %v1405_v3 = vpop.f32.mrb[30].mxu1  ;;  %3164 = vrcp.f32 %v1298_v40  ;;  %v1415_v59 = vadd.f32 %v1363_v18, %v1324_v30  ;;  %v4304_v18 = vld [vmem:[#allocation10 + $0x38] ss:$12 sps:$4 sm:$0xff]   ;;  %v4311_v19 = vld [vmem:[#allocation10 + $0x48] ss:$12 sps:$4 sm:$0xff]  }
 0x4b7   :  { %v2518_v62 = vmul.f32 -1.442695, %v1408_v56  ;;  %v1366_v7 = vpop.f32.mrb[31].mxu0  ;;  %v2851_v25 = vpop.f32.mrb[31].mxu1  ;;  %v4301_v56 = vld [vmem:[#allocation10 + $0x30] ss:$12 sps:$4 sm:$0xff]  }
 0x4b8   :  { %v2519_v26 = vmul.f32 -1.442695, %v1415_v59  ;;  %v4307_v8 = vld [vmem:[#allocation10 + $0x4c] ss:$12 sps:$4 sm:$0xff]   ;;  %v4317_v3 = vld [vmem:[#allocation10 + $0x64] ss:$12 sps:$4 sm:$0xff]  }
 0x4b9   :  { %3166 = vpow2.f32 %v2518_v62  ;;  %v4321_v62 = vld [vmem:[#allocation10 + $0x60] ss:$12 sps:$4 sm:$0xff]   ;;  %v4324_v7 = vld [vmem:[#allocation10 + $0x68] ss:$12 sps:$4 sm:$0xff]   ;;  %v4331_v30 = vld [vmem:[#allocation10 + $0x78] ss:$12 sps:$4 sm:$0xff]  }
 0x4ba   :  { %3168 = vpow2.f32 %v2519_v26  ;;  %v4327_v25 = vld [vmem:[#allocation10 + $0x7c] ss:$12 sps:$4 sm:$0xff]   ;;  %v4334_v59 = vld [vmem:[#allocation10 + $0x80] ss:$12 sps:$4 sm:$0xff]  }
 0x4bf   :  { %v3163_v61 = vpop.eup %3162 }
 0x4c0   :  { %v1305_v27 = vsub.f32 %v4148_v29, %v3163_v61  ;;  %v3165_v0 = vpop.eup %3164 }
 0x4c2   :  { %v1306_v63 = vmul.f32 %v3165_v0, %v1305_v27  ;;  %v4337_v27 = vld [vmem:[#allocation10 + $0x94] ss:$12 sps:$4 sm:$0xff]  }
 0x4c3   :  { %v3167_v34 = vpop.eup %3166 }
 0x4c4   :  { %v1412_v35 = vadd.f32 1.0, %v3167_v34  ;;  %v1307_v10 = vadd.f32 %v3163_v61, %v1306_v63  ;;  %v3169_v33 = vpop.eup %3168  ;;  %v4342_v34 = vld [vmem:[#allocation10 + $0x90] ss:$12 sps:$4 sm:$0xff]  }
 0x4c5   :  { %v1419_v53 = vadd.f32 1.0, %v3169_v33  ;;  %v4355_v33 = vld [vmem:[#allocation10 + $0xb0] ss:$12 sps:$4 sm:$0xff]  }
 0x4c6   :  { %3170 = vrcp.f32 %v1412_v35  ;;  %v4278_v13 = vsel %vm1315_vm2, %v1307_v10, %v4148_v29  ;;  %v1317_v14 = vsel %vm1315_vm2, %v1307_v10, 0.0  ;;  %v4292_v29 = vld [vmem:[#allocation10 + $0x20] ss:$12 sps:$4 sm:$0xff]   ;;  %v1435_v10 = vpop.permute.xlu1 %1434 }
 0x4c7   :  { %1319 = vst [vmem:[#allocation16 + $0x18] sm:$0xff] %v1317_v14  ;;  %v1447_v11 = vpack.c.bf16 %v4278_v13, %v4278_v13  ;;  %v4348_v35 = vld [vmem:[#allocation10 + $0xac] ss:$12 sps:$4 sm:$0xff]   ;;  %vm1436_vm3 = vcmp.eq.s32.totalorder %v1435_v10, 1 }
 0x4c9   :  { %1481 = vmatmul.mubr.bf16.vlgmr.msra.gmra.mrb[32].mxu0 %v1447_v11  ;;  %2869 = vmatmul.mubr.bf16.vlgmr.msra.gmra.mrb[32].mxu1 %v1447_v11  ;;  %v4352_v11 = vld [vmem:[#allocation10 + $0xa8] ss:$12 sps:$4 sm:$0xff]  }
 0x4ca   :  { %1570 = vmatpush1.bf16.msra.mxu0 %v4152_v1  ;;  %2873 = vmatpush3.bf16.msra.mxu1 %v4283_v31 }
 0x4cb   :  { %1571 = vmatprep.subr.bf16.mxu0 %v4156_v60  ;;  %2874 = vmatprep.subr.bf16.mxu1 %v4718_v21 }
 0x4cc   :  { %1601 = vmatprep.mubr.bf16.mxu0 %v4719_v22  ;;  %2888 = vmatprep.mubr.msk.bf16.mxu1 %vm3541_vm0, %v4718_v21 }
 0x4ce   :  { %1572 = vmatpush1.bf16.msra.mxu0 %v4165_v28  ;;  %2875 = vmatpush3.bf16.msra.mxu1 %v4292_v29 }
 0x4cf   :  { %1573 = vmatprep.subr.bf16.mxu0 %v4297_v39  ;;  %2876 = vmatprep.subr.bf16.mxu1 %v4718_v21 }
 0x4d0   :  { %v3171_v40 = vpop.eup %3170 }
 0x4d1   :  { %v1423_v43 = vmul.f32 %v3171_v40, %v1422_v38 }
 0x4d2   :  { %1574 = vmatpush1.bf16.msra.mxu0 %v4301_v56  ;;  %2877 = vmatpush3.bf16.msra.mxu1 %v4304_v18 }
 0x4d3   :  { %v1424_v41 = vadd.f32 %v1423_v43, %v1325_v36  ;;  %1575 = vmatprep.subr.bf16.mxu0 %v4307_v8  ;;  %2878 = vmatprep.subr.bf16.mxu1 %v4718_v21 }
 0x4d5   :  { %3172 = vtanh.f32 %v1424_v41 }
 0x4d6   :  { %1576 = vmatpush1.bf16.msra.mxu0 %v4311_v19  ;;  %2879 = vmatpush3.bf16.msra.mxu1 %v4314_v44  ;;  %3174 = vrcp.f32 %v1419_v53 }
 0x4d7   :  { %1577 = vmatprep.subr.bf16.mxu0 %v4317_v3  ;;  %2880 = vmatprep.subr.bf16.mxu1 %v4718_v21 }
 0x4da   :  { %1578 = vmatpush1.bf16.msra.mxu0 %v4321_v62  ;;  %2881 = vmatpush3.bf16.msra.mxu1 %v4324_v7 }
 0x4db   :  { %1579 = vmatprep.subr.bf16.mxu0 %v4327_v25  ;;  %2882 = vmatprep.subr.bf16.mxu1 %v4718_v21 }
 0x4de   :  { %1580 = vmatpush1.bf16.msra.mxu0 %v4331_v30  ;;  %2883 = vmatpush3.bf16.msra.mxu1 %v4334_v59 }
 0x4df   :  { %v3173_v61 = vpop.eup %3172  ;;  %1581 = vmatprep.subr.bf16.mxu0 %v4337_v27  ;;  %2884 = vmatprep.subr.bf16.mxu1 %v4718_v21 }
 0x4e0   :  { %v1426_v0 = vsub.f32 %v4197_v42, %v3173_v61  ;;  %v3175_v26 = vpop.eup %3174 }
 0x4e2   :  { %v1427_v63 = vmul.f32 %v3175_v26, %v1426_v0  ;;  %1582 = vmatpush1.bf16.msra.mxu0 %v4342_v34  ;;  %2885 = vmatpush3.bf16.msra.mxu1 %v4345_v5 }
 0x4e3   :  { %1583 = vmatprep.subr.bf16.mxu0 %v4348_v35  ;;  %2886 = vmatprep.subr.bf16.mxu1 %v4718_v21 }
 0x4e4   :  { %v1428_v14 = vadd.f32 %v3173_v61, %v1427_v63 }
 0x4e6   :  { %1584 = vmatpush1.bf16.msra.mxu0 %v4352_v11  ;;  %2887 = vmatpush3.bf16.msra.mxu1 %v4355_v33  ;;  %v4359_v36 = vsel %vm1436_vm3, %v1428_v14, %v4197_v42  ;;  %v1438_v38 = vsel %vm1436_vm3, %v1428_v14, 0.0  ;;  %v1442_v42 = vld [vmem:[#allocation4 + $0x30] sm:$0xff] }
 0x4e7   :  { %1440 = vst [vmem:[#allocation17 + $0x20] sm:$0xff] %v1438_v38  ;;  %v1568_v40 = vpack.c.bf16 %v4359_v36, %v4359_v36  ;;  %1690 = vmatprep.subr.bf16.mxu0 %v4091_v24  ;;  %2892 = vmatprep.subr.bf16.mxu1 %v4718_v21  ;;  %v1444_v43 = vunpack.c.l.bf16 %v1442_v42 }
 0x4e9   :  { %1602 = vmatmul.mubr.bf16.vlgmr.msra.gmra.mrb[36].mxu0 %v1568_v40  ;;  %2889 = vmatmul.mubr.bf16.vlgmr.msra.gmra.mrb[36].mxu1 %v1568_v40 }
 0x4ea   :  { %1691 = vmatpush1.bf16.msra.mxu0 %v4095_v4  ;;  %2893 = vmatpush3.bf16.msra.mxu1 %v4204_v46 }
 0x4eb   :  { %1692 = vmatprep.subr.bf16.mxu0 %v4099_v37  ;;  %2894 = vmatprep.subr.bf16.mxu1 %v4718_v21 }
 0x4ec   :  { %1722 = vmatprep.mubr.bf16.mxu0 %v4719_v22  ;;  %2908 = vmatprep.mubr.msk.bf16.mxu1 %vm3541_vm0, %v4718_v21 }
 0x4ee   :  { %1693 = vmatpush1.bf16.msra.mxu0 %v4106_v6  ;;  %2895 = vmatpush3.bf16.msra.mxu1 %v4213_v47 }
 0x4ef   :  { %1694 = vmatprep.subr.bf16.mxu0 %v4110_v49  ;;  %2896 = vmatprep.subr.bf16.mxu1 %v4718_v21 }
 0x4f2   :  { %1695 = vmatpush1.bf16.msra.mxu0 %v4114_v9  ;;  %2897 = vmatpush3.bf16.msra.mxu1 %v4219_v48 }
 0x4f3   :  { %1696 = vmatprep.subr.bf16.mxu0 %v4118_v45  ;;  %2898 = vmatprep.subr.bf16.mxu1 %v4718_v21 }
 0x4f6   :  { %1697 = vmatpush1.bf16.msra.mxu0 %v4224_v50  ;;  %2899 = vmatpush3.bf16.msra.mxu1 %v4227_v51 }
 0x4f7   :  { %1698 = vmatprep.subr.bf16.mxu0 %v4230_v52  ;;  %2900 = vmatprep.subr.bf16.mxu1 %v4718_v21 }
 0x4fa   :  { %1699 = vmatpush1.bf16.msra.mxu0 %v4234_v54  ;;  %2901 = vmatpush3.bf16.msra.mxu1 %v4237_v55 }
 0x4fb   :  { %1700 = vmatprep.subr.bf16.mxu0 %v4240_v57  ;;  %2902 = vmatprep.subr.bf16.mxu1 %v4718_v21 }
 0x4fe   :  { %1701 = vmatpush1.bf16.msra.mxu0 %v4244_v58  ;;  %2903 = vmatpush3.bf16.msra.mxu1 %v4247_v32 }
 0x4ff   :  { %1702 = vmatprep.subr.bf16.mxu0 %v4250_v12  ;;  %2904 = vmatprep.subr.bf16.mxu1 %v4718_v21  ;;  %v1563_v12 = vld [vmem:[#allocation7 + $0x24] sm:$0xff] }
 0x500   :  { %v1566_v57 = vunpack.c.h.bf16 %v1563_v12 }
 0x502   :  { %1703 = vmatpush1.bf16.msra.mxu0 %v4254_v15  ;;  %2905 = vmatpush3.bf16.msra.mxu1 %v4257_v16  ;;  %v4400_v15 = vld [vmem:[#allocation4 + $0x38] ss:$12 sps:$4 sm:$0xff]  }
 0x503   :  { %1704 = vmatprep.subr.bf16.mxu0 %v4260_v17  ;;  %2906 = vmatprep.subr.bf16.mxu1 %v4718_v21  ;;  %4744 = vst [vmem:[#allocation35_spill] sm:$0xff] %v4400_v15 }
 0x506   :  { %1705 = vmatpush1.bf16.msra.mxu0 %v4264_v20  ;;  %2907 = vmatpush3.bf16.msra.mxu1 %v4267_v23  ;;  %v1445_v20 = vunpack.c.h.bf16 %v1442_v42 }
 0x507   :  { %1811 = vmatprep.subr.bf16.mxu0 %v4270_v2  ;;  %2912 = vmatprep.subr.bf16.mxu1 %v4718_v21 }
 0x59c   :  { %v1482_v41 = vpop.f32.mrb[32].mxu0  ;;  %v1523_v53 = vpop.f32.mrb[32].mxu1 }
 0x59d   :  { %v1529_v61 = vadd.f32 %v1482_v41, %v1444_v43  ;;  %v1484_v0 = vpop.f32.mrb[33].mxu0  ;;  %v2870_v26 = vpop.f32.mrb[33].mxu1  ;;  %v1446_v43 = vunpack.c.l.bf16 %v4400_v15  ;;  %v4403_v41 = vld [vmem:[#allocation12] ss:$0 sm:$0xff] }
 0x59e   :  { %v1486_v63 = vpop.f32.mrb[34].mxu0  ;;  %v1526_v10 = vpop.f32.mrb[34].mxu1  ;;  %v1536_v17 = vadd.f32 %v1484_v0, %v1445_v20  ;;  %4745 = vst [vmem:[#allocation36_spill] sm:$0xff] %v4403_v41 }
 0x59f   :  { %v2520_v14 = vmul.f32 -1.442695, %v1529_v61  ;;  %v1487_v38 = vpop.f32.mrb[35].mxu0  ;;  %v2871_v40 = vpop.f32.mrb[35].mxu1  ;;  %v1543_v61 = vadd.f32 %v4403_v41, %v1523_v53  ;;  %v1565_v10 = vunpack.c.l.bf16 %v1563_v12  ;;  %v4416_v12 = vld [vmem:[#allocation7 + $0x20] ss:$12 sps:$4 sm:$0xff]  }
 0x5a0   :  { %v2521_v23 = vmul.f32 -1.442695, %v1536_v17 }
 0x5a1   :  { %3176 = vpow2.f32 %v2520_v14 }
 0x5a2   :  { %3178 = vpow2.f32 %v2521_v23 }
 0x5ab   :  { %v3177_v16 = vpop.eup %3176 }
 0x5ac   :  { %v1533_v2 = vadd.f32 1.0, %v3177_v16  ;;  %v3179_v32 = vpop.eup %3178 }
 0x5ad   :  { %v1540_v20 = vadd.f32 1.0, %v3179_v32 }
 0x5ae   :  { %3180 = vrcp.f32 %v1533_v2 }
 0x5b8   :  { %v3181_v26 = vpop.eup %3180 }
 0x5b9   :  { %v1544_v63 = vmul.f32 %v3181_v26, %v1543_v61 }
 0x5bb   :  { %v1545_v42 = vadd.f32 %v1544_v63, %v1446_v43 }
 0x5bc   :  { %v1603_v17 = vpop.f32.mrb[36].mxu0  ;;  %v1644_v0 = vpop.f32.mrb[36].mxu1 }
 0x5bd   :  { %3182 = vtanh.f32 %v1545_v42  ;;  %v1650_v16 = vadd.f32 %v1603_v17, %v1565_v10  ;;  %v1605_v23 = vpop.f32.mrb[37].mxu0  ;;  %v2890_v2 = vpop.f32.mrb[37].mxu1 }
 0x5be   :  { %v1607_v14 = vpop.f32.mrb[38].mxu0  ;;  %v1647_v38 = vpop.f32.mrb[38].mxu1  ;;  %3184 = vrcp.f32 %v1540_v20  ;;  %v1657_v53 = vadd.f32 %v1605_v23, %v1566_v57 }
 0x5bf   :  { %v2522_v40 = vmul.f32 -1.442695, %v1650_v16  ;;  %v1608_v15 = vpop.f32.mrb[39].mxu0  ;;  %v2891_v58 = vpop.f32.mrb[39].mxu1 }
 0x5c0   :  { %v2523_v32 = vmul.f32 -1.442695, %v1657_v53  ;;  %v1556_v42 = vpop.permute.xlu0 %1555 }
 0x5c1   :  { %3186 = vpow2.f32 %v2522_v40  ;;  %vm1557_vm4 = vcmp.eq.s32.totalorder %v1556_v42, 1 }
 0x5c2   :  { %3188 = vpow2.f32 %v2523_v32 }
 0x5c7   :  { %v3183_v41 = vpop.eup %3182 }
 0x5c8   :  { %v1547_v61 = vsub.f32 %v4278_v13, %v3183_v41  ;;  %v3185_v43 = vpop.eup %3184 }
 0x5ca   :  { %v1548_v26 = vmul.f32 %v3185_v43, %v1547_v61  ;;  %v1677_v43 = vpop.permute.xlu1 %1676 }
 0x5cb   :  { %v3187_v63 = vpop.eup %3186  ;;  %vm1678_vm5 = vcmp.eq.s32.totalorder %v1677_v43, 1 }
 0x5cc   :  { %v1654_v10 = vadd.f32 1.0, %v3187_v63  ;;  %v1549_v17 = vadd.f32 %v3183_v41, %v1548_v26  ;;  %v3189_v15 = vpop.eup %3188  ;;  %v4424_v41 = vld [vmem:[#allocation13] ss:$0 sm:$0xff] }
 0x5cd   :  { %v1664_v16 = vadd.f32 %v4424_v41, %v1644_v0  ;;  %v1661_v38 = vadd.f32 1.0, %v3189_v15 }
 0x5ce   :  { %3190 = vrcp.f32 %v1654_v10  ;;  %v4408_v20 = vsel %vm1557_vm4, %v1549_v17, %v4278_v13  ;;  %v1559_v58 = vsel %vm1557_vm4, %v1549_v17, 0.0  ;;  %v1567_v13 = vunpack.c.h.bf16 %v4416_v12  ;;  %v4754_v10 = vld [vmem:[#allocation33_spill] sm:$0xff]  ;;  %v4755_v17 = vld [vmem:[#allocation34_spill] sm:$0xff] }
 0x5cf   :  { %1561 = vst [vmem:[#allocation16 + $0x20] sm:$0xff] %v1559_v58  ;;  %v1689_v57 = vpack.c.bf16 %v4408_v20, %v4408_v20  ;;  %v1684_v58 = vld [vmem:[#allocation4 + $0x3c] sm:$0xff] }
 0x5d1   :  { %1723 = vmatmul.mubr.bf16.vlgmr.msra.gmra.mrb[40].mxu0 %v1689_v57  ;;  %2909 = vmatmul.mubr.bf16.vlgmr.msra.gmra.mrb[40].mxu1 %v1689_v57  ;;  %v1686_v57 = vunpack.c.l.bf16 %v1684_v58 }
 0x5d2   :  { %1812 = vmatpush1.bf16.msra.mxu0 %v4152_v1  ;;  %2913 = vmatpush3.bf16.msra.mxu1 %v4283_v31 }
 0x5d3   :  { %1813 = vmatprep.subr.bf16.mxu0 %v4156_v60  ;;  %2914 = vmatprep.subr.bf16.mxu1 %v4718_v21 }
 0x5d4   :  { %1843 = vmatprep.mubr.bf16.mxu0 %v4719_v22  ;;  %2928 = vmatprep.mubr.msk.bf16.mxu1 %vm3541_vm0, %v4718_v21 }
 0x5d6   :  { %1814 = vmatpush1.bf16.msra.mxu0 %v4165_v28  ;;  %2915 = vmatpush3.bf16.msra.mxu1 %v4292_v29 }
 0x5d7   :  { %1815 = vmatprep.subr.bf16.mxu0 %v4297_v39  ;;  %2916 = vmatprep.subr.bf16.mxu1 %v4718_v21 }
 0x5d8   :  { %v3191_v23 = vpop.eup %3190 }
 0x5d9   :  { %v1665_v2 = vmul.f32 %v3191_v23, %v1664_v16 }
 0x5da   :  { %1816 = vmatpush1.bf16.msra.mxu0 %v4301_v56  ;;  %2917 = vmatpush3.bf16.msra.mxu1 %v4304_v18 }
 0x5db   :  { %v1666_v14 = vadd.f32 %v1665_v2, %v1567_v13  ;;  %1817 = vmatprep.subr.bf16.mxu0 %v4307_v8  ;;  %2918 = vmatprep.subr.bf16.mxu1 %v4718_v21 }
 0x5dd   :  { %3192 = vtanh.f32 %v1666_v14 }
 0x5de   :  { %1818 = vmatpush1.bf16.msra.mxu0 %v4311_v19  ;;  %2919 = vmatpush3.bf16.msra.mxu1 %v4314_v44  ;;  %3194 = vrcp.f32 %v1661_v38 }
 0x5df   :  { %1819 = vmatprep.subr.bf16.mxu0 %v4317_v3  ;;  %2920 = vmatprep.subr.bf16.mxu1 %v4718_v21 }
 0x5e2   :  { %1820 = vmatpush1.bf16.msra.mxu0 %v4321_v62  ;;  %2921 = vmatpush3.bf16.msra.mxu1 %v4324_v7 }
 0x5e3   :  { %1821 = vmatprep.subr.bf16.mxu0 %v4327_v25  ;;  %2922 = vmatprep.subr.bf16.mxu1 %v4718_v21 }
 0x5e6   :  { %1822 = vmatpush1.bf16.msra.mxu0 %v4331_v30  ;;  %2923 = vmatpush3.bf16.msra.mxu1 %v4334_v59 }
 0x5e7   :  { %v3193_v0 = vpop.eup %3192  ;;  %1823 = vmatprep.subr.bf16.mxu0 %v4337_v27  ;;  %2924 = vmatprep.subr.bf16.mxu1 %v4718_v21 }
 0x5e8   :  { %v1668_v40 = vsub.f32 %v4359_v36, %v3193_v0  ;;  %v3195_v53 = vpop.eup %3194 }
 0x5ea   :  { %v1669_v61 = vmul.f32 %v3195_v53, %v1668_v40  ;;  %1824 = vmatpush1.bf16.msra.mxu0 %v4342_v34  ;;  %2925 = vmatpush3.bf16.msra.mxu1 %v4345_v5 }
 0x5eb   :  { %1825 = vmatprep.subr.bf16.mxu0 %v4348_v35  ;;  %2926 = vmatprep.subr.bf16.mxu1 %v4718_v21 }
 0x5ec   :  { %v1670_v32 = vadd.f32 %v3193_v0, %v1669_v61  ;;  %v1687_v61 = vunpack.c.h.bf16 %v1684_v58 }
 0x5ee   :  { %1826 = vmatpush1.bf16.msra.mxu0 %v4352_v11  ;;  %2927 = vmatpush3.bf16.msra.mxu1 %v4355_v33  ;;  %v4453_v26 = vsel %vm1678_vm5, %v1670_v32, %v4359_v36  ;;  %v1680_v63 = vsel %vm1678_vm5, %v1670_v32, 0.0  ;;  %v4753_v36 = vld [vmem:[#allocation31_spill] sm:$0xff] }
 0x5ef   :  { %1682 = vst [vmem:[#allocation17 + $0x18] sm:$0xff] %v1680_v63  ;;  %v1810_v42 = vpack.c.bf16 %v4453_v26, %v4453_v26  ;;  %1932 = vmatprep.subr.bf16.mxu0 %v4091_v24  ;;  %2932 = vmatprep.subr.bf16.mxu1 %v4718_v21  ;;  %v4746_v24 = vld [vmem:[#allocation25_spill] sm:$0xff] }
 0x5f1   :  { %1844 = vmatmul.mubr.bf16.vlgmr.msra.gmra.mrb[44].mxu0 %v1810_v42  ;;  %2929 = vmatmul.mubr.bf16.vlgmr.msra.gmra.mrb[44].mxu1 %v1810_v42 }
 0x5f2   :  { %1933 = vmatpush1.bf16.msra.mxu0 %v4095_v4  ;;  %2933 = vmatpush3.bf16.msra.mxu1 %v4204_v46  ;;  %v4747_v4 = vld [vmem:[#allocation32_spill] sm:$0xff] }
 0x5f3   :  { %1934 = vmatprep.subr.bf16.mxu0 %v4099_v37  ;;  %2934 = vmatprep.subr.bf16.mxu1 %v4718_v21  ;;  %v4748_v37 = vld [vmem:[#allocation29_spill] sm:$0xff] }
 0x5f4   :  { %1964 = vmatprep.mubr.bf16.mxu0 %v4719_v22  ;;  %2948 = vmatprep.mubr.msk.bf16.mxu1 %vm3541_vm0, %v4718_v21 }
 0x5f6   :  { %1935 = vmatpush1.bf16.msra.mxu0 %v4106_v6  ;;  %2935 = vmatpush3.bf16.msra.mxu1 %v4213_v47  ;;  %v4749_v6 = vld [vmem:[#allocation26_spill] sm:$0xff] }
 0x5f7   :  { %1936 = vmatprep.subr.bf16.mxu0 %v4110_v49  ;;  %2936 = vmatprep.subr.bf16.mxu1 %v4718_v21  ;;  %v4750_v49 = vld [vmem:[#allocation27_spill] sm:$0xff] }
 0x5fa   :  { %1937 = vmatpush1.bf16.msra.mxu0 %v4114_v9  ;;  %2937 = vmatpush3.bf16.msra.mxu1 %v4219_v48  ;;  %v4751_v9 = vld [vmem:[#allocation30_spill] sm:$0xff] }
 0x5fb   :  { %1938 = vmatprep.subr.bf16.mxu0 %v4118_v45  ;;  %2938 = vmatprep.subr.bf16.mxu1 %v4718_v21  ;;  %v4752_v45 = vld [vmem:[#allocation28_spill] sm:$0xff] }
 0x5fe   :  { %1939 = vmatpush1.bf16.msra.mxu0 %v4224_v50  ;;  %2939 = vmatpush3.bf16.msra.mxu1 %v4227_v51 }
 0x5ff   :  { %1940 = vmatprep.subr.bf16.mxu0 %v4230_v52  ;;  %2940 = vmatprep.subr.bf16.mxu1 %v4718_v21 }
 0x602   :  { %1941 = vmatpush1.bf16.msra.mxu0 %v4234_v54  ;;  %2941 = vmatpush3.bf16.msra.mxu1 %v4237_v55 }
 0x603   :  { %1942 = vmatprep.subr.bf16.mxu0 %v4746_v24  ;;  %2942 = vmatprep.subr.bf16.mxu1 %v4718_v21 }
 0x606   :  { %1943 = vmatpush1.bf16.msra.mxu0 %v4747_v4  ;;  %2943 = vmatpush3.bf16.msra.mxu1 %v4748_v37 }
 0x607   :  { %1944 = vmatprep.subr.bf16.mxu0 %v4749_v6  ;;  %2944 = vmatprep.subr.bf16.mxu1 %v4718_v21 }
 0x60a   :  { %1945 = vmatpush1.bf16.msra.mxu0 %v4750_v49  ;;  %2945 = vmatpush3.bf16.msra.mxu1 %v4751_v9 }
 0x60b   :  { %1946 = vmatprep.subr.bf16.mxu0 %v4752_v45  ;;  %2946 = vmatprep.subr.bf16.mxu1 %v4718_v21 }
 0x60e   :  { %1947 = vmatpush1.bf16.msra.mxu0 %v4753_v36  ;;  %2947 = vmatpush3.bf16.msra.mxu1 %v4754_v10  ;;  %v4756_v36 = vld [vmem:[#allocation35_spill] sm:$0xff] }
 0x60f   :  { %2053 = vmatprep.subr.bf16.mxu0 %v4755_v17  ;;  %2952 = vmatprep.subr.bf16.mxu1 %v4718_v21  ;;  %v1805_v17 = vld [vmem:[#allocation7 + $0x18] sm:$0xff]  ;;  %v1688_v45 = vunpack.c.h.bf16 %v4756_v36 }
 0x610   :  { %v1808_v36 = vunpack.c.h.bf16 %v1805_v17 }
 0x6a4   :  { %v1724_v15 = vpop.f32.mrb[40].mxu0  ;;  %v1765_v13 = vpop.f32.mrb[40].mxu1 }
 0x6a5   :  { %v1771_v16 = vadd.f32 %v1724_v15, %v1686_v57  ;;  %v1726_v23 = vpop.f32.mrb[41].mxu0  ;;  %v2910_v2 = vpop.f32.mrb[41].mxu1  ;;  %v4757_v57 = vld [vmem:[#allocation36_spill] sm:$0xff] }
 0x6a6   :  { %v1728_v14 = vpop.f32.mrb[42].mxu0  ;;  %v1768_v38 = vpop.f32.mrb[42].mxu1  ;;  %v1778_v43 = vadd.f32 %v1726_v23, %v1687_v61  ;;  %v1785_v15 = vadd.f32 %v4757_v57, %v1765_v13 }
 0x6a7   :  { %v2524_v0 = vmul.f32 -1.442695, %v1771_v16  ;;  %v1729_v40 = vpop.f32.mrb[43].mxu0  ;;  %v2911_v53 = vpop.f32.mrb[43].mxu1  ;;  %v1807_v38 = vunpack.c.l.bf16 %v1805_v17 }
 0x6a8   :  { %v2525_v32 = vmul.f32 -1.442695, %v1778_v43 }
 0x6a9   :  { %3196 = vpow2.f32 %v2524_v0 }
 0x6aa   :  { %3198 = vpow2.f32 %v2525_v32 }
 0x6b3   :  { %v3197_v63 = vpop.eup %3196 }
 0x6b4   :  { %v1775_v42 = vadd.f32 1.0, %v3197_v63  ;;  %v3199_v10 = vpop.eup %3198 }
 0x6b5   :  { %v1782_v40 = vadd.f32 1.0, %v3199_v10 }
 0x6b6   :  { %3200 = vrcp.f32 %v1775_v42 }
 0x6c0   :  { %v3201_v2 = vpop.eup %3200 }
 0x6c1   :  { %v1786_v14 = vmul.f32 %v3201_v2, %v1785_v15 }
 0x6c3   :  { %v1787_v16 = vadd.f32 %v1786_v14, %v1688_v45 }
 0x6c4   :  { %v1845_v53 = vpop.f32.mrb[44].mxu0  ;;  %v1886_v0 = vpop.f32.mrb[44].mxu1 }
 0x6c5   :  { %3202 = vtanh.f32 %v1787_v16  ;;  %v1892_v58 = vadd.f32 %v1845_v53, %v1807_v38  ;;  %v1847_v23 = vpop.f32.mrb[45].mxu0  ;;  %v2930_v61 = vpop.f32.mrb[45].mxu1 }
 0x6c6   :  { %v1849_v43 = vpop.f32.mrb[46].mxu0  ;;  %v1889_v32 = vpop.f32.mrb[46].mxu1  ;;  %3204 = vrcp.f32 %v1782_v40  ;;  %v1899_v13 = vadd.f32 %v1847_v23, %v1808_v36 }
 0x6c7   :  { %v2526_v63 = vmul.f32 -1.442695, %v1892_v58  ;;  %v1850_v42 = vpop.f32.mrb[47].mxu0  ;;  %v2931_v9 = vpop.f32.mrb[47].mxu1 }
 0x6c8   :  { %v2527_v10 = vmul.f32 -1.442695, %v1899_v13  ;;  %v1798_v16 = vpop.permute.xlu0 %1797  ;;  %v1919_v32 = vpop.permute.xlu1 %1918 }
 0x6c9   :  { %3206 = vpow2.f32 %v2526_v63  ;;  %vm1799_vm6 = vcmp.eq.s32.totalorder %v1798_v16, 1  ;;  %vm1920_vm7 = vcmp.eq.s32.totalorder %v1919_v32, 1 }
 0x6ca   :  { %3208 = vpow2.f32 %v2527_v10  ;;  %v3308_v10 = vld [vmem:[#allocation9 + $0x1c] ss:$12 sps:$4 sm:$0xff]  }
 0x6cf   :  { %v3203_v57 = vpop.eup %3202 }
 0x6d0   :  { %v1789_v15 = vsub.f32 %v4408_v20, %v3203_v57  ;;  %v3205_v45 = vpop.eup %3204 }
 0x6d2   :  { %v1790_v2 = vmul.f32 %v3205_v45, %v1789_v15  ;;  %v3306_v15 = vld [vmem:[#allocation9 + $0x4] ss:$12 sps:$4 sm:$0xff]   ;;  %v3307_v45 = vld [vmem:[#allocation9] ss:$12 sps:$4 sm:$0xff]  }
 0x6d3   :  { %v3207_v14 = vpop.eup %3206 }
 0x6d4   :  { %v1896_v38 = vadd.f32 1.0, %v3207_v14  ;;  %v1791_v53 = vadd.f32 %v3203_v57, %v1790_v2  ;;  %v1809_v57 = vunpack.c.l.bf16 %v4416_v12  ;;  %v3310_v2 = vld [vmem:[#allocation9 + $0x34] ss:$12 sps:$4 sm:$0xff]   ;;  %v3311_v14 = vld [vmem:[#allocation9 + $0x30] ss:$12 sps:$4 sm:$0xff]  }
 0x6d6   :  { %3210 = vrcp.f32 %v1896_v38  ;;  %v4498_v40 = vsel %vm1799_vm6, %v1791_v53, %v4408_v20  ;;  %v1801_v9 = vsel %vm1799_vm6, %v1791_v53, 0.0  ;;  %v3209_v20 = vpop.eup %3208 }
 0x6d7   :  { %1803 = vst [vmem:[#allocation16 + $0x28] sm:$0xff] %v1801_v9  ;;  %v1931_v17 = vpack.c.bf16 %v4498_v40, %v4498_v40  ;;  %v1903_v61 = vadd.f32 1.0, %v3209_v20 }
 0x6d9   :  { %1965 = vmatmul.mubr.bf16.vlgmr.msra.gmra.mrb[48].mxu0 %v1931_v17  ;;  %2949 = vmatmul.mubr.bf16.vlgmr.msra.gmra.mrb[48].mxu1 %v1931_v17 }
 0x6da   :  { %2054 = vmatpush1.bf16.msra.mxu0 %v4152_v1  ;;  %2953 = vmatpush3.bf16.msra.mxu1 %v4283_v31  ;;  %v1906_v1 = vadd.f32 %v4424_v41, %v1886_v0 }
 0x6db   :  { %2055 = vmatprep.subr.bf16.mxu0 %v4156_v60  ;;  %2954 = vmatprep.subr.bf16.mxu1 %v4718_v21 }
 0x6dc   :  { %2085 = vmatprep.mubr.bf16.mxu0 %v4719_v22  ;;  %2968 = vmatprep.mubr.msk.bf16.mxu1 %vm3541_vm0, %v4718_v21 }
 0x6de   :  { %2056 = vmatpush1.bf16.msra.mxu0 %v4165_v28  ;;  %2955 = vmatpush3.bf16.msra.mxu1 %v4292_v29 }
 0x6df   :  { %2057 = vmatprep.subr.bf16.mxu0 %v4297_v39  ;;  %2956 = vmatprep.subr.bf16.mxu1 %v4718_v21 }
 0x6e0   :  { %v3211_v60 = vpop.eup %3210 }
 0x6e1   :  { %v1907_v58 = vmul.f32 %v3211_v60, %v1906_v1 }
 0x6e2   :  { %2058 = vmatpush1.bf16.msra.mxu0 %v4301_v56  ;;  %2957 = vmatpush3.bf16.msra.mxu1 %v4304_v18 }
 0x6e3   :  { %v1908_v23 = vadd.f32 %v1907_v58, %v1809_v57  ;;  %2059 = vmatprep.subr.bf16.mxu0 %v4307_v8  ;;  %2958 = vmatprep.subr.bf16.mxu1 %v4718_v21 }
 0x6e5   :  { %3212 = vtanh.f32 %v1908_v23  ;;  %v4573_v23 = vld [vmem:[#allocation4 + $0x50] ss:$12 sps:$4 sm:$0xff]  }
 0x6e6   :  { %2060 = vmatpush1.bf16.msra.mxu0 %v4311_v19  ;;  %2959 = vmatpush3.bf16.msra.mxu1 %v4314_v44  ;;  %3214 = vrcp.f32 %v1903_v61  ;;  %v2047_v61 = vld [vmem:[#allocation7 + $0xc] sm:$0xff] }
 0x6e7   :  { %2061 = vmatprep.subr.bf16.mxu0 %v4317_v3  ;;  %2960 = vmatprep.subr.bf16.mxu1 %v4718_v21 }
 0x6ea   :  { %2062 = vmatpush1.bf16.msra.mxu0 %v4321_v62  ;;  %2961 = vmatpush3.bf16.msra.mxu1 %v4324_v7 }
 0x6eb   :  { %2063 = vmatprep.subr.bf16.mxu0 %v4327_v25  ;;  %2962 = vmatprep.subr.bf16.mxu1 %v4718_v21 }
 0x6ee   :  { %2064 = vmatpush1.bf16.msra.mxu0 %v4331_v30  ;;  %2963 = vmatpush3.bf16.msra.mxu1 %v4334_v59 }
 0x6ef   :  { %v3213_v28 = vpop.eup %3212  ;;  %2065 = vmatprep.subr.bf16.mxu0 %v4337_v27  ;;  %2964 = vmatprep.subr.bf16.mxu1 %v4718_v21 }
 0x6f0   :  { %v1910_v12 = vsub.f32 %v4453_v26, %v3213_v28  ;;  %v3215_v0 = vpop.eup %3214 }
 0x6f2   :  { %v1911_v43 = vmul.f32 %v3215_v0, %v1910_v12  ;;  %2066 = vmatpush1.bf16.msra.mxu0 %v4342_v34  ;;  %2965 = vmatpush3.bf16.msra.mxu1 %v4345_v5  ;;  %v1930_v12 = vunpack.c.l.bf16 %v4573_v23  ;;  %v4763_v0 = vld [vmem:[#allocation36_spill] sm:$0xff] }
 0x6f3   :  { %2067 = vmatprep.subr.bf16.mxu0 %v4348_v35  ;;  %2966 = vmatprep.subr.bf16.mxu1 %v4718_v21 }
 0x6f4   :  { %v1912_v63 = vadd.f32 %v3213_v28, %v1911_v43 }
 0x6f6   :  { %2068 = vmatpush1.bf16.msra.mxu0 %v4352_v11  ;;  %2967 = vmatpush3.bf16.msra.mxu1 %v4355_v33  ;;  %v4539_v42 = vsel %vm1920_vm7, %v1912_v63, %v4453_v26  ;;  %v1922_v36 = vsel %vm1920_vm7, %v1912_v63, 0.0  ;;  %v3309_v26 = vld [vmem:[#allocation9 + $0x18] ss:$12 sps:$4 sm:$0xff]  }
 0x6f7   :  { %1924 = vst [vmem:[#allocation17 + $0x10] sm:$0xff] %v1922_v36  ;;  %v2052_v13 = vpack.c.bf16 %v4539_v42, %v4539_v42  ;;  %2174 = vmatprep.subr.bf16.mxu0 %v3306_v15  ;;  %2972 = vmatprep.subr.bf16.mxu1 %v4718_v21  ;;  %v2049_v36 = vunpack.c.l.bf16 %v2047_v61 }
 0x6f9   :  { %2086 = vmatmul.mubr.bf16.vlgmr.msra.gmra.mrb[52].mxu0 %v2052_v13  ;;  %2969 = vmatmul.mubr.bf16.vlgmr.msra.gmra.mrb[52].mxu1 %v2052_v13 }
 0x6fa   :  { %2175 = vmatpush1.bf16.msra.mxu0 %v3307_v45  ;;  %2973 = vmatpush3.bf16.msra.mxu1 %v4204_v46  ;;  %v3312_v46 = vld [vmem:[#allocation9 + $0x4c] ss:$12 sps:$4 sm:$0xff]  }
 0x6fb   :  { %2176 = vmatprep.subr.bf16.mxu0 %v3308_v10  ;;  %2974 = vmatprep.subr.bf16.mxu1 %v4718_v21 }
 0x6fc   :  { %2206 = vmatprep.mubr.bf16.mxu0 %v4719_v22  ;;  %2988 = vmatprep.mubr.msk.bf16.mxu1 %vm3541_vm0, %v4718_v21 }
 0x6fe   :  { %2177 = vmatpush1.bf16.msra.mxu0 %v3309_v26  ;;  %2975 = vmatpush3.bf16.msra.mxu1 %v4213_v47  ;;  %v4758_v47 = vld [vmem:[#allocation30_spill] sm:$0xff] }
 0x6ff   :  { %2178 = vmatprep.subr.bf16.mxu0 %v3310_v2  ;;  %2976 = vmatprep.subr.bf16.mxu1 %v4718_v21 }
 0x702   :  { %2179 = vmatpush1.bf16.msra.mxu0 %v3311_v14  ;;  %2977 = vmatpush3.bf16.msra.mxu1 %v4219_v48  ;;  %v4759_v48 = vld [vmem:[#allocation28_spill] sm:$0xff] }
 0x703   :  { %2180 = vmatprep.subr.bf16.mxu0 %v3312_v46  ;;  %2978 = vmatprep.subr.bf16.mxu1 %v4718_v21 }
 0x706   :  { %2181 = vmatpush1.bf16.msra.mxu0 %v4224_v50  ;;  %2979 = vmatpush3.bf16.msra.mxu1 %v4227_v51  ;;  %v4760_v50 = vld [vmem:[#allocation31_spill] sm:$0xff]  ;;  %v4761_v51 = vld [vmem:[#allocation33_spill] sm:$0xff] }
 0x707   :  { %2182 = vmatprep.subr.bf16.mxu0 %v4230_v52  ;;  %2980 = vmatprep.subr.bf16.mxu1 %v4718_v21  ;;  %v4762_v52 = vld [vmem:[#allocation34_spill] sm:$0xff] }
 0x70a   :  { %2183 = vmatpush1.bf16.msra.mxu0 %v4234_v54  ;;  %2981 = vmatpush3.bf16.msra.mxu1 %v4237_v55  ;;  %v1926_v54 = vld [vmem:[#allocation4 + $0x48] sm:$0xff] }
 0x70b   :  { %2184 = vmatprep.subr.bf16.mxu0 %v4746_v24  ;;  %2982 = vmatprep.subr.bf16.mxu1 %v4718_v21  ;;  %v1928_v55 = vunpack.c.l.bf16 %v1926_v54  ;;  %v1929_v20 = vunpack.c.h.bf16 %v1926_v54 }
 0x70e   :  { %2185 = vmatpush1.bf16.msra.mxu0 %v4747_v4  ;;  %2983 = vmatpush3.bf16.msra.mxu1 %v4748_v37 }
 0x70f   :  { %2186 = vmatprep.subr.bf16.mxu0 %v4749_v6  ;;  %2984 = vmatprep.subr.bf16.mxu1 %v4718_v21 }
 0x712   :  { %2187 = vmatpush1.bf16.msra.mxu0 %v4750_v49  ;;  %2985 = vmatpush3.bf16.msra.mxu1 %v4758_v47 }
 0x713   :  { %2188 = vmatprep.subr.bf16.mxu0 %v4759_v48  ;;  %2986 = vmatprep.subr.bf16.mxu1 %v4718_v21 }
 0x716   :  { %2189 = vmatpush1.bf16.msra.mxu0 %v4760_v50  ;;  %2987 = vmatpush3.bf16.msra.mxu1 %v4761_v51 }
 0x717   :  { %2294 = vmatprep.subr.bf16.mxu0 %v4762_v52  ;;  %2992 = vmatprep.subr.bf16.mxu1 %v4718_v21  ;;  %v2050_v52 = vunpack.c.h.bf16 %v2047_v61 }
 0x7ac   :  { %v1966_v24 = vpop.f32.mrb[48].mxu0  ;;  %v2007_v4 = vpop.f32.mrb[48].mxu1 }
 0x7ad   :  { %v2013_v37 = vadd.f32 %v1966_v24, %v1928_v55  ;;  %v1968_v6 = vpop.f32.mrb[49].mxu0  ;;  %v2950_v49 = vpop.f32.mrb[49].mxu1  ;;  %v2027_v43 = vadd.f32 %v4763_v0, %v2007_v4 }
 0x7ae   :  { %v1970_v16 = vpop.f32.mrb[50].mxu0  ;;  %v2010_v38 = vpop.f32.mrb[50].mxu1  ;;  %v2020_v57 = vadd.f32 %v1968_v6, %v1929_v20 }
 0x7af   :  { %v2528_v53 = vmul.f32 -1.442695, %v2013_v37  ;;  %v1971_v9 = vpop.f32.mrb[51].mxu0  ;;  %v2951_v17 = vpop.f32.mrb[51].mxu1 }
 0x7b0   :  { %v2529_v1 = vmul.f32 -1.442695, %v2020_v57  ;;  %v2040_v16 = vpop.permute.xlu0 %2039  ;;  %v3313_v57 = vld [vmem:[#allocation10] ss:$12 sps:$4 sm:$0xff]  }
 0x7b1   :  { %3216 = vpow2.f32 %v2528_v53  ;;  %vm2041_vm8 = vcmp.eq.s32.totalorder %v2040_v16, 1 }
 0x7b2   :  { %3218 = vpow2.f32 %v2529_v1  ;;  %v3314_v1 = vld [vmem:[#allocation10 + $0x1c] ss:$12 sps:$4 sm:$0xff]  }
 0x7bb   :  { %v3217_v60 = vpop.eup %3216 }
 0x7bc   :  { %v2017_v58 = vadd.f32 1.0, %v3217_v60  ;;  %v3219_v28 = vpop.eup %3218  ;;  %v4585_v60 = vld [vmem:[#allocation7 + $0x8] ss:$12 sps:$4 sm:$0xff]  }
 0x7bd   :  { %v2024_v15 = vadd.f32 1.0, %v3219_v28  ;;  %v2051_v61 = vunpack.c.h.bf16 %v4585_v60 }
 0x7be   :  { %3220 = vrcp.f32 %v2017_v58 }
 0x7c8   :  { %v3221_v32 = vpop.eup %3220 }
 0x7c9   :  { %v2028_v63 = vmul.f32 %v3221_v32, %v2027_v43 }
 0x7cb   :  { %v2029_v13 = vadd.f32 %v2028_v63, %v1930_v12 }
 0x7cc   :  { %v2087_v45 = vpop.f32.mrb[52].mxu0  ;;  %v2128_v10 = vpop.f32.mrb[52].mxu1 }
 0x7cd   :  { %3222 = vtanh.f32 %v2029_v13  ;;  %v2134_v26 = vadd.f32 %v2087_v45, %v2049_v36  ;;  %v2089_v2 = vpop.f32.mrb[53].mxu0  ;;  %v2970_v14 = vpop.f32.mrb[53].mxu1  ;;  %v2288_v45 = vld [vmem:[#allocation7] sm:$0xff] }
 0x7ce   :  { %v2091_v46 = vpop.f32.mrb[54].mxu0  ;;  %v2131_v47 = vpop.f32.mrb[54].mxu1  ;;  %3224 = vrcp.f32 %v2024_v15  ;;  %v2141_v54 = vadd.f32 %v2089_v2, %v2050_v52 }
 0x7cf   :  { %v2530_v48 = vmul.f32 -1.442695, %v2134_v26  ;;  %v2092_v50 = vpop.f32.mrb[55].mxu0  ;;  %v2971_v51 = vpop.f32.mrb[55].mxu1  ;;  %v2172_v26 = vunpack.c.h.bf16 %v4573_v23  ;;  %v2290_v47 = vunpack.c.l.bf16 %v2288_v45  ;;  %v2291_v23 = vunpack.c.h.bf16 %v2288_v45 }
 0x7d0   :  { %v2531_v37 = vmul.f32 -1.442695, %v2141_v54 }
 0x7d1   :  { %3226 = vpow2.f32 %v2530_v48 }
 0x7d2   :  { %3228 = vpow2.f32 %v2531_v37 }
 0x7d7   :  { %v3223_v55 = vpop.eup %3222 }
 0x7d8   :  { %v2031_v24 = vsub.f32 %v4498_v40, %v3223_v55  ;;  %v3225_v4 = vpop.eup %3224 }
 0x7da   :  { %v2032_v6 = vmul.f32 %v3225_v4, %v2031_v24 }
 0x7db   :  { %v3227_v49 = vpop.eup %3226 }
 0x7dc   :  { %v2138_v38 = vadd.f32 1.0, %v3227_v49  ;;  %v2033_v53 = vadd.f32 %v3223_v55, %v2032_v6  ;;  %v3229_v58 = vpop.eup %3228 }
 0x7dd   :  { %v2145_v43 = vadd.f32 1.0, %v3229_v58 }
 0x7de   :  { %3230 = vrcp.f32 %v2138_v38  ;;  %v4579_v9 = vsel %vm2041_vm8, %v2033_v53, %v4498_v40  ;;  %v2043_v17 = vsel %vm2041_vm8, %v2033_v53, 0.0  ;;  %v3315_v40 = vld [vmem:[#allocation10 + $0x18] ss:$12 sps:$4 sm:$0xff]  }
 0x7df   :  { %2045 = vst [vmem:[#allocation16 + $0x30] sm:$0xff] %v2043_v17  ;;  %v2173_v20 = vpack.c.bf16 %v4579_v9, %v4579_v9 }
 0x7e1   :  { %2207 = vmatmul.mubr.bf16.vlgmr.msra.gmra.mrb[56].mxu0 %v2173_v20  ;;  %2989 = vmatmul.mubr.bf16.vlgmr.msra.gmra.mrb[56].mxu1 %v2173_v20 }
 0x7e2   :  { %2295 = vmatpush1.bf16.msra.mxu0 %v3313_v57  ;;  %2993 = vmatpush3.bf16.msra.mxu1 %v4283_v31  ;;  %v2148_v31 = vadd.f32 %v4424_v41, %v2128_v10  ;;  %v2282_v57 = vpop.permute.xlu0 %2281 }
 0x7e3   :  { %2296 = vmatprep.subr.bf16.mxu0 %v3314_v1  ;;  %2994 = vmatprep.subr.bf16.mxu1 %v4718_v21  ;;  %vm2283_vm9 = vcmp.eq.s32.totalorder %v2282_v57, 1 }
 0x7e4   :  { %2326 = vmatprep.mubr.bf16.mxu0 %v4719_v22  ;;  %3008 = vmatprep.mubr.msk.bf16.mxu1 %vm3541_vm0, %v4718_v21 }
 0x7e6   :  { %2297 = vmatpush1.bf16.msra.mxu0 %v3315_v40  ;;  %2995 = vmatpush3.bf16.msra.mxu1 %v4292_v29 }
 0x7e7   :  { %2298 = vmatprep.subr.bf16.mxu0 %v4297_v39  ;;  %2996 = vmatprep.subr.bf16.mxu1 %v4718_v21 }
 0x7e8   :  { %v3231_v28 = vpop.eup %3230 }
 0x7e9   :  { %v2149_v12 = vmul.f32 %v3231_v28, %v2148_v31 }
 0x7ea   :  { %2299 = vmatpush1.bf16.msra.mxu0 %v4301_v56  ;;  %2997 = vmatpush3.bf16.msra.mxu1 %v4304_v18 }
 0x7eb   :  { %v2150_v22 = vadd.f32 %v2149_v12, %v2051_v61  ;;  %2300 = vmatprep.subr.bf16.mxu0 %v4307_v8  ;;  %2998 = vmatprep.subr.bf16.mxu1 %v4718_v21  ;;  %v2161_v8 = vpop.permute.xlu1 %2160 }
 0x7ec   :  { %vm2162_vm0 = vcmp.eq.s32.totalorder %v2161_v8, 1 }
 0x7ed   :  { %3232 = vtanh.f32 %v2150_v22 }
 0x7ee   :  { %2301 = vmatpush1.bf16.msra.mxu0 %v4311_v19  ;;  %2999 = vmatpush3.bf16.msra.mxu1 %v4314_v44  ;;  %3234 = vrcp.f32 %v2145_v43 }
 0x7ef   :  { %2302 = vmatprep.subr.bf16.mxu0 %v4317_v3  ;;  %3000 = vmatprep.subr.bf16.mxu1 %v4718_v21 }
 0x7f2   :  { %2303 = vmatpush1.bf16.msra.mxu0 %v4321_v62  ;;  %3001 = vmatpush3.bf16.msra.mxu1 %v4324_v7  ;;  %v2168_v7 = vld [vmem:[#allocation4 + $0x54] sm:$0xff] }
 0x7f3   :  { %2304 = vmatprep.subr.bf16.mxu0 %v4327_v25  ;;  %3002 = vmatprep.subr.bf16.mxu1 %v4718_v21  ;;  %v2170_v25 = vunpack.c.l.bf16 %v2168_v7  ;;  %v2171_v32 = vunpack.c.h.bf16 %v2168_v7 }
 0x7f6   :  { %2305 = vmatpush1.bf16.msra.mxu0 %v4331_v30  ;;  %3003 = vmatpush3.bf16.msra.mxu1 %v4334_v59 }
 0x7f7   :  { %v3233_v29 = vpop.eup %3232  ;;  %2306 = vmatprep.subr.bf16.mxu0 %v4337_v27  ;;  %3004 = vmatprep.subr.bf16.mxu1 %v4718_v21 }
 0x7f8   :  { %v2152_v39 = vsub.f32 %v4539_v42, %v3233_v29  ;;  %v3235_v56 = vpop.eup %3234 }
 0x7fa   :  { %2307 = vmatpush1.bf16.msra.mxu0 %v4342_v34  ;;  %3005 = vmatpush3.bf16.msra.mxu1 %v4345_v5  ;;  %v2153_v18 = vmul.f32 %v3235_v56, %v2152_v39 }
 0x7fb   :  { %2308 = vmatprep.subr.bf16.mxu0 %v4348_v35  ;;  %3006 = vmatprep.subr.bf16.mxu1 %v4718_v21 }
 0x7fc   :  { %v2154_v19 = vadd.f32 %v3233_v29, %v2153_v18 }
 0x7fe   :  { %2309 = vmatpush1.bf16.msra.mxu0 %v4352_v11  ;;  %3007 = vmatpush3.bf16.msra.mxu1 %v4355_v33  ;;  %v4619_v44 = vsel %vm2162_vm0, %v2154_v19, %v4539_v42  ;;  %v2164_v3 = vsel %vm2162_vm0, %v2154_v19, 0.0 }
 0x7ff   :  { %2166 = vst [vmem:[#allocation17 + $0x8] sm:$0xff] %v2164_v3  ;;  %v2293_v62 = vpack.c.bf16 %v4619_v44, %v4619_v44 }
 0x801   :  { %2327 = vmatmul.mubr.bf16.vlgmr.msra.gmra.mrb[60].mxu0 %v2293_v62  ;;  %3009 = vmatmul.mubr.bf16.vlgmr.msra.gmra.mrb[60].mxu1 %v2293_v62 }
 0x8b4   :  { %v2208_v21 = vpop.f32.mrb[56].mxu0  ;;  %v2249_v30 = vpop.f32.mrb[56].mxu1 }
 0x8b5   :  { %v2255_v59 = vadd.f32 %v2208_v21, %v2170_v25  ;;  %v2210_v27 = vpop.f32.mrb[57].mxu0  ;;  %v2990_v34 = vpop.f32.mrb[57].mxu1  ;;  %v2269_v2 = vadd.f32 %v4763_v0, %v2249_v30 }
 0x8b6   :  { %v2212_v5 = vpop.f32.mrb[58].mxu0  ;;  %v2252_v35 = vpop.f32.mrb[58].mxu1  ;;  %v2262_v63 = vadd.f32 %v2210_v27, %v2171_v32 }
 0x8b7   :  { %v2532_v11 = vmul.f32 -1.442695, %v2255_v59  ;;  %v2213_v33 = vpop.f32.mrb[59].mxu0  ;;  %v2991_v42 = vpop.f32.mrb[59].mxu1 }
 0x8b8   :  { %v2533_v36 = vmul.f32 -1.442695, %v2262_v63 }
 0x8b9   :  { %3236 = vpow2.f32 %v2532_v11 }
 0x8ba   :  { %3238 = vpow2.f32 %v2533_v36 }
 0x8c3   :  { %v3237_v13 = vpop.eup %3236 }
 0x8c4   :  { %v2259_v15 = vadd.f32 1.0, %v3237_v13  ;;  %v3239_v10 = vpop.eup %3238 }
 0x8c5   :  { %v2266_v50 = vadd.f32 1.0, %v3239_v10 }
 0x8c6   :  { %3240 = vrcp.f32 %v2259_v15 }
 0x8d0   :  { %v3241_v14 = vpop.eup %3240 }
 0x8d1   :  { %v2270_v46 = vmul.f32 %v3241_v14, %v2269_v2 }
 0x8d3   :  { %v2271_v48 = vadd.f32 %v2270_v46, %v2172_v26 }
 0x8d4   :  { %v2328_v51 = vpop.f32.mrb[60].mxu0  ;;  %v2369_v52 = vpop.f32.mrb[60].mxu1 }
 0x8d5   :  { %3242 = vtanh.f32 %v2271_v48  ;;  %v2375_v54 = vadd.f32 %v2328_v51, %v2290_v47  ;;  %v2330_v55 = vpop.f32.mrb[61].mxu0  ;;  %v3010_v24 = vpop.f32.mrb[61].mxu1 }
 0x8d6   :  { %v2332_v4 = vpop.f32.mrb[62].mxu0  ;;  %v2372_v37 = vpop.f32.mrb[62].mxu1  ;;  %3244 = vrcp.f32 %v2266_v50  ;;  %v2382_v0 = vadd.f32 %v2330_v55, %v2291_v23 }
 0x8d7   :  { %v2534_v6 = vmul.f32 -1.442695, %v2375_v54  ;;  %v2333_v49 = vpop.f32.mrb[63].mxu0  ;;  %v3011_v16 = vpop.f32.mrb[63].mxu1 }
 0x8d8   :  { %v2535_v20 = vmul.f32 -1.442695, %v2382_v0 }
 0x8d9   :  { %3246 = vpow2.f32 %v2534_v6 }
 0x8da   :  { %3248 = vpow2.f32 %v2535_v20 }
 0x8df   :  { %v3243_v38 = vpop.eup %3242 }
 0x8e0   :  { %v2273_v53 = vsub.f32 %v4579_v9, %v3243_v38  ;;  %v3245_v17 = vpop.eup %3244 }
 0x8e2   :  { %v2274_v1 = vmul.f32 %v3245_v17, %v2273_v53 }
 0x8e3   :  { %v3247_v40 = vpop.eup %3246 }
 0x8e4   :  { %v2275_v58 = vadd.f32 %v3243_v38, %v2274_v1  ;;  %v2379_v61 = vadd.f32 1.0, %v3247_v40 }
 0x8e6   :  { %v2285_v31 = vsel %vm2283_vm9, %v2275_v58, 0.0  ;;  %3250 = vrcp.f32 %v2379_v61 }
 0x8e7   :  { %2287 = vst [vmem:[#allocation16 + $0x38] sm:$0xff] %v2285_v31 }
 0x8e8   :  { %3484 = shalt.err (!%p3481_p10)
}
 0x8e9   :  { %s3485_s15 = scalar_lea.hbm %s4666_s7, 1024 }
 0x8ea   :  { %p3486_p11 = scmp.ne.s32.totalorder %s4666_s7, %s3485_s15  ;;  %p3489_p12 = scmp.lt.u32.totalorder %s3485_s15, %s4666_s7 }
 0x8ec   :  { %p3491_p13 = pnand %p3489_p12, %p3486_p11 }
 0x8ee   :  { %3494 = shalt.err (!%p3491_p13)
}
 0x8ef   :  { %s3544_s14 = smov 128   ;;  %s3545_s16 = smov 8   ;;  %v3249_v9 = vpop.eup %3248  ;;  %v2292_v28 = vunpack.c.l.bf16 %v4585_v60  ;;  %v2389_v12 = vadd.f32 %v4424_v41, %v2369_v52  ;;  %v2401_v19 = vpop.permute.xlu1 %2400 }
 0x8f0   :  { %2419 = dma.vmem_to_hbm [thread:$0]  %s2414_s28, 1024, %s4666_s7, [#allocation6], %s3544_s14, %s3544_s14, %s3545_s16   ;;  %v3251_v22 = vpop.eup %3250  ;;  %v2386_v39 = vadd.f32 1.0, %v3249_v9  ;;  %vm2402_vm10 = vcmp.eq.s32.totalorder %v2401_v19, 1 }
 0x8f1   :  { %v2390_v43 = vmul.f32 %v3251_v22, %v2389_v12  ;;  %s3546_s13 = smov [#allocation17]  }
 0x8f2   :  { %s2429_s2 = sshll.u32 %s3546_s13, 4  ;;  %s2430_s2 = int_to_ptr.vmem [resolvable:$true] %s2429_s2 }
 0x8f3   :  { %v2391_v29 = vadd.f32 %v2390_v43, %v2292_v28  ;;  %s3495_s7 = scalar_lea.vmem %s2430_s2, 1024  ;;  %p3500_p1 = scmp.lt.s32.totalorder %s2430_s2, %s2430_s2 }
 0x8f4   :  { %p3496_p0 = scmp.ne.s32.totalorder %s2430_s2, %s3495_s7  ;;  %p3501_p2 = scmp.lt.s32.totalorder %s3495_s7, %s3495_s7 }
 0x8f5   :  { %3252 = vtanh.f32 %v2391_v29 }
 0x8f6   :  { %3254 = vrcp.f32 %v2386_v39  ;;  %p3502_p3 = por %p3501_p2, %p3500_p1 }
 0x8f8   :  { %p3503_p4 = pnand %p3502_p3, %p3496_p0 }
 0x8ff   :  { %v3253_v56 = vpop.eup %3252 }
 0x900   :  { %v2393_v18 = vsub.f32 %v4619_v44, %v3253_v56  ;;  %v3255_v8 = vpop.eup %3254 }
 0x902   :  { %v2394_v3 = vmul.f32 %v3255_v8, %v2393_v18 }
 0x904   :  { %v2395_v62 = vadd.f32 %v3253_v56, %v2394_v3 }
 0x906   :  { %v2404_v60 = vsel %vm2402_vm10, %v2395_v62, 0.0 }
 0x907   :  { %2405 = vst [vmem:[#allocation17] sm:$0xff] %v2404_v60 }
 0x908   :  { %3506 = shalt.err (!%p3503_p4)
}
 0x909   :  { %s3507_s18 = scalar_lea.hbm %s4667_s8, 1024 }
 0x90a   :  { %p3508_p5 = scmp.ne.s32.totalorder %s4667_s8, %s3507_s18  ;;  %p3511_p6 = scmp.lt.u32.totalorder %s3507_s18, %s4667_s8 }
 0x90c   :  { %p3513_p7 = pnand %p3511_p6, %p3508_p5 }
 0x90e   :  { %3516 = shalt.err (!%p3513_p7)
}
 0x90f   :  { %2435 = dma.vmem_to_hbm [thread:$0]  %s2430_s2, 1024, %s4667_s8, [#allocation18], %s3544_s14, %s3544_s14, %s3545_s16  }
 0x910   :  { %3525 = dma.done.wait [#allocation6], 1024  }
 0x911   :  { %3526 = vsyncadd [#allocation6], 4294966272 }
 0x912   :  { %3527 = dma.done.wait [#allocation18], 1024  }
 0x913   :  { %3528 = vsyncadd [#allocation18], 4294966272 }
 0x914   :  { %2442 = vsyncpa [#allocation5], 1 }
 0x915   :  { %2443 = vsyncpa [#allocation8], 1 }
 0x916   :  { %2444 = vsyncpa [#allocation11], 1 }
 0x917   :  { %2445 = vsyncpa [#allocation14], 1 }
 0x918   :  { %2446 = vsyncpa [#allocation6], 1 }
 0x919   :  { %2447 = vsyncpa [#allocation18], 1 }

</bundles_post_ra>
